<compile_context>
chip_gen: v5e
topology: v5e:2x2
jax: 0.10.0
libtpu: 0.0.40
codegen_flags: <defaults>
</compile_context>

<pallas_src>
import functools

import jax
import jax.numpy as jnp
import numpy as np
from jax.experimental import pallas as pl
from jax.experimental.pallas import tpu as pltpu

EPS = 1e-5
LANE = 128


# ------------------------------- small helpers ------------------------------ #

def _round_up(x, m):
    return (x + m - 1) // m * m


def _pick_tm(m, cap=512):
    """Largest multiple-of-8 divisor of m that is <= cap.

    Using an exact divisor means no tensor carries padded rows, so no kernel
    needs row masks and no wrapper-side jnp.pad copy is ever required.
    """
    # TODO(synk): pad+mask fallback for row counts that are not multiples of 8.
    assert m % 8 == 0, "row count must be a multiple of 8"
    t = min(cap, m)
    t -= t % 8
    while t > 8:
        if m % t == 0:
            return t
        t -= 8
    return 8


def _vmem_limit_bytes():
    # v5e/v6e: 128 MiB physical VMEM -> ~96 MiB scoped; v7x: 64 MiB -> ~40 MiB.
    try:
        cap = pltpu.get_tpu_info().vmem_capacity_bytes
    except Exception:
        cap = 128 * 1024 * 1024
    return int(min(96 * 1024 * 1024, max(32 * 1024 * 1024, cap - 24 * 1024 * 1024)))


VMEM_LIMIT = _vmem_limit_bytes()


def _mosaic_params(sem):
    return pltpu.CompilerParams(dimension_semantics=sem,
                                vmem_limit_bytes=VMEM_LIMIT)


def _pad2d(a, rows, cols, dtype):
    return jnp.zeros((rows, cols), dtype).at[:a.shape[0], :a.shape[1]].set(
        a.astype(dtype))


def _pad_vec(v, cols):
    return jnp.zeros((1, cols), jnp.float32).at[0, :v.shape[0]].set(v)


def _bn_scale_shift(st, g, b, inv_m):
    """Fold batch stats (rows: sum, sumsq) + affine params into per-channel
    scale/shift (single-pass variance in f32, clamped at zero)."""
    mean = st[0:1, :] * inv_m
    var = jnp.maximum(st[1:2, :] * inv_m - mean * mean, 0.0)
    scale = g * jax.lax.rsqrt(var + EPS)
    return scale, b - mean * scale


# ------------------------------ Pallas kernels ------------------------------ #
# NOTE: constant-index_map operands (weights / stats / gamma / beta) could be
# single-buffered via pipeline_mode=pl.Buffered(1) to save VMEM on v7x; left
# at the default double-buffering here for portability.

def _matmul_stats_kernel(x_ref, w_ref, y_ref, p_ref):
    """Row-tiled 1x1 conv: y = x @ w (bf16 in, f32 acc, bf16 store) plus
    per-tile partial channel sum / sumsq (reduced in the wrapper)."""
    y = jnp.dot(x_ref[...], w_ref[...], preferred_element_type=jnp.float32)
    y_ref[...] = y.astype(y_ref.dtype)
    p_ref[0:1, :] = jnp.sum(y, axis=0, keepdims=True)
    p_ref[1:2, :] = jnp.sum(y * y, axis=0, keepdims=True)


def _matmul2_stats_kernel(x_ref, w_ref, ya_ref, yb_ref, pa_ref, pb_ref, *, ca):
    """conv1 + projection-shortcut conv fused: a single matmul against the
    concatenated (K, Ca+Cb) weight (one HBM read of x, full MXU width)."""
    y = jnp.dot(x_ref[...], w_ref[...], preferred_element_type=jnp.float32)
    ya, yb = y[:, :ca], y[:, ca:]
    ya_ref[...] = ya.astype(ya_ref.dtype)
    yb_ref[...] = yb.astype(yb_ref.dtype)
    pa_ref[0:1, :] = jnp.sum(ya, axis=0, keepdims=True)
    pa_ref[1:2, :] = jnp.sum(ya * ya, axis=0, keepdims=True)
    pb_ref[0:1, :] = jnp.sum(yb, axis=0, keepdims=True)
    pb_ref[1:2, :] = jnp.sum(yb * yb, axis=0, keepdims=True)


def _conv2_bn3x3_kernel(y1_ref, st_ref, g_ref, b_ref, w_ref, y2_ref, pst_ref,
                        hp_ref, *, h, w, inv_m):
    """Direct 3x3 conv (stride 1, pad 1) for one image with bn1+ReLU fused on
    the input: the raw conv1 output is normalized in registers, written into a
    zero-halo VMEM scratch, and convolved with 3 matmuls of K=3*C (the three
    dj taps folded into K)."""
    cpm = y1_ref.shape[-1]
    scale, shift = _bn_scale_shift(st_ref[...], g_ref[...], b_ref[...], inv_m)
    act = jnp.maximum(y1_ref[...].astype(jnp.float32) * scale + shift, 0.0)

    hp_ref[...] = jnp.zeros(hp_ref.shape, hp_ref.dtype)      # zero halo
    hp_ref[1:h + 1, 1:w + 1, :] = act.astype(hp_ref.dtype)

    acc = None
    for di in range(3):
        patch = jnp.concatenate(
            [hp_ref[di:di + h, 0:w, :],
             hp_ref[di:di + h, 1:w + 1, :],
             hp_ref[di:di + h, 2:w + 2, :]], axis=-1).reshape(h * w, 3 * cpm)
        term = jnp.dot(patch, w_ref[di], preferred_element_type=jnp.float32)
        acc = term if acc is None else acc + term

    y2_ref[...] = acc.astype(y2_ref.dtype)
    pst_ref[0:1, :] = jnp.sum(acc, axis=0, keepdims=True)
    pst_ref[1:2, :] = jnp.sum(acc * acc, axis=0, keepdims=True)


def _bn_matmul_stats_kernel(y_ref, st_ref, g_ref, b_ref, w_ref, o_ref, p_ref,
                            *, inv_m):
    """conv3 (1x1) with bn2+ReLU fused on its input (no h2 round trip)."""
    scale, shift = _bn_scale_shift(st_ref[...], g_ref[...], b_ref[...], inv_m)
    hin = jnp.maximum(y_ref[...].astype(jnp.float32) * scale + shift, 0.0)
    y = jnp.dot(hin.astype(jnp.bfloat16), w_ref[...],
                preferred_element_type=jnp.float32)
    o_ref[...] = y.astype(o_ref.dtype)
    p_ref[0:1, :] = jnp.sum(y, axis=0, keepdims=True)
    p_ref[1:2, :] = jnp.sum(y * y, axis=0, keepdims=True)


def _bn_act_kernel(y_ref, st_ref, g_ref, b_ref, o_ref, *, inv_m):
    """Standalone bn+ReLU (only used by the stride!=1 im2col fallback)."""
    scale, shift = _bn_scale_shift(st_ref[...], g_ref[...], b_ref[...], inv_m)
    o_ref[...] = jnp.maximum(y_ref[...].astype(jnp.float32) * scale + shift,
                             0.0).astype(o_ref.dtype)


def _bn_add_relu_kernel(y_ref, st_ref, g_ref, b_ref, r_ref, o_ref, *, inv_m):
    """bn3 + identity residual (f32 x) + relu, fused epilogue."""
    scale, shift = _bn_scale_shift(st_ref[...], g_ref[...], b_ref[...], inv_m)
    out = y_ref[...].astype(jnp.float32) * scale + shift + r_ref[...]
    o_ref[...] = jnp.maximum(out, 0.0)


def _bn2_add_relu_kernel(y_ref, st_ref, g_ref, b_ref,
                         ys_ref, sts_ref, gs_ref, bs_ref, o_ref, *, inv_m):
    """bn3 + shortcut-bn + residual add + relu, fully fused epilogue."""
    s3, h3 = _bn_scale_shift(st_ref[...], g_ref[...], b_ref[...], inv_m)
    ss, hs = _bn_scale_shift(sts_ref[...], gs_ref[...], bs_ref[...], inv_m)
    out = (y_ref[...].astype(jnp.float32) * s3 + h3
           + ys_ref[...].astype(jnp.float32) * ss + hs)
    o_ref[...] = jnp.maximum(out, 0.0)


# ---------------------------- pallas_call wrappers --------------------------- #

def matmul_stats(x, w, *, tm):
    m, kp = x.shape
    cp = w.shape[1]
    nt = m // tm
    return pl.pallas_call(
        _matmul_stats_kernel,
        grid=(nt,),
        in_specs=[pl.BlockSpec((tm, kp), lambda i: (i, 0)),
                  pl.BlockSpec((kp, cp), lambda i: (0, 0))],          # resident
        out_specs=(pl.BlockSpec((tm, cp), lambda i: (i, 0)),
                   pl.BlockSpec((None, 2, cp), lambda i: (i, 0, 0))),
        out_shape=(jax.ShapeDtypeStruct((m, cp), jnp.bfloat16),
                   jax.ShapeDtypeStruct((nt, 2, cp), jnp.float32)),
        compiler_params=_mosaic_params(("parallel",)),
    )(x, w)


def matmul2_stats(x, w, *, ca, tm):
    m, kp = x.shape
    ctot = w.shape[1]
    cb = ctot - ca
    nt = m // tm
    kern = functools.partial(_matmul2_stats_kernel, ca=ca)
    return pl.pallas_call(
        kern,
        grid=(nt,),
        in_specs=[pl.BlockSpec((tm, kp), lambda i: (i, 0)),
                  pl.BlockSpec((kp, ctot), lambda i: (0, 0))],
        out_specs=(pl.BlockSpec((tm, ca), lambda i: (i, 0)),
                   pl.BlockSpec((tm, cb), lambda i: (i, 0)),
                   pl.BlockSpec((None, 2, ca), lambda i: (i, 0, 0)),
                   pl.BlockSpec((None, 2, cb), lambda i: (i, 0, 0))),
        out_shape=(jax.ShapeDtypeStruct((m, ca), jnp.bfloat16),
                   jax.ShapeDtypeStruct((m, cb), jnp.bfloat16),
                   jax.ShapeDtypeStruct((nt, 2, ca), jnp.float32),
                   jax.ShapeDtypeStruct((nt, 2, cb), jnp.float32)),
        compiler_params=_mosaic_params(("parallel",)),
    )(x, w)


def conv2_bn3x3(y1img, st, g, b, wcat, *, inv_m):
    """Per-image direct 3x3 (stride 1) with bn1+ReLU fused on the input."""
    n, h, w, cpm = y1img.shape
    cpo = wcat.shape[2]
    # TODO(synk): band the per-image block over output rows for very large
    # H*W*C so the working set stays inside v7x's 64 MiB VMEM.
    assert (h * w) % 8 == 0  # TODO(synk): sublane-pad path for odd spatial sizes
    kern = functools.partial(_conv2_bn3x3_kernel, h=h, w=w, inv_m=inv_m)
    return pl.pallas_call(
        kern,
        grid=(n,),
        in_specs=[pl.BlockSpec((None, h, w, cpm), lambda i: (i, 0, 0, 0)),
                  pl.BlockSpec((2, cpm), lambda i: (0, 0)),
                  pl.BlockSpec((1, cpm), lambda i: (0, 0)),
                  pl.BlockSpec((1, cpm), lambda i: (0, 0)),
                  pl.BlockSpec((3, 3 * cpm, cpo), lambda i: (0, 0, 0))],
        out_specs=(pl.BlockSpec((h * w, cpo), lambda i: (i, 0)),
                   pl.BlockSpec((None, 2, cpo), lambda i: (i, 0, 0))),
        out_shape=(jax.ShapeDtypeStruct((n * h * w, cpo), jnp.bfloat16),
                   jax.ShapeDtypeStruct((n, 2, cpo), jnp.float32)),
        scratch_shapes=[pltpu.VMEM((h + 2, w + 2, cpm), jnp.bfloat16)],
        compiler_params=_mosaic_params(("parallel",)),
    )(y1img, st, g, b, wcat)


def bn_matmul_stats(y, st, g, b, w, *, tm, inv_m):
    m, kp = y.shape
    cp = w.shape[1]
    nt = m // tm
    kern = functools.partial(_bn_matmul_stats_kernel, inv_m=inv_m)
    return pl.pallas_call(
        kern,
        grid=(nt,),
        in_specs=[pl.BlockSpec((tm, kp), lambda i: (i, 0)),
                  pl.BlockSpec((2, kp), lambda i: (0, 0)),
                  pl.BlockSpec((1, kp), lambda i: (0, 0)),
                  pl.BlockSpec((1, kp), lambda i: (0, 0)),
                  pl.BlockSpec((kp, cp), lambda i: (0, 0))],
        out_specs=(pl.BlockSpec((tm, cp), lambda i: (i, 0)),
                   pl.BlockSpec((None, 2, cp), lambda i: (i, 0, 0))),
        out_shape=(jax.ShapeDtypeStruct((m, cp), jnp.bfloat16),
                   jax.ShapeDtypeStruct((nt, 2, cp), jnp.float32)),
        compiler_params=_mosaic_params(("parallel",)),
    )(y, st, g, b, w)


def bn_act(y, st, g, b, *, tm, inv_m):
    m, cp = y.shape
    nt = m // tm
    kern = functools.partial(_bn_act_kernel, inv_m=inv_m)
    return pl.pallas_call(
        kern,
        grid=(nt,),
        in_specs=[pl.BlockSpec((tm, cp), lambda i: (i, 0)),
                  pl.BlockSpec((2, cp), lambda i: (0, 0)),
                  pl.BlockSpec((1, cp), lambda i: (0, 0)),
                  pl.BlockSpec((1, cp), lambda i: (0, 0))],
        out_specs=pl.BlockSpec((tm, cp), lambda i: (i, 0)),
        out_shape=jax.ShapeDtypeStruct((m, cp), jnp.bfloat16),
        compiler_params=_mosaic_params(("parallel",)),
    )(y, st, g, b)


def bn_add_relu(y, st, g, b, res, *, tm, inv_m):
    m, cp = y.shape
    nt = m // tm
    kern = functools.partial(_bn_add_relu_kernel, inv_m=inv_m)
    return pl.pallas_call(
        kern,
        grid=(nt,),
        in_specs=[pl.BlockSpec((tm, cp), lambda i: (i, 0)),
                  pl.BlockSpec((2, cp), lambda i: (0, 0)),
                  pl.BlockSpec((1, cp), lambda i: (0, 0)),
                  pl.BlockSpec((1, cp), lambda i: (0, 0)),
                  pl.BlockSpec((tm, cp), lambda i: (i, 0))],
        out_specs=pl.BlockSpec((tm, cp), lambda i: (i, 0)),
        out_shape=jax.ShapeDtypeStruct((m, cp), jnp.float32),
        compiler_params=_mosaic_params(("parallel",)),
    )(y, st, g, b, res)


def bn2_add_relu(y, st, g, b, ys, sts, gs, bs, *, tm, inv_m):
    m, cp = y.shape
    nt = m // tm
    kern = functools.partial(_bn2_add_relu_kernel, inv_m=inv_m)
    return pl.pallas_call(
        kern,
        grid=(nt,),
        in_specs=[pl.BlockSpec((tm, cp), lambda i: (i, 0)),
                  pl.BlockSpec((2, cp), lambda i: (0, 0)),
                  pl.BlockSpec((1, cp), lambda i: (0, 0)),
                  pl.BlockSpec((1, cp), lambda i: (0, 0)),
                  pl.BlockSpec((tm, cp), lambda i: (i, 0)),
                  pl.BlockSpec((2, cp), lambda i: (0, 0)),
                  pl.BlockSpec((1, cp), lambda i: (0, 0)),
                  pl.BlockSpec((1, cp), lambda i: (0, 0))],
        out_specs=pl.BlockSpec((tm, cp), lambda i: (i, 0)),
        out_shape=jax.ShapeDtypeStruct((m, cp), jnp.float32),
        compiler_params=_mosaic_params(("parallel",)),
    )(y, st, g, b, ys, sts, gs, bs)


# --------------------------------- JAX glue ---------------------------------- #

def im2col_3x3(x_nhwc, stride):
    """3x3, pad=1 patches -> (N*Ho*Wo, 9*C). Row order (n,i,j); col (di,dj,c)."""
    N, H, W, C = x_nhwc.shape
    xp = jnp.pad(x_nhwc, ((0, 0), (1, 1), (1, 1), (0, 0)))
    Ho = (H - 1) // stride + 1
    Wo = (W - 1) // stride + 1
    cols = []
    for di in range(3):
        for dj in range(3):
            cols.append(xp[:, di:di + stride * (Ho - 1) + 1:stride,
                           dj:dj + stride * (Wo - 1) + 1:stride, :])
    col = jnp.stack(cols, axis=-2)                 # (N, Ho, Wo, 9, C)
    return col.reshape(N * Ho * Wo, 9 * C), (N, Ho, Wo)


def bottleneck_forward(x_nchw, params, stride):
    xf = jnp.transpose(x_nchw, (0, 2, 3, 1)).astype(jnp.float32)   # NHWC, f32
    N, H, W, cin = xf.shape
    planes = params["w1"].shape[1]
    cexp = params["w3"].shape[1]
    Ho = (H - 1) // stride + 1
    Wo = (W - 1) // stride + 1
    M1, M2 = N * H * W, N * Ho * Wo
    has_proj = (stride != 1) or (cin != cexp)

    cp_in = _round_up(cin, LANE)
    cp_mid = _round_up(planes, LANE)
    cp_out = _round_up(cexp, LANE)
    tm1 = _pick_tm(M1, cap=512)        # matmul row tiles on M1-sized tensors
    tm2 = _pick_tm(M2, cap=512)        # matmul row tiles on M2-sized tensors
    tm_ew = _pick_tm(M2, cap=1024)     # larger tiles for the elementwise epilogue
    inv_m1, inv_m2 = 1.0 / M1, 1.0 / M2

    bf = jnp.bfloat16
    # lane-dense (multiple-of-128) weight / BN parameter layouts, bf16 operands
    w1p = _pad2d(params["w1"], cp_in, cp_mid, bf)
    w3p = _pad2d(params["w3"], cp_mid, cp_out, bf)
    # 3x3 weight grouped per row-tap di with the three column taps dj stacked
    # along K (so the direct conv runs 3 matmuls of K=3*C instead of 9 of K=C).
    w2 = params["w2"].astype(bf)
    w2cat = jnp.zeros((3, 3 * cp_mid, cp_mid), bf)
    for di in range(3):
        for dj in range(3):
            w2cat = w2cat.at[di, dj * cp_mid:dj * cp_mid + planes, :planes].set(
                w2[di, dj])
    g1, b1 = _pad_vec(params["g1"], cp_mid), _pad_vec(params["b1"], cp_mid)
    g2, b2 = _pad_vec(params["g2"], cp_mid), _pad_vec(params["b2"], cp_mid)
    g3, b3 = _pad_vec(params["g3"], cp_out), _pad_vec(params["b3"], cp_out)

    x2d = jnp.zeros((M1, cp_in), bf).at[:, :cin].set(
        xf.reshape(M1, cin).astype(bf))

    ys = sts = None
    if has_proj:
        wsp = _pad2d(params["ws"], cp_in, cp_out, bf)
        gs, bs = _pad_vec(params["gs"], cp_out), _pad_vec(params["bs"], cp_out)

    # ---- conv1 (1x1), fused with the projection shortcut when both consume
    #      the same rows of x (stride == 1): one wide matmul, one HBM read of x.
    if has_proj and stride == 1:
        wcat = jnp.concatenate([w1p, wsp], axis=1)
        y1, ys, p1, ps = matmul2_stats(x2d, wcat, ca=cp_mid, tm=tm1)
        st1, sts = jnp.sum(p1, axis=0), jnp.sum(ps, axis=0)
    else:
        y1, p1 = matmul_stats(x2d, w1p, tm=tm1)
        st1 = jnp.sum(p1, axis=0)
        if has_proj:      # stride != 1: shortcut reads a strided row subset of x
            xs = xf[:, ::stride, ::stride, :].reshape(M2, cin)
            xs2d = jnp.zeros((M2, cp_in), bf).at[:, :cin].set(xs.astype(bf))
            ys, ps = matmul_stats(xs2d, wsp, tm=tm2)
            sts = jnp.sum(ps, axis=0)

    # ---- conv2 (3x3, pad 1) with bn1+ReLU fused into the kernel
    if stride == 1:
        y1img = y1.reshape(N, H, W, cp_mid)            # free: no padded rows
        y2, p2 = conv2_bn3x3(y1img, st1, g1, b1, w2cat, inv_m=inv_m1)
    else:
        # TODO(synk): direct halo-windowed strided 3x3 kernel; stride != 1 falls
        # back to a separate bn pass + wrapper im2col feeding the tiled matmul.
        h1 = bn_act(y1, st1, g1, b1, tm=_pick_tm(M1, cap=1024), inv_m=inv_m1)
        col, _ = im2col_3x3(h1.reshape(N, H, W, cp_mid), stride)
        y2, p2 = matmul_stats(col, w2cat.reshape(9 * cp_mid, cp_mid), tm=tm2)
    st2 = jnp.sum(p2, axis=0)

    # ---- conv3 (1x1) with bn2+ReLU fused into the kernel
    y3, p3 = bn_matmul_stats(y2, st2, g2, b2, w3p, tm=tm2, inv_m=inv_m2)
    st3 = jnp.sum(p3, axis=0)

    # ---- bn3 (+ shortcut bn) + residual + relu, fused epilogue
    if has_proj:
        out_rows = bn2_add_relu(y3, st3, g3, b3, ys, sts, gs, bs,
                                tm=tm_ew, inv_m=inv_m2)
    else:
        if cexp == cp_out:                     # lane-aligned: zero-copy f32 residual
            x_res = xf.reshape(M2, cexp)
        else:                                  # toy channel counts: one padded copy
            x_res = jnp.zeros((M2, cp_out), jnp.float32).at[:, :cexp].set(
                xf.reshape(M2, cexp))
        out_rows = bn_add_relu(y3, st3, g3, b3, x_res, tm=tm_ew, inv_m=inv_m2)

    out = out_rows[:, :cexp].reshape(N, Ho, Wo, cexp)
    return jnp.transpose(out, (0, 3, 1, 2))            # back to NCHW


# ----------------------------- pure-JAX reference ---------------------------- #
# Mirrors the kernels' numeric policy exactly (bf16 matmul operands, bf16-
# stored conv outputs, f32 single-pass batch statistics) so the assert checks
# the Pallas tiling / fusion / indexing rather than the rounding policy.

def _bn_apply_stored(y_f32, y_stored, g, b):
    st = jnp.concatenate([jnp.sum(y_f32, axis=0, keepdims=True),
                          jnp.sum(y_f32 * y_f32, axis=0, keepdims=True)], axis=0)
    scale, shift = _bn_scale_shift(st, g[None, :], b[None, :],
                                   1.0 / y_f32.shape[0])
    return y_stored.astype(jnp.float32) * scale + shift


def bottleneck_reference(x_nchw, params, stride):
    xf = jnp.transpose(x_nchw, (0, 2, 3, 1)).astype(jnp.float32)
    N, H, W, cin = xf.shape
    planes = params["w1"].shape[1]
    cexp = params["w3"].shape[1]
    bf = jnp.bfloat16

    def dot(a, b):
        return jnp.dot(a.astype(bf), b.astype(bf),
                       preferred_element_type=jnp.float32)

    y1 = dot(xf.reshape(-1, cin), params["w1"])
    h1 = jnp.maximum(_bn_apply_stored(y1, y1.astype(bf),
                                      params["g1"], params["b1"]), 0.0).astype(bf)
    col, (_, Ho, Wo) = im2col_3x3(h1.reshape(N, H, W, planes), stride)
    y2 = dot(col, params["w2"].reshape(9 * planes, planes))
    h2 = jnp.maximum(_bn_apply_stored(y2, y2.astype(bf),
                                      params["g2"], params["b2"]), 0.0).astype(bf)
    y3 = dot(h2, params["w3"])
    if stride != 1 or cin != cexp:
        xs = xf[:, ::stride, ::stride, :].reshape(-1, cin)
        ysc = dot(xs, params["ws"])
        sc = _bn_apply_stored(ysc, ysc.astype(bf), params["gs"], params["bs"])
    else:
        sc = xf.reshape(-1, cexp)
    out = jnp.maximum(_bn_apply_stored(y3, y3.astype(bf),
                                       params["g3"], params["b3"]) + sc, 0.0)
    return jnp.transpose(out.reshape(N, Ho, Wo, cexp), (0, 3, 1, 2))


# --------------------------------- parameters -------------------------------- #

def init_params(key, in_planes, planes, expansion=4):
    ks = jax.random.split(key, 12)
    cexp = expansion * planes
    return {
        # conv weights stored matmul-ready: (Cin, Cout) for 1x1, (3,3,Cin,Cout) for 3x3
        "w1": 0.1 * jax.random.normal(ks[0], (in_planes, planes), jnp.float32),
        "w2": 0.1 * jax.random.normal(ks[1], (3, 3, planes, planes), jnp.float32),
        "w3": 0.1 * jax.random.normal(ks[2], (planes, cexp), jnp.float32),
        "ws": 0.1 * jax.random.normal(ks[3], (in_planes, cexp), jnp.float32),
        "g1": 1.0 + 0.1 * jax.random.normal(ks[4], (planes,), jnp.float32),
        "b1": 0.1 * jax.random.normal(ks[5], (planes,), jnp.float32),
        "g2": 1.0 + 0.1 * jax.random.normal(ks[6], (planes,), jnp.float32),
        "b2": 0.1 * jax.random.normal(ks[7], (planes,), jnp.float32),
        "g3": 1.0 + 0.1 * jax.random.normal(ks[8], (cexp,), jnp.float32),
        "b3": 0.1 * jax.random.normal(ks[9], (cexp,), jnp.float32),
        "gs": 1.0 + 0.1 * jax.random.normal(ks[10], (cexp,), jnp.float32),
        "bs": 0.1 * jax.random.normal(ks[11], (cexp,), jnp.float32),
    }


# ------------------------------------ main ------------------------------------ #

if __name__ == "__main__":
    key = jax.random.PRNGKey(0)
    fwd = jax.jit(bottleneck_forward, static_argnums=2)

    configs = [
        # (N, in_planes, planes, H, W, stride)
        (2, 4, 4, 16, 16, 1),    # projection shortcut, stride 1 (fused conv1+proj, direct 3x3)
        (2, 16, 4, 16, 16, 1),   # identity shortcut
        (2, 4, 4, 16, 16, 2),    # projection shortcut, stride 2 (im2col fallback)
    ]
    for idx, (N, cin, planes, H, W, stride) in enumerate(configs):
        kx, kp = jax.random.split(jax.random.fold_in(key, idx))
        x = jax.random.normal(kx, (N, cin, H, W), jnp.float32)   # NCHW like PyTorch
        params = init_params(kp, cin, planes)

        out = jax.block_until_ready(fwd(x, params, stride))
        ref = jax.block_until_ready(bottleneck_reference(x, params, stride))

        Ho = (H - 1) // stride + 1
        Wo = (W - 1) // stride + 1
        assert out.shape == (N, 4 * planes, Ho, Wo), out.shape
        np.testing.assert_allclose(np.asarray(out), np.asarray(ref),
                                   rtol=2e-3, atol=2e-3)

    print("KERNEL_OK")
</pallas_src>

<mosaic_0001>
module attributes {stable_mosaic.version = 11 : i64} {
  func.func @_matmul2_stats_kernel(%arg0: i32, %arg1: memref<512x128xbf16, #tpu.memory_space<vmem>>, %arg2: memref<128x256xbf16, #tpu.memory_space<vmem>>, %arg3: memref<512x128xbf16, #tpu.memory_space<vmem>>, %arg4: memref<512x128xbf16, #tpu.memory_space<vmem>>, %arg5: memref<1x2x128xf32, #tpu.memory_space<vmem>>, %arg6: memref<1x2x128xf32, #tpu.memory_space<vmem>>) attributes {dimension_semantics = [#tpu.dimension_semantics<parallel>], iteration_bounds = array<i64: 1>, scalar_prefetch = 0 : i64, scratch_operands = 0 : i64, tpu.core_type = #tpu.core_type<tc>, window_params = [{transform_indices = @transform_0, window_bounds = array<i64: 512, 128>}, {pipeline_mode = #tpu.pipeline_mode<synchronous>, transform_indices = @transform_1, window_bounds = array<i64: 128, 256>}, {transform_indices = @transform_2, window_bounds = array<i64: 512, 128>}, {transform_indices = @transform_3, window_bounds = array<i64: 512, 128>}, {transform_indices = @transform_4, window_bounds = array<i64: 1, 2, 128>}, {transform_indices = @transform_5, window_bounds = array<i64: 1, 2, 128>}]} {
    %c0 = arith.constant 0 : index
    %c0_0 = arith.constant 0 : index
    %0 = vector.load %arg1[%c0, %c0_0] : memref<512x128xbf16, #tpu.memory_space<vmem>>, vector<512x128xbf16>
    %c0_1 = arith.constant 0 : index
    %c0_2 = arith.constant 0 : index
    %1 = vector.load %arg2[%c0_1, %c0_2] : memref<128x256xbf16, #tpu.memory_space<vmem>>, vector<128x256xbf16>
    %cst = arith.constant dense<0.000000e+00> : vector<512x256xf32>
    %2 = tpu.matmul %0, %1, %cst {dimension_numbers = #tpu.dot_dimension_numbers<[1], [0], [0], [1], [0, 0, 1, 1], [], []>} : vector<512x128xbf16>, vector<128x256xbf16>, vector<512x256xf32> -> vector<512x256xf32>
    %3 = vector.extract_strided_slice %2 {offsets = [0, 0], sizes = [512, 128], strides = [1, 1]} : vector<512x256xf32> to vector<512x128xf32>
    %4 = vector.extract_strided_slice %2 {offsets = [0, 128], sizes = [512, 128], strides = [1, 1]} : vector<512x256xf32> to vector<512x128xf32>
    %5 = arith.truncf %3 : vector<512x128xf32> to vector<512x128xbf16>
    %c0_3 = arith.constant 0 : index
    %c0_4 = arith.constant 0 : index
    %6 = vector.load %arg3[%c0_3, %c0_4] : memref<512x128xbf16, #tpu.memory_space<vmem>>, vector<512x128xbf16>
    tpu.vector_store %arg3[%c0_3, %c0_4], %5 {strides = array<i32>} : memref<512x128xbf16, #tpu.memory_space<vmem>>, vector<512x128xbf16>,
    %7 = arith.truncf %4 : vector<512x128xf32> to vector<512x128xbf16>
    %c0_5 = arith.constant 0 : index
    %c0_6 = arith.constant 0 : index
    %8 = vector.load %arg4[%c0_5, %c0_6] : memref<512x128xbf16, #tpu.memory_space<vmem>>, vector<512x128xbf16>
    tpu.vector_store %arg4[%c0_5, %c0_6], %7 {strides = array<i32>} : memref<512x128xbf16, #tpu.memory_space<vmem>>, vector<512x128xbf16>,
    %cst_7 = arith.constant dense<0.000000e+00> : vector<128xf32>
    %9 = vector.multi_reduction <add>, %3, %cst_7 [0] : vector<512x128xf32> to vector<128xf32>
    %10 = vector.shape_cast %9 : vector<128xf32> to vector<1x128xf32>
    %c0_8 = arith.constant 0 : index
    %c0_9 = arith.constant 0 : index
    %c0_10 = arith.constant 0 : index
    %11 = vector.load %arg5[%c0_8, %c0_9, %c0_10] : memref<1x2x128xf32, #tpu.memory_space<vmem>>, vector<1x1x128xf32>
    %12 = vector.shape_cast %11 : vector<1x1x128xf32> to vector<1x128xf32>
    %13 = vector.shape_cast %10 : vector<1x128xf32> to vector<1x1x128xf32>
    tpu.vector_store %arg5[%c0_8, %c0_9, %c0_10], %13 {strides = array<i32>} : memref<1x2x128xf32, #tpu.memory_space<vmem>>, vector<1x1x128xf32>,
    %14 = arith.mulf %3, %3 : vector<512x128xf32>
    %cst_11 = arith.constant dense<0.000000e+00> : vector<128xf32>
    %15 = vector.multi_reduction <add>, %14, %cst_11 [0] : vector<512x128xf32> to vector<128xf32>
    %16 = vector.shape_cast %15 : vector<128xf32> to vector<1x128xf32>
    %c0_12 = arith.constant 0 : index
    %c1 = arith.constant 1 : index
    %c0_13 = arith.constant 0 : index
    %17 = vector.load %arg5[%c0_12, %c1, %c0_13] : memref<1x2x128xf32, #tpu.memory_space<vmem>>, vector<1x1x128xf32>
    %18 = vector.shape_cast %17 : vector<1x1x128xf32> to vector<1x128xf32>
    %19 = vector.shape_cast %16 : vector<1x128xf32> to vector<1x1x128xf32>
    tpu.vector_store %arg5[%c0_12, %c1, %c0_13], %19 {strides = array<i32>} : memref<1x2x128xf32, #tpu.memory_space<vmem>>, vector<1x1x128xf32>,
    %cst_14 = arith.constant dense<0.000000e+00> : vector<128xf32>
    %20 = vector.multi_reduction <add>, %4, %cst_14 [0] : vector<512x128xf32> to vector<128xf32>
    %21 = vector.shape_cast %20 : vector<128xf32> to vector<1x128xf32>
    %c0_15 = arith.constant 0 : index
    %c0_16 = arith.constant 0 : index
    %c0_17 = arith.constant 0 : index
    %22 = vector.load %arg6[%c0_15, %c0_16, %c0_17] : memref<1x2x128xf32, #tpu.memory_space<vmem>>, vector<1x1x128xf32>
    %23 = vector.shape_cast %22 : vector<1x1x128xf32> to vector<1x128xf32>
    %24 = vector.shape_cast %21 : vector<1x128xf32> to vector<1x1x128xf32>
    tpu.vector_store %arg6[%c0_15, %c0_16, %c0_17], %24 {strides = array<i32>} : memref<1x2x128xf32, #tpu.memory_space<vmem>>, vector<1x1x128xf32>,
    %25 = arith.mulf %4, %4 : vector<512x128xf32>
    %cst_18 = arith.constant dense<0.000000e+00> : vector<128xf32>
    %26 = vector.multi_reduction <add>, %25, %cst_18 [0] : vector<512x128xf32> to vector<128xf32>
    %27 = vector.shape_cast %26 : vector<128xf32> to vector<1x128xf32>
    %c0_19 = arith.constant 0 : index
    %c1_20 = arith.constant 1 : index
    %c0_21 = arith.constant 0 : index
    %28 = vector.load %arg6[%c0_19, %c1_20, %c0_21] : memref<1x2x128xf32, #tpu.memory_space<vmem>>, vector<1x1x128xf32>
    %29 = vector.shape_cast %28 : vector<1x1x128xf32> to vector<1x128xf32>
    %30 = vector.shape_cast %27 : vector<1x128xf32> to vector<1x1x128xf32>
    tpu.vector_store %arg6[%c0_19, %c1_20, %c0_21], %30 {strides = array<i32>} : memref<1x2x128xf32, #tpu.memory_space<vmem>>, vector<1x1x128xf32>,
    return
  }
  func.func @transform_0(%arg0: i32) -> (i32, i32) {
    %c0_i32 = arith.constant 0 : i32
    %c0_i32_0 = arith.constant 0 : i32
    return %arg0, %c0_i32 : i32, i32
  }
  func.func @transform_1(%arg0: i32) -> (i32, i32) {
    %c0_i32 = arith.constant 0 : i32
    %c0_i32_0 = arith.constant 0 : i32
    %c0_i32_1 = arith.constant 0 : i32
    return %c0_i32, %c0_i32_0 : i32, i32
  }
  func.func @transform_2(%arg0: i32) -> (i32, i32) {
    %c0_i32 = arith.constant 0 : i32
    %c0_i32_0 = arith.constant 0 : i32
    return %arg0, %c0_i32 : i32, i32
  }
  func.func @transform_3(%arg0: i32) -> (i32, i32) {
    %c0_i32 = arith.constant 0 : i32
    %c0_i32_0 = arith.constant 0 : i32
    return %arg0, %c0_i32 : i32, i32
  }
  func.func @transform_4(%arg0: i32) -> (i32, i32, i32) {
    %c0_i32 = arith.constant 0 : i32
    %c0_i32_0 = arith.constant 0 : i32
    %c0_i32_1 = arith.constant 0 : i32
    return %arg0, %c0_i32, %c0_i32_0 : i32, i32, i32
  }
  func.func @transform_5(%arg0: i32) -> (i32, i32, i32) {
    %c0_i32 = arith.constant 0 : i32
    %c0_i32_0 = arith.constant 0 : i32
    %c0_i32_1 = arith.constant 0 : i32
    return %arg0, %c0_i32, %c0_i32_0 : i32, i32, i32
  }
}

module attributes {stable_mosaic.version = 11 : i64} {
  func.func @_conv2_bn3x3_kernel(%arg0: i32, %arg1: memref<1x16x16x128xbf16, #tpu.memory_space<vmem>>, %arg2: memref<2x128xf32, #tpu.memory_space<vmem>>, %arg3: memref<1x128xf32, #tpu.memory_space<vmem>>, %arg4: memref<1x128xf32, #tpu.memory_space<vmem>>, %arg5: memref<3x384x128xbf16, #tpu.memory_space<vmem>>, %arg6: memref<256x128xbf16, #tpu.memory_space<vmem>>, %arg7: memref<1x2x128xf32, #tpu.memory_space<vmem>>, %arg8: memref<18x18x128xbf16, #tpu.memory_space<vmem>>) attributes {dimension_semantics = [#tpu.dimension_semantics<parallel>], iteration_bounds = array<i64: 2>, scalar_prefetch = 0 : i64, scratch_operands = 1 : i64, tpu.core_type = #tpu.core_type<tc>, window_params = [{transform_indices = @transform_0, window_bounds = array<i64: 1, 16, 16, 128>}, {pipeline_mode = #tpu.pipeline_mode<synchronous>, transform_indices = @transform_1, window_bounds = array<i64: 2, 128>}, {pipeline_mode = #tpu.pipeline_mode<synchronous>, transform_indices = @transform_2, window_bounds = array<i64: 1, 128>}, {pipeline_mode = #tpu.pipeline_mode<synchronous>, transform_indices = @transform_3, window_bounds = array<i64: 1, 128>}, {pipeline_mode = #tpu.pipeline_mode<synchronous>, transform_indices = @transform_4, window_bounds = array<i64: 3, 384, 128>}, {transform_indices = @transform_5, window_bounds = array<i64: 256, 128>}, {transform_indices = @transform_6, window_bounds = array<i64: 1, 2, 128>}]} {
    %c0 = arith.constant 0 : index
    %c0_0 = arith.constant 0 : index
    %0 = vector.load %arg2[%c0, %c0_0] : memref<2x128xf32, #tpu.memory_space<vmem>>, vector<2x128xf32>
    %c0_1 = arith.constant 0 : index
    %c0_2 = arith.constant 0 : index
    %1 = vector.load %arg3[%c0_1, %c0_2] : memref<1x128xf32, #tpu.memory_space<vmem>>, vector<1x128xf32>
    %c0_3 = arith.constant 0 : index
    %c0_4 = arith.constant 0 : index
    %2 = vector.load %arg4[%c0_3, %c0_4] : memref<1x128xf32, #tpu.memory_space<vmem>>, vector<1x128xf32>
    %3 = vector.extract_strided_slice %0 {offsets = [0, 0], sizes = [1, 128], strides = [1, 1]} : vector<2x128xf32> to vector<1x128xf32>
    %cst = arith.constant 0.001953125 : f32
    %4 = vector.broadcast %cst : f32 to vector<1x128xf32>
    %5 = arith.mulf %3, %4 : vector<1x128xf32>
    %6 = vector.extract_strided_slice %0 {offsets = [1, 0], sizes = [1, 128], strides = [1, 1]} : vector<2x128xf32> to vector<1x128xf32>
    %cst_5 = arith.constant 0.001953125 : f32
    %7 = vector.broadcast %cst_5 : f32 to vector<1x128xf32>
    %8 = arith.mulf %6, %7 : vector<1x128xf32>
    %9 = arith.mulf %5, %5 : vector<1x128xf32>
    %10 = arith.subf %8, %9 : vector<1x128xf32>
    %cst_6 = arith.constant 0.000000e+00 : f32
    %11 = vector.broadcast %cst_6 : f32 to vector<1x128xf32>
    %12 = arith.maximumf %10, %11 : vector<1x128xf32>
    %cst_7 = arith.constant 9.99999974E-6 : f32
    %13 = vector.broadcast %cst_7 : f32 to vector<1x128xf32>
    %14 = arith.addf %12, %13 : vector<1x128xf32>
    %15 = math.rsqrt %14 : vector<1x128xf32>
    %16 = arith.mulf %1, %15 : vector<1x128xf32>
    %17 = arith.mulf %5, %16 : vector<1x128xf32>
    %18 = arith.subf %2, %17 : vector<1x128xf32>
    %c0_8 = arith.constant 0 : index
    %c0_9 = arith.constant 0 : index
    %c0_10 = arith.constant 0 : index
    %c0_11 = arith.constant 0 : index
    %19 = vector.load %arg1[%c0_8, %c0_9, %c0_10, %c0_11] : memref<1x16x16x128xbf16, #tpu.memory_space<vmem>>, vector<1x16x16x128xbf16>
    %20 = vector.shape_cast %19 : vector<1x16x16x128xbf16> to vector<16x16x128xbf16>
    %21 = arith.extf %20 : vector<16x16x128xbf16> to vector<16x16x128xf32>
    %22 = vector.shape_cast %16 : vector<1x128xf32> to vector<1x1x128xf32>
    %23 = vector.broadcast %22 : vector<1x1x128xf32> to vector<16x16x128xf32>
    %24 = arith.mulf %21, %23 : vector<16x16x128xf32>
    %25 = vector.shape_cast %18 : vector<1x128xf32> to vector<1x1x128xf32>
    %26 = vector.broadcast %25 : vector<1x1x128xf32> to vector<16x16x128xf32>
    %27 = arith.addf %24, %26 : vector<16x16x128xf32>
    %cst_12 = arith.constant 0.000000e+00 : f32
    %28 = vector.broadcast %cst_12 : f32 to vector<16x16x128xf32>
    %29 = arith.maximumf %27, %28 : vector<16x16x128xf32>
    %cst_13 = arith.constant 0.000000e+00 : bf16
    %30 = vector.broadcast %cst_13 : bf16 to vector<18x18x128xbf16>
    %c0_14 = arith.constant 0 : index
    %c0_15 = arith.constant 0 : index
    %c0_16 = arith.constant 0 : index
    %31 = vector.load %arg8[%c0_14, %c0_15, %c0_16] : memref<18x18x128xbf16, #tpu.memory_space<vmem>>, vector<18x18x128xbf16>
    tpu.vector_store %arg8[%c0_14, %c0_15, %c0_16], %30 {strides = array<i32>} : memref<18x18x128xbf16, #tpu.memory_space<vmem>>, vector<18x18x128xbf16>,
    %32 = arith.truncf %29 : vector<16x16x128xf32> to vector<16x16x128xbf16>
    %c1 = arith.constant 1 : index
    %c1_17 = arith.constant 1 : index
    %c0_18 = arith.constant 0 : index
    %33 = vector.load %arg8[%c1, %c1_17, %c0_18] : memref<18x18x128xbf16, #tpu.memory_space<vmem>>, vector<16x16x128xbf16>
    tpu.vector_store %arg8[%c1, %c1_17, %c0_18], %32 {strides = array<i32>} : memref<18x18x128xbf16, #tpu.memory_space<vmem>>, vector<16x16x128xbf16>,
    %c0_19 = arith.constant 0 : index
    %c0_20 = arith.constant 0 : index
    %c0_21 = arith.constant 0 : index
    %34 = vector.load %arg8[%c0_19, %c0_20, %c0_21] : memref<18x18x128xbf16, #tpu.memory_space<vmem>>, vector<16x16x128xbf16>
    %c0_22 = arith.constant 0 : index
    %c1_23 = arith.constant 1 : index
    %c0_24 = arith.constant 0 : index
    %35 = vector.load %arg8[%c0_22, %c1_23, %c0_24] : memref<18x18x128xbf16, #tpu.memory_space<vmem>>, vector<16x16x128xbf16>
    %c0_25 = arith.constant 0 : index
    %c2 = arith.constant 2 : index
    %c0_26 = arith.constant 0 : index
    %36 = vector.load %arg8[%c0_25, %c2, %c0_26] : memref<18x18x128xbf16, #tpu.memory_space<vmem>>, vector<16x16x128xbf16>
    %37 = tpu.concatenate %34, %35, %36 in 2 : vector<16x16x128xbf16>, vector<16x16x128xbf16>, vector<16x16x128xbf16> -> vector<16x16x384xbf16>
    %38 = vector.shape_cast %37 : vector<16x16x384xbf16> to vector<256x384xbf16>
    %c0_27 = arith.constant 0 : index
    %c0_28 = arith.constant 0 : index
    %c0_29 = arith.constant 0 : index
    %39 = vector.load %arg5[%c0_27, %c0_28, %c0_29] : memref<3x384x128xbf16, #tpu.memory_space<vmem>>, vector<1x384x128xbf16>
    %40 = vector.shape_cast %39 : vector<1x384x128xbf16> to vector<384x128xbf16>
    %cst_30 = arith.constant dense<0.000000e+00> : vector<256x128xf32>
    %41 = tpu.matmul %38, %40, %cst_30 {dimension_numbers = #tpu.dot_dimension_numbers<[1], [0], [0], [1], [0, 0, 1, 1], [], []>} : vector<256x384xbf16>, vector<384x128xbf16>, vector<256x128xf32> -> vector<256x128xf32>
    %c1_31 = arith.constant 1 : index
    %c0_32 = arith.constant 0 : index
    %c0_33 = arith.constant 0 : index
    %42 = vector.load %arg8[%c1_31, %c0_32, %c0_33] : memref<18x18x128xbf16, #tpu.memory_space<vmem>>, vector<16x16x128xbf16>
    %c1_34 = arith.constant 1 : index
    %c1_35 = arith.constant 1 : index
    %c0_36 = arith.constant 0 : index
    %43 = vector.load %arg8[%c1_34, %c1_35, %c0_36] : memref<18x18x128xbf16, #tpu.memory_space<vmem>>, vector<16x16x128xbf16>
    %c1_37 = arith.constant 1 : index
    %c2_38 = arith.constant 2 : index
    %c0_39 = arith.constant 0 : index
    %44 = vector.load %arg8[%c1_37, %c2_38, %c0_39] : memref<18x18x128xbf16, #tpu.memory_space<vmem>>, vector<16x16x128xbf16>
    %45 = tpu.concatenate %42, %43, %44 in 2 : vector<16x16x128xbf16>, vector<16x16x128xbf16>, vector<16x16x128xbf16> -> vector<16x16x384xbf16>
    %46 = vector.shape_cast %45 : vector<16x16x384xbf16> to vector<256x384xbf16>
    %c1_40 = arith.constant 1 : index
    %c0_41 = arith.constant 0 : index
    %c0_42 = arith.constant 0 : index
    %47 = vector.load %arg5[%c1_40, %c0_41, %c0_42] : memref<3x384x128xbf16, #tpu.memory_space<vmem>>, vector<1x384x128xbf16>
    %48 = vector.shape_cast %47 : vector<1x384x128xbf16> to vector<384x128xbf16>
    %cst_43 = arith.constant dense<0.000000e+00> : vector<256x128xf32>
    %49 = tpu.matmul %46, %48, %cst_43 {dimension_numbers = #tpu.dot_dimension_numbers<[1], [0], [0], [1], [0, 0, 1, 1], [], []>} : vector<256x384xbf16>, vector<384x128xbf16>, vector<256x128xf32> -> vector<256x128xf32>
    %50 = arith.addf %41, %49 : vector<256x128xf32>
    %c2_44 = arith.constant 2 : index
    %c0_45 = arith.constant 0 : index
    %c0_46 = arith.constant 0 : index
    %51 = vector.load %arg8[%c2_44, %c0_45, %c0_46] : memref<18x18x128xbf16, #tpu.memory_space<vmem>>, vector<16x16x128xbf16>
    %c2_47 = arith.constant 2 : index
    %c1_48 = arith.constant 1 : index
    %c0_49 = arith.constant 0 : index
    %52 = vector.load %arg8[%c2_47, %c1_48, %c0_49] : memref<18x18x128xbf16, #tpu.memory_space<vmem>>, vector<16x16x128xbf16>
    %c2_50 = arith.constant 2 : index
    %c2_51 = arith.constant 2 : index
    %c0_52 = arith.constant 0 : index
    %53 = vector.load %arg8[%c2_50, %c2_51, %c0_52] : memref<18x18x128xbf16, #tpu.memory_space<vmem>>, vector<16x16x128xbf16>
    %54 = tpu.concatenate %51, %52, %53 in 2 : vector<16x16x128xbf16>, vector<16x16x128xbf16>, vector<16x16x128xbf16> -> vector<16x16x384xbf16>
    %55 = vector.shape_cast %54 : vector<16x16x384xbf16> to vector<256x384xbf16>
    %c2_53 = arith.constant 2 : index
    %c0_54 = arith.constant 0 : index
    %c0_55 = arith.constant 0 : index
    %56 = vector.load %arg5[%c2_53, %c0_54, %c0_55] : memref<3x384x128xbf16, #tpu.memory_space<vmem>>, vector<1x384x128xbf16>
    %57 = vector.shape_cast %56 : vector<1x384x128xbf16> to vector<384x128xbf16>
    %cst_56 = arith.constant dense<0.000000e+00> : vector<256x128xf32>
    %58 = tpu.matmul %55, %57, %cst_56 {dimension_numbers = #tpu.dot_dimension_numbers<[1], [0], [0], [1], [0, 0, 1, 1], [], []>} : vector<256x384xbf16>, vector<384x128xbf16>, vector<256x128xf32> -> vector<256x128xf32>
    %59 = arith.addf %50, %58 : vector<256x128xf32>
    %60 = arith.truncf %59 : vector<256x128xf32> to vector<256x128xbf16>
    %c0_57 = arith.constant 0 : index
    %c0_58 = arith.constant 0 : index
    %61 = vector.load %arg6[%c0_57, %c0_58] : memref<256x128xbf16, #tpu.memory_space<vmem>>, vector<256x128xbf16>
    tpu.vector_store %arg6[%c0_57, %c0_58], %60 {strides = array<i32>} : memref<256x128xbf16, #tpu.memory_space<vmem>>, vector<256x128xbf16>,
    %cst_59 = arith.constant dense<0.000000e+00> : vector<128xf32>
    %62 = vector.multi_reduction <add>, %59, %cst_59 [0] : vector<256x128xf32> to vector<128xf32>
    %63 = vector.shape_cast %62 : vector<128xf32> to vector<1x128xf32>
    %c0_60 = arith.constant 0 : index
    %c0_61 = arith.constant 0 : index
    %c0_62 = arith.constant 0 : index
    %64 = vector.load %arg7[%c0_60, %c0_61, %c0_62] : memref<1x2x128xf32, #tpu.memory_space<vmem>>, vector<1x1x128xf32>
    %65 = vector.shape_cast %64 : vector<1x1x128xf32> to vector<1x128xf32>
    %66 = vector.shape_cast %63 : vector<1x128xf32> to vector<1x1x128xf32>
    tpu.vector_store %arg7[%c0_60, %c0_61, %c0_62], %66 {strides = array<i32>} : memref<1x2x128xf32, #tpu.memory_space<vmem>>, vector<1x1x128xf32>,
    %67 = arith.mulf %59, %59 : vector<256x128xf32>
    %cst_63 = arith.constant dense<0.000000e+00> : vector<128xf32>
    %68 = vector.multi_reduction <add>, %67, %cst_63 [0] : vector<256x128xf32> to vector<128xf32>
    %69 = vector.shape_cast %68 : vector<128xf32> to vector<1x128xf32>
    %c0_64 = arith.constant 0 : index
    %c1_65 = arith.constant 1 : index
    %c0_66 = arith.constant 0 : index
    %70 = vector.load %arg7[%c0_64, %c1_65, %c0_66] : memref<1x2x128xf32, #tpu.memory_space<vmem>>, vector<1x1x128xf32>
    %71 = vector.shape_cast %70 : vector<1x1x128xf32> to vector<1x128xf32>
    %72 = vector.shape_cast %69 : vector<1x128xf32> to vector<1x1x128xf32>
    tpu.vector_store %arg7[%c0_64, %c1_65, %c0_66], %72 {strides = array<i32>} : memref<1x2x128xf32, #tpu.memory_space<vmem>>, vector<1x1x128xf32>,
    return
  }
  func.func @transform_0(%arg0: i32) -> (i32, i32, i32, i32) {
    %c0_i32 = arith.constant 0 : i32
    %c0_i32_0 = arith.constant 0 : i32
    %c0_i32_1 = arith.constant 0 : i32
    %c0_i32_2 = arith.constant 0 : i32
    return %arg0, %c0_i32, %c0_i32_0, %c0_i32_1 : i32, i32, i32, i32
  }
  func.func @transform_1(%arg0: i32) -> (i32, i32) {
    %c0_i32 = arith.constant 0 : i32
    %c0_i32_0 = arith.constant 0 : i32
    %c0_i32_1 = arith.constant 0 : i32
    return %c0_i32, %c0_i32_0 : i32, i32
  }
  func.func @transform_2(%arg0: i32) -> (i32, i32) {
    %c0_i32 = arith.constant 0 : i32
    %c0_i32_0 = arith.constant 0 : i32
    %c0_i32_1 = arith.constant 0 : i32
    return %c0_i32, %c0_i32_0 : i32, i32
  }
  func.func @transform_3(%arg0: i32) -> (i32, i32) {
    %c0_i32 = arith.constant 0 : i32
    %c0_i32_0 = arith.constant 0 : i32
    %c0_i32_1 = arith.constant 0 : i32
    return %c0_i32, %c0_i32_0 : i32, i32
  }
  func.func @transform_4(%arg0: i32) -> (i32, i32, i32) {
    %c0_i32 = arith.constant 0 : i32
    %c0_i32_0 = arith.constant 0 : i32
    %c0_i32_1 = arith.constant 0 : i32
    %c0_i32_2 = arith.constant 0 : i32
    return %c0_i32, %c0_i32_0, %c0_i32_1 : i32, i32, i32
  }
  func.func @transform_5(%arg0: i32) -> (i32, i32) {
    %c0_i32 = arith.constant 0 : i32
    %c0_i32_0 = arith.constant 0 : i32
    return %arg0, %c0_i32 : i32, i32
  }
  func.func @transform_6(%arg0: i32) -> (i32, i32, i32) {
    %c0_i32 = arith.constant 0 : i32
    %c0_i32_0 = arith.constant 0 : i32
    %c0_i32_1 = arith.constant 0 : i32
    return %arg0, %c0_i32, %c0_i32_0 : i32, i32, i32
  }
}

module attributes {stable_mosaic.version = 11 : i64} {
  func.func @_bn_matmul_stats_kernel(%arg0: i32, %arg1: memref<512x128xbf16, #tpu.memory_space<vmem>>, %arg2: memref<2x128xf32, #tpu.memory_space<vmem>>, %arg3: memref<1x128xf32, #tpu.memory_space<vmem>>, %arg4: memref<1x128xf32, #tpu.memory_space<vmem>>, %arg5: memref<128x128xbf16, #tpu.memory_space<vmem>>, %arg6: memref<512x128xbf16, #tpu.memory_space<vmem>>, %arg7: memref<1x2x128xf32, #tpu.memory_space<vmem>>) attributes {dimension_semantics = [#tpu.dimension_semantics<parallel>], iteration_bounds = array<i64: 1>, scalar_prefetch = 0 : i64, scratch_operands = 0 : i64, tpu.core_type = #tpu.core_type<tc>, window_params = [{transform_indices = @transform_0, window_bounds = array<i64: 512, 128>}, {pipeline_mode = #tpu.pipeline_mode<synchronous>, transform_indices = @transform_1, window_bounds = array<i64: 2, 128>}, {pipeline_mode = #tpu.pipeline_mode<synchronous>, transform_indices = @transform_2, window_bounds = array<i64: 1, 128>}, {pipeline_mode = #tpu.pipeline_mode<synchronous>, transform_indices = @transform_3, window_bounds = array<i64: 1, 128>}, {pipeline_mode = #tpu.pipeline_mode<synchronous>, transform_indices = @transform_4, window_bounds = array<i64: 128, 128>}, {transform_indices = @transform_5, window_bounds = array<i64: 512, 128>}, {transform_indices = @transform_6, window_bounds = array<i64: 1, 2, 128>}]} {
    %c0 = arith.constant 0 : index
    %c0_0 = arith.constant 0 : index
    %0 = vector.load %arg2[%c0, %c0_0] : memref<2x128xf32, #tpu.memory_space<vmem>>, vector<2x128xf32>
    %c0_1 = arith.constant 0 : index
    %c0_2 = arith.constant 0 : index
    %1 = vector.load %arg3[%c0_1, %c0_2] : memref<1x128xf32, #tpu.memory_space<vmem>>, vector<1x128xf32>
    %c0_3 = arith.constant 0 : index
    %c0_4 = arith.constant 0 : index
    %2 = vector.load %arg4[%c0_3, %c0_4] : memref<1x128xf32, #tpu.memory_space<vmem>>, vector<1x128xf32>
    %3 = vector.extract_strided_slice %0 {offsets = [0, 0], sizes = [1, 128], strides = [1, 1]} : vector<2x128xf32> to vector<1x128xf32>
    %cst = arith.constant 0.001953125 : f32
    %4 = vector.broadcast %cst : f32 to vector<1x128xf32>
    %5 = arith.mulf %3, %4 : vector<1x128xf32>
    %6 = vector.extract_strided_slice %0 {offsets = [1, 0], sizes = [1, 128], strides = [1, 1]} : vector<2x128xf32> to vector<1x128xf32>
    %cst_5 = arith.constant 0.001953125 : f32
    %7 = vector.broadcast %cst_5 : f32 to vector<1x128xf32>
    %8 = arith.mulf %6, %7 : vector<1x128xf32>
    %9 = arith.mulf %5, %5 : vector<1x128xf32>
    %10 = arith.subf %8, %9 : vector<1x128xf32>
    %cst_6 = arith.constant 0.000000e+00 : f32
    %11 = vector.broadcast %cst_6 : f32 to vector<1x128xf32>
    %12 = arith.maximumf %10, %11 : vector<1x128xf32>
    %cst_7 = arith.constant 9.99999974E-6 : f32
    %13 = vector.broadcast %cst_7 : f32 to vector<1x128xf32>
    %14 = arith.addf %12, %13 : vector<1x128xf32>
    %15 = math.rsqrt %14 : vector<1x128xf32>
    %16 = arith.mulf %1, %15 : vector<1x128xf32>
    %17 = arith.mulf %5, %16 : vector<1x128xf32>
    %18 = arith.subf %2, %17 : vector<1x128xf32>
    %c0_8 = arith.constant 0 : index
    %c0_9 = arith.constant 0 : index
    %19 = vector.load %arg1[%c0_8, %c0_9] : memref<512x128xbf16, #tpu.memory_space<vmem>>, vector<512x128xbf16>
    %20 = arith.extf %19 : vector<512x128xbf16> to vector<512x128xf32>
    %21 = vector.broadcast %16 : vector<1x128xf32> to vector<512x128xf32>
    %22 = arith.mulf %20, %21 : vector<512x128xf32>
    %23 = vector.broadcast %18 : vector<1x128xf32> to vector<512x128xf32>
    %24 = arith.addf %22, %23 : vector<512x128xf32>
    %cst_10 = arith.constant 0.000000e+00 : f32
    %25 = vector.broadcast %cst_10 : f32 to vector<512x128xf32>
    %26 = arith.maximumf %24, %25 : vector<512x128xf32>
    %27 = arith.truncf %26 : vector<512x128xf32> to vector<512x128xbf16>
    %c0_11 = arith.constant 0 : index
    %c0_12 = arith.constant 0 : index
    %28 = vector.load %arg5[%c0_11, %c0_12] : memref<128x128xbf16, #tpu.memory_space<vmem>>, vector<128x128xbf16>
    %cst_13 = arith.constant dense<0.000000e+00> : vector<512x128xf32>
    %29 = tpu.matmul %27, %28, %cst_13 {dimension_numbers = #tpu.dot_dimension_numbers<[1], [0], [0], [1], [0, 0, 1, 1], [], []>} : vector<512x128xbf16>, vector<128x128xbf16>, vector<512x128xf32> -> vector<512x128xf32>
    %30 = arith.truncf %29 : vector<512x128xf32> to vector<512x128xbf16>
    %c0_14 = arith.constant 0 : index
    %c0_15 = arith.constant 0 : index
    %31 = vector.load %arg6[%c0_14, %c0_15] : memref<512x128xbf16, #tpu.memory_space<vmem>>, vector<512x128xbf16>
    tpu.vector_store %arg6[%c0_14, %c0_15], %30 {strides = array<i32>} : memref<512x128xbf16, #tpu.memory_space<vmem>>, vector<512x128xbf16>,
    %cst_16 = arith.constant dense<0.000000e+00> : vector<128xf32>
    %32 = vector.multi_reduction <add>, %29, %cst_16 [0] : vector<512x128xf32> to vector<128xf32>
    %33 = vector.shape_cast %32 : vector<128xf32> to vector<1x128xf32>
    %c0_17 = arith.constant 0 : index
    %c0_18 = arith.constant 0 : index
    %c0_19 = arith.constant 0 : index
    %34 = vector.load %arg7[%c0_17, %c0_18, %c0_19] : memref<1x2x128xf32, #tpu.memory_space<vmem>>, vector<1x1x128xf32>
    %35 = vector.shape_cast %34 : vector<1x1x128xf32> to vector<1x128xf32>
    %36 = vector.shape_cast %33 : vector<1x128xf32> to vector<1x1x128xf32>
    tpu.vector_store %arg7[%c0_17, %c0_18, %c0_19], %36 {strides = array<i32>} : memref<1x2x128xf32, #tpu.memory_space<vmem>>, vector<1x1x128xf32>,
    %37 = arith.mulf %29, %29 : vector<512x128xf32>
    %cst_20 = arith.constant dense<0.000000e+00> : vector<128xf32>
    %38 = vector.multi_reduction <add>, %37, %cst_20 [0] : vector<512x128xf32> to vector<128xf32>
    %39 = vector.shape_cast %38 : vector<128xf32> to vector<1x128xf32>
    %c0_21 = arith.constant 0 : index
    %c1 = arith.constant 1 : index
    %c0_22 = arith.constant 0 : index
    %40 = vector.load %arg7[%c0_21, %c1, %c0_22] : memref<1x2x128xf32, #tpu.memory_space<vmem>>, vector<1x1x128xf32>
    %41 = vector.shape_cast %40 : vector<1x1x128xf32> to vector<1x128xf32>
    %42 = vector.shape_cast %39 : vector<1x128xf32> to vector<1x1x128xf32>
    tpu.vector_store %arg7[%c0_21, %c1, %c0_22], %42 {strides = array<i32>} : memref<1x2x128xf32, #tpu.memory_space<vmem>>, vector<1x1x128xf32>,
    return
  }
  func.func @transform_0(%arg0: i32) -> (i32, i32) {
    %c0_i32 = arith.constant 0 : i32
    %c0_i32_0 = arith.constant 0 : i32
    return %arg0, %c0_i32 : i32, i32
  }
  func.func @transform_1(%arg0: i32) -> (i32, i32) {
    %c0_i32 = arith.constant 0 : i32
    %c0_i32_0 = arith.constant 0 : i32
    %c0_i32_1 = arith.constant 0 : i32
    return %c0_i32, %c0_i32_0 : i32, i32
  }
  func.func @transform_2(%arg0: i32) -> (i32, i32) {
    %c0_i32 = arith.constant 0 : i32
    %c0_i32_0 = arith.constant 0 : i32
    %c0_i32_1 = arith.constant 0 : i32
    return %c0_i32, %c0_i32_0 : i32, i32
  }
  func.func @transform_3(%arg0: i32) -> (i32, i32) {
    %c0_i32 = arith.constant 0 : i32
    %c0_i32_0 = arith.constant 0 : i32
    %c0_i32_1 = arith.constant 0 : i32
    return %c0_i32, %c0_i32_0 : i32, i32
  }
  func.func @transform_4(%arg0: i32) -> (i32, i32) {
    %c0_i32 = arith.constant 0 : i32
    %c0_i32_0 = arith.constant 0 : i32
    %c0_i32_1 = arith.constant 0 : i32
    return %c0_i32, %c0_i32_0 : i32, i32
  }
  func.func @transform_5(%arg0: i32) -> (i32, i32) {
    %c0_i32 = arith.constant 0 : i32
    %c0_i32_0 = arith.constant 0 : i32
    return %arg0, %c0_i32 : i32, i32
  }
  func.func @transform_6(%arg0: i32) -> (i32, i32, i32) {
    %c0_i32 = arith.constant 0 : i32
    %c0_i32_0 = arith.constant 0 : i32
    %c0_i32_1 = arith.constant 0 : i32
    return %arg0, %c0_i32, %c0_i32_0 : i32, i32, i32
  }
}

module attributes {stable_mosaic.version = 11 : i64} {
  func.func @_bn2_add_relu_kernel(%arg0: i32, %arg1: memref<512x128xbf16, #tpu.memory_space<vmem>>, %arg2: memref<2x128xf32, #tpu.memory_space<vmem>>, %arg3: memref<1x128xf32, #tpu.memory_space<vmem>>, %arg4: memref<1x128xf32, #tpu.memory_space<vmem>>, %arg5: memref<512x128xbf16, #tpu.memory_space<vmem>>, %arg6: memref<2x128xf32, #tpu.memory_space<vmem>>, %arg7: memref<1x128xf32, #tpu.memory_space<vmem>>, %arg8: memref<1x128xf32, #tpu.memory_space<vmem>>, %arg9: memref<512x128xf32, #tpu.memory_space<vmem>>) attributes {dimension_semantics = [#tpu.dimension_semantics<parallel>], iteration_bounds = array<i64: 1>, scalar_prefetch = 0 : i64, scratch_operands = 0 : i64, tpu.core_type = #tpu.core_type<tc>, window_params = [{transform_indices = @transform_0, window_bounds = array<i64: 512, 128>}, {pipeline_mode = #tpu.pipeline_mode<synchronous>, transform_indices = @transform_1, window_bounds = array<i64: 2, 128>}, {pipeline_mode = #tpu.pipeline_mode<synchronous>, transform_indices = @transform_2, window_bounds = array<i64: 1, 128>}, {pipeline_mode = #tpu.pipeline_mode<synchronous>, transform_indices = @transform_3, window_bounds = array<i64: 1, 128>}, {transform_indices = @transform_4, window_bounds = array<i64: 512, 128>}, {pipeline_mode = #tpu.pipeline_mode<synchronous>, transform_indices = @transform_5, window_bounds = array<i64: 2, 128>}, {pipeline_mode = #tpu.pipeline_mode<synchronous>, transform_indices = @transform_6, window_bounds = array<i64: 1, 128>}, {pipeline_mode = #tpu.pipeline_mode<synchronous>, transform_indices = @transform_7, window_bounds = array<i64: 1, 128>}, {transform_indices = @transform_8, window_bounds = array<i64: 512, 128>}]} {
    %c0 = arith.constant 0 : index
    %c0_0 = arith.constant 0 : index
    %0 = vector.load %arg2[%c0, %c0_0] : memref<2x128xf32, #tpu.memory_space<vmem>>, vector<2x128xf32>
    %c0_1 = arith.constant 0 : index
    %c0_2 = arith.constant 0 : index
    %1 = vector.load %arg3[%c0_1, %c0_2] : memref<1x128xf32, #tpu.memory_space<vmem>>, vector<1x128xf32>
    %c0_3 = arith.constant 0 : index
    %c0_4 = arith.constant 0 : index
    %2 = vector.load %arg4[%c0_3, %c0_4] : memref<1x128xf32, #tpu.memory_space<vmem>>, vector<1x128xf32>
    %3 = vector.extract_strided_slice %0 {offsets = [0, 0], sizes = [1, 128], strides = [1, 1]} : vector<2x128xf32> to vector<1x128xf32>
    %cst = arith.constant 0.001953125 : f32
    %4 = vector.broadcast %cst : f32 to vector<1x128xf32>
    %5 = arith.mulf %3, %4 : vector<1x128xf32>
    %6 = vector.extract_strided_slice %0 {offsets = [1, 0], sizes = [1, 128], strides = [1, 1]} : vector<2x128xf32> to vector<1x128xf32>
    %cst_5 = arith.constant 0.001953125 : f32
    %7 = vector.broadcast %cst_5 : f32 to vector<1x128xf32>
    %8 = arith.mulf %6, %7 : vector<1x128xf32>
    %9 = arith.mulf %5, %5 : vector<1x128xf32>
    %10 = arith.subf %8, %9 : vector<1x128xf32>
    %cst_6 = arith.constant 0.000000e+00 : f32
    %11 = vector.broadcast %cst_6 : f32 to vector<1x128xf32>
    %12 = arith.maximumf %10, %11 : vector<1x128xf32>
    %cst_7 = arith.constant 9.99999974E-6 : f32
    %13 = vector.broadcast %cst_7 : f32 to vector<1x128xf32>
    %14 = arith.addf %12, %13 : vector<1x128xf32>
    %15 = math.rsqrt %14 : vector<1x128xf32>
    %16 = arith.mulf %1, %15 : vector<1x128xf32>
    %17 = arith.mulf %5, %16 : vector<1x128xf32>
    %18 = arith.subf %2, %17 : vector<1x128xf32>
    %c0_8 = arith.constant 0 : index
    %c0_9 = arith.constant 0 : index
    %19 = vector.load %arg6[%c0_8, %c0_9] : memref<2x128xf32, #tpu.memory_space<vmem>>, vector<2x128xf32>
    %c0_10 = arith.constant 0 : index
    %c0_11 = arith.constant 0 : index
    %20 = vector.load %arg7[%c0_10, %c0_11] : memref<1x128xf32, #tpu.memory_space<vmem>>, vector<1x128xf32>
    %c0_12 = arith.constant 0 : index
    %c0_13 = arith.constant 0 : index
    %21 = vector.load %arg8[%c0_12, %c0_13] : memref<1x128xf32, #tpu.memory_space<vmem>>, vector<1x128xf32>
    %22 = vector.extract_strided_slice %19 {offsets = [0, 0], sizes = [1, 128], strides = [1, 1]} : vector<2x128xf32> to vector<1x128xf32>
    %cst_14 = arith.constant 0.001953125 : f32
    %23 = vector.broadcast %cst_14 : f32 to vector<1x128xf32>
    %24 = arith.mulf %22, %23 : vector<1x128xf32>
    %25 = vector.extract_strided_slice %19 {offsets = [1, 0], sizes = [1, 128], strides = [1, 1]} : vector<2x128xf32> to vector<1x128xf32>
    %cst_15 = arith.constant 0.001953125 : f32
    %26 = vector.broadcast %cst_15 : f32 to vector<1x128xf32>
    %27 = arith.mulf %25, %26 : vector<1x128xf32>
    %28 = arith.mulf %24, %24 : vector<1x128xf32>
    %29 = arith.subf %27, %28 : vector<1x128xf32>
    %cst_16 = arith.constant 0.000000e+00 : f32
    %30 = vector.broadcast %cst_16 : f32 to vector<1x128xf32>
    %31 = arith.maximumf %29, %30 : vector<1x128xf32>
    %cst_17 = arith.constant 9.99999974E-6 : f32
    %32 = vector.broadcast %cst_17 : f32 to vector<1x128xf32>
    %33 = arith.addf %31, %32 : vector<1x128xf32>
    %34 = math.rsqrt %33 : vector<1x128xf32>
    %35 = arith.mulf %20, %34 : vector<1x128xf32>
    %36 = arith.mulf %24, %35 : vector<1x128xf32>
    %37 = arith.subf %21, %36 : vector<1x128xf32>
    %c0_18 = arith.constant 0 : index
    %c0_19 = arith.constant 0 : index
    %38 = vector.load %arg1[%c0_18, %c0_19] : memref<512x128xbf16, #tpu.memory_space<vmem>>, vector<512x128xbf16>
    %39 = arith.extf %38 : vector<512x128xbf16> to vector<512x128xf32>
    %40 = vector.broadcast %16 : vector<1x128xf32> to vector<512x128xf32>
    %41 = arith.mulf %39, %40 : vector<512x128xf32>
    %42 = vector.broadcast %18 : vector<1x128xf32> to vector<512x128xf32>
    %43 = arith.addf %41, %42 : vector<512x128xf32>
    %c0_20 = arith.constant 0 : index
    %c0_21 = arith.constant 0 : index
    %44 = vector.load %arg5[%c0_20, %c0_21] : memref<512x128xbf16, #tpu.memory_space<vmem>>, vector<512x128xbf16>
    %45 = arith.extf %44 : vector<512x128xbf16> to vector<512x128xf32>
    %46 = vector.broadcast %35 : vector<1x128xf32> to vector<512x128xf32>
    %47 = arith.mulf %45, %46 : vector<512x128xf32>
    %48 = arith.addf %43, %47 : vector<512x128xf32>
    %49 = vector.broadcast %37 : vector<1x128xf32> to vector<512x128xf32>
    %50 = arith.addf %48, %49 : vector<512x128xf32>
    %cst_22 = arith.constant 0.000000e+00 : f32
    %51 = vector.broadcast %cst_22 : f32 to vector<512x128xf32>
    %52 = arith.maximumf %50, %51 : vector<512x128xf32>
    %c0_23 = arith.constant 0 : index
    %c0_24 = arith.constant 0 : index
    %53 = vector.load %arg9[%c0_23, %c0_24] : memref<512x128xf32, #tpu.memory_space<vmem>>, vector<512x128xf32>
    tpu.vector_store %arg9[%c0_23, %c0_24], %52 {strides = array<i32>} : memref<512x128xf32, #tpu.memory_space<vmem>>, vector<512x128xf32>,
    return
  }
  func.func @transform_0(%arg0: i32) -> (i32, i32) {
    %c0_i32 = arith.constant 0 : i32
    %c0_i32_0 = arith.constant 0 : i32
    return %arg0, %c0_i32 : i32, i32
  }
  func.func @transform_1(%arg0: i32) -> (i32, i32) {
    %c0_i32 = arith.constant 0 : i32
    %c0_i32_0 = arith.constant 0 : i32
    %c0_i32_1 = arith.constant 0 : i32
    return %c0_i32, %c0_i32_0 : i32, i32
  }
  func.func @transform_2(%arg0: i32) -> (i32, i32) {
    %c0_i32 = arith.constant 0 : i32
    %c0_i32_0 = arith.constant 0 : i32
    %c0_i32_1 = arith.constant 0 : i32
    return %c0_i32, %c0_i32_0 : i32, i32
  }
  func.func @transform_3(%arg0: i32) -> (i32, i32) {
    %c0_i32 = arith.constant 0 : i32
    %c0_i32_0 = arith.constant 0 : i32
    %c0_i32_1 = arith.constant 0 : i32
    return %c0_i32, %c0_i32_0 : i32, i32
  }
  func.func @transform_4(%arg0: i32) -> (i32, i32) {
    %c0_i32 = arith.constant 0 : i32
    %c0_i32_0 = arith.constant 0 : i32
    return %arg0, %c0_i32 : i32, i32
  }
  func.func @transform_5(%arg0: i32) -> (i32, i32) {
    %c0_i32 = arith.constant 0 : i32
    %c0_i32_0 = arith.constant 0 : i32
    %c0_i32_1 = arith.constant 0 : i32
    return %c0_i32, %c0_i32_0 : i32, i32
  }
  func.func @transform_6(%arg0: i32) -> (i32, i32) {
    %c0_i32 = arith.constant 0 : i32
    %c0_i32_0 = arith.constant 0 : i32
    %c0_i32_1 = arith.constant 0 : i32
    return %c0_i32, %c0_i32_0 : i32, i32
  }
  func.func @transform_7(%arg0: i32) -> (i32, i32) {
    %c0_i32 = arith.constant 0 : i32
    %c0_i32_0 = arith.constant 0 : i32
    %c0_i32_1 = arith.constant 0 : i32
    return %c0_i32, %c0_i32_0 : i32, i32
  }
  func.func @transform_8(%arg0: i32) -> (i32, i32) {
    %c0_i32 = arith.constant 0 : i32
    %c0_i32_0 = arith.constant 0 : i32
    return %arg0, %c0_i32 : i32, i32
  }
}

</mosaic_0001>

<bundles_post_ra>
// kernel: bottleneck_forward.6
= control target key start
LH: loop header
LB: loop body
LE: loop exit
PB: predicated region body
PF: predicated region fallthrough
CT: control target
= control target key end

     0   :  { %s2090_s4 = inlined_call_operand.vmem [shape: bf16[128,128], index: 4, kind: input, shape index: {}]   ;;  %s2091_s1 = inlined_call_operand.vmem [shape: f32[2,128], index: 1, kind: input, shape index: {}]   ;;  %s2092_s0 = inlined_call_operand.vmem [shape: bf16[512,128], index: 0, kind: input, shape index: {}]   ;;  %s2093_s2 = inlined_call_operand.vmem [shape: f32[1,128], index: 2, kind: input, shape index: {}]   ;;  %s2094_s3 = inlined_call_operand.vmem [shape: f32[1,128], index: 3, kind: input, shape index: {}]   ;;  %s2095_s5 = inlined_call_operand.vmem [shape: bf16[512,128], index: 5, kind: output, shape index: {0}]   ;;  %s2096_s6 = inlined_call_operand.vmem [shape: f32[1,2,128], index: 6, kind: output, shape index: {1}]  }
   0x1   :  { %v1021_v0 = vld [vmem:[%s2090_s4 + $0x38] sm:$0xff]  ;;  %v1020_v1 = vld [vmem:[%s2090_s4 + $0x30] sm:$0xff]  ;;  %v22_v2 = vld [vmem:[%s2091_s1] sm:$0x3] }
   0x2   :  { %473 = vmatpush.bf16.msra.mxu0 %v1021_v0  ;;  %1372 = vmatpush.bf16.msra.mxu1 %v1021_v0  ;;  %v1442_v3 = vmul.f32 0.001953125, %v22_v2  ;;  %v1019_v5 = vld [vmem:[%s2090_s4 + $0x28] sm:$0xff]  ;;  %v1018_v8 = vld [vmem:[%s2090_s4 + $0x20] sm:$0xff]  ;;  %v1017_v11 = vld [vmem:[%s2090_s4 + $0x18] sm:$0xff] }
   0x3   :  { %1373 = vmatpush.bf16.msra.mxu2 %v1021_v0  ;;  %1374 = vmatpush.bf16.msra.mxu3 %v1021_v0  ;;  %v1016_v12 = vld [vmem:[%s2090_s4 + $0x10] sm:$0xff]  ;;  %v1015_v14 = vld [vmem:[%s2090_s4 + $0x8] sm:$0xff]  ;;  %v1014_v17 = vld [vmem:[%s2090_s4] sm:$0xff] }
   0x4   :  { %v26_v4 = vmul.f32 %v1442_v3, %v1442_v3  ;;  %v23_v22 = vld [vmem:[%s2093_s2] sm:$0x1]  ;;  %v1310_v40 = vld [vmem:[%s2092_s0 + $0x8] sm:$0xff]  }
   0x5   :  { %v1023_v23 = vld [vmem:[%s2092_s0] sm:$0xff]   ;;  %v1028_v47 = vunpack.c.l.bf16 %v1310_v40  ;;  %v1029_v48 = vunpack.c.h.bf16 %v1310_v40  ;;  %v1318_v51 = vld [vmem:[%s2092_s0 + $0x48] sm:$0xff]  }
   0x6   :  { %474 = vmatpush.bf16.msra.mxu0 %v1020_v1  ;;  %1375 = vmatpush.bf16.msra.mxu1 %v1020_v1  ;;  %v28_v6 = vrot.slane %v26_v4, 7  ;;  %v1317_v24 = vld [vmem:[%s2092_s0 + $0x40] sm:$0xff]   ;;  %v1024_v27 = vunpack.c.l.bf16 %v1023_v23  ;;  %v1025_v28 = vunpack.c.h.bf16 %v1023_v23  ;;  %v1060_v53 = vunpack.c.l.bf16 %v1318_v51 }
   0x7   :  { %1376 = vmatpush.bf16.msra.mxu2 %v1020_v1  ;;  %1377 = vmatpush.bf16.msra.mxu3 %v1020_v1  ;;  %v24_v29 = vld [vmem:[%s2094_s3] sm:$0x1]  ;;  %v1056_v30 = vunpack.c.l.bf16 %v1317_v24  ;;  %v1057_v31 = vunpack.c.h.bf16 %v1317_v24  ;;  %v1061_v54 = vunpack.c.h.bf16 %v1318_v51 }
   0x8   :  { %v30_v7 = vsub.f32 %v1442_v3, %v28_v6  ;;  %v1325_v0 = vld [vmem:[%s2092_s0 + $0x80] sm:$0xff]  }
   0x9   :  { %v1088_v4 = vunpack.c.l.bf16 %v1325_v0 }
   0xa   :  { %475 = vmatpush.bf16.msra.mxu0 %v1019_v5  ;;  %1378 = vmatpush.bf16.msra.mxu1 %v1019_v5  ;;  %v31_v9 = vmax.f32 %v30_v7, 0.0 }
   0xb   :  { %1379 = vmatpush.bf16.msra.mxu2 %v1019_v5  ;;  %1380 = vmatpush.bf16.msra.mxu3 %v1019_v5  ;;  %v1089_v5 = vunpack.c.h.bf16 %v1325_v0  ;;  %v1327_v0 = vld [vmem:[%s2092_s0 + $0x90] sm:$0xff]  }
   0xc   :  { %v32_v10 = vadd.f32 1e-05, %v31_v9 }
   0xe   :  { %476 = vmatpush.bf16.msra.mxu0 %v1018_v8  ;;  %1381 = vmatpush.bf16.msra.mxu1 %v1018_v8  ;;  %1396 = vrsqrt.f32 %v32_v10  ;;  %vm39_vm0 = vweird.f32 %v32_v10 }
   0xf   :  { %1382 = vmatpush.bf16.msra.mxu2 %v1018_v8  ;;  %1383 = vmatpush.bf16.msra.mxu3 %v1018_v8 }
  0x12   :  { %477 = vmatpush.bf16.msra.mxu0 %v1017_v11  ;;  %1384 = vmatpush.bf16.msra.mxu1 %v1017_v11 }
  0x13   :  { %1385 = vmatpush.bf16.msra.mxu2 %v1017_v11  ;;  %1386 = vmatpush.bf16.msra.mxu3 %v1017_v11 }
  0x14   :  { %v1397_v13 = vpop.eup %1396 }
  0x15   :  { %v34_v15 = vmul.f32 %v1397_v13, %v32_v10  ;;  %vm40_vm1 = vweird.f32 %v1397_v13 }
  0x16   :  { %478 = vmatpush.bf16.msra.mxu0 %v1016_v12  ;;  %1387 = vmatpush.bf16.msra.mxu1 %v1016_v12  ;;  %vm41_vm2 = vmor %vm39_vm0, %vm40_vm1 }
  0x17   :  { %1388 = vmatpush.bf16.msra.mxu2 %v1016_v12  ;;  %1389 = vmatpush.bf16.msra.mxu3 %v1016_v12  ;;  %v35_v16 = vmul.f32 %v1397_v13, %v34_v15 }
  0x19   :  { %v36_v18 = vmul.f32 0.5, %v35_v16  ;;  %v1319_v16 = vld [vmem:[%s2092_s0 + $0x50] sm:$0xff]  }
  0x1a   :  { %479 = vmatpush.bf16.msra.mxu0 %v1015_v14  ;;  %1390 = vmatpush.bf16.msra.mxu1 %v1015_v14 }
  0x1b   :  { %1391 = vmatpush.bf16.msra.mxu2 %v1015_v14  ;;  %1392 = vmatpush.bf16.msra.mxu3 %v1015_v14  ;;  %v37_v19 = vsub.f32 1.5, %v36_v18 }
  0x1d   :  { %v38_v20 = vmul.f32 %v1397_v13, %v37_v19  ;;  %v1064_v19 = vunpack.c.l.bf16 %v1319_v16 }
  0x1e   :  { %480 = vmatpush.bf16.msra.mxu0 %v1014_v17  ;;  %1393 = vmatpush.bf16.msra.mxu1 %v1014_v17 }
  0x1f   :  { %1394 = vmatpush.bf16.msra.mxu2 %v1014_v17  ;;  %1395 = vmatpush.bf16.msra.mxu3 %v1014_v17  ;;  %v42_v21 = vsel %vm41_vm2, %v1397_v13, %v38_v20  ;;  %v1065_v20 = vunpack.c.h.bf16 %v1319_v16 }
  0x20   :  { %44 = vst [vmem:[#allocation1] sm:$0xff] %v42_v21 }
  0x27   :  { %v46_v25 = vld [vmem:[#allocation1 + $0x1] ss:$9 sm:$0xff] }
  0x28   :  { %v48_v26 = vmul.f32 %v46_v25, %v23_v22 }
  0x2a   :  { %v49_v32 = vmul.f32 %v48_v26, %v1442_v3  ;;  %v1478_v33 = vperm.slane %v48_v26, 0  ;;  %v1311_v3 = vld [vmem:[%s2092_s0 + $0x10] sm:$0xff]  }
  0x2b   :  { %v1032_v10 = vunpack.c.l.bf16 %v1311_v3  ;;  %v1033_v12 = vunpack.c.h.bf16 %v1311_v3  ;;  %v1096_v3 = vunpack.c.l.bf16 %v1327_v0 }
  0x2c   :  { %v50_v34 = vsub.f32 %v24_v29, %v49_v32  ;;  %v182_v35 = vmul.f32 %v1024_v27, %v1478_v33  ;;  %v183_v36 = vmul.f32 %v1025_v28, %v1478_v33  ;;  %v198_v37 = vmul.f32 %v1056_v30, %v1478_v33  ;;  %v1326_v30 = vld [vmem:[%s2092_s0 + $0x88] sm:$0xff]  }
  0x2d   :  { %v199_v38 = vmul.f32 %v1057_v31, %v1478_v33  ;;  %v184_v56 = vmul.f32 %v1028_v47, %v1478_v33  ;;  %v185_v57 = vmul.f32 %v1029_v48, %v1478_v33  ;;  %v200_v58 = vmul.f32 %v1060_v53, %v1478_v33  ;;  %v1320_v48 = vld [vmem:[%s2092_s0 + $0x58] sm:$0xff]  }
  0x2e   :  { %v1484_v39 = vperm.slane %v50_v34, 0  ;;  %v201_v59 = vmul.f32 %v1061_v54, %v1478_v33  ;;  %v214_v8 = vmul.f32 %v1088_v4, %v1478_v33  ;;  %v215_v9 = vmul.f32 %v1089_v5, %v1478_v33  ;;  %v1312_v34 = vld [vmem:[%s2092_s0 + $0x18] sm:$0xff]  }
  0x2f   :  { %v186_v21 = vmul.f32 %v1032_v10, %v1478_v33  ;;  %v187_v22 = vmul.f32 %v1033_v12, %v1478_v33  ;;  %v202_v24 = vmul.f32 %v1064_v19, %v1478_v33  ;;  %v203_v25 = vmul.f32 %v1065_v20, %v1478_v33 }
  0x30   :  { %v249_v41 = vadd.f32 %v1484_v39, %v182_v35  ;;  %v250_v42 = vadd.f32 %v1484_v39, %v183_v36  ;;  %v265_v43 = vadd.f32 %v1484_v39, %v198_v37  ;;  %v266_v44 = vadd.f32 %v1484_v39, %v199_v38 }
  0x31   :  { %v251_v60 = vadd.f32 %v1484_v39, %v184_v56  ;;  %v252_v61 = vadd.f32 %v1484_v39, %v185_v57  ;;  %v267_v62 = vadd.f32 %v1484_v39, %v200_v58  ;;  %v268_v63 = vadd.f32 %v1484_v39, %v201_v59 }
  0x32   :  { %v313_v45 = vmax.f32 %v249_v41, 0.0  ;;  %v314_v46 = vmax.f32 %v250_v42, 0.0  ;;  %v329_v49 = vmax.f32 %v265_v43, 0.0  ;;  %v330_v50 = vmax.f32 %v266_v44, 0.0 }
  0x33   :  { %v315_v1 = vmax.f32 %v251_v60, 0.0  ;;  %v316_v2 = vmax.f32 %v252_v61, 0.0  ;;  %v331_v6 = vmax.f32 %v267_v62, 0.0  ;;  %v332_v7 = vmax.f32 %v268_v63, 0.0 }
  0x34   :  { %v377_v52 = vpack.c.bf16 %v314_v46, %v313_v45  ;;  %v385_v55 = vpack.c.bf16 %v330_v50, %v329_v49  ;;  %v281_v13 = vadd.f32 %v1484_v39, %v214_v8  ;;  %v282_v14 = vadd.f32 %v1484_v39, %v215_v9 }
  0x35   :  { %v378_v11 = vpack.c.bf16 %v316_v2, %v315_v1  ;;  %v386_v15 = vpack.c.bf16 %v332_v7, %v331_v6  ;;  %v253_v26 = vadd.f32 %v1484_v39, %v186_v21  ;;  %v254_v27 = vadd.f32 %v1484_v39, %v187_v22  ;;  %v1333_v1 = vld [vmem:[%s2092_s0 + $0xc0] sm:$0xff]  }
  0x36   :  { %481 = vmatmul.bf16.vlgmr.msra.gmra.mxu0 %v377_v52  ;;  %521 = vmatmul.bf16.vlgmr.msra.gmra.mxu1 %v385_v55  ;;  %v345_v17 = vmax.f32 %v281_v13, 0.0  ;;  %v346_v18 = vmax.f32 %v282_v14, 0.0  ;;  %v269_v28 = vadd.f32 %v1484_v39, %v202_v24  ;;  %v270_v29 = vadd.f32 %v1484_v39, %v203_v25  ;;  %v1313_v2 = vld [vmem:[%s2092_s0 + $0x20] sm:$0xff]  }
  0x37   :  { %v317_v31 = vmax.f32 %v253_v26, 0.0  ;;  %v318_v32 = vmax.f32 %v254_v27, 0.0  ;;  %v1092_v35 = vunpack.c.l.bf16 %v1326_v30  ;;  %v1093_v36 = vunpack.c.h.bf16 %v1326_v30  ;;  %v1321_v21 = vld [vmem:[%s2092_s0 + $0x60] sm:$0xff]  }
  0x38   :  { %v393_v23 = vpack.c.bf16 %v346_v18, %v345_v17  ;;  %v333_v37 = vmax.f32 %v269_v28, 0.0  ;;  %v334_v38 = vmax.f32 %v270_v29, 0.0  ;;  %v1036_v42 = vunpack.c.l.bf16 %v1312_v34 }
  0x39   :  { %v216_v40 = vmul.f32 %v1092_v35, %v1478_v33  ;;  %v217_v41 = vmul.f32 %v1093_v36, %v1478_v33  ;;  %v1037_v43 = vunpack.c.h.bf16 %v1312_v34  ;;  %v379_v44 = vpack.c.bf16 %v318_v32, %v317_v31 }
  0x3a   :  { %561 = vmatmul.bf16.vlgmr.msra.gmra.mxu2 %v393_v23  ;;  %v387_v47 = vpack.c.bf16 %v334_v38, %v333_v37  ;;  %v1068_v51 = vunpack.c.l.bf16 %v1320_v48  ;;  %v1069_v52 = vunpack.c.h.bf16 %v1320_v48  ;;  %v188_v53 = vmul.f32 %v1036_v42, %v1478_v33  ;;  %v1328_v42 = vld [vmem:[%s2092_s0 + $0x98] sm:$0xff]  }
  0x3b   :  { %v283_v45 = vadd.f32 %v1484_v39, %v216_v40  ;;  %v284_v46 = vadd.f32 %v1484_v39, %v217_v41  ;;  %v189_v54 = vmul.f32 %v1037_v43, %v1478_v33  ;;  %v1097_v4 = vunpack.c.h.bf16 %v1327_v0  ;;  %v1334_v43 = vld [vmem:[%s2092_s0 + $0xc8] sm:$0xff]  }
  0x3c   :  { %v204_v56 = vmul.f32 %v1068_v51, %v1478_v33  ;;  %v205_v57 = vmul.f32 %v1069_v52, %v1478_v33  ;;  %v255_v58 = vadd.f32 %v1484_v39, %v188_v53  ;;  %v1120_v5 = vunpack.c.l.bf16 %v1333_v1 }
  0x3d   :  { %v347_v49 = vmax.f32 %v283_v45, 0.0  ;;  %v348_v50 = vmax.f32 %v284_v46, 0.0  ;;  %v256_v59 = vadd.f32 %v1484_v39, %v189_v54  ;;  %v1121_v6 = vunpack.c.h.bf16 %v1333_v1 }
  0x3e   :  { %v271_v60 = vadd.f32 %v1484_v39, %v204_v56  ;;  %v272_v61 = vadd.f32 %v1484_v39, %v205_v57  ;;  %v319_v62 = vmax.f32 %v255_v58, 0.0  ;;  %v218_v9 = vmul.f32 %v1096_v3, %v1478_v33 }
  0x3f   :  { %v394_v55 = vpack.c.bf16 %v348_v50, %v347_v49  ;;  %v320_v63 = vmax.f32 %v256_v59, 0.0  ;;  %v219_v10 = vmul.f32 %v1097_v4, %v1478_v33  ;;  %v231_v12 = vmul.f32 %v1121_v6, %v1478_v33 }
  0x40   :  { %v335_v7 = vmax.f32 %v271_v60, 0.0  ;;  %v336_v8 = vmax.f32 %v272_v61, 0.0  ;;  %v1040_v14 = vunpack.c.l.bf16 %v1313_v2  ;;  %v285_v16 = vadd.f32 %v1484_v39, %v218_v9 }
  0x41   :  { %v380_v13 = vpack.c.bf16 %v320_v63, %v319_v62  ;;  %v286_v17 = vadd.f32 %v1484_v39, %v219_v10  ;;  %v298_v19 = vadd.f32 %v1484_v39, %v231_v12  ;;  %v1072_v28 = vunpack.c.l.bf16 %v1321_v21  ;;  %v1322_v63 = vld [vmem:[%s2092_s0 + $0x68] sm:$0xff]  }
  0x42   :  { %v388_v20 = vpack.c.bf16 %v336_v8, %v335_v7  ;;  %v349_v22 = vmax.f32 %v285_v16, 0.0  ;;  %v190_v26 = vmul.f32 %v1040_v14, %v1478_v33  ;;  %v1073_v29 = vunpack.c.h.bf16 %v1321_v21 }
  0x43   :  { %v350_v23 = vmax.f32 %v286_v17, 0.0  ;;  %v362_v25 = vmax.f32 %v298_v19, 0.0  ;;  %v206_v32 = vmul.f32 %v1072_v28, %v1478_v33  ;;  %v1100_v45 = vunpack.c.l.bf16 %v1328_v42  ;;  %v1335_v19 = vld [vmem:[%s2092_s0 + $0xd0] sm:$0xff]  }
  0x44   :  { %v207_v34 = vmul.f32 %v1073_v29, %v1478_v33  ;;  %v257_v35 = vadd.f32 %v1484_v39, %v190_v26  ;;  %v1101_v46 = vunpack.c.h.bf16 %v1328_v42  ;;  %v1125_v48 = vunpack.c.h.bf16 %v1334_v43 }
  0x45   :  { %v395_v30 = vpack.c.bf16 %v350_v23, %v349_v22  ;;  %v273_v37 = vadd.f32 %v1484_v39, %v206_v32  ;;  %v220_v51 = vmul.f32 %v1100_v45, %v1478_v33  ;;  %v1076_v6 = vunpack.c.l.bf16 %v1322_v63 }
  0x46   :  { %486 = vmatmul.bf16.gmra.mxu0 %v378_v11  ;;  %526 = vmatmul.bf16.gmra.mxu1 %v386_v15  ;;  %v230_v11 = vmul.f32 %v1120_v5, %v1478_v33  ;;  %v1041_v15 = vunpack.c.h.bf16 %v1313_v2  ;;  %v274_v38 = vadd.f32 %v1484_v39, %v207_v34  ;;  %v321_v40 = vmax.f32 %v257_v35, 0.0 }
  0x47   :  { %v337_v49 = vmax.f32 %v273_v37, 0.0  ;;  %v221_v52 = vmul.f32 %v1101_v46, %v1478_v33  ;;  %v233_v54 = vmul.f32 %v1125_v48, %v1478_v33  ;;  %v287_v58 = vadd.f32 %v1484_v39, %v220_v51 }
  0x48   :  { %v297_v18 = vadd.f32 %v1484_v39, %v230_v11  ;;  %v191_v27 = vmul.f32 %v1041_v15, %v1478_v33  ;;  %v338_v50 = vmax.f32 %v274_v38, 0.0  ;;  %v1077_v7 = vunpack.c.h.bf16 %v1322_v63 }
  0x49   :  { %v288_v59 = vadd.f32 %v1484_v39, %v221_v52  ;;  %v300_v61 = vadd.f32 %v1484_v39, %v233_v54  ;;  %v351_v0 = vmax.f32 %v287_v58, 0.0  ;;  %v208_v10 = vmul.f32 %v1076_v6, %v1478_v33 }
  0x4a   :  { %566 = vmatmul.bf16.gmra.mxu2 %v394_v55  ;;  %v361_v24 = vmax.f32 %v297_v18, 0.0  ;;  %v258_v36 = vadd.f32 %v1484_v39, %v191_v27  ;;  %v389_v62 = vpack.c.bf16 %v338_v50, %v337_v49  ;;  %v209_v11 = vmul.f32 %v1077_v7, %v1478_v33  ;;  %v1329_v18 = vld [vmem:[%s2092_s0 + $0xa0] sm:$0xff]  }
  0x4b   :  { %v352_v1 = vmax.f32 %v288_v59, 0.0  ;;  %v364_v3 = vmax.f32 %v300_v61, 0.0  ;;  %v275_v14 = vadd.f32 %v1484_v39, %v208_v10  ;;  %v1104_v21 = vunpack.c.l.bf16 %v1329_v18  ;;  %v1336_v61 = vld [vmem:[%s2092_s0 + $0xd8] sm:$0xff]  }
  0x4c   :  { %v401_v31 = vpack.c.bf16 %v362_v25, %v361_v24  ;;  %v322_v41 = vmax.f32 %v258_v36, 0.0  ;;  %v276_v15 = vadd.f32 %v1484_v39, %v209_v11  ;;  %v1105_v22 = vunpack.c.h.bf16 %v1329_v18 }
  0x4d   :  { %v396_v8 = vpack.c.bf16 %v352_v1, %v351_v0  ;;  %v1128_v23 = vunpack.c.l.bf16 %v1335_v19  ;;  %v1129_v24 = vunpack.c.h.bf16 %v1335_v19  ;;  %v339_v25 = vmax.f32 %v275_v14, 0.0 }
  0x4e   :  { %601 = vmatmul.bf16.vlgmr.msra.gmra.mxu3 %v401_v31  ;;  %v381_v55 = vpack.c.bf16 %v322_v41, %v321_v40  ;;  %v340_v26 = vmax.f32 %v276_v15, 0.0  ;;  %v222_v27 = vmul.f32 %v1104_v21, %v1478_v33  ;;  %v223_v28 = vmul.f32 %v1105_v22, %v1478_v33  ;;  %v1323_v41 = vld [vmem:[%s2092_s0 + $0x70] sm:$0xff]  }
  0x4f   :  { %v234_v29 = vmul.f32 %v1128_v23, %v1478_v33  ;;  %v1080_v48 = vunpack.c.l.bf16 %v1323_v41  ;;  %v1081_v49 = vunpack.c.h.bf16 %v1323_v41  ;;  %v1132_v1 = vunpack.c.l.bf16 %v1336_v61 }
  0x50   :  { %v289_v35 = vadd.f32 %v1484_v39, %v222_v27  ;;  %v290_v36 = vadd.f32 %v1484_v39, %v223_v28  ;;  %v390_v40 = vpack.c.bf16 %v340_v26, %v339_v25 }
  0x51   :  { %v301_v37 = vadd.f32 %v1484_v39, %v234_v29  ;;  %v210_v52 = vmul.f32 %v1080_v48, %v1478_v33  ;;  %v236_v7 = vmul.f32 %v1132_v1, %v1478_v33 }
  0x52   :  { %v353_v42 = vmax.f32 %v289_v35, 0.0 }
  0x53   :  { %v303_v14 = vadd.f32 %v1484_v39, %v236_v7 }
  0x56   :  { %491 = vmatmul.bf16.gmra.mxu0 %v379_v44  ;;  %531 = vmatmul.bf16.gmra.mxu1 %v387_v47  ;;  %v1314_v44 = vld [vmem:[%s2092_s0 + $0x28] sm:$0xff]   ;;  %v1124_v47 = vunpack.c.l.bf16 %v1334_v43  ;;  %v354_v43 = vmax.f32 %v290_v36, 0.0 }
  0x57   :  { %v1044_v56 = vunpack.c.l.bf16 %v1314_v44  ;;  %v1045_v57 = vunpack.c.h.bf16 %v1314_v44  ;;  %v365_v44 = vmax.f32 %v301_v37, 0.0  ;;  %v1331_v37 = vld [vmem:[%s2092_s0 + $0xb0] sm:$0xff]  }
  0x58   :  { %v232_v53 = vmul.f32 %v1124_v47, %v1478_v33  ;;  %v397_v50 = vpack.c.bf16 %v354_v43, %v353_v42  ;;  %v1113_v41 = vunpack.c.h.bf16 %v1331_v37 }
  0x59   :  { %v192_v4 = vmul.f32 %v1044_v56, %v1478_v33  ;;  %v193_v5 = vmul.f32 %v1045_v57, %v1478_v33  ;;  %v277_v56 = vadd.f32 %v1484_v39, %v210_v52 }
  0x5a   :  { %571 = vmatmul.bf16.gmra.mxu2 %v395_v30  ;;  %v299_v60 = vadd.f32 %v1484_v39, %v232_v53  ;;  %v235_v30 = vmul.f32 %v1129_v24, %v1478_v33  ;;  %v211_v53 = vmul.f32 %v1081_v49, %v1478_v33 }
  0x5b   :  { %v259_v12 = vadd.f32 %v1484_v39, %v192_v4 }
  0x5c   :  { %v363_v2 = vmax.f32 %v299_v60, 0.0  ;;  %v302_v38 = vadd.f32 %v1484_v39, %v235_v30  ;;  %v278_v57 = vadd.f32 %v1484_v39, %v211_v53  ;;  %v1330_v60 = vld [vmem:[%s2092_s0 + $0xa8] sm:$0xff]  }
  0x5d   :  { %v323_v16 = vmax.f32 %v259_v12, 0.0  ;;  %v1108_v63 = vunpack.c.l.bf16 %v1330_v60  ;;  %v1109_v0 = vunpack.c.h.bf16 %v1330_v60 }
  0x5e   :  { %v402_v9 = vpack.c.bf16 %v364_v3, %v363_v2  ;;  %v366_v45 = vmax.f32 %v302_v38, 0.0  ;;  %v1133_v2 = vunpack.c.h.bf16 %v1336_v61  ;;  %v341_v3 = vmax.f32 %v277_v56, 0.0  ;;  %v1337_v38 = vld [vmem:[%s2092_s0 + $0xe0] sm:$0xff]  }
  0x5f   :  { %v342_v4 = vmax.f32 %v278_v57, 0.0  ;;  %v225_v6 = vmul.f32 %v1109_v0, %v1478_v33  ;;  %v1136_v42 = vunpack.c.l.bf16 %v1337_v38  ;;  %v1137_v43 = vunpack.c.h.bf16 %v1337_v38 }
  0x60   :  { %606 = vmatmul.bf16.gmra.mxu3 %v402_v9  ;;  %v403_v51 = vpack.c.bf16 %v366_v45, %v365_v44 }
  0x61   :  { %v238_v48 = vmul.f32 %v1136_v42, %v1478_v33  ;;  %v239_v49 = vmul.f32 %v1137_v43, %v1478_v33 }
  0x63   :  { %v305_v53 = vadd.f32 %v1484_v39, %v238_v48 }
  0x66   :  { %496 = vmatmul.bf16.gmra.mxu0 %v380_v13  ;;  %536 = vmatmul.bf16.gmra.mxu1 %v388_v20  ;;  %v260_v13 = vadd.f32 %v1484_v39, %v193_v5  ;;  %v1315_v20 = vld [vmem:[%s2092_s0 + $0x30] sm:$0xff]   ;;  %v224_v5 = vmul.f32 %v1108_v63, %v1478_v33  ;;  %v1338_v63 = vld [vmem:[%s2092_s0 + $0xe8] sm:$0xff]  }
  0x67   :  { %v1048_v32 = vunpack.c.l.bf16 %v1315_v20  ;;  %v1049_v34 = vunpack.c.h.bf16 %v1315_v20  ;;  %v367_v20 = vmax.f32 %v303_v14, 0.0 }
  0x68   :  { %v324_v17 = vmax.f32 %v260_v13, 0.0  ;;  %v291_v12 = vadd.f32 %v1484_v39, %v224_v5  ;;  %v292_v13 = vadd.f32 %v1484_v39, %v225_v6 }
  0x69   :  { %v194_v46 = vmul.f32 %v1048_v32, %v1478_v33  ;;  %v195_v47 = vmul.f32 %v1049_v34, %v1478_v33 }
  0x6a   :  { %576 = vmatmul.bf16.gmra.mxu2 %v396_v8  ;;  %v382_v31 = vpack.c.bf16 %v324_v17, %v323_v16  ;;  %v237_v8 = vmul.f32 %v1133_v2, %v1478_v33  ;;  %v391_v16 = vpack.c.bf16 %v342_v4, %v341_v3  ;;  %v1324_v17 = vld [vmem:[%s2092_s0 + $0x78] sm:$0xff]   ;;  %v355_v18 = vmax.f32 %v291_v12, 0.0 }
  0x6b   :  { %v261_v54 = vadd.f32 %v1484_v39, %v194_v46  ;;  %v356_v19 = vmax.f32 %v292_v13, 0.0  ;;  %v1084_v24 = vunpack.c.l.bf16 %v1324_v17  ;;  %v1085_v25 = vunpack.c.h.bf16 %v1324_v17 }
  0x6c   :  { %v304_v15 = vadd.f32 %v1484_v39, %v237_v8  ;;  %v1140_v2 = vunpack.c.l.bf16 %v1338_v63  ;;  %v1141_v3 = vunpack.c.h.bf16 %v1338_v63 }
  0x6d   :  { %v325_v58 = vmax.f32 %v261_v54, 0.0  ;;  %v398_v26 = vpack.c.bf16 %v356_v19, %v355_v18  ;;  %v212_v28 = vmul.f32 %v1084_v24, %v1478_v33  ;;  %v213_v29 = vmul.f32 %v1085_v25, %v1478_v33 }
  0x6e   :  { %v368_v21 = vmax.f32 %v304_v15, 0.0  ;;  %v306_v54 = vadd.f32 %v1484_v39, %v239_v49  ;;  %v240_v6 = vmul.f32 %v1140_v2, %v1478_v33  ;;  %v241_v7 = vmul.f32 %v1141_v3, %v1478_v33 }
  0x6f   :  { %v279_v32 = vadd.f32 %v1484_v39, %v212_v28  ;;  %v280_v34 = vadd.f32 %v1484_v39, %v213_v29 }
  0x70   :  { %611 = vmatmul.bf16.gmra.mxu3 %v403_v51  ;;  %v404_v27 = vpack.c.bf16 %v368_v21, %v367_v20 }
  0x71   :  { %v343_v44 = vmax.f32 %v279_v32, 0.0  ;;  %v344_v45 = vmax.f32 %v280_v34, 0.0 }
  0x76   :  { %501 = vmatmul.bf16.gmra.mxu0 %v381_v55  ;;  %541 = vmatmul.bf16.gmra.mxu1 %v389_v62  ;;  %v262_v55 = vadd.f32 %v1484_v39, %v195_v47  ;;  %v1316_v62 = vld [vmem:[%s2092_s0 + $0x38] sm:$0xff]   ;;  %v227_v47 = vmul.f32 %v1113_v41, %v1478_v33 }
  0x77   :  { %v1052_v10 = vunpack.c.l.bf16 %v1316_v62  ;;  %v1053_v11 = vunpack.c.h.bf16 %v1316_v62  ;;  %v1332_v62 = vld [vmem:[%s2092_s0 + $0xb8] sm:$0xff]  }
  0x78   :  { %v326_v59 = vmax.f32 %v262_v55, 0.0  ;;  %v294_v52 = vadd.f32 %v1484_v39, %v227_v47  ;;  %v392_v55 = vpack.c.bf16 %v344_v45, %v343_v44  ;;  %v1116_v0 = vunpack.c.l.bf16 %v1332_v62 }
  0x79   :  { %v196_v22 = vmul.f32 %v1052_v10, %v1478_v33  ;;  %v197_v23 = vmul.f32 %v1053_v11, %v1478_v33  ;;  %v1117_v1 = vunpack.c.h.bf16 %v1332_v62  ;;  %v307_v10 = vadd.f32 %v1484_v39, %v240_v6 }
  0x7a   :  { %581 = vmatmul.bf16.gmra.mxu2 %v397_v50  ;;  %v383_v9 = vpack.c.bf16 %v326_v59, %v325_v58  ;;  %v358_v57 = vmax.f32 %v294_v52, 0.0  ;;  %v369_v58 = vmax.f32 %v305_v53, 0.0  ;;  %v370_v59 = vmax.f32 %v306_v54, 0.0  ;;  %v1340_v52 = vld [vmem:[%s2092_s0 + $0xf8] sm:$0xff]  }
  0x7b   :  { %v263_v30 = vadd.f32 %v1484_v39, %v196_v22  ;;  %v228_v4 = vmul.f32 %v1116_v0, %v1478_v33  ;;  %v229_v5 = vmul.f32 %v1117_v1, %v1478_v33  ;;  %v308_v11 = vadd.f32 %v1484_v39, %v241_v7 }
  0x7c   :  { %v405_v61 = vpack.c.bf16 %v370_v59, %v369_v58  ;;  %v1148_v54 = vunpack.c.l.bf16 %v1340_v52 }
  0x7d   :  { %v327_v35 = vmax.f32 %v263_v30, 0.0  ;;  %v295_v8 = vadd.f32 %v1484_v39, %v228_v4  ;;  %v372_v17 = vmax.f32 %v308_v11, 0.0 }
  0x7f   :  { %v359_v14 = vmax.f32 %v295_v8, 0.0 }
  0x80   :  { %616 = vmatmul.bf16.gmra.mxu3 %v404_v27  ;;  %v1339_v27 = vld [vmem:[%s2092_s0 + $0xf0] sm:$0xff]  }
  0x81   :  { %v1144_v29 = vunpack.c.l.bf16 %v1339_v27  ;;  %v1145_v30 = vunpack.c.h.bf16 %v1339_v27 }
  0x83   :  { %v243_v32 = vmul.f32 %v1145_v30, %v1478_v33 }
  0x86   :  { %506 = vmatmul.bf16.gmra.mxu0 %v382_v31  ;;  %546 = vmatmul.bf16.gmra.mxu1 %v390_v40  ;;  %v264_v31 = vadd.f32 %v1484_v39, %v197_v23  ;;  %v1112_v40 = vunpack.c.l.bf16 %v1331_v37 }
  0x88   :  { %v328_v36 = vmax.f32 %v264_v31, 0.0  ;;  %v226_v46 = vmul.f32 %v1112_v40, %v1478_v33  ;;  %v242_v31 = vmul.f32 %v1144_v29, %v1478_v33 }
  0x8a   :  { %586 = vmatmul.bf16.gmra.mxu2 %v398_v26  ;;  %v384_v50 = vpack.c.bf16 %v328_v36, %v327_v35  ;;  %v293_v51 = vadd.f32 %v1484_v39, %v226_v46  ;;  %v309_v34 = vadd.f32 %v1484_v39, %v242_v31  ;;  %v310_v35 = vadd.f32 %v1484_v39, %v243_v32 }
  0x8c   :  { %v357_v56 = vmax.f32 %v293_v51, 0.0  ;;  %v373_v41 = vmax.f32 %v309_v34, 0.0  ;;  %v374_v42 = vmax.f32 %v310_v35, 0.0 }
  0x8e   :  { %v399_v60 = vpack.c.bf16 %v358_v57, %v357_v56  ;;  %v407_v44 = vpack.c.bf16 %v374_v42, %v373_v41  ;;  %v244_v56 = vmul.f32 %v1148_v54, %v1478_v33 }
  0x90   :  { %621 = vmatmul.bf16.gmra.mxu3 %v405_v61  ;;  %v311_v58 = vadd.f32 %v1484_v39, %v244_v56 }
  0x92   :  { %v375_v2 = vmax.f32 %v311_v58, 0.0 }
  0x96   :  { %511 = vmatmul.bf16.gmra.mxu0 %v383_v9  ;;  %551 = vmatmul.bf16.gmra.mxu1 %v391_v16  ;;  %v296_v9 = vadd.f32 %v1484_v39, %v229_v5  ;;  %v371_v16 = vmax.f32 %v307_v10, 0.0 }
  0x98   :  { %v360_v15 = vmax.f32 %v296_v9, 0.0  ;;  %v406_v19 = vpack.c.bf16 %v372_v17, %v371_v16 }
  0x9a   :  { %591 = vmatmul.bf16.gmra.mxu2 %v399_v60  ;;  %v400_v18 = vpack.c.bf16 %v360_v15, %v359_v14 }
  0xa0   :  { %626 = vmatmul.bf16.gmra.mxu3 %v406_v19 }
  0xa6   :  { %516 = vmatmul.bf16.gmra.mxu0 %v384_v50  ;;  %556 = vmatmul.bf16.gmra.mxu1 %v392_v55  ;;  %v1149_v55 = vunpack.c.h.bf16 %v1340_v52 }
  0xa8   :  { %v245_v57 = vmul.f32 %v1149_v55, %v1478_v33 }
  0xaa   :  { %596 = vmatmul.bf16.gmra.mxu2 %v400_v18  ;;  %v312_v59 = vadd.f32 %v1484_v39, %v245_v57 }
  0xac   :  { %v376_v3 = vmax.f32 %v312_v59, 0.0 }
  0xae   :  { %v408_v33 = vpack.c.bf16 %v376_v3, %v375_v2 }
  0xb0   :  { %631 = vmatmul.bf16.gmra.mxu3 %v407_v44 }
  0xb3   :  { %v482_v12 = vpop.f32.mrf.mxu0  ;;  %v1686_v13 = vpop.f32.mrf.mxu1 }
  0xb4   :  { %v840_v21 = vmul.f32 %v482_v12, %v482_v12 }
  0xbb   :  { %v484_v20 = vpop.f32.mrf.mxu0  ;;  %v1688_v25 = vpop.f32.mrf.mxu1 }
  0xbc   :  { %v1153_v22 = vpack.c.bf16 %v484_v20, %v482_v12  ;;  %v770_v23 = vadd.f32 %v484_v20, %v482_v12  ;;  %v841_v24 = vmul.f32 %v484_v20, %v484_v20  ;;  %v1193_v26 = vpack.c.bf16 %v1688_v25, %v1686_v13 }
  0xbd   :  { %v1707_v46 = vpop.f32.mrf.mxu2 }
  0xbe   :  { %1154 = vst [vmem:[%s2095_s5] sm:$0xff] %v1153_v22   ;;  %v904_v28 = vadd.f32 %v841_v24, %v840_v21 }
  0xbf   :  { %1348 = vst [vmem:[%s2095_s5 + $0x40] sm:$0xff] %v1193_v26  }
  0xc0   :  { %636 = vmatmul.bf16.gmra.mxu3 %v408_v33 }
  0xc3   :  { %v487_v36 = vpop.f32.mrf.mxu0  ;;  %v1705_v40 = vpop.f32.mrf.mxu1 }
  0xc4   :  { %v771_v37 = vadd.f32 %v770_v23, %v487_v36  ;;  %v842_v38 = vmul.f32 %v487_v36, %v487_v36 }
  0xc5   :  { %v1726_v61 = vpop.f32.mrf.mxu2 }
  0xc6   :  { %v905_v43 = vadd.f32 %v904_v28, %v842_v38  ;;  %v1233_v1 = vpack.c.bf16 %v1726_v61, %v1707_v46 }
  0xc8   :  { %1356 = vst [vmem:[%s2095_s5 + $0x80] sm:$0xff] %v1233_v1  }
  0xcb   :  { %v489_v45 = vpop.f32.mrf.mxu0  ;;  %v1709_v50 = vpop.f32.mrf.mxu1 }
  0xcc   :  { %v1158_v47 = vpack.c.bf16 %v489_v45, %v487_v36  ;;  %v772_v48 = vadd.f32 %v771_v37, %v489_v45  ;;  %v843_v49 = vmul.f32 %v489_v45, %v489_v45  ;;  %v1198_v51 = vpack.c.bf16 %v1709_v50, %v1705_v40 }
  0xcd   :  { %v1739_v5 = vpop.f32.mrf.mxu2 }
  0xce   :  { %1341 = vst [vmem:[%s2095_s5 + $0x8] sm:$0xff] %v1158_v47   ;;  %v906_v53 = vadd.f32 %v905_v43, %v843_v49 }
  0xcf   :  { %1349 = vst [vmem:[%s2095_s5 + $0x48] sm:$0xff] %v1198_v51  }
  0xd1   :  { %v1764_v18 = vpop.f32.mrf.mxu3 }
  0xd3   :  { %v492_v60 = vpop.f32.mrf.mxu0  ;;  %v1730_v0 = vpop.f32.mrf.mxu1 }
  0xd4   :  { %v1728_v62 = vadd.f32 %v772_v48, %v492_v60  ;;  %v844_v63 = vmul.f32 %v492_v60, %v492_v60 }
  0xd5   :  { %v1751_v10 = vpop.f32.mrf.mxu2 }
  0xd6   :  { %v1734_v4 = vadd.f32 %v906_v53, %v844_v63  ;;  %v1238_v12 = vpack.c.bf16 %v1751_v10, %v1739_v5 }
  0xd8   :  { %1357 = vst [vmem:[%s2095_s5 + $0x88] sm:$0xff] %v1238_v12  }
  0xd9   :  { %v1780_v24 = vpop.f32.mrf.mxu3 }
  0xda   :  { %v1273_v26 = vpack.c.bf16 %v1780_v24, %v1764_v18 }
  0xdb   :  { %v494_v39 = vpop.f32.mrf.mxu0  ;;  %v1741_v7 = vpop.f32.mrf.mxu1 }
  0xdc   :  { %v1163_v6 = vpack.c.bf16 %v494_v39, %v492_v60  ;;  %v1203_v8 = vpack.c.bf16 %v1741_v7, %v1730_v0  ;;  %1364 = vst [vmem:[%s2095_s5 + $0xc0] sm:$0xff] %v1273_v26   ;;  %v845_v56 = vmul.f32 %v494_v39, %v494_v39  ;;  %v774_v57 = vadd.f32 %v1728_v62, %v494_v39 }
  0xdd   :  { %v1760_v15 = vpop.f32.mrf.mxu2 }
  0xde   :  { %1342 = vst [vmem:[%s2095_s5 + $0x10] sm:$0xff] %v1163_v6   ;;  %v908_v59 = vadd.f32 %v1734_v4, %v845_v56 }
  0xdf   :  { %1350 = vst [vmem:[%s2095_s5 + $0x50] sm:$0xff] %v1203_v8  }
  0xe3   :  { %v497_v9 = vpop.f32.mrf.mxu0  ;;  %v1753_v11 = vpop.f32.mrf.mxu1 }
  0xe4   :  { %v1794_v31 = vpop.f32.mrf.mxu3  ;;  %v846_v58 = vmul.f32 %v497_v9, %v497_v9  ;;  %v775_v60 = vadd.f32 %v774_v57, %v497_v9 }
  0xe5   :  { %v1774_v21 = vpop.f32.mrf.mxu2 }
  0xe6   :  { %v1243_v23 = vpack.c.bf16 %v1774_v21, %v1760_v15  ;;  %v909_v3 = vadd.f32 %v908_v59, %v846_v58 }
  0xe8   :  { %1358 = vst [vmem:[%s2095_s5 + $0x90] sm:$0xff] %v1243_v23  }
  0xeb   :  { %v499_v14 = vpop.f32.mrf.mxu0  ;;  %v1762_v17 = vpop.f32.mrf.mxu1 }
  0xec   :  { %v1168_v16 = vpack.c.bf16 %v499_v14, %v497_v9  ;;  %v1208_v19 = vpack.c.bf16 %v1762_v17, %v1753_v11  ;;  %v1810_v38 = vpop.f32.mrf.mxu3  ;;  %v847_v63 = vmul.f32 %v499_v14, %v499_v14  ;;  %v776_v33 = vadd.f32 %v775_v60, %v499_v14 }
  0xed   :  { %v1790_v28 = vpop.f32.mrf.mxu2  ;;  %v1278_v41 = vpack.c.bf16 %v1810_v38, %v1794_v31 }
  0xee   :  { %1343 = vst [vmem:[%s2095_s5 + $0x18] sm:$0xff] %v1168_v16   ;;  %v910_v39 = vadd.f32 %v909_v3, %v847_v63 }
  0xef   :  { %1351 = vst [vmem:[%s2095_s5 + $0x58] sm:$0xff] %v1208_v19  }
  0xf0   :  { %1365 = vst [vmem:[%s2095_s5 + $0xc8] sm:$0xff] %v1278_v41  }
  0xf3   :  { %v502_v20 = vpop.f32.mrf.mxu0  ;;  %v1776_v22 = vpop.f32.mrf.mxu1 }
  0xf4   :  { %v1824_v47 = vpop.f32.mrf.mxu3  ;;  %v848_v6 = vmul.f32 %v502_v20, %v502_v20  ;;  %v777_v19 = vadd.f32 %v776_v33, %v502_v20 }
  0xf5   :  { %v1804_v35 = vpop.f32.mrf.mxu2 }
  0xf6   :  { %v1248_v37 = vpack.c.bf16 %v1804_v35, %v1790_v28  ;;  %v911_v4 = vadd.f32 %v910_v39, %v848_v6 }
  0xf8   :  { %1359 = vst [vmem:[%s2095_s5 + $0x98] sm:$0xff] %v1248_v37  }
  0xfb   :  { %v504_v27 = vpop.f32.mrf.mxu0  ;;  %v1792_v30 = vpop.f32.mrf.mxu1 }
  0xfc   :  { %v1173_v29 = vpack.c.bf16 %v504_v27, %v502_v20  ;;  %v1213_v32 = vpack.c.bf16 %v1792_v30, %v1776_v22  ;;  %v1838_v53 = vpop.f32.mrf.mxu3  ;;  %v849_v23 = vmul.f32 %v504_v27, %v504_v27  ;;  %v778_v9 = vadd.f32 %v777_v19, %v504_v27 }
  0xfd   :  { %v1820_v43 = vpop.f32.mrf.mxu2  ;;  %v1283_v55 = vpack.c.bf16 %v1838_v53, %v1824_v47 }
  0xfe   :  { %1344 = vst [vmem:[%s2095_s5 + $0x20] sm:$0xff] %v1173_v29   ;;  %v912_v26 = vadd.f32 %v911_v4, %v849_v23  ;;  %v856_v4 = vmul.f32 %v1686_v13, %v1686_v13 }
  0xff   :  { %1352 = vst [vmem:[%s2095_s5 + $0x60] sm:$0xff] %v1213_v32  }
 0x100   :  { %1366 = vst [vmem:[%s2095_s5 + $0xd0] sm:$0xff] %v1283_v55  }
 0x103   :  { %v507_v34 = vpop.f32.mrf.mxu0  ;;  %v1806_v36 = vpop.f32.mrf.mxu1 }
 0x104   :  { %v1856_v16 = vpop.f32.mrf.mxu3  ;;  %v850_v14 = vmul.f32 %v507_v34, %v507_v34  ;;  %v779_v29 = vadd.f32 %v778_v9, %v507_v34 }
 0x105   :  { %v1834_v51 = vpop.f32.mrf.mxu2 }
 0x106   :  { %v1253_v54 = vpack.c.bf16 %v1834_v51, %v1820_v43 }
 0x108   :  { %1360 = vst [vmem:[%s2095_s5 + $0xa0] sm:$0xff] %v1253_v54  }
 0x10b   :  { %v509_v42 = vpop.f32.mrf.mxu0  ;;  %v1822_v45 = vpop.f32.mrf.mxu1 }
 0x10c   :  { %v1178_v44 = vpack.c.bf16 %v509_v42, %v507_v34  ;;  %v1218_v48 = vpack.c.bf16 %v1822_v45, %v1806_v36  ;;  %v851_v32 = vmul.f32 %v509_v42, %v509_v42  ;;  %v780_v20 = vadd.f32 %v779_v29, %v509_v42  ;;  %v1870_v55 = vpop.f32.mrf.mxu3 }
 0x10d   :  { %v1852_v2 = vpop.f32.mrf.mxu2  ;;  %v1288_v27 = vpack.c.bf16 %v1870_v55, %v1856_v16 }
 0x10e   :  { %1345 = vst [vmem:[%s2095_s5 + $0x28] sm:$0xff] %v1178_v44   ;;  %v913_v44 = vadd.f32 %v912_v26, %v850_v14  ;;  %v857_v26 = vmul.f32 %v1688_v25, %v1688_v25 }
 0x10f   :  { %1353 = vst [vmem:[%s2095_s5 + $0x68] sm:$0xff] %v1218_v48  }
 0x110   :  { %v914_v57 = vadd.f32 %v913_v44, %v851_v32  ;;  %1367 = vst [vmem:[%s2095_s5 + $0xd8] sm:$0xff] %v1288_v27  }
 0x113   :  { %v512_v49 = vpop.f32.mrf.mxu0  ;;  %v1836_v52 = vpop.f32.mrf.mxu1 }
 0x114   :  { %v852_v48 = vmul.f32 %v512_v49, %v512_v49  ;;  %v781_v58 = vadd.f32 %v780_v20, %v512_v49  ;;  %v1886_v23 = vpop.f32.mrf.mxu3 }
 0x115   :  { %v1866_v41 = vpop.f32.mrf.mxu2 }
 0x116   :  { %v1258_v56 = vpack.c.bf16 %v1866_v41, %v1852_v2  ;;  %v915_v59 = vadd.f32 %v914_v57, %v852_v48 }
 0x118   :  { %1361 = vst [vmem:[%s2095_s5 + $0xa8] sm:$0xff] %v1258_v56  }
 0x11b   :  { %v514_v1 = vpop.f32.mrf.mxu0  ;;  %v1854_v12 = vpop.f32.mrf.mxu1 }
 0x11c   :  { %v1183_v8 = vpack.c.bf16 %v514_v1, %v512_v49  ;;  %v1223_v62 = vpack.c.bf16 %v1854_v12, %v1836_v52  ;;  %v853_v34 = vmul.f32 %v514_v1, %v514_v1  ;;  %v782_v42 = vadd.f32 %v781_v58, %v514_v1  ;;  %v1910_v57 = vpop.f32.mrf.mxu3 }
 0x11d   :  { %v1882_v6 = vpop.f32.mrf.mxu2  ;;  %v1293_v58 = vpack.c.bf16 %v1910_v57, %v1886_v23 }
 0x11e   :  { %1346 = vst [vmem:[%s2095_s5 + $0x30] sm:$0xff] %v1183_v8   ;;  %v916_v63 = vadd.f32 %v915_v59, %v853_v34 }
 0x11f   :  { %1354 = vst [vmem:[%s2095_s5 + $0x70] sm:$0xff] %v1223_v62  }
 0x120   :  { %1368 = vst [vmem:[%s2095_s5 + $0xe0] sm:$0xff] %v1293_v58   ;;  %v869_v58 = vmul.f32 %v1854_v12, %v1854_v12 }
 0x123   :  { %v517_v37 = vpop.f32.mrf.mxu0  ;;  %v1868_v54 = vpop.f32.mrf.mxu1 }
 0x124   :  { %v854_v60 = vmul.f32 %v517_v37, %v517_v37  ;;  %v783_v3 = vadd.f32 %v782_v42, %v517_v37 }
 0x125   :  { %v1905_v48 = vpop.f32.mrf.mxu2 }
 0x126   :  { %v917_v8 = vadd.f32 %v916_v63, %v854_v60  ;;  %v862_v63 = vmul.f32 %v1753_v11, %v1753_v11 }
 0x12b   :  { %v519_v33 = vpop.f32.mrf.mxu0  ;;  %v1884_v19 = vpop.f32.mrf.mxu1 }
 0x12c   :  { %v1188_v62 = vpack.c.bf16 %v519_v33, %v517_v37  ;;  %v784_v49 = vadd.f32 %v783_v3, %v519_v33  ;;  %v855_v39 = vmul.f32 %v519_v33, %v519_v33  ;;  %v1228_v1 = vpack.c.bf16 %v1884_v19, %v1868_v54 }
 0x12d   :  { %v858_v37 = vmul.f32 %v1705_v40, %v1705_v40  ;;  %v1931_v33 = vpop.f32.mrf.mxu2 }
 0x12e   :  { %1347 = vst [vmem:[%s2095_s5 + $0x38] sm:$0xff] %v1188_v62   ;;  %v785_v9 = vadd.f32 %v784_v49, %v1686_v13  ;;  %v918_v14 = vadd.f32 %v917_v8, %v855_v39  ;;  %v859_v13 = vmul.f32 %v1709_v50, %v1709_v50  ;;  %v863_v8 = vmul.f32 %v1762_v17, %v1762_v17 }
 0x12f   :  { %1355 = vst [vmem:[%s2095_s5 + $0x78] sm:$0xff] %v1228_v1   ;;  %v864_v39 = vmul.f32 %v1776_v22, %v1776_v22 }
 0x130   :  { %v786_v29 = vadd.f32 %v785_v9, %v1688_v25  ;;  %v919_v32 = vadd.f32 %v918_v14, %v856_v4  ;;  %v1263_v25 = vpack.c.bf16 %v1905_v48, %v1882_v6  ;;  %v865_v9 = vmul.f32 %v1792_v30, %v1792_v30 }
 0x132   :  { %v787_v44 = vadd.f32 %v786_v29, %v1705_v40  ;;  %v920_v20 = vadd.f32 %v919_v32, %v857_v26  ;;  %v860_v40 = vmul.f32 %v1730_v0, %v1730_v0  ;;  %1362 = vst [vmem:[%s2095_s5 + $0xb0] sm:$0xff] %v1263_v25   ;;  %v866_v26 = vmul.f32 %v1806_v36, %v1806_v36 }
 0x134   :  { %v788_v56 = vadd.f32 %v787_v44, %v1709_v50  ;;  %v921_v27 = vadd.f32 %v920_v20, %v858_v37  ;;  %v861_v50 = vmul.f32 %v1741_v7, %v1741_v7  ;;  %v867_v37 = vmul.f32 %v1822_v45, %v1822_v45 }
 0x135   :  { %v1947_v32 = vpop.f32.mrf.mxu2 }
 0x136   :  { %v789_v34 = vadd.f32 %v788_v56, %v1730_v0  ;;  %v922_v59 = vadd.f32 %v921_v27, %v859_v13 }
 0x138   :  { %v790_v42 = vadd.f32 %v789_v34, %v1741_v7  ;;  %v923_v60 = vadd.f32 %v922_v59, %v860_v40  ;;  %v1936_v7 = vpop.f32.mrf.mxu3 }
 0x13a   :  { %v924_v3 = vadd.f32 %v923_v60, %v861_v50  ;;  %v791_v0 = vadd.f32 %v790_v42, %v1753_v11  ;;  %v871_v42 = vmul.f32 %v1884_v19, %v1884_v19 }
 0x13c   :  { %v792_v62 = vadd.f32 %v791_v0, %v1762_v17  ;;  %v925_v49 = vadd.f32 %v924_v3, %v862_v63  ;;  %v873_v0 = vmul.f32 %v1726_v61, %v1726_v61 }
 0x13e   :  { %v793_v1 = vadd.f32 %v792_v62, %v1776_v22  ;;  %v926_v4 = vadd.f32 %v925_v49, %v863_v8  ;;  %v874_v62 = vmul.f32 %v1739_v5, %v1739_v5 }
 0x140   :  { %v794_v11 = vadd.f32 %v793_v1, %v1792_v30  ;;  %v927_v14 = vadd.f32 %v926_v4, %v864_v39  ;;  %v1952_v20 = vpop.f32.mrf.mxu3  ;;  %v1268_v30 = vpack.c.bf16 %v1947_v32, %v1931_v33  ;;  %v875_v39 = vmul.f32 %v1751_v10, %v1751_v10 }
 0x141   :  { %v1298_v13 = vpack.c.bf16 %v1952_v20, %v1936_v7 }
 0x142   :  { %v795_v17 = vadd.f32 %v794_v11, %v1806_v36  ;;  %v928_v29 = vadd.f32 %v927_v14, %v865_v9  ;;  %v868_v36 = vmul.f32 %v1836_v52, %v1836_v52  ;;  %1363 = vst [vmem:[%s2095_s5 + $0xb8] sm:$0xff] %v1268_v30  }
 0x143   :  { %1369 = vst [vmem:[%s2095_s5 + $0xe8] sm:$0xff] %v1298_v13   ;;  %v880_v13 = vmul.f32 %v1820_v43, %v1820_v43 }
 0x144   :  { %v796_v22 = vadd.f32 %v795_v17, %v1822_v45  ;;  %v929_v44 = vadd.f32 %v928_v29, %v866_v26  ;;  %v878_v17 = vmul.f32 %v1790_v28, %v1790_v28 }
 0x146   :  { %v797_v56 = vadd.f32 %v796_v22, %v1836_v52  ;;  %v930_v27 = vadd.f32 %v929_v44, %v867_v37  ;;  %v870_v52 = vmul.f32 %v1868_v54, %v1868_v54 }
 0x148   :  { %v931_v45 = vadd.f32 %v930_v27, %v868_v36  ;;  %v798_v25 = vadd.f32 %v797_v56, %v1854_v12  ;;  %v1976_v60 = vpop.f32.mrf.mxu3  ;;  %v872_v12 = vmul.f32 %v1707_v46, %v1707_v46  ;;  %v881_v36 = vmul.f32 %v1834_v51, %v1834_v51 }
 0x14a   :  { %v932_v40 = vadd.f32 %v931_v45, %v869_v58  ;;  %v799_v34 = vadd.f32 %v798_v25, %v1868_v54  ;;  %v882_v45 = vmul.f32 %v1852_v2, %v1852_v2 }
 0x14c   :  { %v933_v59 = vadd.f32 %v932_v40, %v870_v52  ;;  %v800_v50 = vadd.f32 %v799_v34, %v1884_v19  ;;  %v883_v40 = vmul.f32 %v1866_v41, %v1866_v41 }
 0x14e   :  { %v801_v63 = vadd.f32 %v800_v50, %v1707_v46  ;;  %v934_v3 = vadd.f32 %v933_v59, %v871_v42 }
 0x150   :  { %v802_v8 = vadd.f32 %v801_v63, %v1726_v61  ;;  %v935_v54 = vadd.f32 %v934_v3, %v872_v12  ;;  %v1990_v46 = vpop.f32.mrf.mxu3  ;;  %v876_v61 = vmul.f32 %v1760_v15, %v1760_v15  ;;  %v886_v3 = vmul.f32 %v1931_v33, %v1931_v33 }
 0x151   :  { %v1303_v9 = vpack.c.bf16 %v1990_v46, %v1976_v60 }
 0x152   :  { %v803_v49 = vadd.f32 %v802_v8, %v1739_v5  ;;  %v936_v19 = vadd.f32 %v935_v54, %v873_v0  ;;  %v877_v5 = vmul.f32 %v1774_v21, %v1774_v21  ;;  %v888_v54 = vmul.f32 %v1764_v18, %v1764_v18 }
 0x153   :  { %1370 = vst [vmem:[%s2095_s5 + $0xf0] sm:$0xff] %v1303_v9  }
 0x154   :  { %v804_v1 = vadd.f32 %v803_v49, %v1751_v10  ;;  %v937_v4 = vadd.f32 %v936_v19, %v874_v62 }
 0x156   :  { %v805_v11 = vadd.f32 %v804_v1, %v1760_v15  ;;  %v938_v14 = vadd.f32 %v937_v4, %v875_v39  ;;  %v879_v15 = vmul.f32 %v1804_v35, %v1804_v35 }
 0x158   :  { %v806_v10 = vadd.f32 %v805_v11, %v1774_v21  ;;  %v939_v26 = vadd.f32 %v938_v14, %v876_v61  ;;  %v2009_v30 = vpop.f32.mrf.mxu3 }
 0x15a   :  { %v940_v29 = vadd.f32 %v939_v26, %v877_v5  ;;  %v807_v37 = vadd.f32 %v806_v10, %v1790_v28 }
 0x15c   :  { %v808_v22 = vadd.f32 %v807_v37, %v1804_v35  ;;  %v941_v44 = vadd.f32 %v940_v29, %v878_v17 }
 0x15e   :  { %v809_v21 = vadd.f32 %v808_v22, %v1820_v43  ;;  %v942_v56 = vadd.f32 %v941_v44, %v879_v15 }
 0x160   :  { %v810_v27 = vadd.f32 %v809_v21, %v1834_v51  ;;  %v943_v28 = vadd.f32 %v942_v56, %v880_v13  ;;  %v639_v43 = vpop.f32.mrf.mxu3  ;;  %v884_v51 = vmul.f32 %v1882_v6, %v1882_v6 }
 0x161   :  { %v1308_v52 = vpack.c.bf16 %v639_v43, %v2009_v30 }
 0x162   :  { %v811_v35 = vadd.f32 %v810_v27, %v1852_v2  ;;  %v944_v25 = vadd.f32 %v943_v28, %v881_v36  ;;  %v899_v36 = vmul.f32 %v1952_v20, %v1952_v20 }
 0x163   :  { %1371 = vst [vmem:[%s2095_s5 + $0xf8] sm:$0xff] %v1308_v52   ;;  %v903_v52 = vmul.f32 %v639_v43, %v639_v43 }
 0x164   :  { %v812_v58 = vadd.f32 %v811_v35, %v1866_v41  ;;  %v945_v34 = vadd.f32 %v944_v25, %v882_v45  ;;  %v885_v41 = vmul.f32 %v1905_v48, %v1905_v48  ;;  %v900_v45 = vmul.f32 %v1976_v60, %v1976_v60 }
 0x165   :  { %v901_v25 = vmul.f32 %v1990_v46, %v1990_v46 }
 0x166   :  { %v946_v59 = vadd.f32 %v945_v34, %v883_v40  ;;  %v813_v50 = vadd.f32 %v812_v58, %v1882_v6  ;;  %v887_v6 = vmul.f32 %v1947_v32, %v1947_v32  ;;  %v902_v40 = vmul.f32 %v2009_v30, %v2009_v30 }
 0x168   :  { %v947_v2 = vadd.f32 %v946_v59, %v884_v51  ;;  %v814_v42 = vadd.f32 %v813_v50, %v1905_v48  ;;  %v889_v48 = vmul.f32 %v1780_v24, %v1780_v24 }
 0x16a   :  { %v948_v12 = vadd.f32 %v947_v2, %v885_v41  ;;  %v815_v63 = vadd.f32 %v814_v42, %v1931_v33  ;;  %v890_v33 = vmul.f32 %v1794_v31, %v1794_v31 }
 0x16c   :  { %v949_v0 = vadd.f32 %v948_v12, %v886_v3  ;;  %v816_v8 = vadd.f32 %v815_v63, %v1947_v32  ;;  %v891_v32 = vmul.f32 %v1810_v38, %v1810_v38 }
 0x16e   :  { %v817_v62 = vadd.f32 %v816_v8, %v1764_v18  ;;  %v950_v49 = vadd.f32 %v949_v0, %v887_v6  ;;  %v892_v18 = vmul.f32 %v1824_v47, %v1824_v47 }
 0x170   :  { %v818_v19 = vadd.f32 %v817_v62, %v1780_v24  ;;  %v951_v39 = vadd.f32 %v950_v49, %v888_v54  ;;  %v893_v24 = vmul.f32 %v1838_v53, %v1838_v53 }
 0x172   :  { %v819_v1 = vadd.f32 %v818_v19, %v1794_v31  ;;  %v952_v4 = vadd.f32 %v951_v39, %v889_v48  ;;  %v894_v31 = vmul.f32 %v1856_v16, %v1856_v16 }
 0x174   :  { %v820_v9 = vadd.f32 %v819_v1, %v1810_v38  ;;  %v953_v61 = vadd.f32 %v952_v4, %v890_v33  ;;  %v895_v38 = vmul.f32 %v1870_v55, %v1870_v55 }
 0x176   :  { %v821_v11 = vadd.f32 %v820_v9, %v1824_v47  ;;  %v954_v14 = vadd.f32 %v953_v61, %v891_v32  ;;  %v896_v47 = vmul.f32 %v1886_v23, %v1886_v23 }
 0x178   :  { %v822_v5 = vadd.f32 %v821_v11, %v1838_v53  ;;  %v955_v10 = vadd.f32 %v954_v14, %v892_v18  ;;  %v897_v53 = vmul.f32 %v1910_v57, %v1910_v57 }
 0x17a   :  { %v956_v26 = vadd.f32 %v955_v10, %v893_v24  ;;  %v823_v17 = vadd.f32 %v822_v5, %v1856_v16  ;;  %v898_v16 = vmul.f32 %v1936_v7, %v1936_v7 }
 0x17c   :  { %v824_v29 = vadd.f32 %v823_v17, %v1870_v55  ;;  %v957_v37 = vadd.f32 %v956_v26, %v894_v31 }
 0x17e   :  { %v825_v15 = vadd.f32 %v824_v29, %v1886_v23  ;;  %v958_v22 = vadd.f32 %v957_v37, %v895_v38 }
 0x180   :  { %v826_v44 = vadd.f32 %v825_v15, %v1910_v57  ;;  %v959_v13 = vadd.f32 %v958_v22, %v896_v47 }
 0x182   :  { %v827_v21 = vadd.f32 %v826_v44, %v1936_v7  ;;  %v960_v56 = vadd.f32 %v959_v13, %v897_v53 }
 0x184   :  { %v828_v55 = vadd.f32 %v827_v21, %v1952_v20  ;;  %v961_v27 = vadd.f32 %v960_v56, %v898_v16 }
 0x186   :  { %v962_v23 = vadd.f32 %v961_v27, %v899_v36  ;;  %v829_v28 = vadd.f32 %v828_v55, %v1976_v60 }
 0x188   :  { %v963_v57 = vadd.f32 %v962_v23, %v900_v45  ;;  %v830_v35 = vadd.f32 %v829_v28, %v1990_v46 }
 0x18a   :  { %v964_v7 = vadd.f32 %v963_v57, %v901_v25  ;;  %v831_v58 = vadd.f32 %v830_v35, %v2009_v30 }
 0x18c   :  { %v965_v20 = vadd.f32 %v964_v7, %v902_v40  ;;  %v832_v34 = vadd.f32 %v831_v58, %v639_v43 }
 0x18e   :  { %v833_v59 = vrot.slane %v832_v34, 4  ;;  %v966_v50 = vadd.f32 %v965_v20, %v903_v52 }
 0x190   :  { %v834_v51 = vadd.f32 %v833_v59, %v832_v34  ;;  %v967_v2 = vrot.slane %v966_v50, 4 }
 0x192   :  { %v835_v60 = vrot.slane %v834_v51, 2  ;;  %v968_v42 = vadd.f32 %v967_v2, %v966_v50 }
 0x194   :  { %v836_v41 = vadd.f32 %v835_v60, %v834_v51  ;;  %v969_v12 = vrot.slane %v968_v42, 2 }
 0x196   :  { %v837_v63 = vrot.slane %v836_v41, 1  ;;  %v970_v3 = vadd.f32 %v969_v12, %v968_v42 }
 0x198   :  { %v838_v46 = vadd.f32 %v837_v63, %v836_v41  ;;  %v971_v0 = vrot.slane %v970_v3, 1 }
 0x19a   :  { %839 = vst [vmem:[%s2096_s6] sm:$0x1] %v838_v46  ;;  %v972_v30 = vadd.f32 %v971_v0, %v970_v3 }
 0x19c   :  { %973 = vst [vmem:[%s2096_s6 + $0x1] sm:$0x1] %v972_v30 }

// kernel: bottleneck_forward.7
= control target key start
LH: loop header
LB: loop body
LE: loop exit
PB: predicated region body
PF: predicated region fallthrough
CT: control target
= control target key end

     0   :  { %s2034_s1 = inlined_call_operand.vmem [shape: f32[2,128], index: 1, kind: input, shape index: {}]   ;;  %s2035_s5 = inlined_call_operand.vmem [shape: f32[2,128], index: 5, kind: input, shape index: {}]   ;;  %s2036_s0 = inlined_call_operand.vmem [shape: bf16[512,128], index: 0, kind: input, shape index: {}]   ;;  %s2037_s4 = inlined_call_operand.vmem [shape: bf16[512,128], index: 4, kind: input, shape index: {}]   ;;  %s2038_s2 = inlined_call_operand.vmem [shape: f32[1,128], index: 2, kind: input, shape index: {}]   ;;  %s2039_s3 = inlined_call_operand.vmem [shape: f32[1,128], index: 3, kind: input, shape index: {}]   ;;  %s2040_s6 = inlined_call_operand.vmem [shape: f32[1,128], index: 6, kind: input, shape index: {}]   ;;  %s2041_s7 = inlined_call_operand.vmem [shape: f32[1,128], index: 7, kind: input, shape index: {}]   ;;  %s2042_s8 = inlined_call_operand.vmem [shape: f32[512,128], index: 8, kind: output, shape index: {}]  }
   0x1   :  { %v29_v0 = vld [vmem:[%s2034_s1] sm:$0x3]  ;;  %v1202_v26 = vld [vmem:[%s2036_s0 + $0x8] sm:$0xff]   ;;  %v1207_v27 = vld [vmem:[%s2036_s0 + $0x10] sm:$0xff]  }
   0x2   :  { %v1177_v1 = vmul.f32 0.001953125, %v29_v0  ;;  %v58_v2 = vld [vmem:[%s2035_s5] sm:$0x3]  ;;  %v1212_v28 = vld [vmem:[%s2036_s0 + $0x18] sm:$0xff]   ;;  %v813_v34 = vunpack.c.l.bf16 %v1202_v26  ;;  %v1231_v35 = vld [vmem:[%s2037_s4 + $0x8] sm:$0xff]   ;;  %v814_v36 = vunpack.c.h.bf16 %v1202_v26  ;;  %v817_v39 = vunpack.c.l.bf16 %v1207_v27 }
   0x3   :  { %v1182_v3 = vmul.f32 0.001953125, %v58_v2  ;;  %v1197_v25 = vld [vmem:[%s2036_s0] sm:$0xff]   ;;  %v1237_v37 = vld [vmem:[%s2036_s0 + $0x28] sm:$0xff]   ;;  %v1244_v40 = vld [vmem:[%s2037_s4 + $0x10] sm:$0xff]   ;;  %v818_v41 = vunpack.c.h.bf16 %v1207_v27  ;;  %v821_v42 = vunpack.c.l.bf16 %v1212_v28  ;;  %v822_v48 = vunpack.c.h.bf16 %v1212_v28 }
   0x4   :  { %v33_v4 = vmul.f32 %v1177_v1, %v1177_v1  ;;  %v1218_v30 = vld [vmem:[%s2037_s4] sm:$0xff]   ;;  %v809_v32 = vunpack.c.l.bf16 %v1197_v25  ;;  %v810_v33 = vunpack.c.h.bf16 %v1197_v25  ;;  %v1251_v43 = vld [vmem:[%s2036_s0 + $0x30] sm:$0xff]   ;;  %v1265_v47 = vld [vmem:[%s2037_s4 + $0x18] sm:$0xff]   ;;  %v941_v51 = vunpack.c.l.bf16 %v1231_v35 }
   0x5   :  { %v62_v5 = vmul.f32 %v1182_v3, %v1182_v3  ;;  %v1223_v31 = vld [vmem:[%s2036_s0 + $0x20] sm:$0xff]   ;;  %v937_v45 = vunpack.c.l.bf16 %v1218_v30  ;;  %v938_v46 = vunpack.c.h.bf16 %v1218_v30  ;;  %v1272_v50 = vld [vmem:[%s2036_s0 + $0x38] sm:$0xff]   ;;  %v942_v52 = vunpack.c.h.bf16 %v1231_v35  ;;  %v1286_v56 = vld [vmem:[%s2037_s4 + $0x28] sm:$0xff]  }
   0x6   :  { %v35_v6 = vrot.slane %v33_v4, 7  ;;  %v825_v49 = vunpack.c.l.bf16 %v1223_v31  ;;  %v1279_v53 = vld [vmem:[%s2037_s4 + $0x20] sm:$0xff]   ;;  %v826_v54 = vunpack.c.h.bf16 %v1223_v31  ;;  %v829_v55 = vunpack.c.l.bf16 %v1237_v37  ;;  %v1295_v61 = vld [vmem:[%s2037_s4 + $0x30] sm:$0xff]  }
   0x7   :  { %v64_v7 = vrot.slane %v62_v5, 7  ;;  %v945_v57 = vunpack.c.l.bf16 %v1244_v40  ;;  %v946_v58 = vunpack.c.h.bf16 %v1244_v40  ;;  %v830_v59 = vunpack.c.h.bf16 %v1237_v37  ;;  %v30_v62 = vld [vmem:[%s2038_s2] sm:$0x1] }
   0x8   :  { %v37_v8 = vsub.f32 %v1177_v1, %v35_v6  ;;  %v833_v60 = vunpack.c.l.bf16 %v1251_v43  ;;  %v949_v0 = vunpack.c.l.bf16 %v1265_v47  ;;  %v834_v2 = vunpack.c.h.bf16 %v1251_v43  ;;  %v1309_v5 = vld [vmem:[%s2036_s0 + $0x40] sm:$0xff]   ;;  %v1314_v6 = vld [vmem:[%s2036_s0 + $0x48] sm:$0xff]  }
   0x9   :  { %v66_v9 = vsub.f32 %v1182_v3, %v64_v7  ;;  %v837_v4 = vunpack.c.l.bf16 %v1272_v50  ;;  %v950_v7 = vunpack.c.h.bf16 %v1265_v47 }
   0xa   :  { %v38_v10 = vmax.f32 %v37_v8, 0.0  ;;  %v953_v8 = vunpack.c.l.bf16 %v1279_v53 }
   0xb   :  { %v67_v11 = vmax.f32 %v66_v9, 0.0  ;;  %v954_v9 = vunpack.c.h.bf16 %v1279_v53 }
   0xc   :  { %v39_v12 = vadd.f32 1e-05, %v38_v10  ;;  %v957_v10 = vunpack.c.l.bf16 %v1286_v56 }
   0xd   :  { %v68_v13 = vadd.f32 1e-05, %v67_v11  ;;  %v1323_v11 = vld [vmem:[%s2037_s4 + $0x38] sm:$0xff]  }
   0xe   :  { %1125 = vrsqrt.f32 %v39_v12  ;;  %vm46_vm0 = vweird.f32 %v39_v12 }
   0xf   :  { %1127 = vrsqrt.f32 %v68_v13  ;;  %vm75_vm3 = vweird.f32 %v68_v13 }
  0x14   :  { %v1126_v14 = vpop.eup %1125 }
  0x15   :  { %v1190_v15 = vpop.eup %1127  ;;  %v41_v16 = vmul.f32 %v1126_v14, %v39_v12  ;;  %vm47_vm1 = vweird.f32 %v1126_v14  ;;  %v1328_v12 = vld [vmem:[%s2036_s0 + $0x50] sm:$0xff]  }
  0x16   :  { %v70_v17 = vmul.f32 %v1190_v15, %v68_v13  ;;  %vm48_vm2 = vmor %vm46_vm0, %vm47_vm1  ;;  %vm76_vm4 = vweird.f32 %v1190_v15 }
  0x17   :  { %v42_v18 = vmul.f32 %v1126_v14, %v41_v16  ;;  %vm1256_vm5 = vmor %vm75_vm3, %vm76_vm4  ;;  %v962_v16 = vunpack.c.h.bf16 %v1295_v61 }
  0x18   :  { %v71_v19 = vmul.f32 %v1190_v15, %v70_v17  ;;  %v838_v17 = vunpack.c.h.bf16 %v1272_v50  ;;  %v2046_v50 = vunpack.c.l.bf16 %v1309_v5 }
  0x19   :  { %v43_v20 = vmul.f32 0.5, %v42_v18  ;;  %v1337_v18 = vld [vmem:[%s2036_s0 + $0x58] sm:$0xff]  }
  0x1a   :  { %v72_v21 = vmul.f32 0.5, %v71_v19 }
  0x1b   :  { %v44_v22 = vsub.f32 1.5, %v43_v20 }
  0x1c   :  { %v73_v24 = vsub.f32 1.5, %v72_v21 }
  0x1d   :  { %v45_v23 = vmul.f32 %v1126_v14, %v44_v22  ;;  %v1361_v22 = vld [vmem:[%s2037_s4 + $0x48] sm:$0xff]  }
  0x1e   :  { %v74_v38 = vmul.f32 %v1190_v15, %v73_v24  ;;  %v965_v24 = vunpack.c.l.bf16 %v1323_v11  ;;  %v973_v43 = vunpack.c.l.bf16 %v1361_v22 }
  0x1f   :  { %v49_v29 = vsel %vm48_vm2, %v1126_v14, %v45_v23  ;;  %v958_v14 = vunpack.c.h.bf16 %v1286_v56  ;;  %v31_v23 = vld [vmem:[%s2039_s3] sm:$0x1] }
  0x20   :  { %51 = vst [vmem:[#allocation1] sm:$0xff] %v49_v29  ;;  %v78_v63 = vsel %vm1256_vm5, %v1190_v15, %v74_v38  ;;  %v961_v15 = vunpack.c.l.bf16 %v1295_v61  ;;  %v1349_v29 = vld [vmem:[%s2037_s4 + $0x40] sm:$0xff]  }
  0x21   :  { %v969_v20 = vunpack.c.l.bf16 %v1349_v29  ;;  %v59_v38 = vld [vmem:[%s2040_s6] sm:$0x1] }
  0x27   :  { %v53_v13 = vld [vmem:[#allocation1 + $0x1] ss:$9 sm:$0xff] }
  0x28   :  { %v55_v19 = vmul.f32 %v53_v13, %v30_v62  ;;  %80 = vst [vmem:[#allocation1] sm:$0xff] %v78_v63 }
  0x2a   :  { %v56_v62 = vmul.f32 %v55_v19, %v1177_v1  ;;  %v1355_v63 = vperm.slane %v55_v19, 0 }
  0x2c   :  { %v57_v1 = vsub.f32 %v31_v23, %v56_v62  ;;  %v218_v19 = vmul.f32 %v809_v32, %v1355_v63  ;;  %v219_v13 = vmul.f32 %v810_v33, %v1355_v63  ;;  %v220_v21 = vmul.f32 %v813_v34, %v1355_v63 }
  0x2d   :  { %v221_v23 = vmul.f32 %v814_v36, %v1355_v63  ;;  %v222_v32 = vmul.f32 %v817_v39, %v1355_v63  ;;  %v223_v25 = vmul.f32 %v818_v41, %v1355_v63  ;;  %v224_v33 = vmul.f32 %v821_v42, %v1355_v63 }
  0x2e   :  { %v1392_v34 = vperm.slane %v57_v1, 0  ;;  %v225_v62 = vmul.f32 %v822_v48, %v1355_v63  ;;  %v226_v26 = vmul.f32 %v825_v49, %v1355_v63  ;;  %v227_v36 = vmul.f32 %v826_v54, %v1355_v63  ;;  %v60_v49 = vld [vmem:[%s2041_s7] sm:$0x1] }
  0x2f   :  { %v82_v39 = vld [vmem:[#allocation1 + $0x1] ss:$9 sm:$0xff]  ;;  %v228_v27 = vmul.f32 %v829_v55, %v1355_v63  ;;  %v229_v41 = vmul.f32 %v830_v59, %v1355_v63  ;;  %v230_v42 = vmul.f32 %v833_v60, %v1355_v63  ;;  %v231_v1 = vmul.f32 %v834_v2, %v1355_v63 }
  0x30   :  { %v84_v44 = vmul.f32 %v82_v39, %v59_v38  ;;  %v285_v28 = vadd.f32 %v1392_v34, %v218_v19  ;;  %v286_v48 = vadd.f32 %v1392_v34, %v219_v13  ;;  %v287_v31 = vadd.f32 %v1392_v34, %v220_v21 }
  0x31   :  { %v288_v37 = vadd.f32 %v1392_v34, %v221_v23  ;;  %v289_v54 = vadd.f32 %v1392_v34, %v222_v32  ;;  %v290_v55 = vadd.f32 %v1392_v34, %v223_v25  ;;  %v291_v59 = vadd.f32 %v1392_v34, %v224_v33 }
  0x32   :  { %v85_v60 = vmul.f32 %v84_v44, %v1182_v3  ;;  %v1418_v2 = vperm.slane %v84_v44, 0  ;;  %v292_v38 = vadd.f32 %v1392_v34, %v225_v62  ;;  %v293_v21 = vadd.f32 %v1392_v34, %v226_v26 }
  0x33   :  { %v294_v13 = vadd.f32 %v1392_v34, %v227_v36  ;;  %v295_v19 = vadd.f32 %v1392_v34, %v228_v27  ;;  %v296_v23 = vadd.f32 %v1392_v34, %v229_v41  ;;  %v297_v32 = vadd.f32 %v1392_v34, %v230_v42 }
  0x34   :  { %v86_v39 = vsub.f32 %v60_v49, %v85_v60  ;;  %v480_v25 = vmul.f32 %v937_v45, %v1418_v2  ;;  %v481_v3 = vmul.f32 %v938_v46, %v1418_v2  ;;  %v482_v44 = vmul.f32 %v941_v51, %v1418_v2 }
  0x35   :  { %v483_v33 = vmul.f32 %v942_v52, %v1418_v2  ;;  %v484_v62 = vmul.f32 %v945_v57, %v1418_v2  ;;  %v485_v45 = vmul.f32 %v946_v58, %v1418_v2  ;;  %v486_v30 = vmul.f32 %v949_v0, %v1418_v2 }
  0x36   :  { %v1447_v46 = vperm.slane %v86_v39, 0  ;;  %v544_v26 = vadd.f32 %v480_v25, %v285_v28  ;;  %v545_v51 = vadd.f32 %v481_v3, %v286_v48  ;;  %v546_v36 = vadd.f32 %v482_v44, %v287_v31 }
  0x37   :  { %v547_v27 = vadd.f32 %v483_v33, %v288_v37  ;;  %v548_v35 = vadd.f32 %v484_v62, %v289_v54  ;;  %v549_v52 = vadd.f32 %v485_v45, %v290_v55  ;;  %v550_v41 = vadd.f32 %v486_v30, %v291_v59 }
  0x38   :  { %v611_v42 = vadd.f32 %v1447_v46, %v544_v26  ;;  %v612_v57 = vadd.f32 %v1447_v46, %v545_v51  ;;  %v613_v40 = vadd.f32 %v1447_v46, %v546_v36  ;;  %v487_v58 = vmul.f32 %v950_v7, %v1418_v2 }
  0x39   :  { %v614_v0 = vadd.f32 %v1447_v46, %v547_v27  ;;  %v615_v28 = vadd.f32 %v1447_v46, %v548_v35  ;;  %v616_v48 = vadd.f32 %v1447_v46, %v549_v52  ;;  %v617_v31 = vadd.f32 %v1447_v46, %v550_v41 }
  0x3a   :  { %v675_v49 = vmax.f32 %v611_v42, 0.0  ;;  %v676_v37 = vmax.f32 %v612_v57, 0.0  ;;  %v677_v54 = vmax.f32 %v613_v40, 0.0  ;;  %v551_v55 = vadd.f32 %v487_v58, %v292_v38 }
  0x3b   :  { %v678_v59 = vmax.f32 %v614_v0, 0.0  ;;  %v679_v60 = vmax.f32 %v615_v28, 0.0  ;;  %v680_v39 = vmax.f32 %v616_v48, 0.0  ;;  %v681_v25 = vmax.f32 %v617_v31, 0.0 }
  0x3c   :  { %739 = vst [vmem:[%s2042_s8] sm:$0xff] %v675_v49  ;;  %v618_v47 = vadd.f32 %v1447_v46, %v551_v55  ;;  %v488_v7 = vmul.f32 %v953_v8, %v1418_v2  ;;  %v489_v3 = vmul.f32 %v954_v9, %v1418_v2  ;;  %v490_v38 = vmul.f32 %v957_v10, %v1418_v2  ;;  %v1103_v55 = vld [vmem:[%s2037_s4 + $0x50] sm:$0xff]  }
  0x3d   :  { %740 = vst [vmem:[%s2042_s8 + $0x8] sm:$0xff] %v676_v37  ;;  %v491_v44 = vmul.f32 %v958_v14, %v1418_v2  ;;  %v492_v8 = vmul.f32 %v961_v15, %v1418_v2  ;;  %v298_v33 = vadd.f32 %v1392_v34, %v231_v1  ;;  %v493_v53 = vmul.f32 %v962_v16, %v1418_v2 }
  0x3e   :  { %741 = vst [vmem:[%s2042_s8 + $0x10] sm:$0xff] %v677_v54  ;;  %v682_v9 = vmax.f32 %v618_v47, 0.0  ;;  %v552_v10 = vadd.f32 %v488_v7, %v293_v21  ;;  %v553_v62 = vadd.f32 %v489_v3, %v294_v13  ;;  %v554_v45 = vadd.f32 %v490_v38, %v295_v19 }
  0x3f   :  { %742 = vst [vmem:[%s2042_s8 + $0x18] sm:$0xff] %v678_v59  ;;  %v555_v56 = vadd.f32 %v491_v44, %v296_v23  ;;  %v556_v14 = vadd.f32 %v492_v8, %v297_v32  ;;  %v557_v15 = vadd.f32 %v493_v53, %v298_v33  ;;  %v232_v61 = vmul.f32 %v837_v4, %v1355_v63 }
  0x40   :  { %743 = vst [vmem:[%s2042_s8 + $0x20] sm:$0xff] %v679_v60  ;;  %v619_v16 = vadd.f32 %v1447_v46, %v552_v10  ;;  %v620_v1 = vadd.f32 %v1447_v46, %v553_v62  ;;  %v621_v21 = vadd.f32 %v1447_v46, %v554_v45  ;;  %v494_v13 = vmul.f32 %v965_v24, %v1418_v2 }
  0x41   :  { %744 = vst [vmem:[%s2042_s8 + $0x28] sm:$0xff] %v680_v39  ;;  %v622_v4 = vadd.f32 %v1447_v46, %v555_v56  ;;  %v623_v19 = vadd.f32 %v1447_v46, %v556_v14  ;;  %v624_v23 = vadd.f32 %v1447_v46, %v557_v15  ;;  %v299_v32 = vadd.f32 %v1392_v34, %v232_v61  ;;  %v1104_v61 = vld [vmem:[%s2037_s4 + $0x58] sm:$0xff]  }
  0x42   :  { %745 = vst [vmem:[%s2042_s8 + $0x30] sm:$0xff] %v681_v25  ;;  %v683_v30 = vmax.f32 %v619_v16, 0.0  ;;  %v684_v26 = vmax.f32 %v620_v1, 0.0  ;;  %v685_v51 = vmax.f32 %v621_v21, 0.0  ;;  %v233_v24 = vmul.f32 %v838_v17, %v1355_v63 }
  0x43   :  { %746 = vst [vmem:[%s2042_s8 + $0x38] sm:$0xff] %v682_v9  ;;  %v686_v36 = vmax.f32 %v622_v4, 0.0  ;;  %v687_v27 = vmax.f32 %v623_v19, 0.0  ;;  %v688_v35 = vmax.f32 %v624_v23, 0.0  ;;  %v558_v52 = vadd.f32 %v494_v13, %v299_v32  ;;  %v1074_v4 = vld [vmem:[%s2036_s0 + $0x60] sm:$0xff]  }
  0x44   :  { %747 = vst [vmem:[%s2042_s8 + $0x40] sm:$0xff] %v683_v30  ;;  %v300_v41 = vadd.f32 %v1392_v34, %v233_v24  ;;  %v2045_v42 = vunpack.c.h.bf16 %v1323_v11  ;;  %v234_v17 = vmul.f32 %v2046_v50, %v1355_v63  ;;  %v496_v40 = vmul.f32 %v969_v20, %v1418_v2 }
  0x45   :  { %748 = vst [vmem:[%s2042_s8 + $0x48] sm:$0xff] %v684_v26  ;;  %v625_v58 = vadd.f32 %v1447_v46, %v558_v52  ;;  %v2047_v0 = vunpack.c.h.bf16 %v1309_v5  ;;  %v2048_v11 = vunpack.c.h.bf16 %v1349_v29  ;;  %v2049_v31 = vunpack.c.l.bf16 %v1314_v6  ;;  %v1105_v26 = vld [vmem:[%s2037_s4 + $0x60] sm:$0xff]  }
  0x46   :  { %v495_v57 = vmul.f32 %v2045_v42, %v1418_v2  ;;  %749 = vst [vmem:[%s2042_s8 + $0x50] sm:$0xff] %v685_v51  ;;  %v301_v37 = vadd.f32 %v1392_v34, %v234_v17  ;;  %v498_v5 = vmul.f32 %v973_v43, %v1418_v2  ;;  %v2050_v54 = vunpack.c.h.bf16 %v1314_v6 }
  0x47   :  { %v235_v28 = vmul.f32 %v2047_v0, %v1355_v63  ;;  %v497_v48 = vmul.f32 %v2048_v11, %v1418_v2  ;;  %v236_v49 = vmul.f32 %v2049_v31, %v1355_v63  ;;  %750 = vst [vmem:[%s2042_s8 + $0x58] sm:$0xff] %v686_v36  ;;  %v689_v59 = vmax.f32 %v625_v58, 0.0  ;;  %v1075_v58 = vld [vmem:[%s2036_s0 + $0x68] sm:$0xff]  }
  0x48   :  { %v559_v20 = vadd.f32 %v495_v57, %v300_v41  ;;  %v237_v29 = vmul.f32 %v2050_v54, %v1355_v63  ;;  %v974_v25 = vunpack.c.h.bf16 %v1361_v22  ;;  %751 = vst [vmem:[%s2042_s8 + $0x60] sm:$0xff] %v687_v27  ;;  %v560_v43 = vadd.f32 %v496_v40, %v301_v37  ;;  %v1106_v31 = vld [vmem:[%s2037_s4 + $0x68] sm:$0xff]  }
  0x49   :  { %v302_v60 = vadd.f32 %v1392_v34, %v235_v28  ;;  %v303_v39 = vadd.f32 %v1392_v34, %v236_v49  ;;  %v2051_v7 = vunpack.c.l.bf16 %v1328_v12  ;;  %752 = vst [vmem:[%s2042_s8 + $0x68] sm:$0xff] %v688_v35  ;;  %v977_v8 = vunpack.c.l.bf16 %v1103_v55 }
  0x4a   :  { %v626_v6 = vadd.f32 %v1447_v46, %v559_v20  ;;  %v304_v47 = vadd.f32 %v1392_v34, %v237_v29  ;;  %v499_v22 = vmul.f32 %v974_v25, %v1418_v2  ;;  %753 = vst [vmem:[%s2042_s8 + $0x70] sm:$0xff] %v689_v59  ;;  %v627_v53 = vadd.f32 %v1447_v46, %v560_v43 }
  0x4b   :  { %v238_v3 = vmul.f32 %v2051_v7, %v1355_v63  ;;  %v561_v38 = vadd.f32 %v497_v48, %v302_v60  ;;  %v562_v44 = vadd.f32 %v498_v5, %v303_v39  ;;  %v2052_v10 = vunpack.c.h.bf16 %v1328_v12 }
  0x4c   :  { %v690_v33 = vmax.f32 %v626_v6, 0.0  ;;  %v563_v14 = vadd.f32 %v499_v22, %v304_v47  ;;  %v500_v15 = vmul.f32 %v977_v8, %v1418_v2  ;;  %v691_v16 = vmax.f32 %v627_v53, 0.0 }
  0x4d   :  { %v305_v9 = vadd.f32 %v1392_v34, %v238_v3  ;;  %v239_v62 = vmul.f32 %v2052_v10, %v1355_v63  ;;  %v628_v45 = vadd.f32 %v1447_v46, %v561_v38  ;;  %v629_v56 = vadd.f32 %v1447_v46, %v562_v44  ;;  %v1076_v38 = vld [vmem:[%s2036_s0 + $0x70] sm:$0xff]  }
  0x4e   :  { %754 = vst [vmem:[%s2042_s8 + $0x78] sm:$0xff] %v690_v33  ;;  %v978_v12 = vunpack.c.h.bf16 %v1103_v55  ;;  %v2053_v21 = vunpack.c.l.bf16 %v1337_v18  ;;  %v630_v32 = vadd.f32 %v1447_v46, %v563_v14  ;;  %v981_v36 = vunpack.c.l.bf16 %v1104_v61  ;;  %v1107_v44 = vld [vmem:[%s2037_s4 + $0x70] sm:$0xff]  }
  0x4f   :  { %v306_v1 = vadd.f32 %v1392_v34, %v239_v62  ;;  %v692_v19 = vmax.f32 %v628_v45, 0.0  ;;  %v693_v23 = vmax.f32 %v629_v56, 0.0  ;;  %v564_v30 = vadd.f32 %v500_v15, %v305_v9  ;;  %755 = vst [vmem:[%s2042_s8 + $0x80] sm:$0xff] %v691_v16  ;;  %v1077_v16 = vld [vmem:[%s2036_s0 + $0x78] sm:$0xff]  }
  0x50   :  { %v240_v13 = vmul.f32 %v2053_v21, %v1355_v63  ;;  %v501_v51 = vmul.f32 %v978_v12, %v1418_v2  ;;  %v2054_v27 = vunpack.c.h.bf16 %v1337_v18  ;;  %v694_v52 = vmax.f32 %v630_v32, 0.0 }
  0x51   :  { %756 = vst [vmem:[%s2042_s8 + $0x88] sm:$0xff] %v692_v19  ;;  %v631_v41 = vadd.f32 %v1447_v46, %v564_v30  ;;  %v982_v42 = vunpack.c.h.bf16 %v1104_v61  ;;  %v857_v57 = vunpack.c.l.bf16 %v1074_v4  ;;  %v502_v17 = vmul.f32 %v981_v36, %v1418_v2 }
  0x52   :  { %v307_v24 = vadd.f32 %v1392_v34, %v240_v13  ;;  %v241_v35 = vmul.f32 %v2054_v27, %v1355_v63  ;;  %757 = vst [vmem:[%s2042_s8 + $0x90] sm:$0xff] %v693_v23  ;;  %v565_v50 = vadd.f32 %v501_v51, %v306_v1  ;;  %v985_v18 = vunpack.c.l.bf16 %v1105_v26 }
  0x53   :  { %758 = vst [vmem:[%s2042_s8 + $0x98] sm:$0xff] %v694_v52  ;;  %v695_v0 = vmax.f32 %v631_v41, 0.0  ;;  %v503_v28 = vmul.f32 %v982_v42, %v1418_v2  ;;  %v242_v11 = vmul.f32 %v857_v57, %v1355_v63  ;;  %v858_v48 = vunpack.c.h.bf16 %v1074_v4  ;;  %v1108_v4 = vld [vmem:[%s2037_s4 + $0x78] sm:$0xff]   ;;  %v1078_v42 = vld [vmem:[%s2036_s0 + $0x80] sm:$0xff]  }
  0x54   :  { %v308_v40 = vadd.f32 %v1392_v34, %v241_v35  ;;  %v632_v49 = vadd.f32 %v1447_v46, %v565_v50  ;;  %v566_v20 = vadd.f32 %v502_v17, %v307_v24  ;;  %v504_v37 = vmul.f32 %v985_v18, %v1418_v2  ;;  %v1109_v18 = vld [vmem:[%s2037_s4 + $0x80] sm:$0xff]  }
  0x55   :  { %v986_v5 = vunpack.c.h.bf16 %v1105_v26  ;;  %759 = vst [vmem:[%s2042_s8 + $0xa0] sm:$0xff] %v695_v0  ;;  %v309_v29 = vadd.f32 %v1392_v34, %v242_v11  ;;  %v243_v55 = vmul.f32 %v858_v48, %v1355_v63  ;;  %v861_v59 = vunpack.c.l.bf16 %v1075_v58 }
  0x56   :  { %v567_v54 = vadd.f32 %v503_v28, %v308_v40  ;;  %v696_v60 = vmax.f32 %v632_v49, 0.0  ;;  %v633_v39 = vadd.f32 %v1447_v46, %v566_v20  ;;  %v989_v6 = vunpack.c.l.bf16 %v1106_v31 }
  0x57   :  { %v505_v25 = vmul.f32 %v986_v5, %v1418_v2  ;;  %v568_v47 = vadd.f32 %v504_v37, %v309_v29  ;;  %v310_v7 = vadd.f32 %v1392_v34, %v243_v55  ;;  %v244_v3 = vmul.f32 %v861_v59, %v1355_v63 }
  0x58   :  { %v634_v43 = vadd.f32 %v1447_v46, %v567_v54  ;;  %760 = vst [vmem:[%s2042_s8 + $0xa8] sm:$0xff] %v696_v60  ;;  %v697_v22 = vmax.f32 %v633_v39, 0.0  ;;  %v506_v8 = vmul.f32 %v989_v6, %v1418_v2  ;;  %v862_v33 = vunpack.c.h.bf16 %v1075_v58  ;;  %v1110_v6 = vld [vmem:[%s2037_s4 + $0x88] sm:$0xff]  }
  0x59   :  { %v990_v53 = vunpack.c.h.bf16 %v1106_v31  ;;  %v635_v10 = vadd.f32 %v1447_v46, %v568_v47  ;;  %v569_v62 = vadd.f32 %v505_v25, %v310_v7  ;;  %v311_v45 = vadd.f32 %v1392_v34, %v244_v3  ;;  %v1079_v25 = vld [vmem:[%s2036_s0 + $0x88] sm:$0xff]  }
  0x5a   :  { %v698_v9 = vmax.f32 %v634_v43, 0.0  ;;  %761 = vst [vmem:[%s2042_s8 + $0xb0] sm:$0xff] %v697_v22  ;;  %v245_v56 = vmul.f32 %v862_v33, %v1355_v63  ;;  %v865_v15 = vunpack.c.l.bf16 %v1076_v38  ;;  %v993_v61 = vunpack.c.l.bf16 %v1107_v44 }
  0x5b   :  { %v507_v14 = vmul.f32 %v990_v53, %v1418_v2  ;;  %v699_v1 = vmax.f32 %v635_v10, 0.0  ;;  %v636_v12 = vadd.f32 %v1447_v46, %v569_v62  ;;  %v570_v21 = vadd.f32 %v506_v8, %v311_v45  ;;  %v1080_v62 = vld [vmem:[%s2036_s0 + $0x90] sm:$0xff]  }
  0x5c   :  { %762 = vst [vmem:[%s2042_s8 + $0xb8] sm:$0xff] %v698_v9  ;;  %v866_v13 = vunpack.c.h.bf16 %v1076_v38  ;;  %v312_v19 = vadd.f32 %v1392_v34, %v245_v56  ;;  %v246_v23 = vmul.f32 %v865_v15, %v1355_v63  ;;  %v508_v32 = vmul.f32 %v993_v61, %v1418_v2  ;;  %v1111_v61 = vld [vmem:[%s2037_s4 + $0x90] sm:$0xff]  }
  0x5d   :  { %v994_v30 = vunpack.c.h.bf16 %v1107_v44  ;;  %763 = vst [vmem:[%s2042_s8 + $0xc0] sm:$0xff] %v699_v1  ;;  %v700_v26 = vmax.f32 %v636_v12, 0.0  ;;  %v637_v51 = vadd.f32 %v1447_v46, %v570_v21  ;;  %v869_v36 = vunpack.c.l.bf16 %v1077_v16 }
  0x5e   :  { %v247_v24 = vmul.f32 %v866_v13, %v1355_v63  ;;  %v571_v27 = vadd.f32 %v507_v14, %v312_v19  ;;  %v313_v35 = vadd.f32 %v1392_v34, %v246_v23  ;;  %v997_v41 = vunpack.c.l.bf16 %v1108_v4 }
  0x5f   :  { %v509_v52 = vmul.f32 %v994_v30, %v1418_v2  ;;  %764 = vst [vmem:[%s2042_s8 + $0xc8] sm:$0xff] %v700_v26  ;;  %v701_v57 = vmax.f32 %v637_v51, 0.0  ;;  %v248_v17 = vmul.f32 %v869_v36, %v1355_v63  ;;  %v870_v40 = vunpack.c.h.bf16 %v1077_v16 }
  0x60   :  { %v314_v50 = vadd.f32 %v1392_v34, %v247_v24  ;;  %v638_v58 = vadd.f32 %v1447_v46, %v571_v27  ;;  %v572_v0 = vadd.f32 %v508_v32, %v313_v35  ;;  %v510_v28 = vmul.f32 %v997_v41, %v1418_v2  ;;  %v1081_v24 = vld [vmem:[%s2036_s0 + $0x98] sm:$0xff]  }
  0x61   :  { %v998_v11 = vunpack.c.h.bf16 %v1108_v4  ;;  %765 = vst [vmem:[%s2042_s8 + $0xd0] sm:$0xff] %v701_v57  ;;  %v315_v31 = vadd.f32 %v1392_v34, %v248_v17  ;;  %v249_v49 = vmul.f32 %v870_v40, %v1355_v63  ;;  %v873_v20 = vunpack.c.l.bf16 %v1078_v42  ;;  %v1112_v41 = vld [vmem:[%s2037_s4 + $0x98] sm:$0xff]  }
  0x62   :  { %v573_v48 = vadd.f32 %v509_v52, %v314_v50  ;;  %v702_v37 = vmax.f32 %v638_v58, 0.0  ;;  %v639_v5 = vadd.f32 %v1447_v46, %v572_v0  ;;  %v1001_v29 = vunpack.c.l.bf16 %v1109_v18 }
  0x63   :  { %v511_v54 = vmul.f32 %v998_v11, %v1418_v2  ;;  %v574_v59 = vadd.f32 %v510_v28, %v315_v31  ;;  %v316_v60 = vadd.f32 %v1392_v34, %v249_v49  ;;  %v250_v39 = vmul.f32 %v873_v20, %v1355_v63 }
  0x64   :  { %v640_v55 = vadd.f32 %v1447_v46, %v573_v48  ;;  %766 = vst [vmem:[%s2042_s8 + $0xd8] sm:$0xff] %v702_v37  ;;  %v703_v43 = vmax.f32 %v639_v5, 0.0  ;;  %v512_v47 = vmul.f32 %v1001_v29, %v1418_v2  ;;  %v874_v7 = vunpack.c.h.bf16 %v1078_v42  ;;  %v1113_v29 = vld [vmem:[%s2037_s4 + $0xa0] sm:$0xff]  }
  0x65   :  { %v1002_v3 = vunpack.c.h.bf16 %v1109_v18  ;;  %v641_v44 = vadd.f32 %v1447_v46, %v574_v59  ;;  %v575_v22 = vadd.f32 %v511_v54, %v316_v60  ;;  %v317_v8 = vadd.f32 %v1392_v34, %v250_v39  ;;  %v1082_v54 = vld [vmem:[%s2036_s0 + $0xa0] sm:$0xff]  }
  0x66   :  { %v704_v38 = vmax.f32 %v640_v55, 0.0  ;;  %767 = vst [vmem:[%s2042_s8 + $0xe0] sm:$0xff] %v703_v43  ;;  %v251_v33 = vmul.f32 %v874_v7, %v1355_v63  ;;  %v877_v9 = vunpack.c.l.bf16 %v1079_v25  ;;  %v1005_v10 = vunpack.c.l.bf16 %v1110_v6 }
  0x67   :  { %v513_v53 = vmul.f32 %v1002_v3, %v1418_v2  ;;  %v705_v45 = vmax.f32 %v641_v44, 0.0  ;;  %v642_v56 = vadd.f32 %v1447_v46, %v575_v22  ;;  %v576_v14 = vadd.f32 %v512_v47, %v317_v8  ;;  %v1083_v22 = vld [vmem:[%s2036_s0 + $0xa8] sm:$0xff]  }
  0x68   :  { %768 = vst [vmem:[%s2042_s8 + $0xe8] sm:$0xff] %v704_v38  ;;  %v878_v15 = vunpack.c.h.bf16 %v1079_v25  ;;  %v318_v16 = vadd.f32 %v1392_v34, %v251_v33  ;;  %v252_v1 = vmul.f32 %v877_v9, %v1355_v63  ;;  %v514_v12 = vmul.f32 %v1005_v10, %v1418_v2  ;;  %v1114_v10 = vld [vmem:[%s2037_s4 + $0xa8] sm:$0xff]  }
  0x69   :  { %v1006_v21 = vunpack.c.h.bf16 %v1110_v6  ;;  %769 = vst [vmem:[%s2042_s8 + $0xf0] sm:$0xff] %v705_v45  ;;  %v706_v13 = vmax.f32 %v642_v56, 0.0  ;;  %v643_v4 = vadd.f32 %v1447_v46, %v576_v14  ;;  %v881_v23 = vunpack.c.l.bf16 %v1080_v62 }
  0x6a   :  { %v253_v19 = vmul.f32 %v878_v15, %v1355_v63  ;;  %v577_v32 = vadd.f32 %v513_v53, %v318_v16  ;;  %v319_v30 = vadd.f32 %v1392_v34, %v252_v1  ;;  %v1009_v51 = vunpack.c.l.bf16 %v1111_v61 }
  0x6b   :  { %v515_v26 = vmul.f32 %v1006_v21, %v1418_v2  ;;  %770 = vst [vmem:[%s2042_s8 + $0xf8] sm:$0xff] %v706_v13  ;;  %v707_v36 = vmax.f32 %v643_v4, 0.0  ;;  %v254_v35 = vmul.f32 %v881_v23, %v1355_v63  ;;  %v882_v52 = vunpack.c.h.bf16 %v1080_v62 }
  0x6c   :  { %v320_v27 = vadd.f32 %v1392_v34, %v253_v19  ;;  %v644_v42 = vadd.f32 %v1447_v46, %v577_v32  ;;  %v578_v57 = vadd.f32 %v514_v12, %v319_v30  ;;  %v516_v50 = vmul.f32 %v1009_v51, %v1418_v2  ;;  %v1084_v19 = vld [vmem:[%s2036_s0 + $0xb0] sm:$0xff]  }
  0x6d   :  { %v1010_v17 = vunpack.c.h.bf16 %v1111_v61  ;;  %771 = vst [vmem:[%s2042_s8 + $0x100] sm:$0xff] %v707_v36  ;;  %v321_v18 = vadd.f32 %v1392_v34, %v254_v35  ;;  %v255_v58 = vmul.f32 %v882_v52, %v1355_v63  ;;  %v885_v0 = vunpack.c.l.bf16 %v1081_v24  ;;  %v1115_v51 = vld [vmem:[%s2037_s4 + $0xb0] sm:$0xff]  }
  0x6e   :  { %v579_v40 = vadd.f32 %v515_v26, %v320_v27  ;;  %v708_v28 = vmax.f32 %v644_v42, 0.0  ;;  %v645_v11 = vadd.f32 %v1447_v46, %v578_v57  ;;  %v1013_v31 = vunpack.c.l.bf16 %v1112_v41 }
  0x6f   :  { %v517_v48 = vmul.f32 %v1010_v17, %v1418_v2  ;;  %v580_v20 = vadd.f32 %v516_v50, %v321_v18  ;;  %v322_v37 = vadd.f32 %v1392_v34, %v255_v58  ;;  %v256_v5 = vmul.f32 %v885_v0, %v1355_v63 }
  0x70   :  { %v646_v49 = vadd.f32 %v1447_v46, %v579_v40  ;;  %772 = vst [vmem:[%s2042_s8 + $0x108] sm:$0xff] %v708_v28  ;;  %v709_v55 = vmax.f32 %v645_v11, 0.0  ;;  %v518_v59 = vmul.f32 %v1013_v31, %v1418_v2  ;;  %v886_v60 = vunpack.c.h.bf16 %v1081_v24  ;;  %v1116_v31 = vld [vmem:[%s2037_s4 + $0xb8] sm:$0xff]  }
  0x71   :  { %v1014_v39 = vunpack.c.h.bf16 %v1112_v41  ;;  %v647_v6 = vadd.f32 %v1447_v46, %v580_v20  ;;  %v581_v43 = vadd.f32 %v517_v48, %v322_v37  ;;  %v323_v47 = vadd.f32 %v1392_v34, %v256_v5  ;;  %v1085_v48 = vld [vmem:[%s2036_s0 + $0xb8] sm:$0xff]  }
  0x72   :  { %v710_v25 = vmax.f32 %v646_v49, 0.0  ;;  %773 = vst [vmem:[%s2042_s8 + $0x110] sm:$0xff] %v709_v55  ;;  %v257_v7 = vmul.f32 %v886_v60, %v1355_v63  ;;  %v889_v38 = vunpack.c.l.bf16 %v1082_v54  ;;  %v1017_v44 = vunpack.c.l.bf16 %v1113_v29 }
  0x73   :  { %v519_v3 = vmul.f32 %v1014_v39, %v1418_v2  ;;  %v711_v8 = vmax.f32 %v647_v6, 0.0  ;;  %v648_v33 = vadd.f32 %v1447_v46, %v581_v43  ;;  %v582_v53 = vadd.f32 %v518_v59, %v323_v47  ;;  %v1086_v43 = vld [vmem:[%s2036_s0 + $0xc0] sm:$0xff]  }
  0x74   :  { %774 = vst [vmem:[%s2042_s8 + $0x118] sm:$0xff] %v710_v25  ;;  %v890_v9 = vunpack.c.h.bf16 %v1082_v54  ;;  %v324_v62 = vadd.f32 %v1392_v34, %v257_v7  ;;  %v258_v45 = vmul.f32 %v889_v38, %v1355_v63  ;;  %v520_v56 = vmul.f32 %v1017_v44, %v1418_v2  ;;  %v1117_v44 = vld [vmem:[%s2037_s4 + $0xc0] sm:$0xff]  }
  0x75   :  { %v1018_v14 = vunpack.c.h.bf16 %v1113_v29  ;;  %775 = vst [vmem:[%s2042_s8 + $0x120] sm:$0xff] %v711_v8  ;;  %v712_v15 = vmax.f32 %v648_v33, 0.0  ;;  %v649_v61 = vadd.f32 %v1447_v46, %v582_v53  ;;  %v893_v1 = vunpack.c.l.bf16 %v1083_v22 }
  0x76   :  { %v259_v16 = vmul.f32 %v890_v9, %v1355_v63  ;;  %v583_v12 = vadd.f32 %v519_v3, %v324_v62  ;;  %v325_v21 = vadd.f32 %v1392_v34, %v258_v45  ;;  %v1021_v4 = vunpack.c.l.bf16 %v1114_v10 }
  0x77   :  { %v521_v13 = vmul.f32 %v1018_v14, %v1418_v2  ;;  %776 = vst [vmem:[%s2042_s8 + $0x128] sm:$0xff] %v712_v15  ;;  %v713_v23 = vmax.f32 %v649_v61, 0.0  ;;  %v260_v30 = vmul.f32 %v893_v1, %v1355_v63  ;;  %v894_v26 = vunpack.c.h.bf16 %v1083_v22 }
  0x78   :  { %v326_v32 = vadd.f32 %v1392_v34, %v259_v16  ;;  %v650_v24 = vadd.f32 %v1447_v46, %v583_v12  ;;  %v584_v36 = vadd.f32 %v520_v56, %v325_v21  ;;  %v522_v27 = vmul.f32 %v1021_v4, %v1418_v2  ;;  %v1087_v16 = vld [vmem:[%s2036_s0 + $0xc8] sm:$0xff]  }
  0x79   :  { %v1022_v35 = vunpack.c.h.bf16 %v1114_v10  ;;  %777 = vst [vmem:[%s2042_s8 + $0x130] sm:$0xff] %v713_v23  ;;  %v327_v41 = vadd.f32 %v1392_v34, %v260_v30  ;;  %v261_v42 = vmul.f32 %v894_v26, %v1355_v63  ;;  %v897_v57 = vunpack.c.l.bf16 %v1084_v19  ;;  %v1118_v4 = vld [vmem:[%s2037_s4 + $0xc8] sm:$0xff]  }
  0x7a   :  { %v585_v52 = vadd.f32 %v521_v13, %v326_v32  ;;  %v714_v50 = vmax.f32 %v650_v24, 0.0  ;;  %v651_v17 = vadd.f32 %v1447_v46, %v584_v36  ;;  %v1025_v18 = vunpack.c.l.bf16 %v1115_v51 }
  0x7b   :  { %v523_v40 = vmul.f32 %v1022_v35, %v1418_v2  ;;  %v586_v0 = vadd.f32 %v522_v27, %v327_v41  ;;  %v328_v28 = vadd.f32 %v1392_v34, %v261_v42  ;;  %v262_v11 = vmul.f32 %v897_v57, %v1355_v63 }
  0x7c   :  { %v652_v58 = vadd.f32 %v1447_v46, %v585_v52  ;;  %778 = vst [vmem:[%s2042_s8 + $0x138] sm:$0xff] %v714_v50  ;;  %v715_v49 = vmax.f32 %v651_v17, 0.0  ;;  %v524_v20 = vmul.f32 %v1025_v18, %v1418_v2  ;;  %v898_v37 = vunpack.c.h.bf16 %v1084_v19  ;;  %v1119_v18 = vld [vmem:[%s2037_s4 + $0xd0] sm:$0xff]  }
  0x7d   :  { %v1026_v5 = vunpack.c.h.bf16 %v1115_v51  ;;  %v653_v29 = vadd.f32 %v1447_v46, %v586_v0  ;;  %v587_v55 = vadd.f32 %v523_v40, %v328_v28  ;;  %v329_v59 = vadd.f32 %v1392_v34, %v262_v11  ;;  %v1088_v40 = vld [vmem:[%s2036_s0 + $0xd0] sm:$0xff]  }
  0x7e   :  { %v716_v54 = vmax.f32 %v652_v58, 0.0  ;;  %779 = vst [vmem:[%s2042_s8 + $0x140] sm:$0xff] %v715_v49  ;;  %v263_v60 = vmul.f32 %v898_v37, %v1355_v63  ;;  %v901_v25 = vunpack.c.l.bf16 %v1085_v48  ;;  %v1029_v6 = vunpack.c.l.bf16 %v1116_v31 }
  0x7f   :  { %v525_v39 = vmul.f32 %v1026_v5, %v1418_v2  ;;  %v717_v47 = vmax.f32 %v653_v29, 0.0  ;;  %v654_v7 = vadd.f32 %v1447_v46, %v587_v55  ;;  %v588_v3 = vadd.f32 %v524_v20, %v329_v59  ;;  %v1089_v55 = vld [vmem:[%s2036_s0 + $0xd8] sm:$0xff]  }
  0x80   :  { %780 = vst [vmem:[%s2042_s8 + $0x148] sm:$0xff] %v716_v54  ;;  %v902_v38 = vunpack.c.h.bf16 %v1085_v48  ;;  %v330_v22 = vadd.f32 %v1392_v34, %v263_v60  ;;  %v264_v8 = vmul.f32 %v901_v25, %v1355_v63  ;;  %v526_v33 = vmul.f32 %v1029_v6, %v1418_v2  ;;  %v1120_v6 = vld [vmem:[%s2037_s4 + $0xd8] sm:$0xff]  }
  0x81   :  { %v1030_v53 = vunpack.c.h.bf16 %v1116_v31  ;;  %781 = vst [vmem:[%s2042_s8 + $0x150] sm:$0xff] %v717_v47  ;;  %v718_v9 = vmax.f32 %v654_v7, 0.0  ;;  %v655_v10 = vadd.f32 %v1447_v46, %v588_v3  ;;  %v905_v45 = vunpack.c.l.bf16 %v1086_v43 }
  0x82   :  { %v265_v62 = vmul.f32 %v902_v38, %v1355_v63  ;;  %v589_v56 = vadd.f32 %v525_v39, %v330_v22  ;;  %v331_v14 = vadd.f32 %v1392_v34, %v264_v8  ;;  %v1033_v61 = vunpack.c.l.bf16 %v1117_v44 }
  0x83   :  { %v527_v15 = vmul.f32 %v1030_v53, %v1418_v2  ;;  %782 = vst [vmem:[%s2042_s8 + $0x158] sm:$0xff] %v718_v9  ;;  %v719_v1 = vmax.f32 %v655_v10, 0.0  ;;  %v266_v21 = vmul.f32 %v905_v45, %v1355_v63  ;;  %v906_v13 = vunpack.c.h.bf16 %v1086_v43 }
  0x84   :  { %v332_v12 = vadd.f32 %v1392_v34, %v265_v62  ;;  %v656_v19 = vadd.f32 %v1447_v46, %v589_v56  ;;  %v590_v23 = vadd.f32 %v526_v33, %v331_v14  ;;  %v528_v32 = vmul.f32 %v1033_v61, %v1418_v2  ;;  %v1090_v62 = vld [vmem:[%s2036_s0 + $0xe0] sm:$0xff]  }
  0x85   :  { %v1034_v30 = vunpack.c.h.bf16 %v1117_v44  ;;  %783 = vst [vmem:[%s2042_s8 + $0x160] sm:$0xff] %v719_v1  ;;  %v333_v51 = vadd.f32 %v1392_v34, %v266_v21  ;;  %v267_v24 = vmul.f32 %v906_v13, %v1355_v63  ;;  %v909_v36 = vunpack.c.l.bf16 %v1087_v16  ;;  %v1121_v61 = vld [vmem:[%s2037_s4 + $0xe0] sm:$0xff]  }
  0x86   :  { %v591_v26 = vadd.f32 %v527_v15, %v332_v12  ;;  %v720_v27 = vmax.f32 %v656_v19, 0.0  ;;  %v657_v35 = vadd.f32 %v1447_v46, %v590_v23  ;;  %v1037_v41 = vunpack.c.l.bf16 %v1118_v4 }
  0x87   :  { %v529_v52 = vmul.f32 %v1034_v30, %v1418_v2  ;;  %v592_v57 = vadd.f32 %v528_v32, %v333_v51  ;;  %v334_v50 = vadd.f32 %v1392_v34, %v267_v24  ;;  %v268_v17 = vmul.f32 %v909_v36, %v1355_v63 }
  0x88   :  { %v658_v42 = vadd.f32 %v1447_v46, %v591_v26  ;;  %784 = vst [vmem:[%s2042_s8 + $0x168] sm:$0xff] %v720_v27  ;;  %v721_v58 = vmax.f32 %v657_v35, 0.0  ;;  %v530_v0 = vmul.f32 %v1037_v41, %v1418_v2  ;;  %v910_v28 = vunpack.c.h.bf16 %v1087_v16  ;;  %v1122_v41 = vld [vmem:[%s2037_s4 + $0xe8] sm:$0xff]  }
  0x89   :  { %v1038_v11 = vunpack.c.h.bf16 %v1118_v4  ;;  %v659_v31 = vadd.f32 %v1447_v46, %v592_v57  ;;  %v593_v49 = vadd.f32 %v529_v52, %v334_v50  ;;  %v335_v20 = vadd.f32 %v1392_v34, %v268_v17  ;;  %v1091_v52 = vld [vmem:[%s2036_s0 + $0xe8] sm:$0xff]  }
  0x8a   :  { %v722_v48 = vmax.f32 %v658_v42, 0.0  ;;  %785 = vst [vmem:[%s2042_s8 + $0x170] sm:$0xff] %v721_v58  ;;  %v269_v37 = vmul.f32 %v910_v28, %v1355_v63  ;;  %v913_v54 = vunpack.c.l.bf16 %v1088_v40  ;;  %v1041_v29 = vunpack.c.l.bf16 %v1119_v18 }
  0x8b   :  { %v531_v5 = vmul.f32 %v1038_v11, %v1418_v2  ;;  %v723_v59 = vmax.f32 %v659_v31, 0.0  ;;  %v660_v60 = vadd.f32 %v1447_v46, %v593_v49  ;;  %v594_v39 = vadd.f32 %v530_v0, %v335_v20  ;;  %v1092_v49 = vld [vmem:[%s2036_s0 + $0xf0] sm:$0xff]  }
  0x8c   :  { %786 = vst [vmem:[%s2042_s8 + $0x178] sm:$0xff] %v722_v48  ;;  %v914_v25 = vunpack.c.h.bf16 %v1088_v40  ;;  %v336_v43 = vadd.f32 %v1392_v34, %v269_v37  ;;  %v270_v47 = vmul.f32 %v913_v54, %v1355_v63  ;;  %v532_v7 = vmul.f32 %v1041_v29, %v1418_v2  ;;  %v1123_v29 = vld [vmem:[%s2037_s4 + $0xf0] sm:$0xff]  }
  0x8d   :  { %v1042_v3 = vunpack.c.h.bf16 %v1119_v18  ;;  %787 = vst [vmem:[%s2042_s8 + $0x180] sm:$0xff] %v723_v59  ;;  %v724_v38 = vmax.f32 %v660_v60, 0.0  ;;  %v661_v44 = vadd.f32 %v1447_v46, %v594_v39  ;;  %v917_v8 = vunpack.c.l.bf16 %v1089_v55 }
  0x8e   :  { %v271_v22 = vmul.f32 %v914_v25, %v1355_v63  ;;  %v595_v33 = vadd.f32 %v531_v5, %v336_v43  ;;  %v337_v53 = vadd.f32 %v1392_v34, %v270_v47  ;;  %v1045_v10 = vunpack.c.l.bf16 %v1120_v6 }
  0x8f   :  { %v533_v9 = vmul.f32 %v1042_v3, %v1418_v2  ;;  %788 = vst [vmem:[%s2042_s8 + $0x188] sm:$0xff] %v724_v38  ;;  %v725_v45 = vmax.f32 %v661_v44, 0.0  ;;  %v272_v14 = vmul.f32 %v917_v8, %v1355_v63  ;;  %v918_v15 = vunpack.c.h.bf16 %v1089_v55 }
  0x90   :  { %v338_v56 = vadd.f32 %v1392_v34, %v271_v22  ;;  %v662_v16 = vadd.f32 %v1447_v46, %v595_v33  ;;  %v596_v1 = vadd.f32 %v532_v7, %v337_v53  ;;  %v534_v12 = vmul.f32 %v1045_v10, %v1418_v2  ;;  %v1093_v22 = vld [vmem:[%s2036_s0 + $0xf8] sm:$0xff]  }
  0x91   :  { %v1046_v21 = vunpack.c.h.bf16 %v1120_v6  ;;  %789 = vst [vmem:[%s2042_s8 + $0x190] sm:$0xff] %v725_v45  ;;  %v339_v4 = vadd.f32 %v1392_v34, %v272_v14  ;;  %v273_v19 = vmul.f32 %v918_v15, %v1355_v63  ;;  %v921_v23 = vunpack.c.l.bf16 %v1090_v62  ;;  %v1124_v10 = vld [vmem:[%s2037_s4 + $0xf8] sm:$0xff]  }
  0x92   :  { %v597_v13 = vadd.f32 %v533_v9, %v338_v56  ;;  %v726_v32 = vmax.f32 %v662_v16, 0.0  ;;  %v663_v30 = vadd.f32 %v1447_v46, %v596_v1  ;;  %v1049_v51 = vunpack.c.l.bf16 %v1121_v61 }
  0x93   :  { %v535_v26 = vmul.f32 %v1046_v21, %v1418_v2  ;;  %v598_v36 = vadd.f32 %v534_v12, %v339_v4  ;;  %v340_v27 = vadd.f32 %v1392_v34, %v273_v19  ;;  %v274_v35 = vmul.f32 %v921_v23, %v1355_v63 }
  0x94   :  { %v664_v24 = vadd.f32 %v1447_v46, %v597_v13  ;;  %790 = vst [vmem:[%s2042_s8 + $0x198] sm:$0xff] %v726_v32  ;;  %v727_v42 = vmax.f32 %v663_v30, 0.0  ;;  %v536_v57 = vmul.f32 %v1049_v51, %v1418_v2  ;;  %v922_v50 = vunpack.c.h.bf16 %v1090_v62 }
  0x95   :  { %v1050_v17 = vunpack.c.h.bf16 %v1121_v61  ;;  %v665_v18 = vadd.f32 %v1447_v46, %v598_v36  ;;  %v599_v58 = vadd.f32 %v535_v26, %v340_v27  ;;  %v341_v0 = vadd.f32 %v1392_v34, %v274_v35 }
  0x96   :  { %v728_v40 = vmax.f32 %v664_v24, 0.0  ;;  %791 = vst [vmem:[%s2042_s8 + $0x1a0] sm:$0xff] %v727_v42  ;;  %v275_v28 = vmul.f32 %v922_v50, %v1355_v63  ;;  %v925_v48 = vunpack.c.l.bf16 %v1091_v52  ;;  %v1053_v31 = vunpack.c.l.bf16 %v1122_v41 }
  0x97   :  { %v537_v11 = vmul.f32 %v1050_v17, %v1418_v2  ;;  %v729_v20 = vmax.f32 %v665_v18, 0.0  ;;  %v666_v37 = vadd.f32 %v1447_v46, %v599_v58  ;;  %v600_v5 = vadd.f32 %v536_v57, %v341_v0 }
  0x98   :  { %792 = vst [vmem:[%s2042_s8 + $0x1a8] sm:$0xff] %v728_v40  ;;  %v926_v54 = vunpack.c.h.bf16 %v1091_v52  ;;  %v342_v55 = vadd.f32 %v1392_v34, %v275_v28  ;;  %v276_v59 = vmul.f32 %v925_v48, %v1355_v63  ;;  %v538_v60 = vmul.f32 %v1053_v31, %v1418_v2 }
  0x99   :  { %v1054_v39 = vunpack.c.h.bf16 %v1122_v41  ;;  %793 = vst [vmem:[%s2042_s8 + $0x1b0] sm:$0xff] %v729_v20  ;;  %v730_v25 = vmax.f32 %v666_v37, 0.0  ;;  %v667_v6 = vadd.f32 %v1447_v46, %v600_v5  ;;  %v929_v47 = vunpack.c.l.bf16 %v1092_v49 }
  0x9a   :  { %v277_v43 = vmul.f32 %v926_v54, %v1355_v63  ;;  %v601_v7 = vadd.f32 %v537_v11, %v342_v55  ;;  %v343_v3 = vadd.f32 %v1392_v34, %v276_v59  ;;  %v1057_v44 = vunpack.c.l.bf16 %v1123_v29 }
  0x9b   :  { %v539_v38 = vmul.f32 %v1054_v39, %v1418_v2  ;;  %794 = vst [vmem:[%s2042_s8 + $0x1b8] sm:$0xff] %v730_v25  ;;  %v731_v8 = vmax.f32 %v667_v6, 0.0  ;;  %v278_v53 = vmul.f32 %v929_v47, %v1355_v63  ;;  %v930_v9 = vunpack.c.h.bf16 %v1092_v49 }
  0x9c   :  { %v344_v33 = vadd.f32 %v1392_v34, %v277_v43  ;;  %v668_v62 = vadd.f32 %v1447_v46, %v601_v7  ;;  %v602_v45 = vadd.f32 %v538_v60, %v343_v3  ;;  %v540_v56 = vmul.f32 %v1057_v44, %v1418_v2 }
  0x9d   :  { %v1058_v14 = vunpack.c.h.bf16 %v1123_v29  ;;  %795 = vst [vmem:[%s2042_s8 + $0x1c0] sm:$0xff] %v731_v8  ;;  %v345_v61 = vadd.f32 %v1392_v34, %v278_v53  ;;  %v279_v16 = vmul.f32 %v930_v9, %v1355_v63  ;;  %v933_v1 = vunpack.c.l.bf16 %v1093_v22 }
  0x9e   :  { %v603_v15 = vadd.f32 %v539_v38, %v344_v33  ;;  %v732_v12 = vmax.f32 %v668_v62, 0.0  ;;  %v669_v21 = vadd.f32 %v1447_v46, %v602_v45  ;;  %v1061_v4 = vunpack.c.l.bf16 %v1124_v10 }
  0x9f   :  { %v541_v13 = vmul.f32 %v1058_v14, %v1418_v2  ;;  %v604_v23 = vadd.f32 %v540_v56, %v345_v61  ;;  %v346_v32 = vadd.f32 %v1392_v34, %v279_v16  ;;  %v280_v30 = vmul.f32 %v933_v1, %v1355_v63 }
  0xa0   :  { %v670_v19 = vadd.f32 %v1447_v46, %v603_v15  ;;  %796 = vst [vmem:[%s2042_s8 + $0x1c8] sm:$0xff] %v732_v12  ;;  %v733_v26 = vmax.f32 %v669_v21, 0.0  ;;  %v542_v51 = vmul.f32 %v1061_v4, %v1418_v2  ;;  %v934_v24 = vunpack.c.h.bf16 %v1093_v22 }
  0xa1   :  { %v1062_v36 = vunpack.c.h.bf16 %v1124_v10  ;;  %v671_v35 = vadd.f32 %v1447_v46, %v604_v23  ;;  %v605_v52 = vadd.f32 %v541_v13, %v346_v32  ;;  %v347_v41 = vadd.f32 %v1392_v34, %v280_v30 }
  0xa2   :  { %v734_v27 = vmax.f32 %v670_v19, 0.0  ;;  %797 = vst [vmem:[%s2042_s8 + $0x1d0] sm:$0xff] %v733_v26  ;;  %v281_v42 = vmul.f32 %v934_v24, %v1355_v63 }
  0xa3   :  { %v543_v57 = vmul.f32 %v1062_v36, %v1418_v2  ;;  %v735_v50 = vmax.f32 %v671_v35, 0.0  ;;  %v672_v17 = vadd.f32 %v1447_v46, %v605_v52  ;;  %v606_v40 = vadd.f32 %v542_v51, %v347_v41 }
  0xa4   :  { %798 = vst [vmem:[%s2042_s8 + $0x1d8] sm:$0xff] %v734_v27  ;;  %v348_v18 = vadd.f32 %v1392_v34, %v281_v42 }
  0xa5   :  { %799 = vst [vmem:[%s2042_s8 + $0x1e0] sm:$0xff] %v735_v50  ;;  %v736_v58 = vmax.f32 %v672_v17, 0.0  ;;  %v673_v0 = vadd.f32 %v1447_v46, %v606_v40 }
  0xa6   :  { %v607_v63 = vadd.f32 %v543_v57, %v348_v18 }
  0xa7   :  { %800 = vst [vmem:[%s2042_s8 + $0x1e8] sm:$0xff] %v736_v58  ;;  %v737_v2 = vmax.f32 %v673_v0, 0.0 }
  0xa8   :  { %v674_v28 = vadd.f32 %v1447_v46, %v607_v63 }
  0xa9   :  { %801 = vst [vmem:[%s2042_s8 + $0x1f0] sm:$0xff] %v737_v2 }
  0xaa   :  { %v738_v34 = vmax.f32 %v674_v28, 0.0 }
  0xac   :  { %802 = vst [vmem:[%s2042_s8 + $0x1f8] sm:$0xff] %v738_v34 }

// kernel: bottleneck_forward.4
= control target key start
LH: loop header
LB: loop body
LE: loop exit
PB: predicated region body
PF: predicated region fallthrough
CT: control target
= control target key end

     0   :  { %s2935_s1 = inlined_call_operand.vmem [shape: bf16[128,256], index: 1, kind: input, shape index: {}]   ;;  %s2936_s0 = inlined_call_operand.vmem [shape: bf16[512,128], index: 0, kind: input, shape index: {}]   ;;  %s2937_s2 = inlined_call_operand.vmem [shape: bf16[512,128], index: 2, kind: output, shape index: {0}]   ;;  %s2938_s3 = inlined_call_operand.vmem [shape: bf16[512,128], index: 3, kind: output, shape index: {1}]   ;;  %s2939_s4 = inlined_call_operand.vmem [shape: f32[1,2,128], index: 4, kind: output, shape index: {2}]   ;;  %s2940_s5 = inlined_call_operand.vmem [shape: f32[1,2,128], index: 5, kind: output, shape index: {3}]  }
   0x1   :  { %v1571_v0 = vld [vmem:[%s2935_s1 + $0x70] sm:$0xf]  ;;  %v1624_v1 = vld [vmem:[%s2935_s1 + $0x74] sm:$0xf0]  ;;  %v1623_v2 = vld [vmem:[%s2935_s1 + $0x74] sm:$0xf] }
   0x2   :  { %v1572_v3 = vor.u32 %v1624_v1, %v1571_v0  ;;  %v1573_v4 = vld [vmem:[%s2935_s1 + $0x78] sm:$0xf0]  ;;  %v1563_v5 = vld [vmem:[%s2935_s1 + $0x60] sm:$0xf]  ;;  %v1622_v6 = vld [vmem:[%s2935_s1 + $0x64] sm:$0xf0] }
   0x3   :  { %v1576_v7 = vor.u32 %v1623_v2, %v1573_v4  ;;  %v1621_v8 = vld [vmem:[%s2935_s1 + $0x64] sm:$0xf]  ;;  %v1565_v9 = vld [vmem:[%s2935_s1 + $0x68] sm:$0xf0]  ;;  %v1564_v10 = vor.u32 %v1622_v6, %v1563_v5  ;;  %v1555_v12 = vld [vmem:[%s2935_s1 + $0x50] sm:$0xf] }
   0x4   :  { %367 = vmatpush.bf16.msra.mxu0 %v1572_v3  ;;  %2007 = vmatpush.bf16.msra.mxu2 %v1572_v3  ;;  %v1568_v11 = vor.u32 %v1621_v8, %v1565_v9  ;;  %v1620_v13 = vld [vmem:[%s2935_s1 + $0x54] sm:$0xf0]  ;;  %v1619_v14 = vld [vmem:[%s2935_s1 + $0x54] sm:$0xf]  ;;  %v1557_v15 = vld [vmem:[%s2935_s1 + $0x58] sm:$0xf0] }
   0x5   :  { %536 = vmatpush.bf16.msra.mxu1 %v1576_v7  ;;  %2015 = vmatpush.bf16.msra.mxu3 %v1576_v7  ;;  %v1556_v16 = vor.u32 %v1620_v13, %v1555_v12  ;;  %v1560_v17 = vor.u32 %v1619_v14, %v1557_v15  ;;  %v1547_v18 = vld [vmem:[%s2935_s1 + $0x40] sm:$0xf]  ;;  %v1618_v19 = vld [vmem:[%s2935_s1 + $0x44] sm:$0xf0]  ;;  %v1617_v20 = vld [vmem:[%s2935_s1 + $0x44] sm:$0xf] }
   0x6   :  { %v1549_v21 = vld [vmem:[%s2935_s1 + $0x48] sm:$0xf0]  ;;  %v1548_v22 = vor.u32 %v1618_v19, %v1547_v18  ;;  %v1539_v24 = vld [vmem:[%s2935_s1 + $0x30] sm:$0xf]  ;;  %v1616_v25 = vld [vmem:[%s2935_s1 + $0x34] sm:$0xf0] }
   0x7   :  { %v1552_v23 = vor.u32 %v1617_v20, %v1549_v21  ;;  %v1615_v26 = vld [vmem:[%s2935_s1 + $0x34] sm:$0xf]  ;;  %v1541_v27 = vld [vmem:[%s2935_s1 + $0x38] sm:$0xf0]  ;;  %v1540_v28 = vor.u32 %v1616_v25, %v1539_v24  ;;  %v1531_v30 = vld [vmem:[%s2935_s1 + $0x20] sm:$0xf] }
   0x8   :  { %368 = vmatpush.bf16.msra.mxu0 %v1564_v10  ;;  %2008 = vmatpush.bf16.msra.mxu2 %v1564_v10  ;;  %v1544_v29 = vor.u32 %v1615_v26, %v1541_v27  ;;  %v1614_v31 = vld [vmem:[%s2935_s1 + $0x24] sm:$0xf0]  ;;  %v1613_v32 = vld [vmem:[%s2935_s1 + $0x24] sm:$0xf]  ;;  %v1533_v33 = vld [vmem:[%s2935_s1 + $0x28] sm:$0xf0] }
   0x9   :  { %537 = vmatpush.bf16.msra.mxu1 %v1568_v11  ;;  %2016 = vmatpush.bf16.msra.mxu3 %v1568_v11  ;;  %v1532_v34 = vor.u32 %v1614_v31, %v1531_v30  ;;  %v1536_v35 = vor.u32 %v1613_v32, %v1533_v33  ;;  %v1523_v36 = vld [vmem:[%s2935_s1 + $0x10] sm:$0xf]  ;;  %v1612_v37 = vld [vmem:[%s2935_s1 + $0x14] sm:$0xf0]  ;;  %v1611_v38 = vld [vmem:[%s2935_s1 + $0x14] sm:$0xf] }
   0xa   :  { %v1525_v39 = vld [vmem:[%s2935_s1 + $0x18] sm:$0xf0]  ;;  %v1524_v40 = vor.u32 %v1612_v37, %v1523_v36  ;;  %v1515_v42 = vld [vmem:[%s2935_s1] sm:$0xf]  ;;  %v1610_v43 = vld [vmem:[%s2935_s1 + $0x4] sm:$0xf0] }
   0xb   :  { %v1528_v41 = vor.u32 %v1611_v38, %v1525_v39  ;;  %v1609_v44 = vld [vmem:[%s2935_s1 + $0x4] sm:$0xf]  ;;  %v1517_v45 = vld [vmem:[%s2935_s1 + $0x8] sm:$0xf0]  ;;  %v1516_v46 = vor.u32 %v1610_v43, %v1515_v42  ;;  %v1579_v51 = vld [vmem:[%s2936_s0 + $0x10] sm:$0xff] }
   0xc   :  { %369 = vmatpush.bf16.msra.mxu0 %v1556_v16  ;;  %2009 = vmatpush.bf16.msra.mxu2 %v1556_v16  ;;  %v1520_v47 = vor.u32 %v1609_v44, %v1517_v45  ;;  %v1577_v48 = vld [vmem:[%s2936_s0] sm:$0xff]  ;;  %v1578_v49 = vld [vmem:[%s2936_s0 + $0x8] sm:$0xff]  ;;  %v1580_v53 = vld [vmem:[%s2936_s0 + $0x18] sm:$0xff] }
   0xd   :  { %538 = vmatpush.bf16.msra.mxu1 %v1560_v17  ;;  %2017 = vmatpush.bf16.msra.mxu3 %v1560_v17  ;;  %v1593_v50 = vld [vmem:[%s2936_s0 + $0x80] sm:$0xff]  ;;  %v1594_v52 = vld [vmem:[%s2936_s0 + $0x88] sm:$0xff]  ;;  %v1595_v54 = vld [vmem:[%s2936_s0 + $0x90] sm:$0xff] }
   0xe   :  { %v1581_v55 = vld [vmem:[%s2936_s0 + $0x20] sm:$0xff]  ;;  %v1596_v56 = vld [vmem:[%s2936_s0 + $0x98] sm:$0xff]  ;;  %v1582_v57 = vld [vmem:[%s2936_s0 + $0x28] sm:$0xff] }
   0xf   :  { %v1597_v58 = vld [vmem:[%s2936_s0 + $0xa0] sm:$0xff]  ;;  %v1583_v59 = vld [vmem:[%s2936_s0 + $0x30] sm:$0xff]  ;;  %v1598_v60 = vld [vmem:[%s2936_s0 + $0xa8] sm:$0xff] }
  0x10   :  { %370 = vmatpush.bf16.msra.mxu0 %v1548_v22  ;;  %2010 = vmatpush.bf16.msra.mxu2 %v1548_v22  ;;  %v1584_v61 = vld [vmem:[%s2936_s0 + $0x38] sm:$0xff]  ;;  %v1599_v62 = vld [vmem:[%s2936_s0 + $0xb0] sm:$0xff]  ;;  %v1585_v63 = vld [vmem:[%s2936_s0 + $0x40] sm:$0xff] }
  0x11   :  { %539 = vmatpush.bf16.msra.mxu1 %v1552_v23  ;;  %2018 = vmatpush.bf16.msra.mxu3 %v1552_v23  ;;  %v1600_v2 = vld [vmem:[%s2936_s0 + $0xb8] sm:$0xff]  ;;  %v1586_v15 = vld [vmem:[%s2936_s0 + $0x48] sm:$0xff]  ;;  %v1601_v24 = vld [vmem:[%s2936_s0 + $0xc0] sm:$0xff] }
  0x12   :  { %v1587_v37 = vld [vmem:[%s2936_s0 + $0x50] sm:$0xff] }
  0x14   :  { %371 = vmatpush.bf16.msra.mxu0 %v1540_v28  ;;  %2011 = vmatpush.bf16.msra.mxu2 %v1540_v28 }
  0x15   :  { %540 = vmatpush.bf16.msra.mxu1 %v1544_v29  ;;  %2019 = vmatpush.bf16.msra.mxu3 %v1544_v29 }
  0x18   :  { %372 = vmatpush.bf16.msra.mxu0 %v1532_v34  ;;  %2012 = vmatpush.bf16.msra.mxu2 %v1532_v34 }
  0x19   :  { %541 = vmatpush.bf16.msra.mxu1 %v1536_v35  ;;  %2020 = vmatpush.bf16.msra.mxu3 %v1536_v35 }
  0x1c   :  { %373 = vmatpush.bf16.msra.mxu0 %v1524_v40  ;;  %2013 = vmatpush.bf16.msra.mxu2 %v1524_v40 }
  0x1d   :  { %542 = vmatpush.bf16.msra.mxu1 %v1528_v41  ;;  %2021 = vmatpush.bf16.msra.mxu3 %v1528_v41 }
  0x20   :  { %374 = vmatpush.bf16.msra.mxu0 %v1516_v46  ;;  %2014 = vmatpush.bf16.msra.mxu2 %v1516_v46 }
  0x21   :  { %543 = vmatpush.bf16.msra.mxu1 %v1520_v47  ;;  %2022 = vmatpush.bf16.msra.mxu3 %v1520_v47 }
  0x23   :  { %375 = vmatmul.bf16.vlgmr.msra.gmra.mxu0 %v1577_v48  ;;  %455 = vmatmul.bf16.vlgmr.msra.gmra.mxu2 %v1593_v50 }
  0x24   :  { %544 = vmatmul.bf16.vlgmr.msra.gmra.mxu1 %v1577_v48  ;;  %624 = vmatmul.bf16.vlgmr.msra.gmra.mxu3 %v1593_v50  ;;  %v1602_v50 = vld [vmem:[%s2936_s0 + $0xc8] sm:$0xff] }
  0x33   :  { %380 = vmatmul.bf16.gmra.mxu0 %v1578_v49  ;;  %460 = vmatmul.bf16.gmra.mxu2 %v1594_v52 }
  0x34   :  { %549 = vmatmul.bf16.gmra.mxu1 %v1578_v49  ;;  %629 = vmatmul.bf16.gmra.mxu3 %v1594_v52 }
  0x43   :  { %385 = vmatmul.bf16.gmra.mxu0 %v1579_v51  ;;  %465 = vmatmul.bf16.gmra.mxu2 %v1595_v54 }
  0x44   :  { %554 = vmatmul.bf16.gmra.mxu1 %v1579_v51  ;;  %634 = vmatmul.bf16.gmra.mxu3 %v1595_v54 }
  0x53   :  { %390 = vmatmul.bf16.gmra.mxu0 %v1580_v53  ;;  %470 = vmatmul.bf16.gmra.mxu2 %v1596_v56 }
  0x54   :  { %559 = vmatmul.bf16.gmra.mxu1 %v1580_v53  ;;  %639 = vmatmul.bf16.gmra.mxu3 %v1596_v56 }
  0x63   :  { %395 = vmatmul.bf16.gmra.mxu0 %v1581_v55  ;;  %475 = vmatmul.bf16.gmra.mxu2 %v1597_v58 }
  0x64   :  { %564 = vmatmul.bf16.gmra.mxu1 %v1581_v55  ;;  %644 = vmatmul.bf16.gmra.mxu3 %v1597_v58 }
  0x73   :  { %400 = vmatmul.bf16.gmra.mxu0 %v1582_v57  ;;  %480 = vmatmul.bf16.gmra.mxu2 %v1598_v60 }
  0x74   :  { %569 = vmatmul.bf16.gmra.mxu1 %v1582_v57  ;;  %649 = vmatmul.bf16.gmra.mxu3 %v1598_v60 }
  0x83   :  { %405 = vmatmul.bf16.gmra.mxu0 %v1583_v59  ;;  %485 = vmatmul.bf16.gmra.mxu2 %v1599_v62 }
  0x84   :  { %574 = vmatmul.bf16.gmra.mxu1 %v1583_v59  ;;  %654 = vmatmul.bf16.gmra.mxu3 %v1599_v62 }
  0x93   :  { %410 = vmatmul.bf16.gmra.mxu0 %v1584_v61  ;;  %490 = vmatmul.bf16.gmra.mxu2 %v1600_v2 }
  0x94   :  { %579 = vmatmul.bf16.gmra.mxu1 %v1584_v61  ;;  %659 = vmatmul.bf16.gmra.mxu3 %v1600_v2 }
  0xa0   :  { %v376_v0 = vpop.f32.mrf.mxu0 }
  0xa1   :  { %v545_v1 = vpop.f32.mrf.mxu1  ;;  %v1031_v4 = vmul.f32 %v376_v0, %v376_v0 }
  0xa2   :  { %v1235_v9 = vmul.f32 %v545_v1, %v545_v1 }
  0xa3   :  { %415 = vmatmul.bf16.gmra.mxu0 %v1585_v63  ;;  %495 = vmatmul.bf16.gmra.mxu2 %v1601_v24 }
  0xa4   :  { %584 = vmatmul.bf16.gmra.mxu1 %v1585_v63  ;;  %664 = vmatmul.bf16.gmra.mxu3 %v1601_v24  ;;  %v1588_v63 = vld [vmem:[%s2936_s0 + $0x58] sm:$0xff] }
  0xa6   :  { %v2212_v30 = vpop.f32.mrf.mxu2 }
  0xa7   :  { %v2214_v34 = vpop.f32.mrf.mxu3 }
  0xa8   :  { %v378_v3 = vpop.f32.mrf.mxu0 }
  0xa9   :  { %v1628_v5 = vpack.c.bf16 %v378_v3, %v376_v0  ;;  %v1032_v6 = vmul.f32 %v378_v3, %v378_v3  ;;  %v547_v7 = vpop.f32.mrf.mxu1  ;;  %v961_v8 = vadd.f32 %v378_v3, %v376_v0 }
  0xaa   :  { %v1788_v10 = vpack.c.bf16 %v547_v7, %v545_v1  ;;  %v1236_v11 = vmul.f32 %v547_v7, %v547_v7  ;;  %v1165_v12 = vadd.f32 %v547_v7, %v545_v1 }
  0xab   :  { %1629 = vst [vmem:[%s2937_s2] sm:$0xff] %v1628_v5   ;;  %v1095_v13 = vadd.f32 %v1032_v6, %v1031_v4 }
  0xac   :  { %1789 = vst [vmem:[%s2938_s3] sm:$0xff] %v1788_v10   ;;  %v1299_v14 = vadd.f32 %v1236_v11, %v1235_v9 }
  0xae   :  { %v2225_v42 = vpop.f32.mrf.mxu2 }
  0xaf   :  { %v1708_v45 = vpack.c.bf16 %v2225_v42, %v2212_v30  ;;  %v2229_v46 = vpop.f32.mrf.mxu3 }
  0xb0   :  { %v381_v16 = vpop.f32.mrf.mxu0  ;;  %v1868_v48 = vpack.c.bf16 %v2229_v46, %v2214_v34 }
  0xb1   :  { %v962_v17 = vadd.f32 %v961_v8, %v381_v16  ;;  %v1033_v18 = vmul.f32 %v381_v16, %v381_v16  ;;  %v550_v19 = vpop.f32.mrf.mxu1  ;;  %1960 = vst [vmem:[%s2937_s2 + $0x80] sm:$0xff] %v1708_v45  }
  0xb2   :  { %v1166_v20 = vadd.f32 %v1165_v12, %v550_v19  ;;  %v1237_v21 = vmul.f32 %v550_v19, %v550_v19  ;;  %1991 = vst [vmem:[%s2938_s3 + $0x80] sm:$0xff] %v1868_v48   ;;  %v1603_v12 = vld [vmem:[%s2936_s0 + $0xd0] sm:$0xff] }
  0xb3   :  { %v1096_v22 = vadd.f32 %v1095_v13, %v1033_v18  ;;  %420 = vmatmul.bf16.gmra.mxu0 %v1586_v15  ;;  %500 = vmatmul.bf16.gmra.mxu2 %v1602_v50 }
  0xb4   :  { %v1300_v23 = vadd.f32 %v1299_v14, %v1237_v21  ;;  %589 = vmatmul.bf16.gmra.mxu1 %v1586_v15  ;;  %669 = vmatmul.bf16.gmra.mxu3 %v1602_v50 }
  0xb6   :  { %v2242_v56 = vpop.f32.mrf.mxu2 }
  0xb7   :  { %v2244_v60 = vpop.f32.mrf.mxu3 }
  0xb8   :  { %v383_v25 = vpop.f32.mrf.mxu0 }
  0xb9   :  { %v1633_v26 = vpack.c.bf16 %v383_v25, %v381_v16  ;;  %v1034_v27 = vmul.f32 %v383_v25, %v383_v25  ;;  %v552_v28 = vpop.f32.mrf.mxu1  ;;  %v963_v29 = vadd.f32 %v962_v17, %v383_v25  ;;  %v1589_v25 = vld [vmem:[%s2936_s0 + $0x60] sm:$0xff] }
  0xba   :  { %v1793_v31 = vpack.c.bf16 %v552_v28, %v550_v19  ;;  %v1238_v32 = vmul.f32 %v552_v28, %v552_v28  ;;  %v1167_v33 = vadd.f32 %v1166_v20, %v552_v28 }
  0xbb   :  { %1945 = vst [vmem:[%s2937_s2 + $0x8] sm:$0xff] %v1633_v26   ;;  %v1097_v35 = vadd.f32 %v1096_v22, %v1034_v27 }
  0xbc   :  { %1976 = vst [vmem:[%s2938_s3 + $0x8] sm:$0xff] %v1793_v31   ;;  %v1301_v36 = vadd.f32 %v1300_v23, %v1238_v32 }
  0xbe   :  { %v2255_v4 = vpop.f32.mrf.mxu2 }
  0xbf   :  { %v1713_v7 = vpack.c.bf16 %v2255_v4, %v2242_v56  ;;  %v2259_v8 = vpop.f32.mrf.mxu3 }
  0xc0   :  { %v386_v38 = vpop.f32.mrf.mxu0  ;;  %v1873_v10 = vpack.c.bf16 %v2259_v8, %v2244_v60 }
  0xc1   :  { %v964_v39 = vadd.f32 %v963_v29, %v386_v38  ;;  %v1035_v40 = vmul.f32 %v386_v38, %v386_v38  ;;  %v555_v41 = vpop.f32.mrf.mxu1  ;;  %1961 = vst [vmem:[%s2937_s2 + $0x88] sm:$0xff] %v1713_v7   ;;  %v1605_v7 = vld [vmem:[%s2936_s0 + $0xe0] sm:$0xff] }
  0xc2   :  { %v1168_v43 = vadd.f32 %v1167_v33, %v555_v41  ;;  %v1239_v44 = vmul.f32 %v555_v41, %v555_v41  ;;  %1992 = vst [vmem:[%s2938_s3 + $0x88] sm:$0xff] %v1873_v10  }
  0xc3   :  { %v1098_v47 = vadd.f32 %v1097_v35, %v1035_v40  ;;  %425 = vmatmul.bf16.gmra.mxu0 %v1587_v37  ;;  %505 = vmatmul.bf16.gmra.mxu2 %v1603_v12  ;;  %v1604_v40 = vld [vmem:[%s2936_s0 + $0xd8] sm:$0xff] }
  0xc4   :  { %v1302_v49 = vadd.f32 %v1301_v36, %v1239_v44  ;;  %594 = vmatmul.bf16.gmra.mxu1 %v1587_v37  ;;  %674 = vmatmul.bf16.gmra.mxu3 %v1603_v12 }
  0xc6   :  { %v2272_v18 = vpop.f32.mrf.mxu2 }
  0xc7   :  { %v2274_v22 = vpop.f32.mrf.mxu3 }
  0xc8   :  { %v388_v51 = vpop.f32.mrf.mxu0 }
  0xc9   :  { %v1638_v52 = vpack.c.bf16 %v388_v51, %v386_v38  ;;  %v1036_v53 = vmul.f32 %v388_v51, %v388_v51  ;;  %v557_v54 = vpop.f32.mrf.mxu1  ;;  %v965_v55 = vadd.f32 %v964_v39, %v388_v51 }
  0xca   :  { %v1798_v57 = vpack.c.bf16 %v557_v54, %v555_v41  ;;  %v1240_v58 = vmul.f32 %v557_v54, %v557_v54  ;;  %v1169_v59 = vadd.f32 %v1168_v43, %v557_v54 }
  0xcb   :  { %1946 = vst [vmem:[%s2937_s2 + $0x10] sm:$0xff] %v1638_v52   ;;  %v1099_v61 = vadd.f32 %v1098_v47, %v1036_v53 }
  0xcc   :  { %1977 = vst [vmem:[%s2938_s3 + $0x10] sm:$0xff] %v1798_v57   ;;  %v1303_v62 = vadd.f32 %v1302_v49, %v1240_v58 }
  0xce   :  { %v2285_v31 = vpop.f32.mrf.mxu2 }
  0xcf   :  { %v1718_v35 = vpack.c.bf16 %v2285_v31, %v2272_v18  ;;  %v2289_v36 = vpop.f32.mrf.mxu3 }
  0xd0   :  { %v391_v0 = vpop.f32.mrf.mxu0  ;;  %v1878_v38 = vpack.c.bf16 %v2289_v36, %v2274_v22 }
  0xd1   :  { %v966_v1 = vadd.f32 %v965_v55, %v391_v0  ;;  %v1037_v2 = vmul.f32 %v391_v0, %v391_v0  ;;  %v560_v3 = vpop.f32.mrf.mxu1  ;;  %1962 = vst [vmem:[%s2937_s2 + $0x90] sm:$0xff] %v1718_v35   ;;  %v1590_v55 = vld [vmem:[%s2936_s0 + $0x68] sm:$0xff] }
  0xd2   :  { %v1170_v5 = vadd.f32 %v1169_v59, %v560_v3  ;;  %v1241_v6 = vmul.f32 %v560_v3, %v560_v3  ;;  %1993 = vst [vmem:[%s2938_s3 + $0x90] sm:$0xff] %v1878_v38  }
  0xd3   :  { %v1100_v9 = vadd.f32 %v1099_v61, %v1037_v2  ;;  %430 = vmatmul.bf16.gmra.mxu0 %v1588_v63  ;;  %510 = vmatmul.bf16.gmra.mxu2 %v1604_v40 }
  0xd4   :  { %v1304_v11 = vadd.f32 %v1303_v62, %v1241_v6  ;;  %599 = vmatmul.bf16.gmra.mxu1 %v1588_v63  ;;  %679 = vmatmul.bf16.gmra.mxu3 %v1604_v40  ;;  %v1606_v40 = vld [vmem:[%s2936_s0 + $0xe8] sm:$0xff] }
  0xd6   :  { %v2302_v48 = vpop.f32.mrf.mxu2 }
  0xd7   :  { %v2304_v52 = vpop.f32.mrf.mxu3 }
  0xd8   :  { %v393_v13 = vpop.f32.mrf.mxu0 }
  0xd9   :  { %v1643_v14 = vpack.c.bf16 %v393_v13, %v391_v0  ;;  %v1038_v15 = vmul.f32 %v393_v13, %v393_v13  ;;  %v562_v16 = vpop.f32.mrf.mxu1  ;;  %v967_v17 = vadd.f32 %v966_v1, %v393_v13 }
  0xda   :  { %v1803_v19 = vpack.c.bf16 %v562_v16, %v560_v3  ;;  %v1242_v20 = vmul.f32 %v562_v16, %v562_v16  ;;  %v1171_v21 = vadd.f32 %v1170_v5, %v562_v16 }
  0xdb   :  { %1947 = vst [vmem:[%s2937_s2 + $0x18] sm:$0xff] %v1643_v14   ;;  %v1101_v23 = vadd.f32 %v1100_v9, %v1038_v15 }
  0xdc   :  { %1978 = vst [vmem:[%s2938_s3 + $0x18] sm:$0xff] %v1803_v19   ;;  %v1305_v24 = vadd.f32 %v1304_v11, %v1242_v20 }
  0xde   :  { %v2315_v62 = vpop.f32.mrf.mxu2 }
  0xdf   :  { %v1723_v1 = vpack.c.bf16 %v2315_v62, %v2302_v48  ;;  %v2319_v2 = vpop.f32.mrf.mxu3 }
  0xe0   :  { %v396_v26 = vpop.f32.mrf.mxu0  ;;  %v1883_v5 = vpack.c.bf16 %v2319_v2, %v2304_v52 }
  0xe1   :  { %v968_v27 = vadd.f32 %v967_v17, %v396_v26  ;;  %v1039_v28 = vmul.f32 %v396_v26, %v396_v26  ;;  %v565_v29 = vpop.f32.mrf.mxu1  ;;  %1963 = vst [vmem:[%s2937_s2 + $0x98] sm:$0xff] %v1723_v1  }
  0xe2   :  { %v1172_v32 = vadd.f32 %v1171_v21, %v565_v29  ;;  %v1243_v33 = vmul.f32 %v565_v29, %v565_v29  ;;  %1994 = vst [vmem:[%s2938_s3 + $0x98] sm:$0xff] %v1883_v5  }
  0xe3   :  { %v1102_v37 = vadd.f32 %v1101_v23, %v1039_v28  ;;  %435 = vmatmul.bf16.gmra.mxu0 %v1589_v25  ;;  %515 = vmatmul.bf16.gmra.mxu2 %v1605_v7  ;;  %v1591_v23 = vld [vmem:[%s2936_s0 + $0x70] sm:$0xff] }
  0xe4   :  { %v1306_v39 = vadd.f32 %v1305_v24, %v1243_v33  ;;  %604 = vmatmul.bf16.gmra.mxu1 %v1589_v25  ;;  %684 = vmatmul.bf16.gmra.mxu3 %v1605_v7 }
  0xe6   :  { %v2332_v14 = vpop.f32.mrf.mxu2 }
  0xe7   :  { %v2334_v19 = vpop.f32.mrf.mxu3 }
  0xe8   :  { %v398_v41 = vpop.f32.mrf.mxu0 }
  0xe9   :  { %v1648_v43 = vpack.c.bf16 %v398_v41, %v396_v26  ;;  %v969_v44 = vadd.f32 %v968_v27, %v398_v41  ;;  %v1040_v45 = vmul.f32 %v398_v41, %v398_v41  ;;  %v567_v47 = vpop.f32.mrf.mxu1 }
  0xea   :  { %v1808_v49 = vpack.c.bf16 %v567_v47, %v565_v29  ;;  %v1173_v50 = vadd.f32 %v1172_v32, %v567_v47  ;;  %v1244_v51 = vmul.f32 %v567_v47, %v567_v47 }
  0xeb   :  { %1948 = vst [vmem:[%s2937_s2 + $0x20] sm:$0xff] %v1648_v43   ;;  %v1103_v53 = vadd.f32 %v1102_v37, %v1040_v45 }
  0xec   :  { %1979 = vst [vmem:[%s2938_s3 + $0x20] sm:$0xff] %v1808_v49   ;;  %v1307_v54 = vadd.f32 %v1306_v39, %v1244_v51 }
  0xee   :  { %v2345_v28 = vpop.f32.mrf.mxu2 }
  0xef   :  { %v1728_v33 = vpack.c.bf16 %v2345_v28, %v2332_v14  ;;  %v2349_v35 = vpop.f32.mrf.mxu3 }
  0xf0   :  { %v401_v57 = vpop.f32.mrf.mxu0  ;;  %v1888_v38 = vpack.c.bf16 %v2349_v35, %v2334_v19 }
  0xf1   :  { %v970_v58 = vadd.f32 %v969_v44, %v401_v57  ;;  %v1041_v59 = vmul.f32 %v401_v57, %v401_v57  ;;  %v570_v61 = vpop.f32.mrf.mxu1  ;;  %1964 = vst [vmem:[%s2937_s2 + $0xa0] sm:$0xff] %v1728_v33  }
  0xf2   :  { %v1174_v63 = vadd.f32 %v1173_v50, %v570_v61  ;;  %v1245_v0 = vmul.f32 %v570_v61, %v570_v61  ;;  %1995 = vst [vmem:[%s2938_s3 + $0xa0] sm:$0xff] %v1888_v38  }
  0xf3   :  { %v1104_v3 = vadd.f32 %v1103_v53, %v1041_v59  ;;  %440 = vmatmul.bf16.gmra.mxu0 %v1590_v55  ;;  %520 = vmatmul.bf16.gmra.mxu2 %v1606_v40 }
  0xf4   :  { %v1308_v6 = vadd.f32 %v1307_v54, %v1245_v0  ;;  %609 = vmatmul.bf16.gmra.mxu1 %v1590_v55  ;;  %689 = vmatmul.bf16.gmra.mxu3 %v1606_v40 }
  0xf6   :  { %v2362_v49 = vpop.f32.mrf.mxu2 }
  0xf7   :  { %v2364_v54 = vpop.f32.mrf.mxu3 }
  0xf8   :  { %v403_v9 = vpop.f32.mrf.mxu0 }
  0xf9   :  { %v1653_v10 = vpack.c.bf16 %v403_v9, %v401_v57  ;;  %v971_v11 = vadd.f32 %v970_v58, %v403_v9  ;;  %v1042_v12 = vmul.f32 %v403_v9, %v403_v9  ;;  %v572_v13 = vpop.f32.mrf.mxu1  ;;  %v1592_v58 = vld [vmem:[%s2936_s0 + $0x78] sm:$0xff] }
  0xfa   :  { %v1813_v15 = vpack.c.bf16 %v572_v13, %v570_v61  ;;  %v1175_v16 = vadd.f32 %v1174_v63, %v572_v13  ;;  %v1246_v17 = vmul.f32 %v572_v13, %v572_v13 }
  0xfb   :  { %1949 = vst [vmem:[%s2937_s2 + $0x28] sm:$0xff] %v1653_v10   ;;  %v1105_v20 = vadd.f32 %v1104_v3, %v1042_v12  ;;  %v1607_v12 = vld [vmem:[%s2936_s0 + $0xf0] sm:$0xff] }
  0xfc   :  { %1980 = vst [vmem:[%s2938_s3 + $0x28] sm:$0xff] %v1813_v15   ;;  %v1309_v21 = vadd.f32 %v1308_v6, %v1246_v17 }
  0xfe   :  { %v2375_v1 = vpop.f32.mrf.mxu2 }
  0xff   :  { %v1733_v6 = vpack.c.bf16 %v2375_v1, %v2362_v49  ;;  %v2379_v7 = vpop.f32.mrf.mxu3 }
 0x100   :  { %v406_v24 = vpop.f32.mrf.mxu0  ;;  %v1893_v10 = vpack.c.bf16 %v2379_v7, %v2364_v54 }
 0x101   :  { %v972_v25 = vadd.f32 %v971_v11, %v406_v24  ;;  %v1043_v26 = vmul.f32 %v406_v24, %v406_v24  ;;  %v575_v27 = vpop.f32.mrf.mxu1  ;;  %1965 = vst [vmem:[%s2937_s2 + $0xa8] sm:$0xff] %v1733_v6  }
 0x102   :  { %v1176_v29 = vadd.f32 %v1175_v16, %v575_v27  ;;  %v1247_v32 = vmul.f32 %v575_v27, %v575_v27  ;;  %1996 = vst [vmem:[%s2938_s3 + $0xa8] sm:$0xff] %v1893_v10  }
 0x103   :  { %v1106_v37 = vadd.f32 %v1105_v20, %v1043_v26  ;;  %445 = vmatmul.bf16.gmra.mxu0 %v1591_v23  ;;  %525 = vmatmul.bf16.gmra.mxu2 %v1607_v12 }
 0x104   :  { %v1310_v39 = vadd.f32 %v1309_v21, %v1247_v32  ;;  %614 = vmatmul.bf16.gmra.mxu1 %v1591_v23  ;;  %694 = vmatmul.bf16.gmra.mxu3 %v1607_v12 }
 0x106   :  { %v2392_v21 = vpop.f32.mrf.mxu2 }
 0x107   :  { %v2394_v26 = vpop.f32.mrf.mxu3 }
 0x108   :  { %v408_v41 = vpop.f32.mrf.mxu0 }
 0x109   :  { %v1658_v43 = vpack.c.bf16 %v408_v41, %v406_v24  ;;  %v973_v44 = vadd.f32 %v972_v25, %v408_v41  ;;  %v1044_v45 = vmul.f32 %v408_v41, %v408_v41  ;;  %v577_v47 = vpop.f32.mrf.mxu1 }
 0x10a   :  { %v1818_v50 = vpack.c.bf16 %v577_v47, %v575_v27  ;;  %v1177_v51 = vadd.f32 %v1176_v29, %v577_v47  ;;  %v1248_v53 = vmul.f32 %v577_v47, %v577_v47 }
 0x10b   :  { %1950 = vst [vmem:[%s2937_s2 + $0x30] sm:$0xff] %v1658_v43   ;;  %v1107_v55 = vadd.f32 %v1106_v37, %v1044_v45 }
 0x10c   :  { %1981 = vst [vmem:[%s2938_s3 + $0x30] sm:$0xff] %v1818_v50   ;;  %v1311_v57 = vadd.f32 %v1310_v39, %v1248_v53 }
 0x10e   :  { %v2402_v39 = vpop.f32.mrf.mxu2 }
 0x10f   :  { %v1738_v43 = vpack.c.bf16 %v2402_v39, %v2392_v21 }
 0x110   :  { %v411_v59 = vpop.f32.mrf.mxu0 }
 0x111   :  { %v974_v61 = vadd.f32 %v973_v44, %v411_v59  ;;  %v1045_v63 = vmul.f32 %v411_v59, %v411_v59  ;;  %v580_v0 = vpop.f32.mrf.mxu1  ;;  %v2406_v44 = vpop.f32.mrf.mxu3  ;;  %1966 = vst [vmem:[%s2937_s2 + $0xb0] sm:$0xff] %v1738_v43  }
 0x112   :  { %v1178_v3 = vadd.f32 %v1177_v51, %v580_v0  ;;  %v1249_v5 = vmul.f32 %v580_v0, %v580_v0  ;;  %v1898_v47 = vpack.c.bf16 %v2406_v44, %v2394_v26  ;;  %v1608_v51 = vld [vmem:[%s2936_s0 + $0xf8] sm:$0xff] }
 0x113   :  { %v1108_v9 = vadd.f32 %v1107_v55, %v1045_v63  ;;  %450 = vmatmul.bf16.gmra.mxu0 %v1592_v58  ;;  %530 = vmatmul.bf16.gmra.mxu2 %v1608_v51 }
 0x114   :  { %v1312_v11 = vadd.f32 %v1311_v57, %v1249_v5  ;;  %619 = vmatmul.bf16.gmra.mxu1 %v1592_v58  ;;  %1997 = vst [vmem:[%s2938_s3 + $0xb0] sm:$0xff] %v1898_v47   ;;  %699 = vmatmul.bf16.gmra.mxu3 %v1608_v51 }
 0x118   :  { %v413_v13 = vpop.f32.mrf.mxu0 }
 0x119   :  { %v1663_v15 = vpack.c.bf16 %v413_v13, %v411_v59  ;;  %v975_v16 = vadd.f32 %v974_v61, %v413_v13  ;;  %v1046_v17 = vmul.f32 %v413_v13, %v413_v13  ;;  %v582_v20 = vpop.f32.mrf.mxu1  ;;  %v2419_v61 = vpop.f32.mrf.mxu2 }
 0x11a   :  { %v1823_v23 = vpack.c.bf16 %v582_v20, %v580_v0  ;;  %v1179_v24 = vadd.f32 %v1178_v3, %v582_v20  ;;  %v1250_v25 = vmul.f32 %v582_v20, %v582_v20  ;;  %v2421_v5 = vpop.f32.mrf.mxu3 }
 0x11b   :  { %1951 = vst [vmem:[%s2937_s2 + $0x38] sm:$0xff] %v1663_v15   ;;  %v1109_v27 = vadd.f32 %v1108_v9, %v1046_v17 }
 0x11c   :  { %1982 = vst [vmem:[%s2938_s3 + $0x38] sm:$0xff] %v1823_v23   ;;  %v1313_v29 = vadd.f32 %v1312_v11, %v1250_v25 }
 0x120   :  { %v416_v32 = vpop.f32.mrf.mxu0 }
 0x121   :  { %v976_v33 = vadd.f32 %v975_v16, %v416_v32  ;;  %v1047_v37 = vmul.f32 %v416_v32, %v416_v32  ;;  %v585_v38 = vpop.f32.mrf.mxu1  ;;  %v2429_v15 = vpop.f32.mrf.mxu2 }
 0x122   :  { %v1180_v40 = vadd.f32 %v1179_v24, %v585_v38  ;;  %v1251_v41 = vmul.f32 %v585_v38, %v585_v38  ;;  %v1743_v20 = vpack.c.bf16 %v2429_v15, %v2419_v61  ;;  %v2433_v23 = vpop.f32.mrf.mxu3 }
 0x123   :  { %v1110_v45 = vadd.f32 %v1109_v27, %v1047_v37  ;;  %v1903_v25 = vpack.c.bf16 %v2433_v23, %v2421_v5 }
 0x124   :  { %v1314_v50 = vadd.f32 %v1313_v29, %v1251_v41  ;;  %1967 = vst [vmem:[%s2937_s2 + $0xb8] sm:$0xff] %v1743_v20  }
 0x125   :  { %1998 = vst [vmem:[%s2938_s3 + $0xb8] sm:$0xff] %v1903_v25  }
 0x128   :  { %v418_v53 = vpop.f32.mrf.mxu0 }
 0x129   :  { %v1668_v55 = vpack.c.bf16 %v418_v53, %v416_v32  ;;  %v977_v57 = vadd.f32 %v976_v33, %v418_v53  ;;  %v1048_v58 = vmul.f32 %v418_v53, %v418_v53  ;;  %v587_v59 = vpop.f32.mrf.mxu1 }
 0x12a   :  { %v1828_v63 = vpack.c.bf16 %v587_v59, %v585_v38  ;;  %v1181_v0 = vadd.f32 %v1180_v40, %v587_v59  ;;  %v1252_v3 = vmul.f32 %v587_v59, %v587_v59  ;;  %v2443_v40 = vpop.f32.mrf.mxu2  ;;  %v2445_v47 = vpop.f32.mrf.mxu3 }
 0x12b   :  { %1952 = vst [vmem:[%s2937_s2 + $0x40] sm:$0xff] %v1668_v55   ;;  %v1111_v6 = vadd.f32 %v1110_v45, %v1048_v58 }
 0x12c   :  { %1983 = vst [vmem:[%s2938_s3 + $0x40] sm:$0xff] %v1828_v63   ;;  %v1315_v9 = vadd.f32 %v1314_v50, %v1252_v3 }
 0x12d   :  { %2981 = vst [vmem:[#allocation2_spill] sm:$0xff] %v2443_v40 }
 0x12e   :  { %2982 = vst [vmem:[#allocation3_spill] sm:$0xff] %v2445_v47 }
 0x130   :  { %v421_v10 = vpop.f32.mrf.mxu0 }
 0x131   :  { %v978_v11 = vadd.f32 %v977_v57, %v421_v10  ;;  %v1049_v12 = vmul.f32 %v421_v10, %v421_v10  ;;  %v590_v13 = vpop.f32.mrf.mxu1 }
 0x132   :  { %v1182_v16 = vadd.f32 %v1181_v0, %v590_v13  ;;  %v1253_v17 = vmul.f32 %v590_v13, %v590_v13  ;;  %v2455_v59 = vpop.f32.mrf.mxu2 }
 0x133   :  { %v1112_v24 = vadd.f32 %v1111_v6, %v1049_v12  ;;  %2983 = vst [vmem:[#allocation4_spill] sm:$0xff] %v2455_v59  ;;  %v1748_v3 = vpack.c.bf16 %v2455_v59, %v2443_v40  ;;  %v2461_v6 = vpop.f32.mrf.mxu3 }
 0x134   :  { %v1316_v27 = vadd.f32 %v1315_v9, %v1253_v17  ;;  %2984 = vst [vmem:[#allocation5_spill] sm:$0xff] %v2461_v6 }
 0x135   :  { %1968 = vst [vmem:[%s2937_s2 + $0xc0] sm:$0xff] %v1748_v3  }
 0x138   :  { %v423_v29 = vpop.f32.mrf.mxu0 }
 0x139   :  { %v1673_v32 = vpack.c.bf16 %v423_v29, %v421_v10  ;;  %v979_v33 = vadd.f32 %v978_v11, %v423_v29  ;;  %v1050_v37 = vmul.f32 %v423_v29, %v423_v29  ;;  %v592_v38 = vpop.f32.mrf.mxu1  ;;  %v1908_v10 = vpack.c.bf16 %v2461_v6, %v2445_v47 }
 0x13a   :  { %v1833_v41 = vpack.c.bf16 %v592_v38, %v590_v13  ;;  %v1183_v43 = vadd.f32 %v1182_v16, %v592_v38  ;;  %v1254_v45 = vmul.f32 %v592_v38, %v592_v38  ;;  %v2480_v17 = vpop.f32.mrf.mxu2 }
 0x13b   :  { %1953 = vst [vmem:[%s2937_s2 + $0x48] sm:$0xff] %v1673_v32   ;;  %v1113_v50 = vadd.f32 %v1112_v24, %v1050_v37  ;;  %v2483_v24 = vpop.f32.mrf.mxu3 }
 0x13c   :  { %1984 = vst [vmem:[%s2938_s3 + $0x48] sm:$0xff] %v1833_v41   ;;  %v1317_v51 = vadd.f32 %v1316_v27, %v1254_v45 }
 0x13d   :  { %1999 = vst [vmem:[%s2938_s3 + $0xc0] sm:$0xff] %v1908_v10  }
 0x13e   :  { %2985 = vst [vmem:[#allocation6_spill] sm:$0xff] %v2480_v17 }
 0x13f   :  { %2986 = vst [vmem:[#allocation7_spill] sm:$0xff] %v2483_v24 }
 0x140   :  { %v426_v53 = vpop.f32.mrf.mxu0 }
 0x141   :  { %v2453_v55 = vadd.f32 %v979_v33, %v426_v53  ;;  %v1051_v57 = vmul.f32 %v426_v53, %v426_v53  ;;  %v595_v58 = vpop.f32.mrf.mxu1 }
 0x142   :  { %v2457_v63 = vadd.f32 %v1183_v43, %v595_v58  ;;  %v1255_v0 = vmul.f32 %v595_v58, %v595_v58  ;;  %v2495_v29 = vpop.f32.mrf.mxu2 }
 0x143   :  { %v2463_v9 = vadd.f32 %v1113_v50, %v1051_v57  ;;  %2987 = vst [vmem:[#allocation8_spill] sm:$0xff] %v2495_v29  ;;  %v1753_v32 = vpack.c.bf16 %v2495_v29, %v2480_v17  ;;  %v2499_v33 = vpop.f32.mrf.mxu3 }
 0x144   :  { %v2467_v11 = vadd.f32 %v1317_v51, %v1255_v0  ;;  %2988 = vst [vmem:[#allocation9_spill] sm:$0xff] %v2499_v33  ;;  %v1913_v37 = vpack.c.bf16 %v2499_v33, %v2483_v24 }
 0x145   :  { %1969 = vst [vmem:[%s2937_s2 + $0xc8] sm:$0xff] %v1753_v32  }
 0x146   :  { %2000 = vst [vmem:[%s2938_s3 + $0xc8] sm:$0xff] %v1913_v37  }
 0x148   :  { %v2475_v12 = vpop.f32.mrf.mxu0 }
 0x149   :  { %v1678_v13 = vpack.c.bf16 %v2475_v12, %v426_v53  ;;  %v2478_v16 = vpop.f32.mrf.mxu1  ;;  %v981_v59 = vadd.f32 %v2453_v55, %v2475_v12 }
 0x14a   :  { %v1838_v20 = vpack.c.bf16 %v2478_v16, %v595_v58  ;;  %v2515_v45 = vpop.f32.mrf.mxu2  ;;  %v1256_v17 = vmul.f32 %v2478_v16, %v2478_v16 }
 0x14b   :  { %1954 = vst [vmem:[%s2937_s2 + $0x50] sm:$0xff] %v1678_v13   ;;  %v2519_v51 = vpop.f32.mrf.mxu3 }
 0x14c   :  { %1985 = vst [vmem:[%s2938_s3 + $0x50] sm:$0xff] %v1838_v20   ;;  %v1319_v55 = vadd.f32 %v2467_v11, %v1256_v17 }
 0x14d   :  { %2989 = vst [vmem:[#allocation10_spill] sm:$0xff] %v2515_v45 }
 0x14e   :  { %2990 = vst [vmem:[#allocation11_spill] sm:$0xff] %v2519_v51 }
 0x150   :  { %v2491_v25 = vpop.f32.mrf.mxu0 }
 0x151   :  { %v2493_v27 = vpop.f32.mrf.mxu1  ;;  %v1053_v6 = vmul.f32 %v2491_v25, %v2491_v25 }
 0x152   :  { %v2531_v58 = vpop.f32.mrf.mxu2  ;;  %v1257_v47 = vmul.f32 %v2493_v27, %v2493_v27 }
 0x153   :  { %2991 = vst [vmem:[#allocation12_spill] sm:$0xff] %v2531_v58  ;;  %v1758_v0 = vpack.c.bf16 %v2531_v58, %v2515_v45  ;;  %v2535_v3 = vpop.f32.mrf.mxu3 }
 0x154   :  { %2992 = vst [vmem:[#allocation13_spill] sm:$0xff] %v2535_v3  ;;  %v1918_v10 = vpack.c.bf16 %v2535_v3, %v2519_v51 }
 0x155   :  { %1970 = vst [vmem:[%s2937_s2 + $0xd0] sm:$0xff] %v1758_v0  }
 0x156   :  { %2001 = vst [vmem:[%s2938_s3 + $0xd0] sm:$0xff] %v1918_v10  }
 0x158   :  { %v2509_v38 = vpop.f32.mrf.mxu0 }
 0x159   :  { %v1683_v41 = vpack.c.bf16 %v2509_v38, %v2491_v25  ;;  %v2513_v43 = vpop.f32.mrf.mxu1 }
 0x15a   :  { %v1843_v50 = vpack.c.bf16 %v2513_v43, %v2493_v27  ;;  %v2551_v37 = vpop.f32.mrf.mxu2 }
 0x15b   :  { %1955 = vst [vmem:[%s2937_s2 + $0x58] sm:$0xff] %v1683_v41  }
 0x15c   :  { %1986 = vst [vmem:[%s2938_s3 + $0x58] sm:$0xff] %v1843_v50   ;;  %v2555_v50 = vpop.f32.mrf.mxu3 }
 0x15d   :  { %2993 = vst [vmem:[#allocation14_spill] sm:$0xff] %v2551_v37 }
 0x15e   :  { %2994 = vst [vmem:[#allocation15_spill] sm:$0xff] %v2555_v50 }
 0x160   :  { %v2527_v53 = vpop.f32.mrf.mxu0 }
 0x161   :  { %v2529_v57 = vpop.f32.mrf.mxu1 }
 0x162   :  { %v2567_v3 = vpop.f32.mrf.mxu2 }
 0x163   :  { %2995 = vst [vmem:[#allocation16_spill] sm:$0xff] %v2567_v3  ;;  %v1763_v58 = vpack.c.bf16 %v2567_v3, %v2551_v37 }
 0x164   :  { %v2571_v51 = vpop.f32.mrf.mxu3 }
 0x165   :  { %2996 = vst [vmem:[#allocation17_spill] sm:$0xff] %v2571_v51  ;;  %v1923_v45 = vpack.c.bf16 %v2571_v51, %v2555_v50  ;;  %v1052_v50 = vmul.f32 %v2475_v12, %v2475_v12  ;;  %v982_v12 = vadd.f32 %v981_v59, %v2491_v25 }
 0x166   :  { %1971 = vst [vmem:[%s2937_s2 + $0xd8] sm:$0xff] %v1763_v58  }
 0x167   :  { %2002 = vst [vmem:[%s2938_s3 + $0xd8] sm:$0xff] %v1923_v45   ;;  %v1115_v40 = vadd.f32 %v2463_v9, %v1052_v50  ;;  %v1320_v50 = vadd.f32 %v1319_v55, %v1257_v47 }
 0x168   :  { %v2545_v13 = vpop.f32.mrf.mxu0 }
 0x169   :  { %v1688_v20 = vpack.c.bf16 %v2545_v13, %v2527_v53  ;;  %v2549_v32 = vpop.f32.mrf.mxu1 }
 0x16a   :  { %v1848_v41 = vpack.c.bf16 %v2549_v32, %v2529_v57  ;;  %v2584_v29 = vpop.f32.mrf.mxu2 }
 0x16b   :  { %1956 = vst [vmem:[%s2937_s2 + $0x60] sm:$0xff] %v1688_v20  }
 0x16c   :  { %1987 = vst [vmem:[%s2938_s3 + $0x60] sm:$0xff] %v1848_v41   ;;  %v2588_v37 = vpop.f32.mrf.mxu3 }
 0x16d   :  { %2997 = vst [vmem:[#allocation18_spill] sm:$0xff] %v2584_v29 }
 0x16e   :  { %2998 = vst [vmem:[#allocation19_spill] sm:$0xff] %v2588_v37 }
 0x170   :  { %v2563_v0 = vpop.f32.mrf.mxu0 }
 0x171   :  { %v2565_v10 = vpop.f32.mrf.mxu1 }
 0x172   :  { %v2600_v51 = vpop.f32.mrf.mxu2 }
 0x173   :  { %2999 = vst [vmem:[#allocation20_spill] sm:$0xff] %v2600_v51 }
 0x174   :  { %v2604_v24 = vpop.f32.mrf.mxu3 }
 0x175   :  { %3000 = vst [vmem:[#allocation21_spill] sm:$0xff] %v2604_v24 }
 0x178   :  { %v443_v20 = vpop.f32.mrf.mxu0 }
 0x179   :  { %v1693_v41 = vpack.c.bf16 %v443_v20, %v2563_v0  ;;  %v2582_v33 = vpop.f32.mrf.mxu1 }
 0x17a   :  { %v1853_v3 = vpack.c.bf16 %v2582_v33, %v2565_v10  ;;  %v2640_v59 = vpop.f32.mrf.mxu2 }
 0x17b   :  { %1957 = vst [vmem:[%s2937_s2 + $0x68] sm:$0xff] %v1693_v41   ;;  %v1768_v41 = vpack.c.bf16 %v2600_v51, %v2584_v29  ;;  %v1185_v51 = vadd.f32 %v2457_v63, %v2478_v16  ;;  %v1055_v63 = vmul.f32 %v2527_v53, %v2527_v53  ;;  %v983_v29 = vadd.f32 %v982_v12, %v2509_v38 }
 0x17c   :  { %1988 = vst [vmem:[%s2938_s3 + $0x68] sm:$0xff] %v1853_v3   ;;  %v1928_v3 = vpack.c.bf16 %v2604_v24, %v2588_v37  ;;  %v1054_v24 = vmul.f32 %v2509_v38, %v2509_v38  ;;  %v1258_v37 = vmul.f32 %v2513_v43, %v2513_v43 }
 0x17d   :  { %1972 = vst [vmem:[%s2937_s2 + $0xe0] sm:$0xff] %v1768_v41   ;;  %v1116_v41 = vadd.f32 %v1115_v40, %v1053_v6  ;;  %v1186_v9 = vadd.f32 %v1185_v51, %v2493_v27  ;;  %v1056_v6 = vmul.f32 %v2545_v13, %v2545_v13  ;;  %v2646_v51 = vpop.f32.mrf.mxu3  ;;  %v984_v38 = vadd.f32 %v983_v29, %v2527_v53 }
 0x17e   :  { %2003 = vst [vmem:[%s2938_s3 + $0xe0] sm:$0xff] %v1928_v3   ;;  %v1259_v3 = vmul.f32 %v2529_v57, %v2529_v57  ;;  %v1321_v47 = vadd.f32 %v1320_v50, %v1258_v37 }
 0x17f   :  { %v1117_v25 = vadd.f32 %v1116_v41, %v1054_v24  ;;  %v1187_v40 = vadd.f32 %v1186_v9, %v2513_v43  ;;  %v1260_v24 = vmul.f32 %v2549_v32, %v2549_v32  ;;  %v1057_v43 = vmul.f32 %v2563_v0, %v2563_v0 }
 0x180   :  { %v2596_v45 = vpop.f32.mrf.mxu0  ;;  %v1322_v37 = vadd.f32 %v1321_v47, %v1259_v3  ;;  %v985_v29 = vadd.f32 %v984_v38, %v2545_v13  ;;  %v1261_v9 = vmul.f32 %v2565_v10, %v2565_v10 }
 0x181   :  { %v2598_v58 = vpop.f32.mrf.mxu1  ;;  %v1118_v55 = vadd.f32 %v1117_v25, %v1055_v63  ;;  %v1188_v12 = vadd.f32 %v1187_v40, %v2529_v57  ;;  %v1058_v57 = vmul.f32 %v443_v20, %v443_v20  ;;  %v1262_v40 = vmul.f32 %v2582_v33, %v2582_v33 }
 0x182   :  { %v986_v63 = vadd.f32 %v985_v29, %v2563_v0  ;;  %v1323_v50 = vadd.f32 %v1322_v37, %v1260_v24  ;;  %v1059_v13 = vmul.f32 %v2596_v45, %v2596_v45  ;;  %v1263_v0 = vmul.f32 %v2598_v58, %v2598_v58 }
 0x183   :  { %v1119_v53 = vadd.f32 %v1118_v55, %v1056_v6  ;;  %v1189_v41 = vadd.f32 %v1188_v12, %v2549_v32  ;;  %v2670_v32 = vpop.f32.mrf.mxu2 }
 0x184   :  { %v987_v3 = vadd.f32 %v986_v63, %v443_v20  ;;  %v1324_v47 = vadd.f32 %v1323_v50, %v1261_v9  ;;  %v1773_v20 = vpack.c.bf16 %v2670_v32, %v2640_v59 }
 0x185   :  { %v1190_v25 = vadd.f32 %v1189_v41, %v2565_v10  ;;  %v2675_v12 = vpop.f32.mrf.mxu3 }
 0x186   :  { %v988_v10 = vadd.f32 %v987_v3, %v2596_v45  ;;  %v1325_v37 = vadd.f32 %v1324_v47, %v1262_v40  ;;  %1973 = vst [vmem:[%s2937_s2 + $0xe8] sm:$0xff] %v1773_v20  }
 0x187   :  { %v1191_v55 = vadd.f32 %v1190_v25, %v2582_v33 }
 0x188   :  { %v448_v16 = vpop.f32.mrf.mxu0 }
 0x189   :  { %v1698_v11 = vpack.c.bf16 %v448_v16, %v2596_v45  ;;  %v617_v17 = vpop.f32.mrf.mxu1  ;;  %v1060_v24 = vmul.f32 %v448_v16, %v448_v16  ;;  %v1192_v29 = vadd.f32 %v1191_v55, %v2598_v58  ;;  %v989_v33 = vadd.f32 %v988_v10, %v448_v16 }
 0x18a   :  { %v1858_v27 = vpack.c.bf16 %v617_v17, %v2598_v58 }
 0x18b   :  { %1958 = vst [vmem:[%s2937_s2 + $0x70] sm:$0xff] %v1698_v11   ;;  %v1120_v11 = vadd.f32 %v1119_v53, %v1057_v43  ;;  %v1933_v43 = vpack.c.bf16 %v2675_v12, %v2646_v51  ;;  %v1264_v53 = vmul.f32 %v617_v17, %v617_v17  ;;  %v1193_v45 = vadd.f32 %v1192_v29, %v617_v17  ;;  %v2689_v55 = vpop.f32.mrf.mxu2 }
 0x18c   :  { %1989 = vst [vmem:[%s2938_s3 + $0x70] sm:$0xff] %v1858_v27   ;;  %v1267_v29 = vmul.f32 %v2214_v34, %v2214_v34 }
 0x18d   :  { %v1121_v38 = vadd.f32 %v1120_v11, %v1058_v57  ;;  %v1326_v57 = vadd.f32 %v1325_v37, %v1263_v0  ;;  %2004 = vst [vmem:[%s2938_s3 + $0xe8] sm:$0xff] %v1933_v43   ;;  %v2691_v37 = vpop.f32.mrf.mxu3 }
 0x18f   :  { %v1122_v41 = vadd.f32 %v1121_v38, %v1059_v13  ;;  %v1327_v25 = vadd.f32 %v1326_v57, %v1264_v53 }
 0x190   :  { %v451_v27 = vpop.f32.mrf.mxu0 }
 0x191   :  { %v620_v6 = vpop.f32.mrf.mxu1  ;;  %v1061_v9 = vmul.f32 %v451_v27, %v451_v27  ;;  %v1123_v50 = vadd.f32 %v1122_v41, %v1060_v24  ;;  %v990_v11 = vadd.f32 %v989_v33, %v451_v27  ;;  %v1063_v24 = vmul.f32 %v2212_v30, %v2212_v30 }
 0x192   :  { %v1265_v63 = vmul.f32 %v620_v6, %v620_v6  ;;  %v1194_v40 = vadd.f32 %v1193_v45, %v620_v6  ;;  %v1064_v41 = vmul.f32 %v2225_v42, %v2225_v42 }
 0x193   :  { %v1124_v3 = vadd.f32 %v1123_v50, %v1061_v9 }
 0x194   :  { %v1328_v10 = vadd.f32 %v1327_v25, %v1265_v63  ;;  %v1065_v63 = vmul.f32 %v2242_v56, %v2242_v56 }
 0x198   :  { %v453_v58 = vpop.f32.mrf.mxu0 }
 0x199   :  { %v1703_v13 = vpack.c.bf16 %v453_v58, %v451_v27  ;;  %v991_v16 = vadd.f32 %v990_v11, %v453_v58  ;;  %v1062_v47 = vmul.f32 %v453_v58, %v453_v58  ;;  %v622_v38 = vpop.f32.mrf.mxu1 }
 0x19a   :  { %v1863_v0 = vpack.c.bf16 %v622_v38, %v620_v6  ;;  %v1195_v17 = vadd.f32 %v1194_v40, %v622_v38  ;;  %v1266_v20 = vmul.f32 %v622_v38, %v622_v38 }
 0x19b   :  { %1959 = vst [vmem:[%s2937_s2 + $0x78] sm:$0xff] %v1703_v13   ;;  %v992_v27 = vadd.f32 %v991_v16, %v2212_v30  ;;  %v1125_v43 = vadd.f32 %v1124_v3, %v1062_v47  ;;  %v1268_v30 = vmul.f32 %v2229_v46, %v2229_v46  ;;  %v1270_v13 = vmul.f32 %v2259_v8, %v2259_v8  ;;  %v2725_v47 = vpop.f32.mrf.mxu3 }
 0x19c   :  { %1990 = vst [vmem:[%s2938_s3 + $0x78] sm:$0xff] %v1863_v0   ;;  %v1196_v6 = vadd.f32 %v1195_v17, %v2214_v34  ;;  %v1329_v53 = vadd.f32 %v1328_v10, %v1266_v20  ;;  %v1269_v34 = vmul.f32 %v2244_v60, %v2244_v60  ;;  %v1271_v0 = vmul.f32 %v2274_v22, %v2274_v22 }
 0x19d   :  { %v993_v33 = vadd.f32 %v992_v27, %v2225_v42  ;;  %v1126_v9 = vadd.f32 %v1125_v43, %v1063_v24  ;;  %v1066_v42 = vmul.f32 %v2255_v4, %v2255_v4  ;;  %v1068_v24 = vmul.f32 %v2285_v31, %v2285_v31 }
 0x19e   :  { %v1197_v57 = vadd.f32 %v1196_v6, %v2229_v46  ;;  %v1330_v45 = vadd.f32 %v1329_v53, %v1267_v29  ;;  %v2720_v46 = vpop.f32.mrf.mxu2  ;;  %v1069_v6 = vmul.f32 %v2302_v48, %v2302_v48 }
 0x19f   :  { %v994_v50 = vadd.f32 %v993_v33, %v2242_v56  ;;  %v1127_v11 = vadd.f32 %v1126_v9, %v1064_v41  ;;  %v1273_v41 = vmul.f32 %v2304_v52, %v2304_v52 }
 0x1a0   :  { %v1198_v25 = vadd.f32 %v1197_v57, %v2244_v60  ;;  %v1331_v40 = vadd.f32 %v1330_v45, %v1268_v30  ;;  %v1067_v60 = vmul.f32 %v2272_v18, %v2272_v18 }
 0x1a1   :  { %v995_v58 = vadd.f32 %v994_v50, %v2255_v4  ;;  %v1128_v3 = vadd.f32 %v1127_v11, %v1065_v63  ;;  %v1778_v4 = vpack.c.bf16 %v2720_v46, %v2689_v55  ;;  %v1274_v63 = vmul.f32 %v2319_v2, %v2319_v2 }
 0x1a2   :  { %v1199_v56 = vadd.f32 %v1198_v25, %v2259_v8  ;;  %v1332_v16 = vadd.f32 %v1331_v40, %v1269_v34  ;;  %v1938_v8 = vpack.c.bf16 %v2725_v47, %v2691_v37 }
 0x1a3   :  { %v996_v38 = vadd.f32 %v995_v58, %v2272_v18  ;;  %v1129_v10 = vadd.f32 %v1128_v3, %v1066_v42  ;;  %1974 = vst [vmem:[%s2937_s2 + $0xf0] sm:$0xff] %v1778_v4   ;;  %v1272_v18 = vmul.f32 %v2289_v36, %v2289_v36  ;;  %v2763_v11 = vpop.f32.mrf.mxu3  ;;  %v1072_v58 = vmul.f32 %v2345_v28, %v2345_v28 }
 0x1a4   :  { %v1200_v17 = vadd.f32 %v1199_v56, %v2274_v22  ;;  %v1333_v20 = vadd.f32 %v1332_v16, %v1270_v13  ;;  %2005 = vst [vmem:[%s2938_s3 + $0xf0] sm:$0xff] %v1938_v8   ;;  %v1276_v13 = vmul.f32 %v2349_v35, %v2349_v35 }
 0x1a5   :  { %v997_v27 = vadd.f32 %v996_v38, %v2285_v31  ;;  %v1130_v43 = vadd.f32 %v1129_v10, %v1067_v60 }
 0x1a6   :  { %v1201_v29 = vadd.f32 %v1200_v17, %v2289_v36  ;;  %v1334_v22 = vadd.f32 %v1333_v20, %v1271_v0  ;;  %v1070_v36 = vmul.f32 %v2315_v62, %v2315_v62  ;;  %v2758_v45 = vpop.f32.mrf.mxu2  ;;  %v1278_v20 = vmul.f32 %v2379_v7, %v2379_v7 }
 0x1a7   :  { %v998_v31 = vadd.f32 %v997_v27, %v2302_v48  ;;  %v1131_v53 = vadd.f32 %v1130_v43, %v1068_v24 }
 0x1a8   :  { %v1202_v33 = vadd.f32 %v1201_v29, %v2304_v52  ;;  %v1335_v9 = vadd.f32 %v1334_v22, %v1272_v18  ;;  %v1071_v52 = vmul.f32 %v2332_v14, %v2332_v14  ;;  %v1279_v18 = vmul.f32 %v2394_v26, %v2394_v26 }
 0x1a9   :  { %v999_v30 = vadd.f32 %v998_v31, %v2315_v62  ;;  %v1132_v57 = vadd.f32 %v1131_v53, %v1069_v6  ;;  %v1275_v62 = vmul.f32 %v2334_v19, %v2334_v19  ;;  %v1076_v6 = vmul.f32 %v2402_v39, %v2402_v39 }
 0x1aa   :  { %v1203_v48 = vadd.f32 %v1202_v33, %v2319_v2  ;;  %v1336_v50 = vadd.f32 %v1335_v9, %v1273_v41 }
 0x1ab   :  { %v1000_v34 = vadd.f32 %v999_v30, %v2332_v14  ;;  %v1133_v25 = vadd.f32 %v1132_v57, %v1070_v36  ;;  %v1073_v14 = vmul.f32 %v2362_v49, %v2362_v49  ;;  %v2791_v24 = vpop.f32.mrf.mxu3  ;;  %v1281_v36 = vmul.f32 %v2421_v5, %v2421_v5 }
 0x1ac   :  { %v1204_v40 = vadd.f32 %v1203_v48, %v2334_v19  ;;  %v1337_v42 = vadd.f32 %v1336_v50, %v1274_v63  ;;  %v1277_v19 = vmul.f32 %v2364_v54, %v2364_v54  ;;  %v1282_v50 = vmul.f32 %v2433_v23, %v2433_v23 }
 0x1ad   :  { %v1001_v2 = vadd.f32 %v1000_v34, %v2345_v28  ;;  %v1134_v3 = vadd.f32 %v1133_v25, %v1071_v52  ;;  %v1074_v28 = vmul.f32 %v2375_v1, %v2375_v1 }
 0x1ae   :  { %v1205_v56 = vadd.f32 %v1204_v40, %v2349_v35  ;;  %v1338_v16 = vadd.f32 %v1337_v42, %v1275_v62  ;;  %v2786_v35 = vpop.f32.mrf.mxu2 }
 0x1af   :  { %v1002_v60 = vadd.f32 %v1001_v2, %v2362_v49  ;;  %v1135_v38 = vadd.f32 %v1134_v3, %v1072_v58 }
 0x1b0   :  { %v1206_v10 = vadd.f32 %v1205_v56, %v2364_v54  ;;  %v1339_v4 = vadd.f32 %v1338_v16, %v1276_v13  ;;  %v1075_v54 = vmul.f32 %v2392_v21, %v2392_v21 }
 0x1b1   :  { %v1003_v0 = vadd.f32 %v1002_v60, %v2375_v1  ;;  %v1136_v17 = vadd.f32 %v1135_v38, %v1073_v14  ;;  %v1783_v1 = vpack.c.bf16 %v2786_v35, %v2758_v45  ;;  %v3005_v38 = vld [vmem:[#allocation6_spill] sm:$0xff] }
 0x1b2   :  { %v1207_v49 = vadd.f32 %v1206_v10, %v2379_v7  ;;  %v1340_v8 = vadd.f32 %v1339_v4, %v1277_v19  ;;  %v1943_v7 = vpack.c.bf16 %v2791_v24, %v2763_v11  ;;  %v1081_v19 = vmul.f32 %v3005_v38, %v3005_v38 }
 0x1b3   :  { %v1137_v27 = vadd.f32 %v1136_v17, %v1074_v28  ;;  %v1004_v43 = vadd.f32 %v1003_v0, %v2392_v21  ;;  %1975 = vst [vmem:[%s2937_s2 + $0xf8] sm:$0xff] %v1783_v1   ;;  %v1280_v21 = vmul.f32 %v2406_v44, %v2406_v44  ;;  %v3006_v28 = vld [vmem:[#allocation7_spill] sm:$0xff] }
 0x1b4   :  { %v1341_v29 = vadd.f32 %v1340_v8, %v1278_v20  ;;  %v1208_v22 = vadd.f32 %v1207_v49, %v2394_v26  ;;  %2006 = vst [vmem:[%s2938_s3 + $0xf8] sm:$0xff] %v1943_v7   ;;  %v1077_v26 = vmul.f32 %v2419_v61, %v2419_v61  ;;  %v1285_v0 = vmul.f32 %v3006_v28, %v3006_v28  ;;  %v3007_v49 = vld [vmem:[#allocation8_spill] sm:$0xff] }
 0x1b5   :  { %v1005_v31 = vadd.f32 %v1004_v43, %v2402_v39  ;;  %v1138_v53 = vadd.f32 %v1137_v27, %v1075_v54  ;;  %v1082_v8 = vmul.f32 %v3007_v49, %v3007_v49  ;;  %v3008_v43 = vld [vmem:[#allocation9_spill] sm:$0xff] }
 0x1b6   :  { %v1209_v41 = vadd.f32 %v1208_v22, %v2406_v44  ;;  %v1342_v33 = vadd.f32 %v1341_v29, %v1279_v18  ;;  %v1078_v44 = vmul.f32 %v2429_v15, %v2429_v15  ;;  %v1286_v1 = vmul.f32 %v3008_v43, %v3008_v43  ;;  %v3009_v22 = vld [vmem:[#allocation10_spill] sm:$0xff] }
 0x1b7   :  { %v1006_v39 = vadd.f32 %v1005_v31, %v2419_v61  ;;  %v1139_v9 = vadd.f32 %v1138_v53, %v1076_v6  ;;  %v3001_v61 = vld [vmem:[#allocation2_spill] sm:$0xff]  ;;  %v1083_v7 = vmul.f32 %v3009_v22, %v3009_v22  ;;  %v3010_v53 = vld [vmem:[#allocation11_spill] sm:$0xff] }
 0x1b8   :  { %v1210_v30 = vadd.f32 %v1209_v41, %v2421_v5  ;;  %v1343_v57 = vadd.f32 %v1342_v33, %v1280_v21  ;;  %v1079_v25 = vmul.f32 %v3001_v61, %v3001_v61  ;;  %v3002_v5 = vld [vmem:[#allocation3_spill] sm:$0xff]  ;;  %v1287_v21 = vmul.f32 %v3010_v53, %v3010_v53 }
 0x1b9   :  { %v1007_v63 = vadd.f32 %v1006_v39, %v2429_v15  ;;  %v1140_v48 = vadd.f32 %v1139_v9, %v1077_v26  ;;  %v1283_v42 = vmul.f32 %v3002_v5, %v3002_v5  ;;  %v3003_v15 = vld [vmem:[#allocation4_spill] sm:$0xff] }
 0x1ba   :  { %v1211_v52 = vadd.f32 %v1210_v30, %v2433_v23  ;;  %v1344_v34 = vadd.f32 %v1343_v57, %v1281_v36  ;;  %v1080_v3 = vmul.f32 %v3003_v15, %v3003_v15  ;;  %v3004_v23 = vld [vmem:[#allocation5_spill] sm:$0xff]  ;;  %v3011_v26 = vld [vmem:[#allocation12_spill] sm:$0xff] }
 0x1bb   :  { %v1008_v62 = vadd.f32 %v1007_v63, %v3001_v61  ;;  %v1141_v40 = vadd.f32 %v1140_v48, %v1078_v44  ;;  %v1284_v16 = vmul.f32 %v3004_v23, %v3004_v23  ;;  %v1084_v39 = vmul.f32 %v3011_v26, %v3011_v26  ;;  %v3012_v30 = vld [vmem:[#allocation13_spill] sm:$0xff]  ;;  %v3013_v48 = vld [vmem:[#allocation14_spill] sm:$0xff]  ;;  %v3014_v61 = vld [vmem:[#allocation15_spill] sm:$0xff] }
 0x1bc   :  { %v1212_v58 = vadd.f32 %v1211_v52, %v3002_v5  ;;  %v1345_v2 = vadd.f32 %v1344_v34, %v1282_v50  ;;  %v1288_v57 = vmul.f32 %v3012_v30, %v3012_v30  ;;  %v1085_v50 = vmul.f32 %v3013_v48, %v3013_v48  ;;  %v3015_v5 = vld [vmem:[#allocation16_spill] sm:$0xff] }
 0x1bd   :  { %v1009_v13 = vadd.f32 %v1008_v62, %v3003_v15  ;;  %v1142_v56 = vadd.f32 %v1141_v40, %v1079_v25  ;;  %v1289_v25 = vmul.f32 %v3014_v61, %v3014_v61  ;;  %v3016_v15 = vld [vmem:[#allocation17_spill] sm:$0xff] }
 0x1be   :  { %v1213_v14 = vadd.f32 %v1212_v58, %v3004_v23  ;;  %v1346_v60 = vadd.f32 %v1345_v2, %v1283_v42  ;;  %v1086_v42 = vmul.f32 %v3015_v5, %v3015_v5  ;;  %v3017_v23 = vld [vmem:[#allocation18_spill] sm:$0xff] }
 0x1bf   :  { %v1010_v10 = vadd.f32 %v1009_v13, %v3005_v38  ;;  %v1143_v4 = vadd.f32 %v1142_v56, %v1080_v3  ;;  %v1290_v3 = vmul.f32 %v3016_v15, %v3016_v15  ;;  %v3018_v38 = vld [vmem:[#allocation19_spill] sm:$0xff] }
 0x1c0   :  { %v1214_v17 = vadd.f32 %v1213_v14, %v3006_v28  ;;  %v1347_v20 = vadd.f32 %v1346_v60, %v1284_v16  ;;  %v1087_v14 = vmul.f32 %v3017_v23, %v3017_v23 }
 0x1c1   :  { %v1011_v54 = vadd.f32 %v1010_v10, %v3007_v49  ;;  %v1144_v27 = vadd.f32 %v1143_v4, %v1081_v19  ;;  %v1291_v10 = vmul.f32 %v3018_v38, %v3018_v38 }
 0x1c2   :  { %v1215_v18 = vadd.f32 %v1214_v17, %v3008_v43  ;;  %v1348_v29 = vadd.f32 %v1347_v20, %v1285_v0  ;;  %v3019_v0 = vld [vmem:[#allocation20_spill] sm:$0xff] }
 0x1c3   :  { %v1012_v6 = vadd.f32 %v1011_v54, %v3009_v22  ;;  %v1145_v31 = vadd.f32 %v1144_v27, %v1082_v8  ;;  %v1088_v20 = vmul.f32 %v3019_v0, %v3019_v0  ;;  %v3020_v8 = vld [vmem:[#allocation21_spill] sm:$0xff] }
 0x1c4   :  { %v1216_v41 = vadd.f32 %v1215_v18, %v3010_v53  ;;  %v1349_v33 = vadd.f32 %v1348_v29, %v1286_v1  ;;  %v1292_v27 = vmul.f32 %v3020_v8, %v3020_v8  ;;  %v1089_v18 = vmul.f32 %v2640_v59, %v2640_v59 }
 0x1c5   :  { %v1013_v9 = vadd.f32 %v1012_v6, %v3011_v26  ;;  %v1146_v36 = vadd.f32 %v1145_v31, %v1083_v7  ;;  %v1293_v7 = vmul.f32 %v2646_v51, %v2646_v51  ;;  %v1090_v53 = vmul.f32 %v2670_v32, %v2670_v32 }
 0x1c6   :  { %v1217_v44 = vadd.f32 %v1216_v41, %v3012_v30  ;;  %v1350_v63 = vadd.f32 %v1349_v33, %v1287_v21  ;;  %v1294_v33 = vmul.f32 %v2675_v12, %v2675_v12 }
 0x1c7   :  { %v1014_v52 = vadd.f32 %v1013_v9, %v3013_v48  ;;  %v1147_v34 = vadd.f32 %v1146_v36, %v1084_v39  ;;  %v1091_v39 = vmul.f32 %v2689_v55, %v2689_v55  ;;  %v1295_v36 = vmul.f32 %v2691_v37, %v2691_v37 }
 0x1c8   :  { %v1218_v62 = vadd.f32 %v1217_v44, %v3014_v61  ;;  %v1351_v40 = vadd.f32 %v1350_v63, %v1288_v57  ;;  %v1092_v57 = vmul.f32 %v2720_v46, %v2720_v46  ;;  %v1296_v63 = vmul.f32 %v2725_v47, %v2725_v47 }
 0x1c9   :  { %v1015_v58 = vadd.f32 %v1014_v52, %v3015_v5  ;;  %v1148_v2 = vadd.f32 %v1147_v34, %v1085_v50  ;;  %v1093_v50 = vmul.f32 %v2758_v45, %v2758_v45  ;;  %v1297_v34 = vmul.f32 %v2763_v11, %v2763_v11 }
 0x1ca   :  { %v1219_v13 = vadd.f32 %v1218_v62, %v3016_v15  ;;  %v1352_v56 = vadd.f32 %v1351_v40, %v1289_v25  ;;  %v1094_v25 = vmul.f32 %v2786_v35, %v2786_v35  ;;  %v1298_v40 = vmul.f32 %v2791_v24, %v2791_v24 }
 0x1cb   :  { %v1016_v16 = vadd.f32 %v1015_v58, %v3017_v23  ;;  %v1149_v60 = vadd.f32 %v1148_v2, %v1086_v42 }
 0x1cc   :  { %v1220_v19 = vadd.f32 %v1219_v13, %v3018_v38  ;;  %v1353_v4 = vadd.f32 %v1352_v56, %v1290_v3 }
 0x1cd   :  { %v1150_v28 = vadd.f32 %v1149_v60, %v1087_v14  ;;  %v1017_v17 = vadd.f32 %v1016_v16, %v3019_v0 }
 0x1ce   :  { %v1354_v49 = vadd.f32 %v1353_v4, %v1291_v10  ;;  %v1221_v54 = vadd.f32 %v1220_v19, %v3020_v8 }
 0x1cf   :  { %v1151_v43 = vadd.f32 %v1150_v28, %v1088_v20  ;;  %v1018_v1 = vadd.f32 %v1017_v17, %v2640_v59 }
 0x1d0   :  { %v1355_v29 = vadd.f32 %v1354_v49, %v1292_v27  ;;  %v1222_v22 = vadd.f32 %v1221_v54, %v2646_v51 }
 0x1d1   :  { %v1152_v6 = vadd.f32 %v1151_v43, %v1089_v18  ;;  %v1019_v31 = vadd.f32 %v1018_v1, %v2670_v32 }
 0x1d2   :  { %v1356_v21 = vadd.f32 %v1355_v29, %v1293_v7  ;;  %v1223_v41 = vadd.f32 %v1222_v22, %v2675_v12 }
 0x1d3   :  { %v1153_v26 = vadd.f32 %v1152_v6, %v1090_v53  ;;  %v1020_v59 = vadd.f32 %v1019_v31, %v2689_v55 }
 0x1d4   :  { %v1357_v9 = vadd.f32 %v1356_v21, %v1294_v33  ;;  %v1224_v51 = vadd.f32 %v1223_v41, %v2691_v37 }
 0x1d5   :  { %v1154_v30 = vadd.f32 %v1153_v26, %v1091_v39  ;;  %v1021_v32 = vadd.f32 %v1020_v59, %v2720_v46 }
 0x1d6   :  { %v1358_v44 = vadd.f32 %v1357_v9, %v1295_v36  ;;  %v1225_v12 = vadd.f32 %v1224_v51, %v2725_v47 }
 0x1d7   :  { %v1155_v48 = vadd.f32 %v1154_v30, %v1092_v57  ;;  %v1022_v55 = vadd.f32 %v1021_v32, %v2758_v45 }
 0x1d8   :  { %v1359_v52 = vadd.f32 %v1358_v44, %v1296_v63  ;;  %v1226_v37 = vadd.f32 %v1225_v12, %v2763_v11 }
 0x1d9   :  { %v1156_v61 = vadd.f32 %v1155_v48, %v1093_v50  ;;  %v1023_v46 = vadd.f32 %v1022_v55, %v2786_v35 }
 0x1da   :  { %v1360_v62 = vadd.f32 %v1359_v52, %v1297_v34  ;;  %v1227_v47 = vadd.f32 %v1226_v37, %v2791_v24 }
 0x1db   :  { %v1024_v5 = vrot.slane %v1023_v46, 4  ;;  %v1157_v45 = vadd.f32 %v1156_v61, %v1094_v25 }
 0x1dc   :  { %v1228_v42 = vrot.slane %v1227_v47, 4  ;;  %v1361_v58 = vadd.f32 %v1360_v62, %v1298_v40 }
 0x1dd   :  { %v1025_v2 = vadd.f32 %v1024_v5, %v1023_v46  ;;  %v1158_v15 = vrot.slane %v1157_v45, 4 }
 0x1de   :  { %v1229_v3 = vadd.f32 %v1228_v42, %v1227_v47  ;;  %v1362_v11 = vrot.slane %v1361_v58, 4 }
 0x1df   :  { %v1026_v13 = vrot.slane %v1025_v2, 2  ;;  %v1159_v56 = vadd.f32 %v1158_v15, %v1157_v45 }
 0x1e0   :  { %v1230_v23 = vrot.slane %v1229_v3, 2  ;;  %v1363_v16 = vadd.f32 %v1362_v11, %v1361_v58 }
 0x1e1   :  { %v1027_v14 = vadd.f32 %v1026_v13, %v1025_v2  ;;  %v1160_v35 = vrot.slane %v1159_v56, 2 }
 0x1e2   :  { %v1231_v60 = vadd.f32 %v1230_v23, %v1229_v3  ;;  %v1364_v38 = vrot.slane %v1363_v16, 2 }
 0x1e3   :  { %v1028_v19 = vrot.slane %v1027_v14, 1  ;;  %v1161_v10 = vadd.f32 %v1160_v35, %v1159_v56 }
 0x1e4   :  { %v1232_v4 = vrot.slane %v1231_v60, 1  ;;  %v1365_v24 = vadd.f32 %v1364_v38, %v1363_v16 }
 0x1e5   :  { %v1029_v28 = vadd.f32 %v1028_v19, %v1027_v14  ;;  %v1162_v0 = vrot.slane %v1161_v10, 1 }
 0x1e6   :  { %v1233_v17 = vadd.f32 %v1232_v4, %v1231_v60  ;;  %v1366_v20 = vrot.slane %v1365_v24, 1 }
 0x1e7   :  { %1030 = vst [vmem:[%s2939_s4] sm:$0x1] %v1029_v28  ;;  %v1163_v49 = vadd.f32 %v1162_v0, %v1161_v10 }
 0x1e8   :  { %1234 = vst [vmem:[%s2940_s5] sm:$0x1] %v1233_v17  ;;  %v1367_v8 = vadd.f32 %v1366_v20, %v1365_v24 }
 0x1e9   :  { %1164 = vst [vmem:[%s2939_s4 + $0x1] sm:$0x1] %v1163_v49 }
 0x1ea   :  { %1368 = vst [vmem:[%s2940_s5 + $0x1] sm:$0x1] %v1367_v8 }

// kernel: bottleneck_forward.5
= control target key start
LH: loop header
LB: loop body
LE: loop exit
PB: predicated region body
PF: predicated region fallthrough
CT: control target
= control target key end

     0   :  { %s5231_s21 = smov 0   ;;  %s6551_s0 = inlined_call_operand.vmem [shape: bf16[2,16,16,128], index: 0, kind: input, shape index: {}]   ;;  %s6552_s1 = inlined_call_operand.vmem [shape: f32[2,128], index: 1, kind: input, shape index: {}]   ;;  %s6553_s2 = inlined_call_operand.vmem [shape: f32[1,128], index: 2, kind: input, shape index: {}]   ;;  %s6554_s3 = inlined_call_operand.vmem [shape: f32[1,128], index: 3, kind: input, shape index: {}]   ;;  %s6555_s4 = inlined_call_operand.vmem [shape: bf16[3,384,128], index: 4, kind: input, shape index: {}]   ;;  %s6556_s5 = inlined_call_operand.vmem [shape: bf16[512,128], index: 5, kind: output, shape index: {0}]   ;;  %s6557_s6 = inlined_call_operand.vmem [shape: f32[2,2,128], index: 6, kind: output, shape index: {1}]  }
   0x1 LB: > { %s5237_s22 = sadd.s32 4294967295, %s5193_s21   ;;  %p4248_p0 = scmp.ge.s32.totalorder %s5193_s21, 1  ;;  %s5193_s21 = sphi %s5231_s21, %s17_s21  }
   0x2   : > { %p215_p1 = scmp.lt.s32.totalorder %s5193_s21, 3 }
   0x4   : > { %p216_p2 = pnand %p4248_p0, %p215_p1 }
   0x6   : > { %219 = sbr.rel (%p216_p2) target bundleno = 828 (0x33c), region = 40 }
   0xb   : > { %v4672_v0 = vld [vmem:[%s6555_s4 + $0xf8] sm:$0xff]  ;;  %v4671_v1 = vld [vmem:[%s6555_s4 + $0xf0] sm:$0xff]  ;;  %v265_v2 = vld [vmem:[%s6552_s1] sm:$0x3]  ;;  %v5195_v13 = vmov 0   ;;  %p249_p3 = scmp.lt.s32.totalorder %s5237_s22, 1 }
   0xc   : > { %2286 = vmatpush.bf16.msra.mxu0 %v4672_v0  ;;  %5077 = vmatpush.bf16.msra.mxu1 %v4672_v0  ;;  %v5250_v3 = vmul.f32 0.001953125, %v265_v2  ;;  %v4670_v5 = vld [vmem:[%s6555_s4 + $0xe8] sm:$0xff]  ;;  %v4669_v8 = vld [vmem:[%s6555_s4 + $0xe0] sm:$0xff]  ;;  %v4668_v11 = vld [vmem:[%s6555_s4 + $0xd8] sm:$0xff]  ;;  %463 = vst [vmem:[#allocation2 + $0xc] sm:$0xf] %v5195_v13 }
   0xd   : > { %5078 = vmatpush.bf16.msra.mxu2 %v4672_v0  ;;  %5079 = vmatpush.bf16.msra.mxu3 %v4672_v0  ;;  %v4667_v12 = vld [vmem:[%s6555_s4 + $0xd0] sm:$0xff]  ;;  %464 = vst [vmem:[#allocation2 + $0x10] sm:$0xf] %v5195_v13  ;;  %v4666_v15 = vld [vmem:[%s6555_s4 + $0xc8] sm:$0xff]  ;;  %v4665_v18 = vld [vmem:[%s6555_s4 + $0xc0] sm:$0xff]  ;;  %s5285_s17 = scalar_select %p249_p3, %s5237_s22, 1 }
   0xe   : > { %v269_v4 = vmul.f32 %v5250_v3, %v5250_v3  ;;  %460 = vst [vmem:[#allocation2] sm:$0xf] %v5195_v13  ;;  %v266_v23 = vld [vmem:[%s6553_s2] sm:$0x1]  ;;  %vm546_vm3 = vsmask.f32 256 }
   0xf   : > { %461 = vst [vmem:[#allocation2 + $0x4] sm:$0xf] %v5195_v13  ;;  %s4640_s18 = sshll.u32 %s5285_s17, 7  ;;  %v267_v33 = vld [vmem:[%s6554_s3] sm:$0x1]  ;;  %vm870_vm5 = vcmask 1043456  }
  0x10   : > { %2287 = vmatpush.bf16.msra.mxu0 %v4671_v1  ;;  %5080 = vmatpush.bf16.msra.mxu1 %v4671_v1  ;;  %v271_v6 = vrot.slane %v269_v4, 7  ;;  %462 = vst [vmem:[#allocation2 + $0x8] sm:$0x1] %v5195_v13  ;;  %s5297_s23 = scalar_lea.vmem %s6551_s0, %s4640_s18  ;;  %vm547_vm4 = vsmask.f32 4368  ;;  %vm877_vm9 = vcmask 1040384  }
  0x11   : > { %5081 = vmatpush.bf16.msra.mxu2 %v4671_v1  ;;  %5082 = vmatpush.bf16.msra.mxu3 %v4671_v1  ;;  %465 = vst [vmem:[#allocation2 + $0x14] sm:$0x1] %v5195_v13  ;;  %v4714_v24 = vld [vmem:[%s5297_s23] sm:$0xff]   ;;  %vm871_vm6 = vsmask.f32 7938  ;;  %vm5356_vm7 = vmor %vm546_vm3, %vm547_vm4  ;;  %vm1452_vm12 = vcmask 1046528  }
  0x12   : > { %v273_v7 = vsub.f32 %v5250_v3, %v271_v6  ;;  %466 = vst [vmem:[#allocation2 + $0x18] sm:$0xf] %v5195_v13  ;;  %v4956_v25 = vld [vmem:[%s5297_s23 + $0x20] sm:$0xff]   ;;  %v4715_v30 = vunpack.c.l.bf16 %v4714_v24  ;;  %v4716_v31 = vunpack.c.h.bf16 %v4714_v24  ;;  %vm5367_vm8 = vmand %vm870_vm5, %vm871_vm6  ;;  %vm1195_vm11 = vsmask.f32 7424  ;;  %s4253_s11 = sshll.u32 %s5285_s17, 1 }
  0x13   : > { %467 = vst [vmem:[#allocation2 + $0x1c] sm:$0xf] %v5195_v13  ;;  %v4960_v26 = vld [vmem:[%s5297_s23 + $0x40] sm:$0xff]   ;;  %v4731_v32 = vunpack.c.l.bf16 %v4956_v25  ;;  %v4732_v34 = vunpack.c.h.bf16 %v4956_v25  ;;  %vm5714_vm10 = vmand %vm877_vm9, %vm546_vm3  ;;  %s263_s14 = scalar_lea.vmem %s6557_s6, %s4253_s11 }
  0x14   : > { %2288 = vmatpush.bf16.msra.mxu0 %v4670_v5  ;;  %5083 = vmatpush.bf16.msra.mxu1 %v4670_v5  ;;  %v274_v9 = vmax.f32 %v273_v7, 0.0  ;;  %468 = vst [vmem:[#allocation2 + $0x20] sm:$0x1] %v5195_v13  ;;  %v4964_v27 = vld [vmem:[%s5297_s23 + $0x60] sm:$0xff]   ;;  %v4747_v35 = vunpack.c.l.bf16 %v4960_v26  ;;  %v4748_v36 = vunpack.c.h.bf16 %v4960_v26 }
  0x15   : > { %5084 = vmatpush.bf16.msra.mxu2 %v4670_v5  ;;  %5085 = vmatpush.bf16.msra.mxu3 %v4670_v5  ;;  %469 = vst [vmem:[#allocation2 + $0x24] sm:$0xf] %v5195_v13  ;;  %v4763_v37 = vunpack.c.l.bf16 %v4964_v27  ;;  %v4764_v40 = vunpack.c.h.bf16 %v4964_v27 }
  0x16   : > { %v275_v10 = vadd.f32 1e-05, %v274_v9  ;;  %470 = vst [vmem:[#allocation2 + $0x28] sm:$0xf] %v5195_v13 }
  0x17   : > { %471 = vst [vmem:[#allocation2 + $0x2c] sm:$0x1] %v5195_v13 }
  0x18   : > { %2289 = vmatpush.bf16.msra.mxu0 %v4669_v8  ;;  %5086 = vmatpush.bf16.msra.mxu1 %v4669_v8  ;;  %5110 = vrsqrt.f32 %v275_v10  ;;  %vm282_vm0 = vweird.f32 %v275_v10  ;;  %472 = vst [vmem:[#allocation2 + $0x30] sm:$0xf] %v5195_v13 }
  0x19   : > { %5087 = vmatpush.bf16.msra.mxu2 %v4669_v8  ;;  %5088 = vmatpush.bf16.msra.mxu3 %v4669_v8  ;;  %473 = vst [vmem:[#allocation2 + $0x34] sm:$0xf] %v5195_v13 }
  0x1a   : > { %474 = vst [vmem:[#allocation2 + $0x38] sm:$0x1] %v5195_v13 }
  0x1b   : > { %475 = vst [vmem:[#allocation2 + $0x3c] sm:$0xf] %v5195_v13 }
  0x1c   : > { %2290 = vmatpush.bf16.msra.mxu0 %v4668_v11  ;;  %5089 = vmatpush.bf16.msra.mxu1 %v4668_v11  ;;  %476 = vst [vmem:[#allocation2 + $0x40] sm:$0xf] %v5195_v13 }
  0x1d   : > { %5090 = vmatpush.bf16.msra.mxu2 %v4668_v11  ;;  %5091 = vmatpush.bf16.msra.mxu3 %v4668_v11  ;;  %477 = vst [vmem:[#allocation2 + $0x44] sm:$0x1] %v5195_v13 }
  0x1e   : > { %v5111_v14 = vpop.eup %5110  ;;  %478 = vst [vmem:[#allocation2 + $0x48] sm:$0xf] %v5195_v13 }
  0x1f   : > { %v277_v16 = vmul.f32 %v5111_v14, %v275_v10  ;;  %vm283_vm1 = vweird.f32 %v5111_v14  ;;  %479 = vst [vmem:[#allocation2 + $0x4c] sm:$0xf] %v5195_v13 }
  0x20   : > { %2291 = vmatpush.bf16.msra.mxu0 %v4667_v12  ;;  %5092 = vmatpush.bf16.msra.mxu1 %v4667_v12  ;;  %vm284_vm2 = vmor %vm282_vm0, %vm283_vm1  ;;  %480 = vst [vmem:[#allocation2 + $0x50] sm:$0x1] %v5195_v13 }
  0x21   : > { %5093 = vmatpush.bf16.msra.mxu2 %v4667_v12  ;;  %5094 = vmatpush.bf16.msra.mxu3 %v4667_v12  ;;  %v278_v17 = vmul.f32 %v5111_v14, %v277_v16  ;;  %481 = vst [vmem:[#allocation2 + $0x54] sm:$0xf] %v5195_v13 }
  0x22   : > { %482 = vst [vmem:[#allocation2 + $0x58] sm:$0xf] %v5195_v13 }
  0x23   : > { %v279_v19 = vmul.f32 0.5, %v278_v17  ;;  %483 = vst [vmem:[#allocation2 + $0x5c] sm:$0x1] %v5195_v13 }
  0x24   : > { %2292 = vmatpush.bf16.msra.mxu0 %v4666_v15  ;;  %5095 = vmatpush.bf16.msra.mxu1 %v4666_v15  ;;  %484 = vst [vmem:[#allocation2 + $0x60] sm:$0xf] %v5195_v13 }
  0x25   : > { %5096 = vmatpush.bf16.msra.mxu2 %v4666_v15  ;;  %5097 = vmatpush.bf16.msra.mxu3 %v4666_v15  ;;  %v280_v20 = vsub.f32 1.5, %v279_v19  ;;  %485 = vst [vmem:[#allocation2 + $0x64] sm:$0xf] %v5195_v13  ;;  %v873_v15 = vld [vmem:[#allocation2 + $0xc] sm:$0xf] }
  0x26   : > { %486 = vst [vmem:[#allocation2 + $0x68] sm:$0x1] %v5195_v13 }
  0x27   : > { %v281_v21 = vmul.f32 %v5111_v14, %v280_v20  ;;  %487 = vst [vmem:[#allocation2 + $0x6c] sm:$0xf] %v5195_v13 }
  0x28   : > { %2293 = vmatpush.bf16.msra.mxu0 %v4665_v18  ;;  %5098 = vmatpush.bf16.msra.mxu1 %v4665_v18  ;;  %488 = vst [vmem:[#allocation2 + $0x70] sm:$0xf] %v5195_v13 }
  0x29   : > { %5099 = vmatpush.bf16.msra.mxu2 %v4665_v18  ;;  %5100 = vmatpush.bf16.msra.mxu3 %v4665_v18  ;;  %v285_v22 = vsel %vm284_vm2, %v5111_v14, %v281_v21  ;;  %489 = vst [vmem:[#allocation2 + $0x74] sm:$0x1] %v5195_v13 }
  0x2a   : > { %287 = vst [vmem:[#allocation1] sm:$0xff] %v285_v22 }
  0x2b   : > { %490 = vst [vmem:[#allocation2 + $0x78] sm:$0xf] %v5195_v13 }
  0x2c   : > { %491 = vst [vmem:[#allocation2 + $0x7c] sm:$0xf] %v5195_v13 }
  0x2d   : > { %492 = vst [vmem:[#allocation2 + $0x80] sm:$0x1] %v5195_v13 }
  0x2e   : > { %493 = vst [vmem:[#allocation2 + $0x84] sm:$0xf] %v5195_v13 }
  0x2f   : > { %494 = vst [vmem:[#allocation2 + $0x88] sm:$0xf] %v5195_v13 }
  0x30   : > { %495 = vst [vmem:[#allocation2 + $0x8c] sm:$0x1] %v5195_v13 }
  0x31   : > { %v289_v28 = vld [vmem:[#allocation1 + $0x1] ss:$9 sm:$0xff]  ;;  %496 = vst [vmem:[#allocation2 + $0x90] sm:$0xf] %v5195_v13 }
  0x32   : > { %v291_v29 = vmul.f32 %v289_v28, %v266_v23  ;;  %497 = vst [vmem:[#allocation2 + $0x94] sm:$0xf] %v5195_v13 }
  0x33   : > { %498 = vst [vmem:[#allocation2 + $0x98] sm:$0x1] %v5195_v13 }
  0x34   : > { %v292_v38 = vmul.f32 %v291_v29, %v5250_v3  ;;  %v5318_v39 = vperm.slane %v291_v29, 0  ;;  %499 = vst [vmem:[#allocation2 + $0x9c] sm:$0xf] %v5195_v13 }
  0x35   : > { %500 = vst [vmem:[#allocation2 + $0xa0] sm:$0xf] %v5195_v13 }
  0x36   : > { %v293_v41 = vsub.f32 %v267_v33, %v292_v38  ;;  %v361_v42 = vmul.f32 %v4715_v30, %v5318_v39  ;;  %v362_v43 = vmul.f32 %v4716_v31, %v5318_v39  ;;  %v369_v44 = vmul.f32 %v4731_v32, %v5318_v39  ;;  %501 = vst [vmem:[#allocation2 + $0xa4] sm:$0x1] %v5195_v13 }
  0x37   : > { %v370_v45 = vmul.f32 %v4732_v34, %v5318_v39  ;;  %v377_v46 = vmul.f32 %v4747_v35, %v5318_v39  ;;  %v378_v47 = vmul.f32 %v4748_v36, %v5318_v39  ;;  %v385_v48 = vmul.f32 %v4763_v37, %v5318_v39  ;;  %v5380_v37 = vld [vmem:[#allocation2 + $0x3c] sm:$0xf]  ;;  %502 = vst [vmem:[#allocation2 + $0xa8] sm:$0xf] %v5195_v13 }
  0x38   : > { %v5331_v49 = vperm.slane %v293_v41, 0  ;;  %v386_v50 = vmul.f32 %v4764_v40, %v5318_v39  ;;  %503 = vst [vmem:[#allocation2 + $0xac] sm:$0xf] %v5195_v13 }
  0x39   : > { %504 = vst [vmem:[#allocation2 + $0xb0] sm:$0x1] %v5195_v13 }
  0x3a   : > { %v396_v51 = vadd.f32 %v5331_v49, %v361_v42  ;;  %v397_v52 = vadd.f32 %v5331_v49, %v362_v43  ;;  %v404_v53 = vadd.f32 %v5331_v49, %v369_v44  ;;  %v405_v54 = vadd.f32 %v5331_v49, %v370_v45  ;;  %v4953_v44 = vld [vmem:[%s5297_s23 + $0x8] sm:$0xff]   ;;  %505 = vst [vmem:[#allocation2 + $0xb4] sm:$0xf] %v5195_v13 }
  0x3b   : > { %v412_v55 = vadd.f32 %v5331_v49, %v377_v46  ;;  %v413_v56 = vadd.f32 %v5331_v49, %v378_v47  ;;  %v420_v57 = vadd.f32 %v5331_v49, %v385_v48  ;;  %v421_v58 = vadd.f32 %v5331_v49, %v386_v50  ;;  %v4957_v45 = vld [vmem:[%s5297_s23 + $0x28] sm:$0xff]   ;;  %v5392_v46 = vld [vmem:[#allocation2 + $0x6c] sm:$0xf]  ;;  %v4688_v47 = vld [vmem:[%s6555_s4 + $0x178] sm:$0xff]  ;;  %506 = vst [vmem:[#allocation2 + $0xb8] sm:$0xf] %v5195_v13 }
  0x3c   : > { %v428_v59 = vmax.f32 %v396_v51, 0.0  ;;  %v429_v60 = vmax.f32 %v397_v52, 0.0  ;;  %v436_v61 = vmax.f32 %v404_v53, 0.0  ;;  %v437_v62 = vmax.f32 %v405_v54, 0.0  ;;  %v4648_v48 = vld [vmem:[%s6555_s4 + $0x38] sm:$0xff]  ;;  %v4961_v51 = vld [vmem:[%s5297_s23 + $0x48] sm:$0xff]   ;;  %2464 = vmatpush.bf16.msrb.mxu2 %v4688_v47 }
  0x3d   : > { %v444_v63 = vmax.f32 %v412_v55, 0.0  ;;  %v445_v0 = vmax.f32 %v413_v56, 0.0  ;;  %v452_v1 = vmax.f32 %v420_v57, 0.0  ;;  %v453_v2 = vmax.f32 %v421_v58, 0.0  ;;  %v4680_v50 = vld [vmem:[%s6555_s4 + $0x138] sm:$0xff]  ;;  %v4687_v56 = vld [vmem:[%s6555_s4 + $0x170] sm:$0xff]  ;;  %2697 = vmatpush.bf16.msrb.mxu3 %v4648_v48 }
  0x3e   : > { %v514_v3 = vpack.c.bf16 %v428_v59, %v428_v59  ;;  %v515_v4 = vpack.c.bf16 %v429_v60, %v429_v60  ;;  %v522_v5 = vpack.c.bf16 %v436_v61, %v436_v61  ;;  %v523_v6 = vpack.c.bf16 %v437_v62, %v437_v62  ;;  %v4647_v60 = vld [vmem:[%s6555_s4 + $0x30] sm:$0xff]  ;;  %v4656_v61 = vld [vmem:[%s6555_s4 + $0x78] sm:$0xff]  ;;  %2375 = vmatpush.bf16.msrb.mxu1 %v4680_v50 }
  0x3f   : > { %v530_v7 = vpack.c.bf16 %v444_v63, %v444_v63  ;;  %v531_v8 = vpack.c.bf16 %v445_v0, %v445_v0  ;;  %v5350_v9 = vpack.c.bf16 %v452_v1, %v452_v1  ;;  %v5363_v24 = vpack.c.bf16 %v453_v2, %v453_v2  ;;  %2786 = vmatpush.bf16.msrb.mxu0 %v4656_v61 }
  0x40   : > { %v550_v10 = vshrl.u32 %v514_v3, 16  ;;  %v553_v11 = vshll.u32 %v514_v3, 16  ;;  %v558_v12 = vshrl.u32 %v515_v4, 16  ;;  %v561_v14 = vshll.u32 %v515_v4, 16  ;;  %v5432_v3 = vld [vmem:[%s5297_s23 + $0x68] sm:$0xff]   ;;  %2465 = vmatpush.bf16.msrb.mxu2 %v4687_v56 }
  0x41   : > { %v618_v16 = vshrl.u32 %v522_v5, 16  ;;  %v621_v17 = vshll.u32 %v522_v5, 16  ;;  %v626_v18 = vshrl.u32 %v523_v6, 16  ;;  %v629_v19 = vshll.u32 %v523_v6, 16  ;;  %2698 = vmatpush.bf16.msrb.mxu3 %v4647_v60  ;;  %507 = vst [vmem:[#allocation2 + $0xbc] sm:$0x1] %v5195_v13 }
  0x42   : > { %v552_v21 = vrot.slane %v550_v10, 7  ;;  %v5360_v22 = vrot.slane %v558_v12, 7  ;;  %v686_v23 = vshrl.u32 %v530_v7, 16  ;;  %v689_v28 = vshll.u32 %v530_v7, 16  ;;  %508 = vst [vmem:[#allocation2 + $0xc0] sm:$0xf] %v5195_v13 }
  0x43   : > { %v620_v26 = vrot.slane %v618_v16, 7  ;;  %v5372_v27 = vrot.slane %v626_v18, 7  ;;  %v694_v29 = vshrl.u32 %v531_v8, 16  ;;  %v697_v33 = vshll.u32 %v531_v8, 16  ;;  %509 = vst [vmem:[#allocation2 + $0xc4] sm:$0xf] %v5195_v13 }
  0x44   : > { %v555_v30 = vor.u32 %v553_v11, %v552_v21  ;;  %v556_v31 = vrot.slane %v552_v21, 4  ;;  %v563_v32 = vor.u32 %v561_v14, %v5360_v22  ;;  %v688_v38 = vrot.slane %v686_v23, 7  ;;  %510 = vst [vmem:[#allocation2 + $0xc8] sm:$0x1] %v5195_v13  ;;  %v882_v60 = vld [vmem:[#allocation2 + $0x18] sm:$0xf] }
  0x45   : > { %v5377_v34 = vor.u32 %v621_v17, %v620_v26  ;;  %v624_v35 = vrot.slane %v620_v26, 4  ;;  %v631_v36 = vor.u32 %v629_v19, %v5372_v27  ;;  %v5387_v42 = vrot.slane %v694_v29, 7  ;;  %511 = vst [vmem:[#allocation2 + $0xcc] sm:$0xf] %v5195_v13 }
  0x46   : > { %v564_v40 = vsel %vm5356_vm7, %v556_v31, %v563_v32  ;;  %v874_v41 = vsel %vm5367_vm8, %v555_v30, %v873_v15  ;;  %v754_v43 = vshrl.u32 %v5350_v9, 16  ;;  %v5404_v52 = vor.u32 %v689_v28, %v688_v38  ;;  %512 = vst [vmem:[#allocation2 + $0xd0] sm:$0xf] %v5195_v13 }
  0x47   : > { %875 = vst [vmem:[#allocation2 + $0xc] sm:$0xf] %v874_v41  ;;  %v692_v53 = vrot.slane %v688_v38, 4  ;;  %v757_v55 = vshll.u32 %v5350_v9, 16  ;;  %v699_v57 = vor.u32 %v697_v33, %v5387_v42  ;;  %v762_v58 = vshrl.u32 %v5363_v24, 16 }
  0x48   : > { %876 = vst [vmem:[#allocation2 + $0x10] sm:$0xf] %v564_v40  ;;  %v756_v54 = vrot.slane %v754_v43, 7  ;;  %v765_v59 = vshll.u32 %v5363_v24, 16  ;;  %v4719_v62 = vunpack.c.l.bf16 %v4953_v44  ;;  %v5423_v63 = vsel %vm5356_vm7, %v624_v35, %v631_v36  ;;  %v5443_v9 = vld [vmem:[#allocation2 + $0x9c] sm:$0xf] }
  0x49   : > { %v904_v0 = vsel %vm5367_vm8, %v5377_v34, %v5380_v37  ;;  %v4720_v2 = vunpack.c.h.bf16 %v4953_v44  ;;  %v5435_v4 = vrot.slane %v762_v58, 7  ;;  %v4735_v6 = vunpack.c.l.bf16 %v4957_v45  ;;  %513 = vst [vmem:[#allocation2 + $0xd4] sm:$0x1] %v5195_v13  ;;  %v910_v37 = vld [vmem:[#allocation2 + $0x48] sm:$0xf] }
  0x4a   : > { %v5429_v1 = vor.u32 %v757_v55, %v756_v54  ;;  %v363_v5 = vmul.f32 %v4719_v62, %v5318_v39  ;;  %v4736_v7 = vunpack.c.h.bf16 %v4957_v45  ;;  %v932_v8 = vsel %vm5367_vm8, %v5404_v52, %v5392_v46  ;;  %905 = vst [vmem:[#allocation2 + $0x3c] sm:$0xf] %v904_v0 }
  0x4b   : > { %v364_v10 = vmul.f32 %v4720_v2, %v5318_v39  ;;  %v4751_v11 = vunpack.c.l.bf16 %v4961_v51  ;;  %v4752_v12 = vunpack.c.h.bf16 %v4961_v51  ;;  %v5449_v14 = vsel %vm5356_vm7, %v692_v53, %v699_v57  ;;  %906 = vst [vmem:[#allocation2 + $0x40] sm:$0xf] %v5423_v63  ;;  %v4686_v63 = vld [vmem:[%s6555_s4 + $0x168] sm:$0xff] }
  0x4c   : > { %v760_v15 = vrot.slane %v756_v54, 4  ;;  %v767_v16 = vor.u32 %v765_v59, %v5435_v4  ;;  %v4767_v17 = vunpack.c.l.bf16 %v5432_v3  ;;  %v398_v18 = vadd.f32 %v5331_v49, %v363_v5  ;;  %933 = vst [vmem:[#allocation2 + $0x6c] sm:$0xf] %v932_v8  ;;  %2466 = vmatpush.bf16.msrb.mxu2 %v4686_v63 }
  0x4d   : > { %v399_v19 = vadd.f32 %v5331_v49, %v364_v10  ;;  %v371_v21 = vmul.f32 %v4735_v6, %v5318_v39  ;;  %v372_v23 = vmul.f32 %v4736_v7, %v5318_v39  ;;  %v960_v28 = vsel %vm5367_vm8, %v5429_v1, %v5443_v9  ;;  %v4679_v7 = vld [vmem:[%s6555_s4 + $0x130] sm:$0xff]  ;;  %934 = vst [vmem:[#allocation2 + $0x70] sm:$0xf] %v5449_v14  ;;  %v4646_v14 = vld [vmem:[%s6555_s4 + $0x28] sm:$0xff] }
  0x4e   : > { %v379_v29 = vmul.f32 %v4751_v11, %v5318_v39  ;;  %v380_v30 = vmul.f32 %v4752_v12, %v5318_v39  ;;  %v4768_v31 = vunpack.c.h.bf16 %v5432_v3  ;;  %v430_v32 = vmax.f32 %v398_v18, 0.0  ;;  %v4954_v9 = vld [vmem:[%s5297_s23 + $0x10] sm:$0xff]   ;;  %961 = vst [vmem:[#allocation2 + $0x9c] sm:$0xf] %v960_v28  ;;  %2376 = vmatpush.bf16.msrb.mxu1 %v4679_v7  ;;  %2699 = vmatpush.bf16.msrb.mxu3 %v4646_v14 }
  0x4f   : > { %v5458_v24 = vld [vmem:[#allocation2 + $0xc] sm:$0xff]   ;;  %v431_v33 = vmax.f32 %v399_v19, 0.0  ;;  %v406_v35 = vadd.f32 %v5331_v49, %v371_v21  ;;  %v407_v36 = vadd.f32 %v5331_v49, %v372_v23  ;;  %v768_v41 = vsel %vm5356_vm7, %v760_v15, %v767_v16 }
  0x50   : > { %v5460_v26 = vld [vmem:[#allocation2 + $0xc] sm:$0xf0]  ;;  %v414_v38 = vadd.f32 %v5331_v49, %v379_v29  ;;  %v415_v40 = vadd.f32 %v5331_v49, %v380_v30  ;;  %v516_v43 = vpack.c.bf16 %v430_v32, %v430_v32  ;;  %2294 = vmatmul.bf16.vlgmr.msra.gmra.mxu0 %v5458_v24  ;;  %v387_v53 = vmul.f32 %v4767_v17, %v5318_v39  ;;  %v4655_v19 = vld [vmem:[%s6555_s4 + $0x70] sm:$0xff]  ;;  %v4678_v29 = vld [vmem:[%s6555_s4 + $0x128] sm:$0xff] }
  0x51   : > { %v517_v44 = vpack.c.bf16 %v431_v33, %v431_v33  ;;  %v438_v45 = vmax.f32 %v406_v35, 0.0  ;;  %v439_v46 = vmax.f32 %v407_v36, 0.0  ;;  %v388_v62 = vmul.f32 %v4768_v31, %v5318_v39  ;;  %962 = vst [vmem:[#allocation2 + $0xa0] sm:$0xf] %v768_v41  ;;  %v4685_v30 = vld [vmem:[%s6555_s4 + $0x160] sm:$0xff]  ;;  %2787 = vmatpush.bf16.msrb.mxu0 %v4655_v19 }
  0x52   : > { %v446_v47 = vmax.f32 %v414_v38, 0.0  ;;  %v447_v48 = vmax.f32 %v415_v40, 0.0  ;;  %v567_v50 = vshrl.u32 %v516_v43, 16  ;;  %v570_v51 = vshll.u32 %v516_v43, 16  ;;  %v4645_v36 = vld [vmem:[%s6555_s4 + $0x20] sm:$0xff]  ;;  %v4654_v43 = vld [vmem:[%s6555_s4 + $0x68] sm:$0xff]  ;;  %2377 = vmatpush.bf16.msrb.mxu1 %v4678_v29  ;;  %2467 = vmatpush.bf16.msrb.mxu2 %v4685_v30 }
  0x53   : > { %v575_v52 = vshrl.u32 %v517_v44, 16  ;;  %v578_v54 = vshll.u32 %v517_v44, 16  ;;  %v524_v55 = vpack.c.bf16 %v438_v45, %v438_v45  ;;  %v525_v56 = vpack.c.bf16 %v439_v46, %v439_v46  ;;  %v938_v41 = vld [vmem:[#allocation2 + $0x78] sm:$0xf]  ;;  %v5535_v45 = vld [vmem:[#allocation2 + $0x3c] sm:$0xff]   ;;  %2700 = vmatpush.bf16.msrb.mxu3 %v4645_v36 }
  0x54   : > { %v532_v57 = vpack.c.bf16 %v446_v47, %v446_v47  ;;  %v569_v58 = vrot.slane %v567_v50, 7  ;;  %v533_v61 = vpack.c.bf16 %v447_v48, %v447_v48  ;;  %v422_v0 = vadd.f32 %v5331_v49, %v387_v53  ;;  %v5537_v46 = vld [vmem:[#allocation2 + $0x3c] sm:$0xf0]  ;;  %2314 = vmatmul.bf16.vlgmr.msra.gmra.mxu1 %v5535_v45  ;;  %v5781_v25 = vld [vmem:[#allocation2 + $0xc] sm:$0xf0] }
  0x55   : > { %v5489_v59 = vrot.slane %v575_v52, 7  ;;  %v635_v13 = vshrl.u32 %v524_v55, 16  ;;  %v638_v1 = vshll.u32 %v524_v55, 16  ;;  %v643_v2 = vshrl.u32 %v525_v56, 16  ;;  %v5542_v55 = vld [vmem:[#allocation2 + $0x6c] sm:$0xf0]  ;;  %2788 = vmatpush.bf16.msrb.mxu0 %v4654_v43 }
  0x56   : > { %v646_v3 = vshll.u32 %v525_v56, 16  ;;  %v572_v5 = vor.u32 %v570_v51, %v569_v58  ;;  %v573_v6 = vrot.slane %v569_v58, 4  ;;  %v703_v11 = vshrl.u32 %v532_v57, 16 }
  0x57   : > { %v580_v34 = vor.u32 %v578_v54, %v5489_v59  ;;  %v637_v10 = vrot.slane %v635_v13, 7  ;;  %v5503_v8 = vrot.slane %v643_v2, 7  ;;  %v706_v12 = vshll.u32 %v532_v57, 16  ;;  %v5540_v54 = vld [vmem:[#allocation2 + $0x6c] sm:$0xff]  }
  0x58   : > { %v883_v16 = vsel %vm5367_vm8, %v572_v5, %v882_v60  ;;  %v711_v17 = vshrl.u32 %v533_v61, 16  ;;  %v714_v18 = vshll.u32 %v533_v61, 16  ;;  %v705_v31 = vrot.slane %v703_v11, 7  ;;  %v5549_v61 = vld [vmem:[#allocation2 + $0x9c] sm:$0xff]   ;;  %v4958_v5 = vld [vmem:[%s5297_s23 + $0x30] sm:$0xff]   ;;  %2334 = vmatmul.bf16.vlgmr.msra.gmra.mxu2 %v5540_v54 }
  0x59   : > { %v581_v15 = vsel %vm5356_vm7, %v573_v6, %v580_v34  ;;  %v640_v21 = vor.u32 %v638_v1, %v637_v10  ;;  %v641_v23 = vrot.slane %v637_v10, 4  ;;  %v648_v28 = vor.u32 %v646_v3, %v5503_v8  ;;  %884 = vst [vmem:[#allocation2 + $0x18] sm:$0xf] %v883_v16  ;;  %2354 = vmatmul.bf16.vlgmr.msra.gmra.mxu3 %v5549_v61 }
  0x5a   : > { %v5522_v32 = vrot.slane %v711_v17, 7  ;;  %v423_v33 = vadd.f32 %v5331_v49, %v388_v62  ;;  %v454_v35 = vmax.f32 %v422_v0, 0.0  ;;  %885 = vst [vmem:[#allocation2 + $0x1c] sm:$0xf] %v581_v15  ;;  %v4723_v44 = vunpack.c.l.bf16 %v4954_v9  ;;  %v5551_v62 = vld [vmem:[#allocation2 + $0x9c] sm:$0xf0] }
  0x5b   : > { %v649_v38 = vsel %vm5356_vm7, %v641_v23, %v648_v28  ;;  %v911_v40 = vsel %vm5367_vm8, %v640_v21, %v910_v37  ;;  %v708_v47 = vor.u32 %v706_v12, %v705_v31  ;;  %v709_v48 = vrot.slane %v705_v31, 4  ;;  %v4962_v28 = vld [vmem:[%s5297_s23 + $0x50] sm:$0xff]  }
  0x5c   : > { %912 = vst [vmem:[#allocation2 + $0x48] sm:$0xf] %v911_v40  ;;  %v716_v50 = vor.u32 %v714_v18, %v5522_v32  ;;  %v4724_v51 = vunpack.c.h.bf16 %v4954_v9  ;;  %v455_v52 = vmax.f32 %v423_v33, 0.0  ;;  %v540_v53 = vpack.c.bf16 %v454_v35, %v454_v35  ;;  %v966_v9 = vld [vmem:[#allocation2 + $0xa8] sm:$0xf] }
  0x5d   : > { %913 = vst [vmem:[#allocation2 + $0x4c] sm:$0xf] %v649_v38  ;;  %v939_v57 = vsel %vm5367_vm8, %v708_v47, %v938_v41  ;;  %v365_v58 = vmul.f32 %v4723_v44, %v5318_v39  ;;  %v4739_v10 = vunpack.c.l.bf16 %v4958_v5  ;;  %v4740_v21 = vunpack.c.h.bf16 %v4958_v5  ;;  %v4966_v31 = vld [vmem:[%s5297_s23 + $0x70] sm:$0xff]   ;;  %v889_v47 = vld [vmem:[#allocation2 + $0x24] sm:$0xf]  ;;  %v4653_v5 = vld [vmem:[%s6555_s4 + $0x60] sm:$0xff] }
  0x5e   : > { %v717_v56 = vsel %vm5356_vm7, %v709_v48, %v716_v50  ;;  %940 = vst [vmem:[#allocation2 + $0x78] sm:$0xf] %v939_v57  ;;  %v541_v60 = vpack.c.bf16 %v455_v52, %v455_v52  ;;  %v771_v13 = vshrl.u32 %v540_v53, 16  ;;  %v774_v1 = vshll.u32 %v540_v53, 16  ;;  %v4677_v57 = vld [vmem:[%s6555_s4 + $0x120] sm:$0xff]  ;;  %2789 = vmatpush.bf16.msrb.mxu0 %v4653_v5 }
  0x5f   : > { %941 = vst [vmem:[#allocation2 + $0x7c] sm:$0xf] %v717_v56  ;;  %v366_v2 = vmul.f32 %v4724_v51, %v5318_v39  ;;  %v400_v3 = vadd.f32 %v5331_v49, %v365_v58  ;;  %v373_v23 = vmul.f32 %v4739_v10, %v5318_v39  ;;  %v374_v38 = vmul.f32 %v4740_v21, %v5318_v39  ;;  %v4684_v58 = vld [vmem:[%s6555_s4 + $0x158] sm:$0xff]  ;;  %v4683_v10 = vld [vmem:[%s6555_s4 + $0x150] sm:$0xff] }
  0x60   : > { %v779_v6 = vshrl.u32 %v541_v60, 16  ;;  %v773_v37 = vrot.slane %v771_v13, 7  ;;  %v782_v0 = vshll.u32 %v541_v60, 16  ;;  %v4755_v43 = vunpack.c.l.bf16 %v4962_v28  ;;  %v4644_v60 = vld [vmem:[%s6555_s4 + $0x18] sm:$0xff]  ;;  %2378 = vmatpush.bf16.msrb.mxu1 %v4677_v57  ;;  %2468 = vmatpush.bf16.msrb.mxu2 %v4684_v58 }
  0x61   : > { %v5557_v34 = vld [vmem:[#allocation2 + $0x18] sm:$0xff]   ;;  %v401_v7 = vadd.f32 %v5331_v49, %v366_v2  ;;  %v432_v63 = vmax.f32 %v400_v3, 0.0  ;;  %v408_v41 = vadd.f32 %v5331_v49, %v373_v23  ;;  %v409_v48 = vadd.f32 %v5331_v49, %v374_v38  ;;  %2701 = vmatpush.bf16.msrb.mxu3 %v4644_v60 }
  0x62   : > { %2299 = vmatmul.bf16.gmra.mxu0 %v5557_v34  ;;  %v776_v11 = vor.u32 %v774_v1, %v773_v37  ;;  %v777_v12 = vrot.slane %v773_v37, 4  ;;  %v5562_v15 = vrot.slane %v779_v6, 7  ;;  %v4756_v50 = vunpack.c.h.bf16 %v4962_v28  ;;  %v4643_v28 = vld [vmem:[%s6555_s4 + $0x10] sm:$0xff] }
  0x63   : > { %v433_v16 = vmax.f32 %v401_v7, 0.0  ;;  %v518_v14 = vpack.c.bf16 %v432_v63, %v432_v63  ;;  %v4771_v51 = vunpack.c.l.bf16 %v4966_v31  ;;  %v440_v56 = vmax.f32 %v408_v41, 0.0  ;;  %v4955_v41 = vld [vmem:[%s5297_s23 + $0x18] sm:$0xff]  }
  0x64   : > { %v784_v17 = vor.u32 %v782_v0, %v5562_v15  ;;  %v967_v18 = vsel %vm5367_vm8, %v776_v11, %v966_v9  ;;  %v441_v1 = vmax.f32 %v409_v48, 0.0  ;;  %v381_v2 = vmul.f32 %v4755_v43, %v5318_v39  ;;  %v5593_v6 = vld [vmem:[#allocation2 + $0x48] sm:$0xff]   ;;  %v4676_v9 = vld [vmem:[%s6555_s4 + $0x118] sm:$0xff]  ;;  %2469 = vmatpush.bf16.msrb.mxu2 %v4683_v10 }
  0x65   : > { %968 = vst [vmem:[#allocation2 + $0xa8] sm:$0xf] %v967_v18  ;;  %v519_v19 = vpack.c.bf16 %v433_v16, %v433_v16  ;;  %v584_v30 = vshrl.u32 %v518_v14, 16  ;;  %v587_v33 = vshll.u32 %v518_v14, 16  ;;  %v382_v3 = vmul.f32 %v4756_v50, %v5318_v39  ;;  %2319 = vmatmul.bf16.gmra.mxu1 %v5593_v6  ;;  %2702 = vmatpush.bf16.msrb.mxu3 %v4643_v28  ;;  %v973_v28 = vld [vmem:[#allocation2 + $0xb4] sm:$0xf] }
  0x66   : > { %v785_v29 = vsel %vm5356_vm7, %v777_v12, %v784_v17  ;;  %v526_v0 = vpack.c.bf16 %v440_v56, %v440_v56  ;;  %v4772_v7 = vunpack.c.h.bf16 %v4966_v31  ;;  %v389_v63 = vmul.f32 %v4771_v51, %v5318_v39  ;;  %v5003_v11 = vld [vmem:[#allocation2 + $0x78] sm:$0xff]   ;;  %2379 = vmatpush.bf16.msrb.mxu1 %v4676_v9 }
  0x67   : > { %969 = vst [vmem:[#allocation2 + $0xac] sm:$0xf] %v785_v29  ;;  %v592_v35 = vshrl.u32 %v519_v19, 16  ;;  %v595_v36 = vshll.u32 %v519_v19, 16  ;;  %v586_v40 = vrot.slane %v584_v30, 7  ;;  %v527_v16 = vpack.c.bf16 %v441_v1, %v441_v1  ;;  %v4652_v29 = vld [vmem:[%s6555_s4 + $0x58] sm:$0xff] }
  0x68   : > { %v416_v17 = vadd.f32 %v5331_v49, %v381_v2  ;;  %v417_v18 = vadd.f32 %v5331_v49, %v382_v3  ;;  %v652_v14 = vshrl.u32 %v526_v0, 16  ;;  %v655_v19 = vshll.u32 %v526_v0, 16  ;;  %2339 = vmatmul.bf16.gmra.mxu2 %v5003_v11  ;;  %2790 = vmatpush.bf16.msrb.mxu0 %v4652_v29  ;;  %v4959_v29 = vld [vmem:[%s5297_s23 + $0x38] sm:$0xff]  }
  0x69   : > { %v5575_v44 = vrot.slane %v592_v35, 7  ;;  %v589_v52 = vor.u32 %v587_v33, %v586_v40  ;;  %v590_v53 = vrot.slane %v586_v40, 4  ;;  %v390_v21 = vmul.f32 %v4772_v7, %v5318_v39 }
  0x6a   : > { %v424_v23 = vadd.f32 %v5331_v49, %v389_v63  ;;  %v660_v30 = vshrl.u32 %v527_v16, 16  ;;  %v663_v31 = vshll.u32 %v527_v16, 16  ;;  %v654_v35 = vrot.slane %v652_v14, 7 }
  0x6b   : > { %v597_v13 = vor.u32 %v595_v36, %v5575_v44  ;;  %v890_v37 = vsel %vm5367_vm8, %v589_v52, %v889_v47  ;;  %v448_v36 = vmax.f32 %v416_v17, 0.0  ;;  %v449_v38 = vmax.f32 %v417_v18, 0.0  ;;  %v917_v47 = vld [vmem:[#allocation2 + $0x54] sm:$0xf] }
  0x6c   : > { %891 = vst [vmem:[#allocation2 + $0x24] sm:$0xf] %v890_v37  ;;  %v425_v40 = vadd.f32 %v5331_v49, %v390_v21  ;;  %v5619_v43 = vrot.slane %v660_v30, 7  ;;  %v456_v48 = vmax.f32 %v424_v23, 0.0  ;;  %v657_v50 = vor.u32 %v655_v19, %v654_v35 }
  0x6d   : > { %v598_v12 = vsel %vm5356_vm7, %v590_v53, %v597_v13  ;;  %v658_v51 = vrot.slane %v654_v35, 4  ;;  %v534_v52 = vpack.c.bf16 %v448_v36, %v448_v36  ;;  %v535_v53 = vpack.c.bf16 %v449_v38, %v449_v38  ;;  %v4963_v35 = vld [vmem:[%s5297_s23 + $0x58] sm:$0xff]  }
  0x6e   : > { %892 = vst [vmem:[#allocation2 + $0x28] sm:$0xf] %v598_v12  ;;  %v5005_v33 = vld [vmem:[#allocation2 + $0xa8] sm:$0xff]   ;;  %v665_v56 = vor.u32 %v663_v31, %v5619_v43  ;;  %v457_v57 = vmax.f32 %v425_v40, 0.0  ;;  %v542_v58 = vpack.c.bf16 %v456_v48, %v456_v48  ;;  %v4727_v60 = vunpack.c.l.bf16 %v4955_v41  ;;  %v945_v12 = vld [vmem:[#allocation2 + $0x84] sm:$0xf] }
  0x6f   : > { %2359 = vmatmul.bf16.gmra.mxu3 %v5005_v33  ;;  %v918_v13 = vsel %vm5367_vm8, %v657_v50, %v917_v47  ;;  %v720_v1 = vshrl.u32 %v534_v52, 16  ;;  %v723_v2 = vshll.u32 %v534_v52, 16  ;;  %v728_v3 = vshrl.u32 %v535_v53, 16  ;;  %v5644_v48 = vld [vmem:[%s5297_s23 + $0x78] sm:$0xff]   ;;  %s4251_s23 = sshll.u32 %s5237_s22, 5 }
  0x70   : > { %v666_v0 = vsel %vm5356_vm7, %v658_v51, %v665_v56  ;;  %919 = vst [vmem:[#allocation2 + $0x54] sm:$0xf] %v918_v13  ;;  %v731_v7 = vshll.u32 %v535_v53, 16  ;;  %v543_v63 = vpack.c.bf16 %v457_v57, %v457_v57  ;;  %v788_v9 = vshrl.u32 %v542_v58, 16  ;;  %p255_p4 = scmp.lt.s32.totalorder %s4251_s23, 63 }
  0x71   : > { %920 = vst [vmem:[#allocation2 + $0x58] sm:$0xf] %v666_v0  ;;  %v722_v10 = vrot.slane %v720_v1, 7  ;;  %v5630_v11 = vrot.slane %v728_v3, 7  ;;  %v791_v17 = vshll.u32 %v542_v58, 16  ;;  %v4728_v40 = vunpack.c.h.bf16 %v4955_v41 }
  0x72   : > { %v790_v16 = vrot.slane %v788_v9, 7  ;;  %v796_v18 = vshrl.u32 %v543_v63, 16  ;;  %v799_v14 = vshll.u32 %v543_v63, 16  ;;  %v367_v47 = vmul.f32 %v4727_v60, %v5318_v39  ;;  %s6645_s23 = smov (!%p255_p4, %s4251_s23), 63 }
  0x73   : > { %v725_v19 = vor.u32 %v723_v2, %v722_v10  ;;  %v726_v21 = vrot.slane %v722_v10, 4  ;;  %v733_v23 = vor.u32 %v731_v7, %v5630_v11  ;;  %v4743_v52 = vunpack.c.l.bf16 %v4959_v29  ;;  %s4252_s22 = sshll.u32 %s6645_s23, 2 }
  0x74   : > { %v793_v30 = vor.u32 %v791_v17, %v790_v16  ;;  %v794_v31 = vrot.slane %v790_v16, 4  ;;  %v5634_v33 = vrot.slane %v796_v18, 7  ;;  %v368_v53 = vmul.f32 %v4728_v40, %v5318_v39  ;;  %s6415_s10 = scalar_lea.vmem %s6556_s5, %s4252_s22 }
  0x75   : > { %v5624_v5 = vld [vmem:[#allocation2 + $0x24] sm:$0xff]   ;;  %v734_v36 = vsel %vm5356_vm7, %v726_v21, %v733_v23  ;;  %v946_v38 = vsel %vm5367_vm8, %v725_v19, %v945_v12  ;;  %v402_v56 = vadd.f32 %v5331_v49, %v367_v47  ;;  %v4744_v57 = vunpack.c.h.bf16 %v4959_v29 }
  0x76   : > { %v5626_v37 = vld [vmem:[#allocation2 + $0x24] sm:$0xf0]  ;;  %2304 = vmatmul.bf16.gmra.mxu0 %v5624_v5  ;;  %947 = vst [vmem:[#allocation2 + $0x84] sm:$0xf] %v946_v38  ;;  %v801_v50 = vor.u32 %v799_v14, %v5634_v33  ;;  %v974_v51 = vsel %vm5367_vm8, %v793_v30, %v973_v28  ;;  %v4759_v58 = vunpack.c.l.bf16 %v4963_v35  ;;  %v375_v1 = vmul.f32 %v4743_v52, %v5318_v39  ;;  %v896_v52 = vld [vmem:[#allocation2 + $0x30] sm:$0xf] }
  0x77   : > { %948 = vst [vmem:[#allocation2 + $0x88] sm:$0xf] %v734_v36  ;;  %v4760_v2 = vunpack.c.h.bf16 %v4963_v35  ;;  %v4775_v3 = vunpack.c.l.bf16 %v5644_v48  ;;  %v403_v0 = vadd.f32 %v5331_v49, %v368_v53  ;;  %v434_v7 = vmax.f32 %v402_v56, 0.0 }
  0x78   : > { %v5651_v13 = vld [vmem:[#allocation2 + $0x54] sm:$0xff]   ;;  %v802_v60 = vsel %vm5356_vm7, %v794_v31, %v801_v50  ;;  %975 = vst [vmem:[#allocation2 + $0xb4] sm:$0xf] %v974_v51  ;;  %v376_v63 = vmul.f32 %v4744_v57, %v5318_v39  ;;  %v410_v9 = vadd.f32 %v5331_v49, %v375_v1  ;;  %v383_v10 = vmul.f32 %v4759_v58, %v5318_v39 }
  0x79   : > { %v5653_v41 = vld [vmem:[#allocation2 + $0x54] sm:$0xf0]  ;;  %976 = vst [vmem:[#allocation2 + $0xb8] sm:$0xf] %v802_v60  ;;  %v384_v12 = vmul.f32 %v4760_v2, %v5318_v39  ;;  %v435_v16 = vmax.f32 %v403_v0, 0.0  ;;  %v520_v17 = vpack.c.bf16 %v434_v7, %v434_v7  ;;  %v4776_v18 = vunpack.c.h.bf16 %v5644_v48  ;;  %2324 = vmatmul.bf16.gmra.mxu1 %v5651_v13  ;;  %v4675_v2 = vld [vmem:[%s6555_s4 + $0x110] sm:$0xff] }
  0x7a   : > { %v411_v14 = vadd.f32 %v5331_v49, %v376_v63  ;;  %v442_v19 = vmax.f32 %v410_v9, 0.0  ;;  %v418_v21 = vadd.f32 %v5331_v49, %v383_v10  ;;  %v391_v31 = vmul.f32 %v4775_v3, %v5318_v39  ;;  %v4651_v3 = vld [vmem:[%s6555_s4 + $0x50] sm:$0xff]  ;;  %v4682_v7 = vld [vmem:[%s6555_s4 + $0x148] sm:$0xff]  ;;  %2380 = vmatpush.bf16.msrb.mxu1 %v4675_v2 }
  0x7b   : > { %v419_v23 = vadd.f32 %v5331_v49, %v384_v12  ;;  %v521_v28 = vpack.c.bf16 %v435_v16, %v435_v16  ;;  %v601_v29 = vshrl.u32 %v520_v17, 16  ;;  %v604_v30 = vshll.u32 %v520_v17, 16  ;;  %v4642_v63 = vld [vmem:[%s6555_s4 + $0x8] sm:$0xff]  ;;  %2791 = vmatpush.bf16.msrb.mxu0 %v4651_v3  ;;  %2470 = vmatpush.bf16.msrb.mxu2 %v4682_v7 }
  0x7c   : > { %v443_v38 = vmax.f32 %v411_v14, 0.0  ;;  %v528_v40 = vpack.c.bf16 %v442_v19, %v442_v19  ;;  %v450_v47 = vmax.f32 %v418_v21, 0.0  ;;  %v4674_v17 = vld [vmem:[%s6555_s4 + $0x108] sm:$0xff]  ;;  %2703 = vmatpush.bf16.msrb.mxu3 %v4642_v63  ;;  %v426_v2 = vadd.f32 %v5331_v49, %v391_v31  ;;  %v4649_v63 = vld [vmem:[%s6555_s4 + $0x40] sm:$0xff] }
  0x7d   : > { %v451_v48 = vmax.f32 %v419_v23, 0.0  ;;  %v603_v50 = vrot.slane %v601_v29, 7  ;;  %v609_v51 = vshrl.u32 %v521_v28, 16  ;;  %v612_v57 = vshll.u32 %v521_v28, 16  ;;  %v924_v21 = vld [vmem:[#allocation2 + $0x60] sm:$0xf] }
  0x7e   : > { %v5670_v35 = vld [vmem:[#allocation2 + $0x84] sm:$0xff]   ;;  %v529_v58 = vpack.c.bf16 %v443_v38, %v443_v38  ;;  %v669_v60 = vshrl.u32 %v528_v40, 16  ;;  %v672_v1 = vshll.u32 %v528_v40, 16  ;;  %v4641_v23 = vld [vmem:[%s6555_s4] sm:$0xff]  ;;  %v565_v29 = vrot.slane %v5360_v22, 4  ;;  %2381 = vmatpush.bf16.msrb.mxu1 %v4674_v17 }
  0x7f   : > { %v5672_v36 = vld [vmem:[#allocation2 + $0x84] sm:$0xf0]  ;;  %v606_v0 = vor.u32 %v604_v30, %v603_v50  ;;  %v607_v9 = vrot.slane %v603_v50, 4  ;;  %v5690_v10 = vrot.slane %v609_v51, 7  ;;  %2344 = vmatmul.bf16.gmra.mxu2 %v5670_v35  ;;  %v4650_v28 = vld [vmem:[%s6555_s4 + $0x48] sm:$0xff]  ;;  %v4681_v40 = vld [vmem:[%s6555_s4 + $0x140] sm:$0xff] }
  0x80   : > { %v5674_v53 = vld [vmem:[#allocation2 + $0xb4] sm:$0xff]   ;;  %v671_v12 = vrot.slane %v669_v60, 7  ;;  %v677_v16 = vshrl.u32 %v529_v58, 16  ;;  %v680_v19 = vshll.u32 %v529_v58, 16  ;;  %v537_v58 = vpack.c.bf16 %v451_v48, %v451_v48  ;;  %2704 = vmatpush.bf16.msrb.mxu3 %v4641_v23  ;;  %2792 = vmatpush.bf16.msrb.mxu0 %v4650_v28 }
  0x81   : > { %v5676_v56 = vld [vmem:[#allocation2 + $0xb4] sm:$0xf0]  ;;  %v897_v14 = vsel %vm5367_vm8, %v606_v0, %v896_v52  ;;  %v614_v30 = vor.u32 %v612_v57, %v5690_v10  ;;  %2364 = vmatmul.bf16.gmra.mxu3 %v5674_v53  ;;  %v536_v52 = vpack.c.bf16 %v450_v47, %v450_v47  ;;  %v879_v48 = vld [vmem:[#allocation2 + $0x14] sm:$0x1]  ;;  %2471 = vmatpush.bf16.msrb.mxu2 %v4681_v40  ;;  %v1774_v20 = vshrl.u32 %v5458_v24, 16 }
  0x82   : > { %898 = vst [vmem:[#allocation2 + $0x30] sm:$0xf] %v897_v14  ;;  %v674_v38 = vor.u32 %v672_v1, %v671_v12  ;;  %v675_v50 = vrot.slane %v671_v12, 4  ;;  %v5710_v51 = vrot.slane %v677_v16, 7  ;;  %v392_v1 = vmul.f32 %v4776_v18, %v5318_v39  ;;  %v4673_v47 = vld [vmem:[%s6555_s4 + $0x100] sm:$0xff] }
  0x83   : > { %v615_v57 = vsel %vm5356_vm7, %v607_v9, %v614_v30  ;;  %v737_v0 = vshrl.u32 %v536_v52, 16  ;;  %v740_v7 = vshll.u32 %v536_v52, 16  ;;  %v745_v39 = vshrl.u32 %v537_v58, 16  ;;  %2382 = vmatpush.bf16.msrb.mxu1 %v4673_v47  ;;  %v1019_v52 = vld [vmem:[#allocation2 + $0x8] sm:$0x1]  ;;  %v4664_v47 = vld [vmem:[%s6555_s4 + $0xb8] sm:$0xff] }
  0x84   : > { %v925_v60 = vsel %vm5367_vm8, %v674_v38, %v924_v21  ;;  %899 = vst [vmem:[#allocation2 + $0x34] sm:$0xf] %v615_v57  ;;  %v682_v3 = vor.u32 %v680_v19, %v5710_v51  ;;  %v748_v18 = vshll.u32 %v537_v58, 16  ;;  %v427_v31 = vadd.f32 %v5331_v49, %v392_v1  ;;  %v952_v19 = vld [vmem:[#allocation2 + $0x90] sm:$0xf]  ;;  %2793 = vmatpush.bf16.msrb.mxu0 %v4649_v63  ;;  %v4689_v22 = vld [vmem:[%s6555_s4 + $0x180] sm:$0xff] }
  0x85   : > { %926 = vst [vmem:[#allocation2 + $0x60] sm:$0xf] %v925_v60  ;;  %v458_v9 = vmax.f32 %v426_v2, 0.0  ;;  %v739_v16 = vrot.slane %v737_v0, 7  ;;  %v880_v17 = vsel %vm5714_vm10, %v565_v29, %v879_v48  ;;  %v5736_v14 = vrot.slane %v745_v39, 7  ;;  %v4696_v1 = vld [vmem:[%s6555_s4 + $0x1b8] sm:$0xff] }
  0x86   : > { %v683_v12 = vsel %vm5356_vm7, %v675_v50, %v682_v3  ;;  %v459_v21 = vmax.f32 %v427_v31, 0.0  ;;  %881 = vst [vmem:[#allocation2 + $0x14] sm:$0x1] %v880_v17  ;;  %v5739_v50 = vld [vmem:[#allocation2] sm:$0xff]   ;;  %v582_v29 = vrot.slane %v5489_v59, 4  ;;  %v4704_v2 = vld [vmem:[%s6555_s4 + $0x1f8] sm:$0xff]  ;;  %3686 = vmatpush.bf16.msra.mxu2 %v4696_v1  ;;  %v1163_v17 = vunpack.c.l.b16 %v1019_v52 }
  0x87   : > { %927 = vst [vmem:[#allocation2 + $0x64] sm:$0xf] %v683_v12  ;;  %v544_v23 = vpack.c.bf16 %v458_v9, %v458_v9  ;;  %v742_v28 = vor.u32 %v740_v7, %v739_v16  ;;  %v743_v30 = vrot.slane %v739_v16, 4  ;;  %v750_v49 = vor.u32 %v748_v18, %v5736_v14  ;;  %v886_v58 = vld [vmem:[#allocation2 + $0x20] sm:$0x1]  ;;  %v4712_v63 = vld [vmem:[%s6555_s4 + $0x238] sm:$0xff]  ;;  %3775 = vmatpush.bf16.msra.mxu3 %v4704_v2 }
  0x88   : > { %v545_v38 = vpack.c.bf16 %v459_v21, %v459_v21  ;;  %v980_v9 = vld [vmem:[#allocation2 + $0xc0] sm:$0xf]  ;;  %v1199_v12 = vshll.u32 %v5739_v50, 16  ;;  %2875 = vmatpush.bf16.msra.mxu1 %v4664_v47  ;;  %3864 = vmatpush.bf16.msra.mxu0 %v4712_v63  ;;  %v5116_v52 = vld [vmem:[#allocation2 + $0xc] sm:$0xe]  ;;  %v599_v63 = vrot.slane %v5575_v44, 4 }
  0x89   : > { %v805_v40 = vshrl.u32 %v544_v23, 16  ;;  %v953_v57 = vsel %vm5367_vm8, %v742_v28, %v952_v19  ;;  %v808_v60 = vshll.u32 %v544_v23, 16  ;;  %v751_v59 = vsel %vm5356_vm7, %v743_v30, %v750_v49  ;;  %v5779_v1 = vld [vmem:[#allocation2 + $0xc] sm:$0xff]  }
  0x8a   : > { %954 = vst [vmem:[#allocation2 + $0x90] sm:$0xf] %v953_v57  ;;  %v813_v0 = vshrl.u32 %v545_v38, 16  ;;  %v816_v7 = vshll.u32 %v545_v38, 16  ;;  %v887_v19 = vsel %vm5714_vm10, %v582_v29, %v886_v58  ;;  %v1776_v28 = vshll.u32 %v5458_v24, 16 }
  0x8b   : > { %v5753_v48 = vld [vmem:[#allocation2 + $0x30] sm:$0xff]   ;;  %v807_v3 = vrot.slane %v805_v40, 7  ;;  %955 = vst [vmem:[#allocation2 + $0x94] sm:$0xf] %v751_v59  ;;  %v5773_v38 = vpack.c.b16 %v1163_v17, %v1163_v17  ;;  %v1197_v58 = vshrl.u32 %v5739_v50, 16  ;;  %v1201_v29 = vrot.slane %v1199_v12, 1 }
  0x8c   : > { %2309 = vmatmul.bf16.gmra.mxu0 %v5753_v48  ;;  %v5761_v31 = vrot.slane %v813_v0, 7  ;;  %888 = vst [vmem:[#allocation2 + $0x20] sm:$0x1] %v887_v19  ;;  %v1778_v47 = vrot.slane %v1776_v28, 1  ;;  %v893_v12 = vld [vmem:[#allocation2 + $0x2c] sm:$0x1] }
  0x8d   : > { %v810_v39 = vor.u32 %v808_v60, %v807_v3  ;;  %v811_v18 = vrot.slane %v807_v3, 4  ;;  %v1597_v23 = vld [vmem:[#allocation2 + $0x14] sm:$0x1]  ;;  %v1204_v60 = vshll.u32 %v5773_v38, 16  ;;  %v1202_v3 = vor.u32 %v1201_v29, %v1197_v58 }
  0x8e   : > { %v5764_v16 = vld [vmem:[#allocation2 + $0x60] sm:$0xff]   ;;  %v818_v21 = vor.u32 %v816_v7, %v5761_v31  ;;  %v1741_v49 = vunpack.c.l.b16 %v1597_v23  ;;  %v1020_v7 = vld [vmem:[#allocation2 + $0x14] sm:$0x1]  ;;  %v894_v24 = vsel %vm5714_vm10, %v599_v63, %v893_v12  ;;  %v900_v12 = vld [vmem:[#allocation2 + $0x38] sm:$0x1] }
  0x8f   : > { %2329 = vmatmul.bf16.gmra.mxu1 %v5764_v16  ;;  %v981_v30 = vsel %vm5367_vm8, %v810_v39, %v980_v9  ;;  %v1206_v0 = vrot.slane %v1204_v60, 1  ;;  %v1779_v39 = vor.u32 %v1778_v47, %v1774_v20  ;;  %v5117_v9 = vor.u32 %v5116_v52, %v5460_v26  ;;  %895 = vst [vmem:[#allocation2 + $0x2c] sm:$0x1] %v894_v24 }
  0x90   : > { %v819_v40 = vsel %vm5356_vm7, %v811_v18, %v818_v21  ;;  %982 = vst [vmem:[#allocation2 + $0xc0] sm:$0xf] %v981_v30  ;;  %v1757_v57 = vpack.c.b16 %v1741_v49, %v1741_v49  ;;  %v1164_v23 = vunpack.c.l.b16 %v1020_v7  ;;  %v1211_v26 = vshll.u32 %v5779_v1, 16 }
  0x91   : > { %983 = vst [vmem:[#allocation2 + $0xc4] sm:$0xf] %v819_v40  ;;  %v1207_v19 = vsel %vm1195_vm11, %v1202_v3, %v1206_v0  ;;  %v2029_v44 = vrot.slane %v5117_v9, 1  ;;  %v1788_v52 = vshll.u32 %v5557_v34, 16  ;;  %v1209_v60 = vshrl.u32 %v5779_v1, 16 }
  0x92   : > { %v5783_v2 = vld [vmem:[#allocation2 + $0x90] sm:$0xff]   ;;  %v1781_v59 = vshll.u32 %v1757_v57, 16  ;;  %v2030_v49 = vrot.slane %v1757_v57, 1  ;;  %v5793_v40 = vpack.c.b16 %v1164_v23, %v1164_v23  ;;  %v1213_v20 = vrot.slane %v1211_v26, 1  ;;  %v4711_v26 = vld [vmem:[%s6555_s4 + $0x230] sm:$0xff] }
  0x93   : > { %2349 = vmatmul.bf16.gmra.mxu2 %v5783_v2  ;;  %v1598_v21 = vld [vmem:[#allocation2 + $0x20] sm:$0x1]  ;;  %v1790_v3 = vrot.slane %v1788_v52, 1  ;;  %v616_v57 = vrot.slane %v5690_v10, 4  ;;  %3865 = vmatpush.bf16.msra.mxu0 %v4711_v26 }
  0x94   : > { %v1783_v18 = vrot.slane %v1781_v59, 1  ;;  %v1742_v30 = vunpack.c.l.b16 %v1598_v21  ;;  %v2031_v29 = vsel %vm1452_vm12, %v2029_v44, %v2030_v49  ;;  %v1216_v47 = vshll.u32 %v5793_v40, 16  ;;  %v1021_v9 = vld [vmem:[#allocation2 + $0x20] sm:$0x1]  ;;  %v4703_v44 = vld [vmem:[%s6555_s4 + $0x1f0] sm:$0xff] }
  0x95   : > { %v1786_v59 = vshrl.u32 %v5557_v34, 16  ;;  %v1214_v7 = vor.u32 %v1213_v20, %v1209_v60  ;;  %v901_v21 = vsel %vm5714_vm10, %v616_v57, %v900_v12  ;;  %v1165_v10 = vunpack.c.l.b16 %v1021_v9  ;;  %v4663_v49 = vld [vmem:[%s6555_s4 + $0xb0] sm:$0xff]  ;;  %3776 = vmatpush.bf16.msra.mxu3 %v4703_v44 }
  0x96   : > { %v1784_v28 = vsel %vm1195_vm11, %v1779_v39, %v1783_v18  ;;  %v1758_v58 = vpack.c.b16 %v1742_v30, %v1742_v30  ;;  %v1218_v63 = vrot.slane %v1216_v47, 1  ;;  %v5007_v39 = vld [vmem:[#allocation2 + $0x18] sm:$0xf0]  ;;  %v5008_v18 = vld [vmem:[#allocation2 + $0x18] sm:$0xe]  ;;  %v4695_v30 = vld [vmem:[%s6555_s4 + $0x1b0] sm:$0xff]  ;;  %2876 = vmatpush.bf16.msra.mxu1 %v4663_v49 }
  0x97   : > { %v5009_v23 = vor.u32 %v5008_v18, %v5007_v39  ;;  %v1599_v34 = vld [vmem:[#allocation2 + $0x2c] sm:$0x1]  ;;  %902 = vst [vmem:[#allocation2 + $0x38] sm:$0x1] %v901_v21  ;;  %3687 = vmatpush.bf16.msra.mxu2 %v4695_v30  ;;  %v5822_v47 = vpack.c.b16 %v1165_v10, %v1165_v10  ;;  %v5830_v18 = vld [vmem:[#allocation2 + $0x24] sm:$0xf0] }
  0x98   : > { %v5006_v17 = vld [vmem:[#allocation2 + $0xc0] sm:$0xff]   ;;  %v1793_v0 = vshll.u32 %v1758_v58, 16  ;;  %v1219_v24 = vsel %vm1195_vm11, %v1214_v7, %v1218_v63  ;;  %v2033_v60 = vrot.slane %v1758_v58, 1  ;;  %6572 = vst [vmem:[#allocation3_spill] sm:$0xff] %v5830_v18  ;;  %v1798_v9 = vshrl.u32 %v5624_v5, 16 }
  0x99   : > { %2369 = vmatmul.bf16.gmra.mxu3 %v5006_v17  ;;  %v1791_v17 = vor.u32 %v1790_v3, %v1786_v59  ;;  %v1800_v3 = vshll.u32 %v5624_v5, 16  ;;  %v1228_v39 = vshll.u32 %v5822_v47, 16  ;;  %v5828_v58 = vld [vmem:[#allocation2 + $0x24] sm:$0xff]  }
  0x9b   : > { %v1802_v12 = vrot.slane %v1800_v3, 1  ;;  %v1230_v21 = vrot.slane %v1228_v39, 1  ;;  %v1235_v3 = vshll.u32 %v5828_v58, 16  ;;  %v650_v39 = vrot.slane %v5503_v8, 4 }
  0x9c   : > { %2794 = vmatmul.bf16.vlgmr.msrb.gmra.mxu0 %v1207_v19  ;;  %v1795_v19 = vrot.slane %v1793_v0, 1  ;;  %v5119_v0 = vld [vmem:[#allocation2 + $0x24] sm:$0xe] }
  0x9d   : > { %v1803_v10 = vor.u32 %v1802_v12, %v1798_v9  ;;  %v5120_v49 = vor.u32 %v5119_v0, %v5626_v37  ;;  %v1812_v37 = vshll.u32 %v5753_v48, 16  ;;  %v1810_v9 = vshrl.u32 %v5753_v48, 16 }
  0x9e   : > { %v1796_v52 = vsel %vm1195_vm11, %v1791_v17, %v1795_v19 }
  0x9f   : > { %2383 = vmatmul.bf16.vlgmr.msrb.gmra.mxu1 %v1784_v28  ;;  %v5805_v28 = vld [vmem:[#allocation2 + $0x18] sm:$0xff]  }
  0xa0   : > { %v1223_v20 = vshll.u32 %v5805_v28, 16  ;;  %v1221_v7 = vshrl.u32 %v5805_v28, 16 }
  0xa2   : > { %v1225_v63 = vrot.slane %v1223_v20, 1 }
  0xa3   : > { %2472 = vmatmul.bf16.vlgmr.msrb.gmra.mxu2 %v2031_v29  ;;  %v2032_v29 = vrot.slane %v5009_v23, 1  ;;  %v1022_v23 = vld [vmem:[#allocation2 + $0x2c] sm:$0x1] }
  0xa4   : > { %v1226_v19 = vor.u32 %v1225_v63, %v1221_v7  ;;  %v1233_v7 = vshrl.u32 %v5828_v58, 16  ;;  %v1237_v63 = vrot.slane %v1235_v3, 1 }
  0xa5   : > { %v2034_v57 = vsel %vm1452_vm12, %v2032_v29, %v2033_v60 }
  0xa6   : > { %v1231_v26 = vsel %vm1195_vm11, %v1226_v19, %v1230_v21  ;;  %v5010_v21 = vld [vmem:[#allocation2 + $0x30] sm:$0xf0] }
  0xa9   : > { %2705 = vmatmul.bf16.vlgmr.msrb.gmra.mxu3 %v5739_v50  ;;  %v1743_v50 = vunpack.c.l.b16 %v1599_v34  ;;  %v907_v34 = vld [vmem:[#allocation2 + $0x44] sm:$0x1] }
  0xab   : > { %v1759_v59 = vpack.c.b16 %v1743_v50, %v1743_v50  ;;  %v1166_v50 = vunpack.c.l.b16 %v1022_v23  ;;  %v5011_v23 = vld [vmem:[#allocation2 + $0x30] sm:$0xe] }
  0xac   : > { %2799 = vmatmul.bf16.gmra.mxu0 %v1219_v24  ;;  %v633_v24 = vrot.slane %v5372_v27, 4  ;;  %v2035_v27 = vrot.slane %v5120_v49, 1  ;;  %v5012_v49 = vor.u32 %v5011_v23, %v5010_v21 }
  0xad   : > { %v1805_v17 = vshll.u32 %v1759_v59, 16  ;;  %v2036_v60 = vrot.slane %v1759_v59, 1  ;;  %v5840_v20 = vpack.c.b16 %v1166_v50, %v1166_v50  ;;  %v1814_v59 = vrot.slane %v1812_v37, 1  ;;  %v4694_v50 = vld [vmem:[%s6555_s4 + $0x1a8] sm:$0xff] }
  0xae   : > { %v908_v44 = vsel %vm5714_vm10, %v633_v24, %v907_v34  ;;  %v1023_v24 = vld [vmem:[#allocation2 + $0x38] sm:$0x1]  ;;  %v914_v34 = vld [vmem:[#allocation2 + $0x50] sm:$0x1]  ;;  %3688 = vmatpush.bf16.msra.mxu2 %v4694_v50  ;;  %v2038_v3 = vrot.slane %v5012_v49, 1 }
  0xaf   : > { %2388 = vmatmul.bf16.gmra.mxu1 %v1796_v52  ;;  %v1807_v30 = vrot.slane %v1805_v17, 1  ;;  %v1600_v52 = vld [vmem:[#allocation2 + $0x38] sm:$0x1]  ;;  %909 = vst [vmem:[#allocation2 + $0x44] sm:$0x1] %v908_v44  ;;  %v2037_v0 = vsel %vm1452_vm12, %v2035_v27, %v2036_v60  ;;  %v1238_v17 = vor.u32 %v1237_v63, %v1233_v7  ;;  %v915_v44 = vsel %vm5714_vm10, %v650_v39, %v914_v34  ;;  %v4710_v27 = vld [vmem:[%s6555_s4 + $0x228] sm:$0xff] }
  0xb0   : > { %v1744_v29 = vunpack.c.l.b16 %v1600_v52  ;;  %6573 = vst [vmem:[#allocation4_spill] sm:$0xff] %v5840_v20  ;;  %v1167_v52 = vunpack.c.l.b16 %v1023_v24  ;;  %3866 = vmatpush.bf16.msra.mxu0 %v4710_v27  ;;  %v921_v49 = vld [vmem:[#allocation2 + $0x5c] sm:$0x1] }
  0xb1   : > { %v1808_v5 = vsel %vm1195_vm11, %v1803_v10, %v1807_v30  ;;  %v1815_v10 = vor.u32 %v1814_v59, %v1810_v9  ;;  %916 = vst [vmem:[#allocation2 + $0x50] sm:$0x1] %v915_v44  ;;  %v5122_v59 = vld [vmem:[#allocation2 + $0x3c] sm:$0xe] }
  0xb2   : > { %v5868_v7 = vpack.c.b16 %v1167_v52, %v1167_v52  ;;  %v5123_v50 = vor.u32 %v5122_v59, %v5537_v46 }
  0xb3   : > { %2477 = vmatmul.bf16.gmra.mxu2 %v2034_v57  ;;  %v1760_v57 = vpack.c.b16 %v1744_v29, %v1744_v29  ;;  %v4662_v29 = vld [vmem:[%s6555_s4 + $0xa8] sm:$0xff] }
  0xb4   : > { %6574 = vst [vmem:[#allocation5_spill] sm:$0xff] %v5868_v7  ;;  %2877 = vmatpush.bf16.msra.mxu1 %v4662_v29  ;;  %v1252_v9 = vshll.u32 %v5868_v7, 16 }
  0xb5   : > { %v1817_v12 = vshll.u32 %v1760_v57, 16  ;;  %v2039_v37 = vrot.slane %v1760_v57, 1 }
  0xb6   : > { %v1601_v8 = vld [vmem:[#allocation2 + $0x44] sm:$0x1]  ;;  %v1254_v24 = vrot.slane %v1252_v9, 1 }
  0xb7   : > { %v1819_v30 = vrot.slane %v1817_v12, 1  ;;  %v2040_v39 = vsel %vm1452_vm12, %v2038_v3, %v2039_v37  ;;  %v5873_v12 = vld [vmem:[#allocation2 + $0x3c] sm:$0xff]   ;;  %v1024_v34 = vld [vmem:[#allocation2 + $0x44] sm:$0x1]  ;;  %v2041_v3 = vrot.slane %v5123_v50, 1 }
  0xb8   : > { %v1602_v29 = vld [vmem:[#allocation2 + $0x50] sm:$0x1]  ;;  %v1259_v46 = vshll.u32 %v5873_v12, 16  ;;  %v5013_v50 = vld [vmem:[#allocation2 + $0x48] sm:$0xf0] }
  0xb9   : > { %2710 = vmatmul.bf16.gmra.mxu3 %v5779_v1  ;;  %v1240_v1 = vshll.u32 %v5840_v20, 16  ;;  %v1820_v60 = vsel %vm1195_vm11, %v1815_v10, %v1819_v30  ;;  %v667_v30 = vrot.slane %v5619_v43, 4 }
  0xbb   : > { %v1242_v19 = vrot.slane %v1240_v1, 1  ;;  %v1824_v1 = vshll.u32 %v5535_v45, 16  ;;  %v922_v52 = vsel %vm5714_vm10, %v667_v30, %v921_v49 }
  0xbc   : > { %2804 = vmatmul.bf16.gmra.mxu0 %v1231_v26  ;;  %923 = vst [vmem:[#allocation2 + $0x5c] sm:$0x1] %v922_v52 }
  0xbd   : > { %v1243_v26 = vsel %vm1195_vm11, %v1238_v17, %v1242_v19  ;;  %v5875_v17 = vld [vmem:[#allocation2 + $0x3c] sm:$0xf0]  ;;  %v1822_v19 = vshrl.u32 %v5535_v45, 16  ;;  %v1826_v21 = vrot.slane %v1824_v1, 1  ;;  %v1168_v45 = vunpack.c.l.b16 %v1024_v34 }
  0xbe   : > { %6575 = vst [vmem:[#allocation6_spill] sm:$0xff] %v5875_v17  ;;  %v684_v34 = vrot.slane %v5710_v51, 4 }
  0xbf   : > { %2393 = vmatmul.bf16.gmra.mxu1 %v1808_v5  ;;  %v4702_v5 = vld [vmem:[%s6555_s4 + $0x1e8] sm:$0xff]  ;;  %v5893_v1 = vpack.c.b16 %v1168_v45, %v1168_v45  ;;  %v928_v45 = vld [vmem:[#allocation2 + $0x68] sm:$0x1] }
  0xc0   : > { %3777 = vmatpush.bf16.msra.mxu3 %v4702_v5  ;;  %v1255_v5 = vsel %vm1195_vm11, %v1815_v10, %v1254_v24  ;;  %v1836_v10 = vshll.u32 %v5593_v6, 16 }
  0xc1   : > { %6576 = vst [vmem:[#allocation7_spill] sm:$0xff] %v5893_v1 }
  0xc2   : > { %v1838_v24 = vrot.slane %v1836_v10, 1 }
  0xc3   : > { %2482 = vmatmul.bf16.gmra.mxu2 %v2037_v0 }
  0xc9   : > { %2715 = vmatmul.bf16.gmra.mxu3 %v5805_v28  ;;  %v1745_v28 = vunpack.c.l.b16 %v1601_v8 }
  0xcb   : > { %v1761_v63 = vpack.c.b16 %v1745_v28, %v1745_v28  ;;  %v1746_v28 = vunpack.c.l.b16 %v1602_v29  ;;  %v1025_v29 = vld [vmem:[#allocation2 + $0x50] sm:$0x1] }
  0xcc   : > { %2809 = vmatmul.bf16.gmra.mxu0 %v1243_v26  ;;  %v1827_v26 = vor.u32 %v1826_v21, %v1822_v19  ;;  %v1257_v19 = vshrl.u32 %v5873_v12, 16  ;;  %v1261_v21 = vrot.slane %v1259_v46, 1  ;;  %v5913_v46 = vld [vmem:[#allocation2 + $0x48] sm:$0xff]   ;;  %v1169_v10 = vunpack.c.l.b16 %v1025_v29 }
  0xcd   : > { %v5866_v0 = vpop.f32.mrf.mxu0  ;;  %v1829_v23 = vshll.u32 %v1761_v63, 16  ;;  %v2042_v37 = vrot.slane %v1761_v63, 1  ;;  %v1834_v63 = vshrl.u32 %v5593_v6, 16  ;;  %v929_v6 = vsel %vm5714_vm10, %v684_v34, %v928_v45 }
  0xce   : > { %930 = vst [vmem:[#allocation2 + $0x68] sm:$0x1] %v929_v6  ;;  %v5125_v6 = vld [vmem:[#allocation2 + $0x54] sm:$0xe] }
  0xcf   : > { %2398 = vmatmul.bf16.gmra.mxu1 %v1820_v60  ;;  %v1831_v8 = vrot.slane %v1829_v23, 1  ;;  %v1264_v23 = vshll.u32 %v5893_v1, 16 }
  0xd1   : > { %v5877_v57 = vpop.f32.mrf.mxu1  ;;  %v1832_v27 = vsel %vm1195_vm11, %v1827_v26, %v1831_v8  ;;  %v1262_v8 = vor.u32 %v1261_v21, %v1257_v19  ;;  %v1266_v52 = vrot.slane %v1264_v23, 1  ;;  %v4701_v19 = vld [vmem:[%s6555_s4 + $0x1e0] sm:$0xff] }
  0xd2   : > { %v4661_v21 = vld [vmem:[%s6555_s4 + $0xa0] sm:$0xff]  ;;  %3778 = vmatpush.bf16.msra.mxu3 %v4701_v19  ;;  %v1846_v19 = vshrl.u32 %v5651_v13, 16 }
  0xd3   : > { %2487 = vmatmul.bf16.gmra.mxu2 %v2040_v39  ;;  %v1762_v39 = vpack.c.b16 %v1746_v28, %v1746_v28  ;;  %v1267_v51 = vsel %vm1195_vm11, %v1262_v8, %v1266_v52  ;;  %v1271_v52 = vshll.u32 %v5913_v46, 16  ;;  %2878 = vmatpush.bf16.msra.mxu1 %v4661_v21 }
  0xd5   : > { %v5881_v44 = vpop.f32.mrf.mxu0  ;;  %v1841_v49 = vshll.u32 %v1762_v39, 16  ;;  %v2045_v8 = vrot.slane %v1762_v39, 1  ;;  %v1269_v39 = vshrl.u32 %v5913_v46, 16 }
  0xd7   : > { %v1843_v28 = vrot.slane %v1841_v49, 1 }
  0xd9   : > { %2720 = vmatmul.bf16.gmra.mxu3 %v5828_v58  ;;  %v5891_v60 = vpop.f32.mrf.mxu1  ;;  %v2043_v58 = vsel %vm1452_vm12, %v2041_v3, %v2042_v37  ;;  %v1603_v37 = vld [vmem:[#allocation2 + $0x5c] sm:$0x1] }
  0xda   : > { %v1747_v34 = vunpack.c.l.b16 %v1603_v37  ;;  %v5944_v37 = vld [vmem:[#allocation2 + $0x54] sm:$0xff]  }
  0xdb   : > { %v5889_v43 = vpop.f32.mrf.mxu2 }
  0xdc   : > { %2814 = vmatmul.bf16.gmra.mxu0 %v1255_v5  ;;  %v5898_v9 = vpop.f32.mrf.mxu3  ;;  %v5014_v5 = vld [vmem:[#allocation2 + $0x48] sm:$0xe]  ;;  %v1763_v45 = vpack.c.b16 %v1747_v34, %v1747_v34 }
  0xdd   : > { %6577 = vst [vmem:[#allocation8_spill] sm:$0xff] %v5898_v9  ;;  %v5015_v3 = vor.u32 %v5014_v5, %v5013_v50  ;;  %v5934_v50 = vpack.c.b16 %v1169_v10, %v1169_v10  ;;  %v5946_v10 = vld [vmem:[#allocation2 + $0x54] sm:$0xf0] }
  0xde   : > { %6580 = vst [vmem:[#allocation11_spill] sm:$0xff] %v5946_v10  ;;  %v1604_v10 = vld [vmem:[#allocation2 + $0x68] sm:$0x1] }
  0xdf   : > { %2403 = vmatmul.bf16.gmra.mxu1 %v1832_v27  ;;  %v5900_v59 = vpop.f32.mrf.mxu0  ;;  %v1839_v27 = vor.u32 %v1838_v24, %v1834_v63  ;;  %v2044_v49 = vrot.slane %v5015_v3, 1  ;;  %6579 = vst [vmem:[#allocation10_spill] sm:$0xff] %v5934_v50  ;;  %v1273_v3 = vrot.slane %v1271_v52, 1  ;;  %v1026_v52 = vld [vmem:[#allocation2 + $0x5c] sm:$0x1] }
  0xe1   : > { %v1844_v24 = vsel %vm1195_vm11, %v1839_v27, %v1843_v28  ;;  %v1848_v27 = vshll.u32 %v5651_v13, 16  ;;  %v2046_v28 = vsel %vm1452_vm12, %v2044_v49, %v2045_v8  ;;  %v1274_v49 = vor.u32 %v1273_v3, %v1269_v39 }
  0xe2   : > { %v5906_v30 = vpop.f32.mrf.mxu1  ;;  %v5126_v13 = vor.u32 %v5125_v6, %v5653_v41  ;;  %v1748_v3 = vunpack.c.l.b16 %v1604_v10  ;;  %v1860_v6 = vshll.u32 %v5764_v16, 16 }
  0xe3   : > { %2492 = vmatmul.bf16.gmra.mxu2 %v2043_v58  ;;  %v5908_v26 = vpop.f32.mrf.mxu2  ;;  %v4693_v58 = vld [vmem:[%s6555_s4 + $0x1a0] sm:$0xff]  ;;  %v1850_v21 = vrot.slane %v1848_v27, 1 }
  0xe4   : > { %v5925_v23 = vpop.f32.mrf.mxu3  ;;  %3689 = vmatpush.bf16.msra.mxu2 %v4693_v58  ;;  %v701_v58 = vrot.slane %v5387_v42, 4 }
  0xe5   : > { %6578 = vst [vmem:[#allocation9_spill] sm:$0xff] %v5925_v23  ;;  %v935_v23 = vld [vmem:[#allocation2 + $0x74] sm:$0x1]  ;;  %v1851_v1 = vor.u32 %v1850_v21, %v1846_v19  ;;  %v2048_v19 = vrot.slane %v1763_v45, 1 }
  0xe6   : > { %v936_v42 = vsel %vm5714_vm10, %v701_v58, %v935_v23  ;;  %v1283_v23 = vshll.u32 %v5944_v37, 16 }
  0xe7   : > { %v5927_v63 = vpop.f32.mrf.mxu0  ;;  %937 = vst [vmem:[#allocation2 + $0x74] sm:$0x1] %v936_v42 }
  0xe9   : > { %2725 = vmatmul.bf16.gmra.mxu3 %v5753_v48  ;;  %v4709_v48 = vld [vmem:[%s6555_s4 + $0x220] sm:$0xff] }
  0xea   : > { %v5936_v5 = vpop.f32.mrf.mxu1  ;;  %3867 = vmatpush.bf16.msra.mxu0 %v4709_v48  ;;  %v1853_v48 = vshll.u32 %v1763_v45, 16 }
  0xeb   : > { %v5938_v29 = vpop.f32.mrf.mxu2 }
  0xec   : > { %2819 = vmatmul.bf16.gmra.mxu0 %v1267_v51  ;;  %v1276_v51 = vshll.u32 %v5934_v50, 16  ;;  %v1855_v9 = vrot.slane %v1853_v48, 1  ;;  %v1764_v48 = vpack.c.b16 %v1748_v3, %v1748_v3  ;;  %v5017_v3 = vld [vmem:[#allocation2 + $0x60] sm:$0xe] }
  0xee   : > { %v1278_v8 = vrot.slane %v1276_v51, 1  ;;  %v1856_v39 = vsel %vm1195_vm11, %v1851_v1, %v1855_v9  ;;  %v2047_v51 = vrot.slane %v5126_v13, 1  ;;  %v1281_v1 = vshrl.u32 %v5944_v37, 16 }
  0xef   : > { %2408 = vmatmul.bf16.gmra.mxu1 %v1844_v24  ;;  %v1285_v9 = vrot.slane %v1283_v23, 1  ;;  %v1865_v42 = vshll.u32 %v1764_v48, 16 }
  0xf0   : > { %v1279_v27 = vsel %vm1195_vm11, %v1274_v49, %v1278_v8  ;;  %v718_v49 = vrot.slane %v5522_v32, 4  ;;  %v1858_v8 = vshrl.u32 %v5764_v16, 16 }
  0xf1   : > { %v1286_v13 = vor.u32 %v1285_v9, %v1281_v1  ;;  %v4692_v1 = vld [vmem:[%s6555_s4 + $0x198] sm:$0xff] }
  0xf2   : > { %v5950_v24 = vpop.f32.mrf.mxu3  ;;  %v4700_v9 = vld [vmem:[%s6555_s4 + $0x1d8] sm:$0xff]  ;;  %3690 = vmatpush.bf16.msra.mxu2 %v4692_v1 }
  0xf3   : > { %2497 = vmatmul.bf16.gmra.mxu2 %v2046_v28  ;;  %6581 = vst [vmem:[#allocation12_spill] sm:$0xff] %v5950_v24  ;;  %v5952_v34 = vpop.f32.mrf.mxu0  ;;  %v5958_v28 = vpop.f32.mrf.mxu2  ;;  %v1170_v24 = vunpack.c.l.b16 %v1026_v52  ;;  %v1862_v52 = vrot.slane %v1860_v6, 1  ;;  %3779 = vmatpush.bf16.msra.mxu3 %v4700_v9  ;;  %v1870_v9 = vshrl.u32 %v5540_v54, 16 }
  0xf4   : > { %6582 = vst [vmem:[#allocation13_spill] sm:$0xff] %v5958_v28 }
  0xf5   : > { %v5964_v21 = vpack.c.b16 %v1170_v24, %v1170_v24  ;;  %v1863_v23 = vor.u32 %v1862_v52, %v1858_v8 }
  0xf6   : > { %v5954_v50 = vpop.f32.mrf.mxu1 }
  0xf7   : > { %6583 = vst [vmem:[#allocation14_spill] sm:$0xff] %v5964_v21  ;;  %v1288_v10 = vshll.u32 %v5964_v21, 16 }
  0xf9   : > { %2730 = vmatmul.bf16.gmra.mxu3 %v5873_v12  ;;  %v2049_v12 = vsel %vm1452_vm12, %v2047_v51, %v2048_v19  ;;  %v1027_v51 = vld [vmem:[#allocation2 + $0x68] sm:$0x1]  ;;  %v942_v19 = vld [vmem:[#allocation2 + $0x80] sm:$0x1] }
  0xfa   : > { %v5967_v58 = vpop.f32.mrf.mxu3  ;;  %v943_v21 = vsel %vm5714_vm10, %v718_v49, %v942_v19  ;;  %v1171_v20 = vunpack.c.l.b16 %v1027_v51  ;;  %v5128_v51 = vld [vmem:[#allocation2 + $0x6c] sm:$0xe] }
  0xfb   : > { %6584 = vst [vmem:[#allocation15_spill] sm:$0xff] %v5967_v58  ;;  %v5969_v41 = vpop.f32.mrf.mxu0  ;;  %v1867_v58 = vrot.slane %v1865_v42, 1  ;;  %v2051_v42 = vrot.slane %v1764_v48, 1  ;;  %v6013_v19 = vld [vmem:[#allocation2 + $0x6c] sm:$0xff]  }
  0xfc   : > { %2824 = vmatmul.bf16.gmra.mxu0 %v1279_v27  ;;  %v1290_v27 = vrot.slane %v1288_v10, 1  ;;  %944 = vst [vmem:[#allocation2 + $0x80] sm:$0x1] %v943_v21 }
  0xfd   : > { %v1868_v49 = vsel %vm1195_vm11, %v1863_v23, %v1867_v58  ;;  %v1872_v58 = vshll.u32 %v5540_v54, 16 }
  0xfe   : > { %v5975_v45 = vpop.f32.mrf.mxu1  ;;  %v1291_v6 = vsel %vm1195_vm11, %v1286_v13, %v1290_v27  ;;  %v4660_v13 = vld [vmem:[%s6555_s4 + $0x98] sm:$0xff] }
  0xff   : > { %2413 = vmatmul.bf16.gmra.mxu1 %v1856_v39  ;;  %v5016_v39 = vld [vmem:[#allocation2 + $0x60] sm:$0xf0]  ;;  %v4708_v27 = vld [vmem:[%s6555_s4 + $0x218] sm:$0xff] }
 0x100   : > { %v5018_v32 = vor.u32 %v5017_v3, %v5016_v39  ;;  %2879 = vmatpush.bf16.msra.mxu1 %v4660_v13  ;;  %3868 = vmatpush.bf16.msra.mxu0 %v4708_v27  ;;  %v949_v27 = vld [vmem:[#allocation2 + $0x8c] sm:$0x1] }
 0x102   : > { %v5977_v24 = vpop.f32.mrf.mxu2  ;;  %v2050_v21 = vrot.slane %v5018_v32, 1  ;;  %v6015_v32 = vld [vmem:[#allocation2 + $0x6c] sm:$0xf0] }
 0x103   : > { %6585 = vst [vmem:[#allocation16_spill] sm:$0xff] %v5977_v24  ;;  %2502 = vmatmul.bf16.gmra.mxu2 %v2049_v12  ;;  %v1605_v12 = vld [vmem:[#allocation2 + $0x74] sm:$0x1]  ;;  %v1029_v24 = vld [vmem:[#allocation2 + $0x80] sm:$0x1] }
 0x104   : > { %v5983_v17 = vpop.f32.mrf.mxu3  ;;  %v1749_v8 = vunpack.c.l.b16 %v1605_v12  ;;  %v2052_v3 = vsel %vm1452_vm12, %v2050_v21, %v2051_v42  ;;  %6589 = vst [vmem:[#allocation20_spill] sm:$0xff] %v6015_v32  ;;  %v735_v12 = vrot.slane %v5630_v11, 4  ;;  %v1028_v42 = vld [vmem:[#allocation2 + $0x74] sm:$0x1]  ;;  %v5129_v11 = vor.u32 %v5128_v51, %v5542_v55 }
 0x105   : > { %6586 = vst [vmem:[#allocation17_spill] sm:$0xff] %v5983_v17  ;;  %v1172_v54 = vunpack.c.l.b16 %v1028_v42 }
 0x106   : > { %v1765_v39 = vpack.c.b16 %v1749_v8, %v1749_v8  ;;  %v950_v32 = vsel %vm5714_vm10, %v735_v12, %v949_v27  ;;  %v1307_v27 = vshll.u32 %v6013_v19, 16 }
 0x107   : > { %951 = vst [vmem:[#allocation2 + $0x8c] sm:$0x1] %v950_v32 }
 0x108   : > { %v1877_v8 = vshll.u32 %v1765_v39, 16  ;;  %v2054_v12 = vrot.slane %v1765_v39, 1 }
 0x109   : > { %v5985_v7 = vpop.f32.mrf.mxu0  ;;  %2735 = vmatmul.bf16.gmra.mxu3 %v5913_v46  ;;  %v6000_v46 = vpack.c.b16 %v1171_v20, %v1171_v20 }
 0x10a   : > { %v5998_v52 = vpop.f32.mrf.mxu2  ;;  %v1879_v17 = vrot.slane %v1877_v8, 1  ;;  %v2053_v8 = vrot.slane %v5129_v11, 1  ;;  %v752_v11 = vrot.slane %v5736_v14, 4 }
 0x10b   : > { %6587 = vst [vmem:[#allocation18_spill] sm:$0xff] %v5998_v52  ;;  %v1300_v20 = vshll.u32 %v6000_v46, 16  ;;  %v1606_v52 = vld [vmem:[#allocation2 + $0x80] sm:$0x1] }
 0x10c   : > { %v5995_v10 = vpop.f32.mrf.mxu1  ;;  %2829 = vmatmul.bf16.gmra.mxu0 %v1291_v6  ;;  %6588 = vst [vmem:[#allocation19_spill] sm:$0xff] %v6000_v46  ;;  %v6017_v6 = vpop.f32.mrf.mxu3 }
 0x10d   : > { %6590 = vst [vmem:[#allocation21_spill] sm:$0xff] %v6017_v6  ;;  %v1302_v21 = vrot.slane %v1300_v20, 1 }
 0x10f   : > { %2418 = vmatmul.bf16.gmra.mxu1 %v1868_v49  ;;  %v1874_v49 = vrot.slane %v1872_v58, 1 }
 0x111   : > { %v6010_v48 = vpop.f32.mrf.mxu0  ;;  %v1875_v46 = vor.u32 %v1874_v49, %v1870_v9  ;;  %v1750_v9 = vunpack.c.l.b16 %v1606_v52  ;;  %v1309_v52 = vrot.slane %v1307_v27, 1  ;;  %v956_v27 = vld [vmem:[#allocation2 + $0x98] sm:$0x1] }
 0x112   : > { %v957_v14 = vsel %vm5714_vm10, %v752_v11, %v956_v27 }
 0x113   : > { %2507 = vmatmul.bf16.gmra.mxu2 %v2052_v3  ;;  %v1303_v3 = vsel %vm1195_vm11, %v1863_v23, %v1302_v21  ;;  %v1880_v20 = vsel %vm1195_vm11, %v1875_v46, %v1879_v17  ;;  %v5112_v23 = vld [vmem:[#allocation2 + $0x78] sm:$0xff]   ;;  %v1766_v32 = vpack.c.b16 %v1750_v9, %v1750_v9  ;;  %v1305_v17 = vshrl.u32 %v6013_v19, 16  ;;  %958 = vst [vmem:[#allocation2 + $0x98] sm:$0x1] %v957_v14 }
 0x114   : > { %v6020_v1 = vpop.f32.mrf.mxu1  ;;  %v1884_v51 = vshll.u32 %v5112_v23, 16  ;;  %v1882_v39 = vshrl.u32 %v5112_v23, 16 }
 0x116   : > { %v6023_v13 = vpop.f32.mrf.mxu2  ;;  %v1886_v42 = vrot.slane %v1884_v51, 1 }
 0x117   : > { %6591 = vst [vmem:[#allocation22_spill] sm:$0xff] %v6023_v13  ;;  %v6036_v13 = vpack.c.b16 %v1172_v54, %v1172_v54  ;;  %v1889_v54 = vshll.u32 %v1766_v32, 16 }
 0x118   : > { %v1887_v28 = vor.u32 %v1886_v42, %v1882_v39  ;;  %v2057_v42 = vrot.slane %v1766_v32, 1  ;;  %v1896_v32 = vshll.u32 %v5670_v35, 16 }
 0x119   : > { %v6027_v6 = vpop.f32.mrf.mxu0  ;;  %2740 = vmatmul.bf16.gmra.mxu3 %v5944_v37  ;;  %6593 = vst [vmem:[#allocation24_spill] sm:$0xff] %v6036_v13  ;;  %v2055_v37 = vsel %vm1452_vm12, %v2053_v8, %v2054_v12  ;;  %v1312_v46 = vshll.u32 %v6036_v13, 16  ;;  %v5019_v12 = vld [vmem:[#allocation2 + $0x78] sm:$0xf0]  ;;  %v1891_v23 = vrot.slane %v1889_v54, 1 }
 0x11b   : > { %v1314_v9 = vrot.slane %v1312_v46, 1 }
 0x11c   : > { %v2384_v58 = vpop.f32.mrf.mxu1  ;;  %2834 = vmatmul.bf16.gmra.mxu0 %v1303_v3  ;;  %v6033_v49 = vpop.f32.mrf.mxu3 }
 0x11d   : > { %6592 = vst [vmem:[#allocation23_spill] sm:$0xff] %v6033_v49  ;;  %v1310_v49 = vor.u32 %v1309_v52, %v1305_v17  ;;  %v2385_v8 = vadd.f32 %v2384_v58, %v5866_v0  ;;  %v1607_v17 = vld [vmem:[#allocation2 + $0x8c] sm:$0x1]  ;;  %v1173_v52 = vunpack.c.l.b16 %v1029_v24  ;;  %v6055_v0 = vld [vmem:[#allocation2 + $0x78] sm:$0xff]  }
 0x11e   : > { %v6038_v55 = vpop.f32.mrf.mxu2  ;;  %v4699_v58 = vld [vmem:[%s6555_s4 + $0x1d0] sm:$0xff]  ;;  %v1317_v14 = vshrl.u32 %v6055_v0, 16 }
 0x11f   : > { %6594 = vst [vmem:[#allocation25_spill] sm:$0xff] %v6038_v55  ;;  %2423 = vmatmul.bf16.gmra.mxu1 %v1880_v20  ;;  %v5020_v55 = vld [vmem:[#allocation2 + $0x78] sm:$0xe]  ;;  %v6065_v11 = vpack.c.b16 %v1173_v52, %v1173_v52  ;;  %3780 = vmatpush.bf16.msra.mxu3 %v4699_v58  ;;  %v6083_v52 = vld [vmem:[#allocation2 + $0x84] sm:$0xff]   ;;  %v769_v58 = vrot.slane %v5435_v4, 4 }
 0x121   : > { %v6041_v21 = vpop.f32.mrf.mxu0  ;;  %6596 = vst [vmem:[#allocation27_spill] sm:$0xff] %v6065_v11 }
 0x123   : > { %2512 = vmatmul.bf16.gmra.mxu2 %v2055_v37  ;;  %v5021_v37 = vor.u32 %v5020_v55, %v5019_v12  ;;  %v1892_v55 = vsel %vm1195_vm11, %v1887_v28, %v1891_v23  ;;  %v4707_v28 = vld [vmem:[%s6555_s4 + $0x210] sm:$0xff]  ;;  %v5131_v23 = vld [vmem:[#allocation2 + $0x84] sm:$0xe] }
 0x124   : > { %v2386_v3 = vpop.f32.mrf.mxu1  ;;  %v6046_v20 = vpop.f32.mrf.mxu3  ;;  %3869 = vmatpush.bf16.msra.mxu0 %v4707_v28 }
 0x125   : > { %6595 = vst [vmem:[#allocation26_spill] sm:$0xff] %v6046_v20  ;;  %v1315_v20 = vsel %vm1195_vm11, %v1310_v49, %v1314_v9  ;;  %v1751_v49 = vunpack.c.l.b16 %v1607_v17  ;;  %v2056_v39 = vrot.slane %v5021_v37, 1  ;;  %v2387_v9 = vadd.f32 %v2386_v3, %v5881_v44 }
 0x126   : > { %v2473_v18 = vpop.f32.mrf.mxu2  ;;  %v1324_v17 = vshll.u32 %v6065_v11, 16  ;;  %v963_v11 = vld [vmem:[#allocation2 + $0xa4] sm:$0x1] }
 0x127   : > { %v2474_v13 = vadd.f32 %v2473_v18, %v2385_v8  ;;  %v4691_v18 = vld [vmem:[%s6555_s4 + $0x190] sm:$0xff]  ;;  %v1767_v27 = vpack.c.b16 %v1751_v49, %v1751_v49  ;;  %v2058_v44 = vsel %vm1452_vm12, %v2056_v39, %v2057_v42  ;;  %v1898_v49 = vrot.slane %v1896_v32, 1 }
 0x128   : > { %3691 = vmatpush.bf16.msra.mxu2 %v4691_v18  ;;  %v4659_v8 = vld [vmem:[%s6555_s4 + $0x90] sm:$0xff] }
 0x129   : > { %v6051_v51 = vpop.f32.mrf.mxu0  ;;  %2745 = vmatmul.bf16.gmra.mxu3 %v5764_v16  ;;  %v1319_v16 = vshll.u32 %v6055_v0, 16  ;;  %2880 = vmatpush.bf16.msra.mxu1 %v4659_v8  ;;  %v6085_v18 = vld [vmem:[#allocation2 + $0x84] sm:$0xf0]  ;;  %v1030_v8 = vld [vmem:[#allocation2 + $0x8c] sm:$0x1] }
 0x12a   : > { %6598 = vst [vmem:[#allocation29_spill] sm:$0xff] %v6085_v18 }
 0x12b   : > { %v1321_v37 = vrot.slane %v1319_v16, 1 }
 0x12c   : > { %v2389_v46 = vpop.f32.mrf.mxu1  ;;  %2839 = vmatmul.bf16.gmra.mxu0 %v1315_v20  ;;  %v2706_v24 = vpop.f32.mrf.mxu3 }
 0x12d   : > { %v2707_v54 = vadd.f32 %v2706_v24, %v2474_v13  ;;  %v1901_v24 = vshll.u32 %v1767_v27, 16  ;;  %v1322_v42 = vor.u32 %v1321_v37, %v1317_v14  ;;  %v2390_v16 = vadd.f32 %v2389_v46, %v5900_v59  ;;  %v1608_v14 = vld [vmem:[#allocation2 + $0x98] sm:$0x1] }
 0x12e   : > { %v2475_v20 = vpop.f32.mrf.mxu2  ;;  %v1174_v37 = vunpack.c.l.b16 %v1030_v8  ;;  %v786_v8 = vrot.slane %v5562_v15, 4 }
 0x12f   : > { %2428 = vmatmul.bf16.gmra.mxu1 %v1892_v55  ;;  %v2476_v12 = vadd.f32 %v2475_v20, %v2387_v9  ;;  %v6076_v13 = vadd.f32 %v6027_v6, %v2707_v54  ;;  %v1894_v6 = vshrl.u32 %v5670_v35, 16  ;;  %v1326_v54 = vrot.slane %v1324_v17, 1 }
 0x130   : > { %v5132_v20 = vor.u32 %v5131_v23, %v5672_v36  ;;  %v1903_v4 = vrot.slane %v1901_v24, 1 }
 0x131   : > { %6597 = vst [vmem:[#allocation28_spill] sm:$0xff] %v6076_v13  ;;  %v6079_v3 = vpop.f32.mrf.mxu0  ;;  %v1899_v13 = vor.u32 %v1898_v49, %v1894_v6  ;;  %v1327_v32 = vsel %vm1195_vm11, %v1322_v42, %v1326_v54  ;;  %v6102_v6 = vpack.c.b16 %v1174_v37, %v1174_v37 }
 0x132   : > { %v2059_v17 = vrot.slane %v5132_v20, 1 }
 0x133   : > { %2517 = vmatmul.bf16.gmra.mxu2 %v2058_v44  ;;  %v964_v44 = vsel %vm5714_vm10, %v769_v58, %v963_v11  ;;  %v1904_v46 = vsel %vm1195_vm11, %v1899_v13, %v1903_v4  ;;  %v2060_v11 = vrot.slane %v1767_v27, 1  ;;  %v1331_v58 = vshll.u32 %v6083_v52, 16 }
 0x134   : > { %v2391_v55 = vpop.f32.mrf.mxu1  ;;  %v2708_v39 = vpop.f32.mrf.mxu3  ;;  %965 = vst [vmem:[#allocation2 + $0xa4] sm:$0x1] %v964_v44 }
 0x135   : > { %v2709_v9 = vadd.f32 %v2708_v39, %v2476_v12  ;;  %v1752_v12 = vunpack.c.l.b16 %v1608_v14  ;;  %v2392_v24 = vadd.f32 %v2391_v55, %v5927_v63  ;;  %v2061_v54 = vsel %vm1452_vm12, %v2059_v17, %v2060_v11  ;;  %v970_v11 = vld [vmem:[#allocation2 + $0xb0] sm:$0x1] }
 0x136   : > { %v2478_v28 = vpop.f32.mrf.mxu2  ;;  %v1906_v63 = vshrl.u32 %v5783_v2, 16 }
 0x137   : > { %v2479_v18 = vadd.f32 %v2478_v28, %v2390_v16  ;;  %v6097_v59 = vadd.f32 %v6041_v21, %v2709_v9  ;;  %v1908_v21 = vshll.u32 %v5783_v2, 16  ;;  %v6106_v42 = vpack.c.b16 %v1752_v12, %v1752_v12  ;;  %v5023_v12 = vld [vmem:[#allocation2 + $0x90] sm:$0xe] }
 0x138   : > { %v1329_v9 = vshrl.u32 %v6083_v52, 16  ;;  %v1333_v16 = vrot.slane %v1331_v58, 1 }
 0x139   : > { %v6093_v35 = vpop.f32.mrf.mxu0  ;;  %2750 = vmatmul.bf16.gmra.mxu3 %v6013_v19  ;;  %v1910_v55 = vrot.slane %v1908_v21, 1  ;;  %v1913_v20 = vshll.u32 %v6106_v42, 16 }
 0x13a   : > { %v1334_v44 = vor.u32 %v1333_v16, %v1329_v9 }
 0x13b   : > { %v1911_v17 = vor.u32 %v1910_v55, %v1906_v63  ;;  %v1915_v15 = vrot.slane %v1913_v20, 1 }
 0x13c   : > { %v2394_v36 = vpop.f32.mrf.mxu1  ;;  %2844 = vmatmul.bf16.gmra.mxu0 %v1327_v32  ;;  %v2711_v23 = vpop.f32.mrf.mxu3 }
 0x13d   : > { %v2712_v49 = vadd.f32 %v2711_v23, %v2479_v18  ;;  %v1336_v18 = vshll.u32 %v6102_v6, 16  ;;  %v2395_v37 = vadd.f32 %v2394_v36, %v5952_v34  ;;  %v1031_v23 = vld [vmem:[#allocation2 + $0x98] sm:$0x1]  ;;  %v6129_v36 = vld [vmem:[#allocation2 + $0x90] sm:$0xff]  }
 0x13e   : > { %v2480_v39 = vpop.f32.mrf.mxu2  ;;  %v1343_v63 = vshll.u32 %v6129_v36, 16 }
 0x13f   : > { %2433 = vmatmul.bf16.gmra.mxu1 %v1904_v46  ;;  %v2481_v19 = vadd.f32 %v2480_v39, %v2392_v24  ;;  %v6109_v13 = vadd.f32 %v6051_v51, %v2712_v49  ;;  %v1338_v32 = vrot.slane %v1336_v18, 1  ;;  %v5022_v46 = vld [vmem:[#allocation2 + $0x90] sm:$0xf0]  ;;  %v1609_v49 = vld [vmem:[#allocation2 + $0xa4] sm:$0x1]  ;;  %v971_v24 = vsel %vm5714_vm10, %v786_v8, %v970_v11 }
 0x140   : > { %v5024_v39 = vor.u32 %v5023_v12, %v5022_v46  ;;  %972 = vst [vmem:[#allocation2 + $0xb0] sm:$0x1] %v971_v24  ;;  %v1753_v9 = vunpack.c.l.b16 %v1609_v49  ;;  %v1916_v18 = vsel %vm1195_vm11, %v1911_v17, %v1915_v15  ;;  %v5134_v12 = vld [vmem:[#allocation2 + $0x9c] sm:$0xe]  ;;  %v6161_v49 = vld [vmem:[#allocation2 + $0x9c] sm:$0xf0] }
 0x141   : > { %v6112_v27 = vpop.f32.mrf.mxu0  ;;  %v1339_v34 = vsel %vm1195_vm11, %v1334_v44, %v1338_v32  ;;  %v4658_v44 = vld [vmem:[%s6555_s4 + $0x88] sm:$0xff] }
 0x142   : > { %v4706_v32 = vld [vmem:[%s6555_s4 + $0x208] sm:$0xff]  ;;  %2881 = vmatpush.bf16.msra.mxu1 %v4658_v44 }
 0x143   : > { %2522 = vmatmul.bf16.gmra.mxu2 %v2061_v54  ;;  %v4690_v54 = vld [vmem:[%s6555_s4 + $0x188] sm:$0xff]  ;;  %3870 = vmatpush.bf16.msra.mxu0 %v4706_v32 }
 0x144   : > { %v2396_v28 = vpop.f32.mrf.mxu1  ;;  %v2713_v51 = vpop.f32.mrf.mxu3  ;;  %3692 = vmatpush.bf16.msra.mxu2 %v4690_v54  ;;  %v6159_v15 = vld [vmem:[#allocation2 + $0x9c] sm:$0xff]  }
 0x145   : > { %v2397_v4 = vadd.f32 %v2396_v28, %v5969_v41  ;;  %v2714_v14 = vadd.f32 %v2713_v51, %v2481_v19  ;;  %v1175_v19 = vunpack.c.l.b16 %v1031_v23  ;;  %v2063_v28 = vrot.slane %v6106_v42, 1 }
 0x146   : > { %v2483_v2 = vpop.f32.mrf.mxu2  ;;  %v1341_v42 = vshrl.u32 %v6129_v36, 16  ;;  %v1345_v23 = vrot.slane %v1343_v63, 1 }
 0x147   : > { %v2484_v58 = vadd.f32 %v2483_v2, %v2395_v37  ;;  %v6124_v21 = vadd.f32 %v6079_v3, %v2714_v14  ;;  %v4698_v3 = vld [vmem:[%s6555_s4 + $0x1c8] sm:$0xff]  ;;  %v6142_v20 = vpack.c.b16 %v1175_v19, %v1175_v19  ;;  %v1920_v14 = vshll.u32 %v5549_v61, 16 }
 0x148   : > { %3781 = vmatpush.bf16.msra.mxu3 %v4698_v3  ;;  %3693 = vmatpush.bf16.msra.mxu2 %v4689_v22 }
 0x149   : > { %v6126_v41 = vpop.f32.mrf.mxu0  ;;  %2755 = vmatmul.bf16.gmra.mxu3 %v6055_v0  ;;  %v2062_v0 = vrot.slane %v5024_v39, 1  ;;  %v1918_v39 = vshrl.u32 %v5549_v61, 16 }
 0x14b   : > { %v2064_v2 = vsel %vm1452_vm12, %v2062_v0, %v2063_v28  ;;  %v977_v0 = vld [vmem:[#allocation2 + $0xbc] sm:$0x1] }
 0x14c   : > { %v2399_v16 = vpop.f32.mrf.mxu1  ;;  %2849 = vmatmul.bf16.gmra.mxu0 %v1339_v34  ;;  %v2716_v55 = vpop.f32.mrf.mxu3  ;;  %v1922_v34 = vrot.slane %v1920_v14, 1  ;;  %v1610_v14 = vld [vmem:[#allocation2 + $0xb0] sm:$0x1] }
 0x14d   : > { %v2400_v8 = vadd.f32 %v2399_v16, %v5985_v7  ;;  %v2717_v51 = vadd.f32 %v2716_v55, %v2484_v58  ;;  %v1769_v7 = vpack.c.b16 %v1753_v9, %v1753_v9  ;;  %v1348_v58 = vshll.u32 %v6142_v20, 16 }
 0x14e   : > { %v2485_v37 = vpop.f32.mrf.mxu2  ;;  %v5135_v55 = vor.u32 %v5134_v12, %v5551_v62 }
 0x14f   : > { %2438 = vmatmul.bf16.gmra.mxu1 %v1916_v18  ;;  %v2486_v46 = vadd.f32 %v2485_v37, %v2397_v4  ;;  %v6153_v17 = vadd.f32 %v6093_v35, %v2717_v51  ;;  %v803_v4 = vrot.slane %v5634_v33, 4  ;;  %v1925_v19 = vshll.u32 %v1769_v7, 16  ;;  %v1032_v18 = vld [vmem:[#allocation2 + $0xa4] sm:$0x1] }
 0x150   : > { %v1346_v35 = vor.u32 %v1345_v23, %v1341_v42  ;;  %v1350_v9 = vrot.slane %v1348_v58, 1  ;;  %v1923_v51 = vor.u32 %v1922_v34, %v1918_v39  ;;  %v1176_v37 = vunpack.c.l.b16 %v1032_v18 }
 0x151   : > { %v6156_v11 = vpop.f32.mrf.mxu0  ;;  %v1927_v33 = vrot.slane %v1925_v19, 1  ;;  %v978_v44 = vsel %vm5714_vm10, %v803_v4, %v977_v0  ;;  %v2065_v42 = vrot.slane %v5135_v55, 1  ;;  %v2066_v23 = vrot.slane %v1769_v7, 1 }
 0x152   : > { %v1351_v32 = vsel %vm1195_vm11, %v1346_v35, %v1350_v9  ;;  %979 = vst [vmem:[#allocation2 + $0xbc] sm:$0x1] %v978_v44  ;;  %v6178_v58 = vpack.c.b16 %v1176_v37, %v1176_v37  ;;  %v1353_v7 = vshrl.u32 %v6159_v15, 16  ;;  %v820_v55 = vrot.slane %v5761_v31, 4  ;;  %v1033_v37 = vld [vmem:[#allocation2 + $0xb0] sm:$0x1] }
 0x153   : > { %2527 = vmatmul.bf16.gmra.mxu2 %v2064_v2  ;;  %v1355_v2 = vshll.u32 %v6159_v15, 16  ;;  %v2067_v35 = vsel %vm1452_vm12, %v2065_v42, %v2066_v23 }
 0x154   : > { %v2401_v24 = vpop.f32.mrf.mxu1  ;;  %v2718_v54 = vpop.f32.mrf.mxu3 }
 0x155   : > { %v2402_v3 = vadd.f32 %v2401_v24, %v6010_v48  ;;  %v2719_v16 = vadd.f32 %v2718_v54, %v2486_v46  ;;  %v1754_v46 = vunpack.c.l.b16 %v1610_v14  ;;  %v5113_v24 = vld [vmem:[#allocation2 + $0xa8] sm:$0xff]   ;;  %v1357_v9 = vrot.slane %v1355_v2, 1 }
 0x156   : > { %v2488_v63 = vpop.f32.mrf.mxu2  ;;  %v1932_v39 = vshll.u32 %v5113_v24, 16  ;;  %v1930_v18 = vshrl.u32 %v5113_v24, 16  ;;  %v5026_v14 = vld [vmem:[#allocation2 + $0xa8] sm:$0xe] }
 0x157   : > { %v2489_v28 = vadd.f32 %v2488_v63, %v2400_v8  ;;  %v6173_v48 = vadd.f32 %v6112_v27, %v2719_v16  ;;  %v1928_v8 = vsel %vm1195_vm11, %v1923_v51, %v1927_v33  ;;  %v6180_v19 = vpack.c.b16 %v1754_v46, %v1754_v46 }
 0x158   : > { %v1360_v16 = vshll.u32 %v6178_v58, 16  ;;  %v1934_v63 = vrot.slane %v1932_v39, 1 }
 0x159   : > { %v6169_v61 = vpop.f32.mrf.mxu0  ;;  %2760 = vmatmul.bf16.gmra.mxu3 %v6083_v52  ;;  %v1937_v0 = vshll.u32 %v6180_v19, 16 }
 0x15a   : > { %v1362_v51 = vrot.slane %v1360_v16, 1 }
 0x15b   : > { %v1939_v23 = vrot.slane %v1937_v0, 1 }
 0x15c   : > { %v2404_v62 = vpop.f32.mrf.mxu1  ;;  %2854 = vmatmul.bf16.gmra.mxu0 %v1351_v32  ;;  %v2721_v12 = vpop.f32.mrf.mxu3  ;;  %v5025_v32 = vld [vmem:[#allocation2 + $0xa8] sm:$0xf0] }
 0x15d   : > { %v2722_v4 = vadd.f32 %v2721_v12, %v2489_v28  ;;  %v2405_v44 = vadd.f32 %v2404_v62, %v5877_v57  ;;  %v984_v12 = vld [vmem:[#allocation2 + $0xc8] sm:$0x1]  ;;  %v5027_v24 = vor.u32 %v5026_v14, %v5025_v32  ;;  %v1611_v57 = vld [vmem:[#allocation2 + $0xbc] sm:$0x1]  ;;  %v1177_v62 = vunpack.c.l.b16 %v1033_v37  ;;  %v5137_v14 = vld [vmem:[#allocation2 + $0xb4] sm:$0xe] }
 0x15e   : > { %v2490_v34 = vpop.f32.mrf.mxu2  ;;  %v985_v31 = vsel %vm5714_vm10, %v820_v55, %v984_v12  ;;  %v6231_v12 = vld [vmem:[#allocation2 + $0xb4] sm:$0xff]  }
 0x15f   : > { %2443 = vmatmul.bf16.gmra.mxu1 %v1928_v8  ;;  %v2491_v27 = vadd.f32 %v2490_v34, %v2402_v3  ;;  %v6183_v52 = vadd.f32 %v6126_v41, %v2722_v4  ;;  %v1358_v41 = vor.u32 %v1357_v9, %v1353_v7  ;;  %v1935_v8 = vor.u32 %v1934_v63, %v1930_v18  ;;  %v6202_v34 = vld [vmem:[#allocation2 + $0xa8] sm:$0xff]  }
 0x160   : > { %986 = vst [vmem:[#allocation2 + $0xc8] sm:$0x1] %v985_v31  ;;  %v1755_v7 = vunpack.c.l.b16 %v1611_v57  ;;  %v2068_v16 = vrot.slane %v5027_v24, 1  ;;  %v1367_v18 = vshll.u32 %v6202_v34, 16  ;;  %v6213_v63 = vpack.c.b16 %v1177_v62, %v1177_v62 }
 0x161   : > { %v6186_v54 = vpop.f32.mrf.mxu0  ;;  %v1363_v39 = vsel %vm1195_vm11, %v1358_v41, %v1362_v51  ;;  %v4705_v41 = vld [vmem:[%s6555_s4 + $0x200] sm:$0xff]  ;;  %v1365_v37 = vshrl.u32 %v6202_v34, 16  ;;  %v1942_v31 = vshrl.u32 %v5674_v53, 16 }
 0x162   : > { %3871 = vmatpush.bf16.msra.mxu0 %v4705_v41 }
 0x163   : > { %2532 = vmatmul.bf16.gmra.mxu2 %v2067_v35  ;;  %v1940_v35 = vsel %vm1195_vm11, %v1935_v8, %v1939_v23  ;;  %v1369_v8 = vrot.slane %v1367_v18, 1 }
 0x164   : > { %v2406_v3 = vpop.f32.mrf.mxu1  ;;  %v2723_v28 = vpop.f32.mrf.mxu3 }
 0x165   : > { %v2724_v33 = vadd.f32 %v2723_v28, %v2491_v27  ;;  %v2407_v0 = vadd.f32 %v2406_v3, %v5891_v60  ;;  %v4657_v28 = vld [vmem:[%s6555_s4 + $0x80] sm:$0xff]  ;;  %v1370_v57 = vor.u32 %v1369_v8, %v1365_v37 }
 0x166   : > { %v2493_v46 = vpop.f32.mrf.mxu2  ;;  %2882 = vmatpush.bf16.msra.mxu1 %v4657_v28 }
 0x167   : > { %v2494_v42 = vadd.f32 %v2493_v46, %v2405_v44  ;;  %v6196_v2 = vadd.f32 %v6156_v11, %v2724_v33  ;;  %v4697_v11 = vld [vmem:[%s6555_s4 + $0x1c0] sm:$0xff]  ;;  %v1771_v44 = vpack.c.b16 %v1755_v7, %v1755_v7  ;;  %v1372_v46 = vshll.u32 %v6213_v63, 16  ;;  %v1612_v28 = vld [vmem:[#allocation2 + $0xc8] sm:$0x1] }
 0x168   : > { %3782 = vmatpush.bf16.msra.mxu3 %v4697_v11 }
 0x169   : > { %v6198_v4 = vpop.f32.mrf.mxu0  ;;  %2765 = vmatmul.bf16.gmra.mxu3 %v6129_v36  ;;  %v2069_v36 = vrot.slane %v6180_v19, 1  ;;  %v1944_v19 = vshll.u32 %v5674_v53, 16  ;;  %v1949_v24 = vshll.u32 %v1771_v44, 16  ;;  %v1374_v62 = vrot.slane %v1372_v46, 1  ;;  %v5114_v46 = vld [vmem:[#allocation2 + $0xc0] sm:$0xff]  }
 0x16a   : > { %v5138_v53 = vor.u32 %v5137_v14, %v5676_v56 }
 0x16b   : > { %v2070_v60 = vsel %vm1452_vm12, %v2068_v16, %v2069_v36  ;;  %v1951_v36 = vrot.slane %v1949_v24, 1 }
 0x16c   : > { %v2409_v27 = vpop.f32.mrf.mxu1  ;;  %2859 = vmatmul.bf16.gmra.mxu0 %v1363_v39  ;;  %v2726_v9 = vpop.f32.mrf.mxu3 }
 0x16d   : > { %v2727_v55 = vadd.f32 %v2726_v9, %v2494_v42  ;;  %v6233_v42 = vld [vmem:[#allocation2 + $0xb4] sm:$0xf0]  ;;  %v2410_v11 = vadd.f32 %v2409_v27, %v5906_v30  ;;  %v1756_v27 = vunpack.c.l.b16 %v1612_v28 }
 0x16e   : > { %v2495_v51 = vpop.f32.mrf.mxu2 }
 0x16f   : > { %2448 = vmatmul.bf16.gmra.mxu1 %v1940_v35  ;;  %v2496_v33 = vadd.f32 %v2495_v51, %v2407_v0  ;;  %v6224_v32 = vadd.f32 %v6169_v61, %v2727_v55  ;;  %v1946_v61 = vrot.slane %v1944_v19, 1  ;;  %v1034_v35 = vld [vmem:[#allocation2 + $0xbc] sm:$0x1]  ;;  %v1375_v0 = vsel %vm1195_vm11, %v1370_v57, %v1374_v62 }
 0x170   : > { %v1178_v41 = vunpack.c.l.b16 %v1034_v35 }
 0x171   : > { %v6227_v3 = vpop.f32.mrf.mxu0  ;;  %v1947_v16 = vor.u32 %v1946_v61, %v1942_v31  ;;  %v1956_v31 = vshll.u32 %v5114_v46, 16  ;;  %v1772_v61 = vpack.c.b16 %v1756_v27, %v1756_v27 }
 0x172   : > { %v6247_v37 = vpack.c.b16 %v1178_v41, %v1178_v41 }
 0x173   : > { %2537 = vmatmul.bf16.gmra.mxu2 %v2070_v60  ;;  %v1952_v30 = vsel %vm1195_vm11, %v1947_v16, %v1951_v36  ;;  %v2072_v60 = vrot.slane %v1771_v44, 1  ;;  %v1377_v44 = vshrl.u32 %v6231_v12, 16  ;;  %v1958_v35 = vrot.slane %v1956_v31, 1 }
 0x174   : > { %v2411_v23 = vpop.f32.mrf.mxu1  ;;  %v2728_v39 = vpop.f32.mrf.mxu3 }
 0x175   : > { %v2729_v22 = vadd.f32 %v2728_v39, %v2496_v33  ;;  %v2071_v33 = vrot.slane %v5138_v53, 1  ;;  %v2412_v56 = vadd.f32 %v2411_v23, %v5936_v5  ;;  %v1961_v23 = vshll.u32 %v1772_v61, 16  ;;  %v5028_v53 = vld [vmem:[#allocation2 + $0xc0] sm:$0xf0] }
 0x176   : > { %v2498_v7 = vpop.f32.mrf.mxu2 }
 0x177   : > { %v2499_v9 = vadd.f32 %v2498_v7, %v2410_v11  ;;  %v6238_v18 = vadd.f32 %v6186_v54, %v2729_v22  ;;  %v1379_v54 = vshll.u32 %v6231_v12, 16  ;;  %v2073_v39 = vsel %vm1452_vm12, %v2071_v33, %v2072_v60 }
 0x178   : > { %v1384_v22 = vshll.u32 %v6247_v37, 16  ;;  %v1954_v11 = vshrl.u32 %v5114_v46, 16  ;;  %v1963_v27 = vrot.slane %v1961_v23, 1  ;;  %v2075_v46 = vrot.slane %v1772_v61, 1  ;;  %v4975_v23 = vld [vmem:[#allocation2] sm:$0xf0] }
 0x179   : > { %v6240_v55 = vpop.f32.mrf.mxu0  ;;  %2770 = vmatmul.bf16.gmra.mxu3 %v6159_v15  ;;  %v1381_v62 = vrot.slane %v1379_v54, 1 }
 0x17a   : > { %v1386_v16 = vrot.slane %v1384_v22, 1  ;;  %v1959_v41 = vor.u32 %v1958_v35, %v1954_v11 }
 0x17c   : > { %v2414_v51 = vpop.f32.mrf.mxu1  ;;  %2864 = vmatmul.bf16.gmra.mxu0 %v1375_v0  ;;  %v2731_v19 = vpop.f32.mrf.mxu3  ;;  %v5029_v0 = vld [vmem:[#allocation2 + $0xc0] sm:$0xe] }
 0x17d   : > { %v2732_v8 = vadd.f32 %v2731_v19, %v2499_v9  ;;  %v1382_v9 = vor.u32 %v1381_v62, %v1377_v44  ;;  %v5030_v60 = vor.u32 %v5029_v0, %v5028_v53 }
 0x17e   : > { %v2500_v14 = vpop.f32.mrf.mxu2 }
 0x17f   : > { %2453 = vmatmul.bf16.gmra.mxu1 %v1952_v30  ;;  %v2501_v15 = vadd.f32 %v2500_v14, %v2412_v56  ;;  %v6251_v24 = vadd.f32 %v6198_v4, %v2732_v8  ;;  %v2415_v4 = vadd.f32 %v2414_v51, %v5954_v50  ;;  %v1387_v54 = vsel %vm1195_vm11, %v1382_v9, %v1386_v16  ;;  %v2997_v50 = vld [vmem:[#allocation2 + $0x20] sm:$0x1] }
 0x180   : > { %v1964_v56 = vsel %vm1195_vm11, %v1959_v41, %v1963_v27  ;;  %v2074_v14 = vrot.slane %v5030_v60, 1  ;;  %v3141_v62 = vunpack.c.l.b16 %v2997_v50  ;;  %v4842_v27 = vld [vmem:[#allocation2 + $0x18] sm:$0xff]   ;;  %v5168_v50 = vld [vmem:[#allocation2 + $0x24] sm:$0xe] }
 0x181   : > { %v2827_v57 = vpop.f32.mrf.mxu0 }
 0x182   : > { %v3157_v16 = vpack.c.b16 %v3141_v62, %v3141_v62 }
 0x183   : > { %2542 = vmatmul.bf16.gmra.mxu2 %v2073_v39  ;;  %v5038_v39 = vld [vmem:[#allocation2 + $0x18] sm:$0xf0] }
 0x184   : > { %v2416_v5 = vpop.f32.mrf.mxu1  ;;  %v2733_v7 = vpop.f32.mrf.mxu3 }
 0x185   : > { %v2734_v36 = vadd.f32 %v2733_v7, %v2501_v15  ;;  %v2417_v15 = vadd.f32 %v2416_v5, %v5975_v45  ;;  %v4976_v7 = vld [vmem:[#allocation2] sm:$0xe] }
 0x186   : > { %v2503_v28 = vpop.f32.mrf.mxu2 }
 0x187   : > { %v2504_v30 = vadd.f32 %v2503_v28, %v2415_v4  ;;  %v6258_v19 = vadd.f32 %v6227_v3, %v2734_v36  ;;  %v5039_v3 = vld [vmem:[#allocation2 + $0x18] sm:$0xe]  ;;  %v4977_v36 = vor.u32 %v4976_v7, %v4975_v23  ;;  %v3430_v4 = vrot.slane %v3157_v16, 1 }
 0x188   : > { %v5040_v9 = vor.u32 %v5039_v3, %v5038_v39  ;;  %v5140_v39 = vld [vmem:[#allocation2 + $0xc] sm:$0xe]  ;;  %v3174_v3 = vshrl.u32 %v4842_v27, 16 }
 0x189   : > { %v2830_v33 = vpop.f32.mrf.mxu0  ;;  %2775 = vmatmul.bf16.gmra.mxu3 %v6202_v34  ;;  %v2076_v34 = vsel %vm1452_vm12, %v2074_v14, %v2075_v46 }
 0x18a   : > { %v3429_v5 = vrot.slane %v5040_v9, 1 }
 0x18c   : > { %v2419_v8 = vpop.f32.mrf.mxu1  ;;  %2869 = vmatmul.bf16.gmra.mxu0 %v1387_v54  ;;  %v2736_v51 = vpop.f32.mrf.mxu3 }
 0x18d   : > { %v2737_v31 = vadd.f32 %v2736_v51, %v2504_v30  ;;  %v2420_v0 = vadd.f32 %v2419_v8, %v5995_v10  ;;  %v1454_v30 = vrot.slane %v5773_v38, 1  ;;  %v3176_v51 = vshll.u32 %v4842_v27, 16  ;;  %v2967_v10 = vld [vmem:[#allocation2 + $0x24] sm:$0xff]  }
 0x18e   : > { %v2505_v44 = vpop.f32.mrf.mxu2  ;;  %v5167_v8 = vld [vmem:[#allocation2 + $0x24] sm:$0xf0] }
 0x18f   : > { %2458 = vmatmul.bf16.gmra.mxu1 %v1964_v56  ;;  %v2506_v22 = vadd.f32 %v2505_v44, %v2417_v15  ;;  %v6265_v11 = vadd.f32 %v6240_v55, %v2737_v31  ;;  %v1453_v55 = vrot.slane %v4977_v36, 1  ;;  %v3431_v56 = vsel %vm1452_vm12, %v3429_v5, %v3430_v4  ;;  %v2998_v31 = vld [vmem:[#allocation2 + $0x2c] sm:$0x1] }
 0x190   : > { %v3178_v62 = vrot.slane %v3176_v51, 1  ;;  %v5169_v9 = vor.u32 %v5168_v50, %v5167_v8 }
 0x191   : > { %v2832_v35 = vpop.f32.mrf.mxu0  ;;  %v1455_v46 = vsel %vm1452_vm12, %v1453_v55, %v1454_v30 }
 0x192   : > { %v3179_v36 = vor.u32 %v3178_v62, %v3174_v3 }
 0x193   : > { %2547 = vmatmul.bf16.gmra.mxu2 %v2076_v34 }
 0x194   : > { %v2421_v61 = vpop.f32.mrf.mxu1  ;;  %v2738_v45 = vpop.f32.mrf.mxu3 }
 0x195   : > { %v2739_v53 = vadd.f32 %v2738_v45, %v2506_v22  ;;  %v3181_v22 = vshll.u32 %v3157_v16, 16 }
 0x196   : > { %v2508_v28 = vpop.f32.mrf.mxu2 }
 0x197   : > { %v2509_v41 = vadd.f32 %v2508_v28, %v2420_v0  ;;  %v6270_v60 = vadd.f32 %v2827_v57, %v2739_v53  ;;  %v2422_v57 = vadd.f32 %v2421_v61, %v6020_v1  ;;  %v3183_v45 = vrot.slane %v3181_v22, 1 }
 0x198   : > { %v5141_v53 = vor.u32 %v5140_v39, %v5781_v25  ;;  %v3432_v1 = vrot.slane %v5169_v9, 1  ;;  %v3188_v25 = vshll.u32 %v2967_v10, 16  ;;  %v5041_v39 = vld [vmem:[#allocation2 + $0x30] sm:$0xf0]  ;;  %v4979_v9 = vld [vmem:[#allocation2 + $0x18] sm:$0xe] }
 0x199   : > { %v2835_v54 = vpop.f32.mrf.mxu0  ;;  %2780 = vmatmul.bf16.gmra.mxu3 %v6231_v12  ;;  %v3142_v12 = vunpack.c.l.b16 %v2998_v31  ;;  %v3184_v16 = vsel %vm1195_vm11, %v3179_v36, %v3183_v45 }
 0x19a   : > { %v1456_v30 = vrot.slane %v5141_v53, 1 }
 0x19b   : > { %v3158_v5 = vpack.c.b16 %v3142_v12, %v3142_v12 }
 0x19c   : > { %v2424_v14 = vpop.f32.mrf.mxu1  ;;  %3872 = vmatmul.bf16.vlgmr.msra.gmra.mxu0 %v3431_v56  ;;  %v2741_v15 = vpop.f32.mrf.mxu3  ;;  %v1457_v56 = vrot.slane %v5793_v40, 1 }
 0x19d   : > { %v2742_v38 = vadd.f32 %v2741_v15, %v2509_v41  ;;  %v3433_v61 = vrot.slane %v3158_v5, 1  ;;  %v2425_v41 = vadd.f32 %v2424_v14, %v5889_v43  ;;  %v2999_v43 = vld [vmem:[#allocation2 + $0x38] sm:$0x1]  ;;  %v3193_v3 = vshll.u32 %v3158_v5, 16 }
 0x19e   : > { %v2510_v44 = vpop.f32.mrf.mxu2  ;;  %v1458_v8 = vsel %vm1452_vm12, %v1456_v30, %v1457_v56  ;;  %v1460_v30 = vrot.slane %v5822_v47, 1  ;;  %v5031_v56 = vld [vmem:[#allocation2 + $0x30] sm:$0xff]   ;;  %v6599_v47 = vld [vmem:[#allocation13_spill] sm:$0xff] }
 0x19f   : > { %2883 = vmatmul.bf16.vlgmr.msra.gmra.mxu1 %v1455_v46  ;;  %v2511_v34 = vadd.f32 %v2510_v44, %v2422_v57  ;;  %v6276_v23 = vadd.f32 %v2830_v33, %v2742_v38  ;;  %v5042_v38 = vld [vmem:[#allocation2 + $0x30] sm:$0xe]  ;;  %v3190_v57 = vrot.slane %v3188_v25, 1  ;;  %v3143_v44 = vunpack.c.l.b16 %v2999_v43 }
 0x1a0   : > { %v5043_v36 = vor.u32 %v5042_v38, %v5041_v39  ;;  %v3195_v53 = vrot.slane %v3193_v3, 1  ;;  %v3200_v43 = vshll.u32 %v5031_v56, 16  ;;  %v5143_v38 = vld [vmem:[#allocation2 + $0x24] sm:$0xe] }
 0x1a1   : > { %v2837_v7 = vpop.f32.mrf.mxu0 }
 0x1a2   : > { %v3202_v3 = vrot.slane %v3200_v43, 1  ;;  %v6602_v43 = vld [vmem:[#allocation4_spill] sm:$0xff] }
 0x1a3   : > { %3694 = vmatmul.bf16.vlgmr.msra.gmra.mxu2 %v4842_v27  ;;  %v3434_v27 = vsel %vm1452_vm12, %v3432_v1, %v3433_v61  ;;  %v3435_v61 = vrot.slane %v5043_v36, 1 }
 0x1a4   : > { %v2426_v4 = vpop.f32.mrf.mxu1  ;;  %v2743_v0 = vpop.f32.mrf.mxu3 }
 0x1a5   : > { %v2744_v28 = vadd.f32 %v2743_v0, %v2511_v34  ;;  %v2427_v15 = vadd.f32 %v2426_v4, %v5908_v26  ;;  %v4978_v34 = vld [vmem:[#allocation2 + $0x18] sm:$0xf0]  ;;  %v3159_v0 = vpack.c.b16 %v3143_v44, %v3143_v44 }
 0x1a6   : > { %v2513_v55 = vpop.f32.mrf.mxu2  ;;  %v4980_v4 = vor.u32 %v4979_v9, %v4978_v34 }
 0x1a7   : > { %v2514_v33 = vadd.f32 %v2513_v55, %v2425_v41  ;;  %v6282_v50 = vadd.f32 %v2832_v35, %v2744_v28  ;;  %v3186_v35 = vshrl.u32 %v2967_v10, 16  ;;  %v3436_v28 = vrot.slane %v3159_v0, 1 }
 0x1a8   : > { %v3205_v44 = vshll.u32 %v3159_v0, 16 }
 0x1a9   : > { %v6284_v51 = vpop.f32.mrf.mxu0  ;;  %3783 = vmatmul.bf16.vlgmr.msra.gmra.mxu3 %v3184_v16  ;;  %v3191_v45 = vor.u32 %v3190_v57, %v3186_v35 }
 0x1ac   : > { %v2429_v46 = vpop.f32.mrf.mxu1  ;;  %3877 = vmatmul.bf16.gmra.mxu0 %v3434_v27  ;;  %v2746_v14 = vpop.f32.mrf.mxu3 }
 0x1ad   : > { %v2747_v31 = vadd.f32 %v2746_v14, %v2514_v33  ;;  %v2430_v5 = vadd.f32 %v2429_v46, %v5938_v29  ;;  %v1459_v33 = vrot.slane %v4980_v4, 1  ;;  %v2971_v29 = vld [vmem:[#allocation2 + $0x3c] sm:$0xff]   ;;  %v3207_v4 = vrot.slane %v3205_v44, 1 }
 0x1ae   : > { %v2515_v40 = vpop.f32.mrf.mxu2  ;;  %v5170_v46 = vld [vmem:[#allocation2 + $0x3c] sm:$0xf0] }
 0x1af   : > { %2888 = vmatmul.bf16.gmra.mxu1 %v1458_v8  ;;  %v2516_v62 = vadd.f32 %v2515_v40, %v2427_v15  ;;  %v6289_v22 = vadd.f32 %v2835_v54, %v2747_v31  ;;  %v3196_v54 = vsel %vm1195_vm11, %v3191_v45, %v3195_v53  ;;  %v5171_v8 = vld [vmem:[#allocation2 + $0x3c] sm:$0xe]  ;;  %v1461_v31 = vsel %vm1452_vm12, %v1459_v33, %v1460_v30  ;;  %v3000_v15 = vld [vmem:[#allocation2 + $0x44] sm:$0x1] }
 0x1b0   : > { %v5172_v45 = vor.u32 %v5171_v8, %v5170_v46  ;;  %v1463_v8 = vrot.slane %v6602_v43, 1 }
 0x1b1   : > { %v6291_v12 = vpop.f32.mrf.mxu0 }
 0x1b3   : > { %3699 = vmatmul.bf16.gmra.mxu2 %v2967_v10  ;;  %v3437_v10 = vsel %vm1452_vm12, %v3435_v61, %v3436_v28  ;;  %v6600_v28 = vld [vmem:[#allocation3_spill] sm:$0xff] }
 0x1b4   : > { %v2431_v26 = vpop.f32.mrf.mxu1  ;;  %v2748_v1 = vpop.f32.mrf.mxu3 }
 0x1b5   : > { %v2749_v41 = vadd.f32 %v2748_v1, %v2516_v62  ;;  %v2432_v35 = vadd.f32 %v2431_v26, %v6599_v47  ;;  %v3144_v62 = vunpack.c.l.b16 %v3000_v15  ;;  %v3212_v15 = vshll.u32 %v2971_v29, 16 }
 0x1b6   : > { %v2518_v16 = vpop.f32.mrf.mxu2 }
 0x1b7   : > { %v2519_v55 = vadd.f32 %v2518_v16, %v2430_v5  ;;  %v6296_v27 = vadd.f32 %v2837_v7, %v2749_v41  ;;  %v3198_v7 = vshrl.u32 %v5031_v56, 16  ;;  %v3160_v1 = vpack.c.b16 %v3144_v62, %v3144_v62 }
 0x1b8   : > { %v5144_v41 = vor.u32 %v5143_v38, %v6600_v28  ;;  %v3438_v5 = vrot.slane %v5172_v45, 1  ;;  %v3214_v62 = vrot.slane %v3212_v15, 1 }
 0x1b9   : > { %v2845_v25 = vpop.f32.mrf.mxu0  ;;  %3788 = vmatmul.bf16.gmra.mxu3 %v3196_v54  ;;  %v3203_v53 = vor.u32 %v3202_v3, %v3198_v7  ;;  %v3439_v54 = vrot.slane %v3160_v1, 1  ;;  %v5045_v3 = vld [vmem:[#allocation2 + $0x48] sm:$0xe] }
 0x1bb   : > { %v3208_v33 = vsel %vm1195_vm11, %v3203_v53, %v3207_v4  ;;  %v3440_v46 = vsel %vm1452_vm12, %v3438_v5, %v3439_v54 }
 0x1bc   : > { %v2434_v14 = vpop.f32.mrf.mxu1  ;;  %3882 = vmatmul.bf16.gmra.mxu0 %v3437_v10  ;;  %v2751_v39 = vpop.f32.mrf.mxu3  ;;  %v1462_v10 = vrot.slane %v5144_v41, 1  ;;  %v4981_v41 = vld [vmem:[#allocation2 + $0x30] sm:$0xf0] }
 0x1bd   : > { %v2752_v40 = vadd.f32 %v2751_v39, %v2519_v55  ;;  %v6601_v55 = vld [vmem:[#allocation16_spill] sm:$0xff] }
 0x1be   : > { %v2520_v57 = vpop.f32.mrf.mxu2  ;;  %v2435_v0 = vadd.f32 %v2434_v14, %v6601_v55  ;;  %v1464_v38 = vsel %vm1452_vm12, %v1462_v10, %v1463_v8  ;;  %v3001_v14 = vld [vmem:[#allocation2 + $0x50] sm:$0x1] }
 0x1bf   : > { %2893 = vmatmul.bf16.gmra.mxu1 %v1461_v31  ;;  %v2521_v34 = vadd.f32 %v2520_v57, %v2432_v35  ;;  %v6302_v9 = vadd.f32 %v6284_v51, %v2752_v40  ;;  %v6603_v35 = vld [vmem:[#allocation18_spill] sm:$0xff]  ;;  %v5044_v57 = vld [vmem:[#allocation2 + $0x48] sm:$0xf0]  ;;  %v3145_v45 = vunpack.c.l.b16 %v3001_v14 }
 0x1c0   : > { %v5046_v5 = vor.u32 %v5045_v3, %v5044_v57 }
 0x1c1   : > { %v2847_v36 = vpop.f32.mrf.mxu0  ;;  %v3161_v55 = vpack.c.b16 %v3145_v45, %v3145_v45  ;;  %v5146_v45 = vld [vmem:[#allocation2 + $0x3c] sm:$0xe] }
 0x1c3   : > { %3704 = vmatmul.bf16.gmra.mxu2 %v5031_v56 }
 0x1c4   : > { %v2436_v61 = vpop.f32.mrf.mxu1  ;;  %v2753_v26 = vpop.f32.mrf.mxu3 }
 0x1c5   : > { %v2754_v16 = vadd.f32 %v2753_v26, %v2521_v34  ;;  %v2437_v7 = vadd.f32 %v2436_v61, %v6603_v35  ;;  %v3217_v34 = vshll.u32 %v3160_v1, 16  ;;  %v4982_v26 = vld [vmem:[#allocation2 + $0x30] sm:$0xe] }
 0x1c6   : > { %v2523_v30 = vpop.f32.mrf.mxu2  ;;  %v6604_v1 = vld [vmem:[#allocation22_spill] sm:$0xff] }
 0x1c7   : > { %v2524_v51 = vadd.f32 %v2523_v30, %v2435_v0  ;;  %v6309_v31 = vadd.f32 %v6291_v12, %v2754_v16  ;;  %v3210_v12 = vshrl.u32 %v2971_v29, 16  ;;  %v3219_v16 = vrot.slane %v3217_v34, 1 }
 0x1c8   : > { %v4983_v0 = vor.u32 %v4982_v26, %v4981_v41  ;;  %v3441_v30 = vrot.slane %v5046_v5, 1  ;;  %v6606_v41 = vld [vmem:[#allocation25_spill] sm:$0xff] }
 0x1c9   : > { %v6311_v56 = vpop.f32.mrf.mxu0  ;;  %3793 = vmatmul.bf16.gmra.mxu3 %v3208_v33  ;;  %v3215_v54 = vor.u32 %v3214_v62, %v3210_v12  ;;  %v5173_v12 = vld [vmem:[#allocation2 + $0x54] sm:$0xf0]  ;;  %v3002_v62 = vld [vmem:[#allocation2 + $0x5c] sm:$0x1] }
 0x1ca   : > { %v1465_v15 = vrot.slane %v4983_v0, 1  ;;  %v3146_v0 = vunpack.c.l.b16 %v3002_v62 }
 0x1cc   : > { %v2439_v39 = vpop.f32.mrf.mxu1  ;;  %3887 = vmatmul.bf16.gmra.mxu0 %v3440_v46  ;;  %v2756_v40 = vpop.f32.mrf.mxu3 }
 0x1cd   : > { %v2757_v47 = vadd.f32 %v2756_v40, %v2524_v51  ;;  %v3442_v51 = vrot.slane %v3161_v55, 1  ;;  %v2440_v43 = vadd.f32 %v2439_v39, %v6604_v1  ;;  %v5032_v40 = vld [vmem:[#allocation2 + $0x48] sm:$0xff]   ;;  %v2975_v39 = vld [vmem:[#allocation2 + $0x54] sm:$0xff]  }
 0x1ce   : > { %v2525_v44 = vpop.f32.mrf.mxu2  ;;  %v3224_v57 = vshll.u32 %v5032_v40, 16 }
 0x1cf   : > { %2898 = vmatmul.bf16.gmra.mxu1 %v1464_v38  ;;  %v2526_v53 = vadd.f32 %v2525_v44, %v2437_v7  ;;  %v6316_v4 = vadd.f32 %v2845_v25, %v2757_v47  ;;  %v3220_v25 = vsel %vm1195_vm11, %v3215_v54, %v3219_v16  ;;  %v6605_v38 = vld [vmem:[#allocation5_spill] sm:$0xff]  ;;  %v5174_v7 = vld [vmem:[#allocation2 + $0x54] sm:$0xe]  ;;  %v3229_v16 = vshll.u32 %v3161_v55, 16 }
 0x1d0   : > { %v1466_v14 = vrot.slane %v6605_v38, 1  ;;  %v3226_v54 = vrot.slane %v3224_v57, 1  ;;  %v6608_v57 = vld [vmem:[#allocation8_spill] sm:$0xff] }
 0x1d1   : > { %v6318_v28 = vpop.f32.mrf.mxu0 }
 0x1d2   : > { %v1467_v44 = vsel %vm1452_vm12, %v1465_v15, %v1466_v14 }
 0x1d3   : > { %3709 = vmatmul.bf16.gmra.mxu2 %v2971_v29  ;;  %v3443_v29 = vsel %vm1452_vm12, %v3441_v30, %v3442_v51 }
 0x1d4   : > { %v2441_v61 = vpop.f32.mrf.mxu1  ;;  %v2758_v33 = vpop.f32.mrf.mxu3 }
 0x1d5   : > { %v2759_v10 = vadd.f32 %v2758_v33, %v2526_v53  ;;  %v2442_v26 = vadd.f32 %v2441_v61, %v6606_v41  ;;  %v3236_v41 = vshll.u32 %v2975_v39, 16 }
 0x1d6   : > { %v2528_v8 = vpop.f32.mrf.mxu2 }
 0x1d7   : > { %v2529_v46 = vadd.f32 %v2528_v8, %v2440_v43  ;;  %v6323_v47 = vadd.f32 %v2847_v36, %v2759_v10  ;;  %v3222_v36 = vshrl.u32 %v5032_v40, 16  ;;  %v5175_v10 = vor.u32 %v5174_v7, %v5173_v12 }
 0x1d8   : > { %v3231_v43 = vrot.slane %v3229_v16, 1  ;;  %v6611_v16 = vld [vmem:[#allocation9_spill] sm:$0xff] }
 0x1d9   : > { %v2855_v35 = vpop.f32.mrf.mxu0  ;;  %3798 = vmatmul.bf16.gmra.mxu3 %v3220_v25  ;;  %v3227_v1 = vor.u32 %v3226_v54, %v3222_v36  ;;  %v3162_v25 = vpack.c.b16 %v3146_v0, %v3146_v0  ;;  %v3444_v38 = vrot.slane %v5175_v10, 1  ;;  %v5048_v10 = vld [vmem:[#allocation2 + $0x60] sm:$0xe] }
 0x1db   : > { %v3445_v14 = vrot.slane %v3162_v25, 1 }
 0x1dc   : > { %v2444_v3 = vpop.f32.mrf.mxu1  ;;  %3892 = vmatmul.bf16.gmra.mxu0 %v3443_v29  ;;  %v2761_v34 = vpop.f32.mrf.mxu3 }
 0x1dd   : > { %v2762_v53 = vadd.f32 %v2761_v34, %v2529_v46  ;;  %v6607_v46 = vld [vmem:[#allocation6_spill] sm:$0xff]  ;;  %v2445_v55 = vadd.f32 %v2444_v3, %v6608_v57  ;;  %v3003_v3 = vld [vmem:[#allocation2 + $0x68] sm:$0x1]  ;;  %v4985_v57 = vld [vmem:[#allocation2 + $0x48] sm:$0xe] }
 0x1de   : > { %v2530_v5 = vpop.f32.mrf.mxu2  ;;  %v5147_v15 = vor.u32 %v5146_v45, %v6607_v46  ;;  %v3446_v45 = vsel %vm1452_vm12, %v3444_v38, %v3445_v14  ;;  %v3241_v46 = vshll.u32 %v3162_v25, 16  ;;  %v6613_v25 = vld [vmem:[#allocation12_spill] sm:$0xff] }
 0x1df   : > { %2903 = vmatmul.bf16.gmra.mxu1 %v1467_v44  ;;  %v2531_v33 = vadd.f32 %v2530_v5, %v2442_v26  ;;  %v6329_v30 = vadd.f32 %v6311_v56, %v2762_v53  ;;  %v3232_v44 = vsel %vm1195_vm11, %v3227_v1, %v3231_v43  ;;  %v6609_v53 = vld [vmem:[#allocation7_spill] sm:$0xff]  ;;  %v3238_v43 = vrot.slane %v3236_v41, 1 }
 0x1e0   : > { %v1468_v34 = vrot.slane %v5147_v15, 1  ;;  %v1469_v7 = vrot.slane %v6609_v53, 1  ;;  %v3147_v15 = vunpack.c.l.b16 %v3003_v3 }
 0x1e1   : > { %v2857_v51 = vpop.f32.mrf.mxu0 }
 0x1e2   : > { %v1470_v36 = vsel %vm1452_vm12, %v1468_v34, %v1469_v7 }
 0x1e3   : > { %3714 = vmatmul.bf16.gmra.mxu2 %v5032_v40 }
 0x1e4   : > { %v2446_v8 = vpop.f32.mrf.mxu1  ;;  %v2763_v61 = vpop.f32.mrf.mxu3 }
 0x1e5   : > { %v2764_v29 = vadd.f32 %v2763_v61, %v2531_v33  ;;  %v2447_v0 = vadd.f32 %v2446_v8, %v6611_v16  ;;  %v5047_v33 = vld [vmem:[#allocation2 + $0x60] sm:$0xf0]  ;;  %v6614_v16 = vld [vmem:[#allocation10_spill] sm:$0xff] }
 0x1e6   : > { %v2533_v62 = vpop.f32.mrf.mxu2 }
 0x1e7   : > { %v2534_v56 = vadd.f32 %v2533_v62, %v2445_v55  ;;  %v6336_v12 = vadd.f32 %v6318_v28, %v2764_v29  ;;  %v3234_v28 = vshrl.u32 %v2975_v39, 16  ;;  %v4984_v29 = vld [vmem:[#allocation2 + $0x48] sm:$0xf0]  ;;  %v5049_v55 = vor.u32 %v5048_v10, %v5047_v33  ;;  %v5033_v33 = vld [vmem:[#allocation2 + $0x60] sm:$0xff]  }
 0x1e8   : > { %v3243_v62 = vrot.slane %v3241_v46, 1  ;;  %v4986_v34 = vor.u32 %v4985_v57, %v4984_v29  ;;  %v3004_v29 = vld [vmem:[#allocation2 + $0x74] sm:$0x1] }
 0x1e9   : > { %6610 = vst [vmem:[#allocation13_spill] sm:$0xff] %v6336_v12  ;;  %v6338_v40 = vpop.f32.mrf.mxu0  ;;  %3803 = vmatmul.bf16.gmra.mxu3 %v3232_v44  ;;  %v3239_v44 = vor.u32 %v3238_v43, %v3234_v28  ;;  %v3447_v7 = vrot.slane %v5049_v55, 1  ;;  %v5177_v28 = vld [vmem:[#allocation2 + $0x6c] sm:$0xe]  ;;  %v3248_v43 = vshll.u32 %v5033_v33, 16 }
 0x1ea   : > { %v5149_v55 = vld [vmem:[#allocation2 + $0x54] sm:$0xe] }
 0x1ec   : > { %v2449_v26 = vpop.f32.mrf.mxu1  ;;  %3897 = vmatmul.bf16.gmra.mxu0 %v3446_v45  ;;  %v2766_v5 = vpop.f32.mrf.mxu3 }
 0x1ed   : > { %v2767_v54 = vadd.f32 %v2766_v5, %v2534_v56  ;;  %v3163_v56 = vpack.c.b16 %v3147_v15, %v3147_v15 }
 0x1ee   : > { %v2535_v1 = vpop.f32.mrf.mxu2 }
 0x1ef   : > { %2908 = vmatmul.bf16.gmra.mxu1 %v1470_v36  ;;  %v2536_v61 = vadd.f32 %v2535_v1, %v2447_v0  ;;  %v6343_v38 = vadd.f32 %v2855_v35, %v2767_v54  ;;  %v3448_v45 = vrot.slane %v3163_v56, 1  ;;  %v2450_v36 = vadd.f32 %v2449_v26, %v6613_v25  ;;  %v2979_v26 = vld [vmem:[#allocation2 + $0x6c] sm:$0xff]  }
 0x1f0   : > { %v3244_v35 = vsel %vm1195_vm11, %v3239_v44, %v3243_v62  ;;  %v1471_v54 = vrot.slane %v4986_v34, 1  ;;  %v1472_v0 = vrot.slane %v6614_v16, 1  ;;  %v6616_v62 = vld [vmem:[#allocation15_spill] sm:$0xff] }
 0x1f1   : > { %6612 = vst [vmem:[#allocation3_spill] sm:$0xff] %v6343_v38  ;;  %v6345_v14 = vpop.f32.mrf.mxu0 }
 0x1f2   : > { %v1473_v15 = vsel %vm1452_vm12, %v1471_v54, %v1472_v0 }
 0x1f3   : > { %3719 = vmatmul.bf16.gmra.mxu2 %v2975_v39  ;;  %v3449_v39 = vsel %vm1452_vm12, %v3447_v7, %v3448_v45  ;;  %v3253_v7 = vshll.u32 %v3163_v56, 16  ;;  %v3148_v45 = vunpack.c.l.b16 %v3004_v29 }
 0x1f4   : > { %v2451_v8 = vpop.f32.mrf.mxu1  ;;  %v2768_v53 = vpop.f32.mrf.mxu3 }
 0x1f5   : > { %v2769_v41 = vadd.f32 %v2768_v53, %v2536_v61  ;;  %v5176_v61 = vld [vmem:[#allocation2 + $0x6c] sm:$0xf0]  ;;  %v2452_v34 = vadd.f32 %v2451_v8, %v6616_v62  ;;  %v3255_v16 = vrot.slane %v3253_v7, 1  ;;  %v3164_v0 = vpack.c.b16 %v3148_v45, %v3148_v45 }
 0x1f6   : > { %v2538_v3 = vpop.f32.mrf.mxu2 }
 0x1f7   : > { %v2539_v5 = vadd.f32 %v2538_v3, %v2450_v36  ;;  %v6350_v10 = vadd.f32 %v2857_v51, %v2769_v41  ;;  %v3246_v51 = vshrl.u32 %v5033_v33, 16  ;;  %v3250_v41 = vrot.slane %v3248_v43, 1  ;;  %v6619_v43 = vld [vmem:[#allocation17_spill] sm:$0xff] }
 0x1f8   : > { %v5178_v3 = vor.u32 %v5177_v28, %v5176_v61 }
 0x1f9   : > { %6615 = vst [vmem:[#allocation16_spill] sm:$0xff] %v6350_v10  ;;  %v2865_v1 = vpop.f32.mrf.mxu0  ;;  %3808 = vmatmul.bf16.gmra.mxu3 %v3244_v35  ;;  %v3251_v54 = vor.u32 %v3250_v41, %v3246_v51  ;;  %v3451_v10 = vrot.slane %v3164_v0, 1  ;;  %v3260_v51 = vshll.u32 %v2979_v26, 16 }
 0x1fa   : > { %v3450_v62 = vrot.slane %v5178_v3, 1  ;;  %v6622_v3 = vld [vmem:[#allocation21_spill] sm:$0xff] }
 0x1fb   : > { %v3256_v29 = vsel %vm1195_vm11, %v3251_v54, %v3255_v16  ;;  %v5050_v16 = vld [vmem:[#allocation2 + $0x78] sm:$0xf0] }
 0x1fc   : > { %v2454_v46 = vpop.f32.mrf.mxu1  ;;  %3902 = vmatmul.bf16.gmra.mxu0 %v3449_v39  ;;  %v2771_v57 = vpop.f32.mrf.mxu3 }
 0x1fd   : > { %v2772_v44 = vadd.f32 %v2771_v57, %v2539_v5  ;;  %v6618_v5 = vld [vmem:[#allocation11_spill] sm:$0xff]  ;;  %v2455_v56 = vadd.f32 %v2454_v46, %v6619_v43  ;;  %v3005_v46 = vld [vmem:[#allocation2 + $0x80] sm:$0x1] }
 0x1fe   : > { %v2540_v53 = vpop.f32.mrf.mxu2  ;;  %v5150_v57 = vor.u32 %v5149_v55, %v6618_v5  ;;  %v3452_v55 = vsel %vm1452_vm12, %v3450_v62, %v3451_v10  ;;  %v5051_v5 = vld [vmem:[#allocation2 + $0x78] sm:$0xe]  ;;  %v3149_v43 = vunpack.c.l.b16 %v3005_v46 }
 0x1ff   : > { %2913 = vmatmul.bf16.gmra.mxu1 %v1473_v15  ;;  %v2541_v25 = vadd.f32 %v2540_v53, %v2452_v34  ;;  %v6356_v36 = vadd.f32 %v6338_v40, %v2772_v44  ;;  %v6620_v53 = vld [vmem:[#allocation14_spill] sm:$0xff] }
 0x200   : > { %v1474_v44 = vrot.slane %v5150_v57, 1  ;;  %v1475_v28 = vrot.slane %v6620_v53, 1 }
 0x201   : > { %6617 = vst [vmem:[#allocation4_spill] sm:$0xff] %v6356_v36  ;;  %v2867_v35 = vpop.f32.mrf.mxu0 }
 0x202   : > { %v1476_v7 = vsel %vm1452_vm12, %v1474_v44, %v1475_v28  ;;  %v5052_v44 = vor.u32 %v5051_v5, %v5050_v16  ;;  %v5034_v16 = vld [vmem:[#allocation2 + $0x78] sm:$0xff]  }
 0x203   : > { %3724 = vmatmul.bf16.gmra.mxu2 %v5033_v33 }
 0x204   : > { %v2456_v39 = vpop.f32.mrf.mxu1  ;;  %v2773_v8 = vpop.f32.mrf.mxu3 }
 0x205   : > { %v2774_v15 = vadd.f32 %v2773_v8, %v2541_v25  ;;  %v2457_v54 = vadd.f32 %v2456_v39, %v6622_v3  ;;  %v3262_v8 = vrot.slane %v3260_v51, 1  ;;  %v3453_v3 = vrot.slane %v5052_v44, 1  ;;  %v6624_v51 = vld [vmem:[#allocation23_spill] sm:$0xff] }
 0x206   : > { %v2543_v34 = vpop.f32.mrf.mxu2 }
 0x207   : > { %v2544_v40 = vadd.f32 %v2543_v34, %v2455_v56  ;;  %v6363_v61 = vadd.f32 %v6345_v14, %v2774_v15  ;;  %v3258_v14 = vshrl.u32 %v2979_v26, 16  ;;  %v3265_v15 = vshll.u32 %v3164_v0, 16  ;;  %v4988_v34 = vld [vmem:[#allocation2 + $0x60] sm:$0xe] }
 0x209   : > { %6621 = vst [vmem:[#allocation18_spill] sm:$0xff] %v6363_v61  ;;  %v6365_v33 = vpop.f32.mrf.mxu0  ;;  %3813 = vmatmul.bf16.gmra.mxu3 %v3256_v29  ;;  %v4987_v29 = vld [vmem:[#allocation2 + $0x60] sm:$0xf0]  ;;  %v3263_v53 = vor.u32 %v3262_v8, %v3258_v14  ;;  %v3267_v28 = vrot.slane %v3265_v15, 1  ;;  %v3272_v15 = vshll.u32 %v5034_v16, 16 }
 0x20a   : > { %v5180_v8 = vld [vmem:[#allocation2 + $0x84] sm:$0xe] }
 0x20b   : > { %v3268_v46 = vsel %vm1195_vm11, %v3263_v53, %v3267_v28  ;;  %v5152_v53 = vld [vmem:[#allocation2 + $0x6c] sm:$0xe] }
 0x20c   : > { %v2459_v41 = vpop.f32.mrf.mxu1  ;;  %3907 = vmatmul.bf16.gmra.mxu0 %v3452_v55  ;;  %v2776_v45 = vpop.f32.mrf.mxu3  ;;  %v4989_v55 = vor.u32 %v4988_v34, %v4987_v29  ;;  %v5179_v29 = vld [vmem:[#allocation2 + $0x84] sm:$0xf0]  ;;  %v3006_v34 = vld [vmem:[#allocation2 + $0x8c] sm:$0x1] }
 0x20d   : > { %v2777_v25 = vadd.f32 %v2776_v45, %v2544_v40  ;;  %v3165_v40 = vpack.c.b16 %v3149_v43, %v3149_v43  ;;  %v2460_v0 = vadd.f32 %v2459_v41, %v6624_v51  ;;  %v3150_v51 = vunpack.c.l.b16 %v3006_v34 }
 0x20e   : > { %v2545_v57 = vpop.f32.mrf.mxu2 }
 0x20f   : > { %2918 = vmatmul.bf16.gmra.mxu1 %v1476_v7  ;;  %v2546_v10 = vadd.f32 %v2545_v57, %v2457_v54  ;;  %v6370_v62 = vadd.f32 %v2865_v1, %v2777_v25  ;;  %v3454_v7 = vrot.slane %v3165_v40, 1  ;;  %v1477_v54 = vrot.slane %v4989_v55, 1  ;;  %v6625_v57 = vld [vmem:[#allocation19_spill] sm:$0xff] }
 0x210   : > { %v3270_v55 = vshrl.u32 %v5034_v16, 16 }
 0x211   : > { %6623 = vst [vmem:[#allocation22_spill] sm:$0xff] %v6370_v62  ;;  %v2872_v56 = vpop.f32.mrf.mxu0  ;;  %v1478_v62 = vrot.slane %v6625_v57, 1 }
 0x213   : > { %3729 = vmatmul.bf16.gmra.mxu2 %v2979_v26  ;;  %v3455_v26 = vsel %vm1452_vm12, %v3453_v3, %v3454_v7  ;;  %v1479_v41 = vsel %vm1452_vm12, %v1477_v54, %v1478_v62  ;;  %v3274_v3 = vrot.slane %v3272_v15, 1  ;;  %v3277_v7 = vshll.u32 %v3165_v40, 16 }
 0x214   : > { %v2461_v39 = vpop.f32.mrf.mxu1  ;;  %v2778_v45 = vpop.f32.mrf.mxu3 }
 0x215   : > { %v2779_v61 = vadd.f32 %v2778_v45, %v2546_v10  ;;  %v2983_v10 = vld [vmem:[#allocation2 + $0x84] sm:$0xff]   ;;  %v3275_v54 = vor.u32 %v3274_v3, %v3270_v55  ;;  %v3279_v57 = vrot.slane %v3277_v7, 1  ;;  %v5053_v7 = vld [vmem:[#allocation2 + $0x90] sm:$0xf0] }
 0x216   : > { %v2548_v1 = vpop.f32.mrf.mxu2 }
 0x217   : > { %v2549_v25 = vadd.f32 %v2548_v1, %v2460_v0  ;;  %v6375_v5 = vadd.f32 %v2867_v35, %v2779_v61  ;;  %v6627_v35 = vld [vmem:[#allocation26_spill] sm:$0xff]  ;;  %v5181_v1 = vor.u32 %v5180_v8, %v5179_v29  ;;  %v3280_v40 = vsel %vm1195_vm11, %v3275_v54, %v3279_v57 }
 0x218   : > { %v2462_v61 = vadd.f32 %v2461_v39, %v6627_v35  ;;  %v3284_v29 = vshll.u32 %v2983_v10, 16 }
 0x219   : > { %6626 = vst [vmem:[#allocation5_spill] sm:$0xff] %v6375_v5  ;;  %v6377_v14 = vpop.f32.mrf.mxu0  ;;  %3818 = vmatmul.bf16.gmra.mxu3 %v3268_v46  ;;  %v3456_v35 = vrot.slane %v5181_v1, 1 }
 0x21a   : > { %v3286_v1 = vrot.slane %v3284_v29, 1 }
 0x21c   : > { %v6380_v43 = vpop.f32.mrf.mxu1  ;;  %3912 = vmatmul.bf16.gmra.mxu0 %v3455_v26  ;;  %v2781_v44 = vpop.f32.mrf.mxu3  ;;  %v3166_v26 = vpack.c.b16 %v3150_v51, %v3150_v51  ;;  %v5054_v51 = vld [vmem:[#allocation2 + $0x90] sm:$0xe] }
 0x21d   : > { %v2782_v28 = vadd.f32 %v2781_v44, %v2549_v25  ;;  %v6629_v25 = vld [vmem:[#allocation20_spill] sm:$0xff] }
 0x21e   : > { %v2550_v45 = vpop.f32.mrf.mxu2  ;;  %v5153_v44 = vor.u32 %v5152_v53, %v6629_v25  ;;  %v3457_v36 = vrot.slane %v3166_v26, 1  ;;  %v3289_v54 = vshll.u32 %v3166_v26, 16 }
 0x21f   : > { %2923 = vmatmul.bf16.gmra.mxu1 %v1479_v41  ;;  %v2551_v0 = vadd.f32 %v2550_v45, %v2462_v61  ;;  %v6385_v46 = vadd.f32 %v6365_v33, %v2782_v28  ;;  %v6630_v33 = vld [vmem:[#allocation24_spill] sm:$0xff]  ;;  %v3007_v45 = vld [vmem:[#allocation2 + $0x98] sm:$0x1] }
 0x220   : > { %v1480_v34 = vrot.slane %v5153_v44, 1  ;;  %v1481_v28 = vrot.slane %v6630_v33, 1  ;;  %v3151_v57 = vunpack.c.l.b16 %v3007_v45  ;;  %v4991_v44 = vld [vmem:[#allocation2 + $0x78] sm:$0xe] }
 0x221   : > { %6628 = vst [vmem:[#allocation25_spill] sm:$0xff] %v6385_v46  ;;  %v3875_v62 = vpop.f32.mrf.mxu0 }
 0x222   : > { %v1482_v55 = vsel %vm1452_vm12, %v1480_v34, %v1481_v28  ;;  %v3167_v33 = vpack.c.b16 %v3151_v57, %v3151_v57  ;;  %v5035_v57 = vld [vmem:[#allocation2 + $0x90] sm:$0xff]  }
 0x223   : > { %3734 = vmatmul.bf16.gmra.mxu2 %v5034_v16  ;;  %v3458_v16 = vsel %vm1452_vm12, %v3456_v35, %v3457_v36  ;;  %v4990_v36 = vld [vmem:[#allocation2 + $0x78] sm:$0xf0]  ;;  %v5055_v35 = vor.u32 %v5054_v51, %v5053_v7 }
 0x224   : > { %v2886_v5 = vpop.f32.mrf.mxu1  ;;  %v2783_v39 = vpop.f32.mrf.mxu3  ;;  %v4992_v34 = vor.u32 %v4991_v44, %v4990_v36 }
 0x225   : > { %v2784_v15 = vadd.f32 %v2783_v39, %v2551_v0  ;;  %v3459_v26 = vrot.slane %v5055_v35, 1  ;;  %v3296_v35 = vshll.u32 %v5035_v57, 16 }
 0x226   : > { %v3695_v41 = vpop.f32.mrf.mxu2  ;;  %v1483_v51 = vrot.slane %v4992_v34, 1  ;;  %v6420_v34 = vld [vmem:[#allocation2 + $0x9c] sm:$0xff]  }
 0x227   : > { %v6390_v61 = vadd.f32 %v2872_v56, %v2784_v15  ;;  %v3282_v56 = vshrl.u32 %v2983_v10, 16 }
 0x229   : > { %6631 = vst [vmem:[#allocation6_spill] sm:$0xff] %v6390_v61  ;;  %v6392_v8 = vpop.f32.mrf.mxu0  ;;  %3823 = vmatmul.bf16.gmra.mxu3 %v3280_v40  ;;  %v3287_v15 = vor.u32 %v3286_v1, %v3282_v56  ;;  %v3291_v40 = vrot.slane %v3289_v54, 1  ;;  %v6633_v56 = vld [vmem:[#allocation27_spill] sm:$0xff] }
 0x22a   : > { %v1484_v1 = vrot.slane %v6633_v56, 1  ;;  %v3301_v56 = vshll.u32 %v3167_v33, 16 }
 0x22b   : > { %v3292_v61 = vsel %vm1195_vm11, %v3287_v15, %v3291_v40 }
 0x22c   : > { %v6395_v53 = vpop.f32.mrf.mxu1  ;;  %3917 = vmatmul.bf16.gmra.mxu0 %v3458_v16  ;;  %v3784_v3 = vpop.f32.mrf.mxu3  ;;  %v3303_v38 = vrot.slane %v3301_v56, 1 }
 0x22d   : > { %v3785_v25 = vadd.f32 %v3784_v3, %v3695_v41  ;;  %v6632_v41 = vld [vmem:[#allocation28_spill] sm:$0xff] }
 0x22e   : > { %v3697_v0 = vpop.f32.mrf.mxu2  ;;  %v2885_v45 = vadd.f32 %v6380_v43, %v6632_v41  ;;  %v5183_v43 = vld [vmem:[#allocation2 + $0x9c] sm:$0xe] }
 0x22f   : > { %2928 = vmatmul.bf16.gmra.mxu1 %v1482_v55  ;;  %v3874_v28 = vadd.f32 %v6377_v14, %v3785_v25  ;;  %v3460_v55 = vrot.slane %v3167_v33, 1  ;;  %v2887_v14 = vadd.f32 %v2886_v5, %v6097_v59 }
 0x231   : > { %v6399_v39 = vpop.f32.mrf.mxu0  ;;  %v3953_v54 = vadd.f32 %v3874_v28, %v2885_v45  ;;  %v3461_v36 = vsel %vm1452_vm12, %v3459_v26, %v3460_v55  ;;  %v3008_v28 = vld [vmem:[#allocation2 + $0xa4] sm:$0x1]  ;;  %v5155_v26 = vld [vmem:[#allocation2 + $0x84] sm:$0xe]  ;;  %v3294_v45 = vshrl.u32 %v5035_v57, 16 }
 0x233   : > { %3739 = vmatmul.bf16.gmra.mxu2 %v2983_v10  ;;  %v4087_v59 = vmul.f32 %v3953_v54, %v3953_v54 }
 0x234   : > { %v6402_v16 = vpop.f32.mrf.mxu1  ;;  %v3786_v29 = vpop.f32.mrf.mxu3 }
 0x235   : > { %v3787_v3 = vadd.f32 %v3786_v29, %v3697_v0  ;;  %v1485_v0 = vsel %vm1452_vm12, %v1483_v51, %v1484_v1  ;;  %v3298_v51 = vrot.slane %v3296_v35, 1  ;;  %v3152_v1 = vunpack.c.l.b16 %v3008_v28 }
 0x236   : > { %v3700_v7 = vpop.f32.mrf.mxu2 }
 0x237   : > { %v3876_v10 = vadd.f32 %v3875_v62, %v3787_v3  ;;  %v3299_v46 = vor.u32 %v3298_v51, %v3294_v45 }
 0x239   : > { %v6409_v25 = vpop.f32.mrf.mxu0  ;;  %v3954_v44 = vadd.f32 %v3876_v10, %v2887_v14  ;;  %3828 = vmatmul.bf16.gmra.mxu3 %v3292_v61  ;;  %v5182_v61 = vld [vmem:[#allocation2 + $0x9c] sm:$0xf0] }
 0x23b   : > { %v4876_v5 = vpack.c.bf16 %v3954_v44, %v3953_v54  ;;  %v4049_v62 = vadd.f32 %v3954_v44, %v3953_v54  ;;  %v4088_v15 = vmul.f32 %v3954_v44, %v3954_v44  ;;  %v2890_v54 = vadd.f32 %v6395_v53, %v6109_v13 }
 0x23c   : > { %v6418_v40 = vpop.f32.mrf.mxu1  ;;  %3922 = vmatmul.bf16.gmra.mxu0 %v3461_v36  ;;  %v3789_v29 = vpop.f32.mrf.mxu3  ;;  %v5184_v36 = vor.u32 %v5183_v43, %v5182_v61  ;;  %v2892_v43 = vadd.f32 %v6402_v16, %v6124_v21 }
 0x23d   : > { %4877 = vst [vmem:[%s6415_s10] sm:$0xff] %v4876_v5   ;;  %v4119_v55 = vadd.f32 %v4088_v15, %v4087_v59  ;;  %v3790_v41 = vadd.f32 %v3789_v29, %v3700_v7  ;;  %v3168_v5 = vpack.c.b16 %v3152_v1, %v3152_v1  ;;  %v5056_v1 = vld [vmem:[#allocation2 + $0xa8] sm:$0xf0] }
 0x23e   : > { %v3702_v3 = vpop.f32.mrf.mxu2  ;;  %v3462_v28 = vrot.slane %v5184_v36, 1  ;;  %v3306_v36 = vshrl.u32 %v6420_v34, 16 }
 0x23f   : > { %2933 = vmatmul.bf16.gmra.mxu1 %v1485_v0  ;;  %v3879_v14 = vadd.f32 %v6392_v8, %v3790_v41  ;;  %v6634_v0 = vld [vmem:[#allocation29_spill] sm:$0xff]  ;;  %v3463_v29 = vrot.slane %v3168_v5, 1  ;;  %v3304_v8 = vsel %vm1195_vm11, %v3299_v46, %v3303_v38 }
 0x240   : > { %v5156_v35 = vor.u32 %v5155_v26, %v6634_v0  ;;  %v2895_v0 = vadd.f32 %v6418_v40, %v6153_v17 }
 0x241   : > { %v6426_v10 = vpop.f32.mrf.mxu0  ;;  %v3955_v44 = vadd.f32 %v3879_v14, %v2890_v54  ;;  %v3464_v26 = vsel %vm1452_vm12, %v3462_v28, %v3463_v29  ;;  %v5057_v54 = vld [vmem:[#allocation2 + $0xa8] sm:$0xe]  ;;  %v4993_v28 = vld [vmem:[#allocation2 + $0x90] sm:$0xf0]  ;;  %v4994_v29 = vld [vmem:[#allocation2 + $0x90] sm:$0xe] }
 0x243   : > { %v4050_v59 = vadd.f32 %v4049_v62, %v3955_v44  ;;  %v4089_v7 = vmul.f32 %v3955_v44, %v3955_v44  ;;  %3744 = vmatmul.bf16.gmra.mxu2 %v5035_v57  ;;  %v1486_v62 = vrot.slane %v5156_v35, 1  ;;  %v1487_v57 = vrot.slane %v6102_v6, 1 }
 0x244   : > { %v2896_v15 = vpop.f32.mrf.mxu1  ;;  %v3791_v33 = vpop.f32.mrf.mxu3 }
 0x245   : > { %v4120_v12 = vadd.f32 %v4119_v55, %v4089_v7  ;;  %v3792_v13 = vadd.f32 %v3791_v33, %v3702_v3  ;;  %v3308_v55 = vshll.u32 %v6420_v34, 16  ;;  %v1488_v21 = vsel %vm1452_vm12, %v1486_v62, %v1487_v57 }
 0x246   : > { %v3705_v53 = vpop.f32.mrf.mxu2  ;;  %v4995_v57 = vor.u32 %v4994_v29, %v4993_v28 }
 0x247   : > { %v3881_v61 = vadd.f32 %v6399_v39, %v3792_v13  ;;  %v3009_v39 = vld [vmem:[#allocation2 + $0xb0] sm:$0x1]  ;;  %v3310_v7 = vrot.slane %v3308_v55, 1 }
 0x249   : > { %v6434_v41 = vpop.f32.mrf.mxu0  ;;  %v3956_v45 = vadd.f32 %v3881_v61, %v2892_v43  ;;  %3833 = vmatmul.bf16.gmra.mxu3 %v3304_v8  ;;  %v3311_v8 = vor.u32 %v3310_v7, %v3306_v36 }
 0x24b   : > { %v4881_v3 = vpack.c.bf16 %v3956_v45, %v3955_v44  ;;  %v4051_v38 = vadd.f32 %v4050_v59, %v3956_v45  ;;  %v4090_v46 = vmul.f32 %v3956_v45, %v3956_v45  ;;  %v3313_v44 = vshll.u32 %v3168_v5, 16 }
 0x24c   : > { %v6438_v51 = vpop.f32.mrf.mxu1  ;;  %3927 = vmatmul.bf16.gmra.mxu0 %v3464_v26  ;;  %v3794_v16 = vpop.f32.mrf.mxu3  ;;  %v3153_v59 = vunpack.c.l.b16 %v3009_v39  ;;  %v1489_v39 = vrot.slane %v4995_v57, 1 }
 0x24d   : > { %5062 = vst [vmem:[%s6415_s10 + $0x8] sm:$0xff] %v4881_v3   ;;  %v4121_v6 = vadd.f32 %v4120_v12, %v4090_v46  ;;  %v3795_v56 = vadd.f32 %v3794_v16, %v3705_v53  ;;  %v5058_v12 = vor.u32 %v5057_v54, %v5056_v1  ;;  %v3315_v53 = vrot.slane %v3313_v44, 1  ;;  %v5036_v16 = vld [vmem:[#allocation2 + $0xa8] sm:$0xff]  }
 0x24e   : > { %v3707_v14 = vpop.f32.mrf.mxu2  ;;  %v3169_v43 = vpack.c.b16 %v3153_v59, %v3153_v59  ;;  %v2897_v46 = vadd.f32 %v2896_v15, %v6173_v48  ;;  %v3320_v54 = vshll.u32 %v5036_v16, 16  ;;  %v3010_v15 = vld [vmem:[#allocation2 + $0xbc] sm:$0x1]  ;;  %v3318_v29 = vshrl.u32 %v5036_v16, 16 }
 0x24f   : > { %2938 = vmatmul.bf16.gmra.mxu1 %v1488_v21  ;;  %v3884_v35 = vadd.f32 %v6409_v25, %v3795_v56  ;;  %v3465_v45 = vrot.slane %v5058_v12, 1  ;;  %v3316_v55 = vsel %vm1195_vm11, %v3311_v8, %v3315_v53  ;;  %v3154_v53 = vunpack.c.l.b16 %v3010_v15 }
 0x250   : > { %v3466_v17 = vrot.slane %v3169_v43, 1  ;;  %v3325_v8 = vshll.u32 %v3169_v43, 16 }
 0x251   : > { %v6446_v33 = vpop.f32.mrf.mxu0  ;;  %v3957_v13 = vadd.f32 %v3884_v35, %v2895_v0  ;;  %v5158_v0 = vld [vmem:[#allocation2 + $0x9c] sm:$0xe] }
 0x253   : > { %v4052_v61 = vadd.f32 %v4051_v38, %v3957_v13  ;;  %v4091_v62 = vmul.f32 %v3957_v13, %v3957_v13  ;;  %3749 = vmatmul.bf16.gmra.mxu2 %v6420_v34  ;;  %v1490_v38 = vrot.slane %v6142_v20, 1  ;;  %v3467_v34 = vsel %vm1452_vm12, %v3465_v45, %v3466_v17  ;;  %v5185_v20 = vld [vmem:[#allocation2 + $0xb4] sm:$0xf0] }
 0x254   : > { %v2901_v5 = vpop.f32.mrf.mxu1  ;;  %v3796_v26 = vpop.f32.mrf.mxu3 }
 0x255   : > { %v4122_v40 = vadd.f32 %v4121_v6, %v4091_v62  ;;  %v3797_v25 = vadd.f32 %v3796_v26, %v3707_v14  ;;  %v5186_v6 = vld [vmem:[#allocation2 + $0xb4] sm:$0xe]  ;;  %v1491_v48 = vsel %vm1452_vm12, %v1489_v39, %v1490_v38 }
 0x256   : > { %v3710_v3 = vpop.f32.mrf.mxu2  ;;  %v5187_v26 = vor.u32 %v5186_v6, %v5185_v20 }
 0x257   : > { %v3886_v21 = vadd.f32 %v6426_v10, %v3797_v25  ;;  %v6459_v10 = vld [vmem:[#allocation2 + $0xb4] sm:$0xff]   ;;  %v3327_v25 = vrot.slane %v3325_v8, 1 }
 0x258   : > { %v3468_v39 = vrot.slane %v5187_v26, 1 }
 0x259   : > { %v6453_v56 = vpop.f32.mrf.mxu0  ;;  %v3958_v1 = vadd.f32 %v3886_v21, %v2897_v46  ;;  %3838 = vmatmul.bf16.gmra.mxu3 %v3316_v55  ;;  %v3170_v55 = vpack.c.b16 %v3154_v53, %v3154_v53  ;;  %v5159_v21 = vor.u32 %v5158_v0, %v6161_v49 }
 0x25b   : > { %v4886_v14 = vpack.c.bf16 %v3958_v1, %v3957_v13  ;;  %v4053_v36 = vadd.f32 %v4052_v61, %v3958_v1  ;;  %v4092_v7 = vmul.f32 %v3958_v1, %v3958_v1  ;;  %v3322_v13 = vrot.slane %v3320_v54, 1 }
 0x25c   : > { %v6456_v44 = vpop.f32.mrf.mxu1  ;;  %3932 = vmatmul.bf16.gmra.mxu0 %v3467_v34  ;;  %v3799_v59 = vpop.f32.mrf.mxu3  ;;  %v2900_v61 = vadd.f32 %v6438_v51, %v6183_v52  ;;  %v3469_v38 = vrot.slane %v3170_v55, 1  ;;  %v2902_v1 = vadd.f32 %v2901_v5, %v6196_v2  ;;  %v1492_v54 = vrot.slane %v5159_v21, 1 }
 0x25d   : > { %5063 = vst [vmem:[%s6415_s10 + $0x10] sm:$0xff] %v4886_v14   ;;  %v4123_v35 = vadd.f32 %v4122_v40, %v4092_v7  ;;  %v3800_v28 = vadd.f32 %v3799_v59, %v3710_v3  ;;  %v3323_v17 = vor.u32 %v3322_v13, %v3318_v29  ;;  %v1493_v14 = vrot.slane %v6178_v58, 1 }
 0x25e   : > { %v3712_v12 = vpop.f32.mrf.mxu2  ;;  %v3470_v49 = vsel %vm1452_vm12, %v3468_v39, %v3469_v38  ;;  %v3332_v7 = vshll.u32 %v6459_v10, 16  ;;  %v3337_v8 = vshll.u32 %v3170_v55, 16 }
 0x25f   : > { %2943 = vmatmul.bf16.gmra.mxu1 %v1491_v48  ;;  %v3889_v62 = vadd.f32 %v6434_v41, %v3800_v28  ;;  %v3328_v41 = vsel %vm1195_vm11, %v3323_v17, %v3327_v25  ;;  %v1494_v2 = vsel %vm1452_vm12, %v1492_v54, %v1493_v14  ;;  %v5060_v28 = vld [vmem:[#allocation2 + $0xc0] sm:$0xe]  ;;  %v4997_v17 = vld [vmem:[#allocation2 + $0xa8] sm:$0xe] }
 0x260   : > { %v3334_v13 = vrot.slane %v3332_v7, 1  ;;  %v3339_v21 = vrot.slane %v3337_v8, 1 }
 0x261   : > { %v6465_v57 = vpop.f32.mrf.mxu0  ;;  %v3959_v45 = vadd.f32 %v3889_v62, %v2900_v61  ;;  %v2905_v61 = vadd.f32 %v6456_v44, %v6224_v32 }
 0x263   : > { %v4054_v40 = vadd.f32 %v4053_v36, %v3959_v45  ;;  %v4093_v3 = vmul.f32 %v3959_v45, %v3959_v45  ;;  %3754 = vmatmul.bf16.gmra.mxu2 %v5036_v16 }
 0x264   : > { %v2906_v46 = vpop.f32.mrf.mxu1  ;;  %v3801_v43 = vpop.f32.mrf.mxu3 }
 0x265   : > { %v4124_v34 = vadd.f32 %v4123_v35, %v4093_v3  ;;  %v3802_v52 = vadd.f32 %v3801_v43, %v3712_v12  ;;  %v5059_v35 = vld [vmem:[#allocation2 + $0xc0] sm:$0xf0]  ;;  %v3330_v12 = vshrl.u32 %v6459_v10, 16 }
 0x266   : > { %v3715_v51 = vpop.f32.mrf.mxu2  ;;  %v5061_v25 = vor.u32 %v5060_v28, %v5059_v35  ;;  %v5161_v35 = vld [vmem:[#allocation2 + $0xb4] sm:$0xe] }
 0x267   : > { %v3891_v6 = vadd.f32 %v6446_v33, %v3802_v52  ;;  %v3011_v33 = vld [vmem:[#allocation2 + $0xc8] sm:$0x1]  ;;  %v3335_v3 = vor.u32 %v3334_v13, %v3330_v12 }
 0x268   : > { %v3155_v53 = vunpack.c.l.b16 %v3011_v33 }
 0x269   : > { %v6472_v16 = vpop.f32.mrf.mxu0  ;;  %v3960_v36 = vadd.f32 %v3891_v6, %v2902_v1  ;;  %3843 = vmatmul.bf16.gmra.mxu3 %v3328_v41  ;;  %v3471_v41 = vrot.slane %v5061_v25, 1  ;;  %v2907_v6 = vadd.f32 %v2906_v46, %v6238_v18  ;;  %v3012_v46 = vld [vmem:[#allocation2 + $0xd4] sm:$0x1] }
 0x26a   : > { %v3171_v43 = vpack.c.b16 %v3155_v53, %v3155_v53 }
 0x26b   : > { %v4891_v48 = vpack.c.bf16 %v3960_v36, %v3959_v45  ;;  %v4055_v20 = vadd.f32 %v4054_v40, %v3960_v36  ;;  %v4094_v15 = vmul.f32 %v3960_v36, %v3960_v36  ;;  %v4996_v45 = vld [vmem:[#allocation2 + $0xa8] sm:$0xf0]  ;;  %v5037_v36 = vld [vmem:[#allocation2 + $0xc0] sm:$0xff]  }
 0x26c   : > { %v6476_v59 = vpop.f32.mrf.mxu1  ;;  %3937 = vmatmul.bf16.gmra.mxu0 %v3470_v49  ;;  %v3804_v5 = vpop.f32.mrf.mxu3  ;;  %v3472_v32 = vrot.slane %v3171_v43, 1  ;;  %v1496_v49 = vrot.slane %v6213_v63, 1  ;;  %v5188_v63 = vld [vmem:[#allocation2 + $0xcc] sm:$0xf0]  ;;  %v3342_v12 = vshrl.u32 %v5037_v36, 16  ;;  %v3349_v53 = vshll.u32 %v3171_v43, 16 }
 0x26d   : > { %5064 = vst [vmem:[%s6415_s10 + $0x18] sm:$0xff] %v4891_v48   ;;  %v4125_v58 = vadd.f32 %v4124_v34, %v4094_v15  ;;  %v3805_v0 = vadd.f32 %v3804_v5, %v3715_v51  ;;  %v4998_v34 = vor.u32 %v4997_v17, %v4996_v45  ;;  %v3340_v51 = vsel %vm1195_vm11, %v3335_v3, %v3339_v21 }
 0x26e   : > { %v3717_v29 = vpop.f32.mrf.mxu2  ;;  %v3344_v15 = vshll.u32 %v5037_v36, 16  ;;  %v3351_v21 = vrot.slane %v3349_v53, 1 }
 0x26f   : > { %2948 = vmatmul.bf16.gmra.mxu1 %v1494_v2  ;;  %v3894_v62 = vadd.f32 %v6453_v56, %v3805_v0  ;;  %v1495_v14 = vrot.slane %v4998_v34, 1 }
 0x270   : > { %v3346_v8 = vrot.slane %v3344_v15, 1 }
 0x271   : > { %v6484_v26 = vpop.f32.mrf.mxu0  ;;  %v3961_v40 = vadd.f32 %v3894_v62, %v2905_v61  ;;  %v1497_v18 = vsel %vm1452_vm12, %v1495_v14, %v1496_v49  ;;  %v3156_v61 = vunpack.c.l.b16 %v3012_v46  ;;  %v2910_v62 = vadd.f32 %v6476_v59, %v6251_v24 }
 0x272   : > { %v3347_v3 = vor.u32 %v3346_v8, %v3342_v12 }
 0x273   : > { %v4056_v39 = vadd.f32 %v4055_v20, %v3961_v40  ;;  %v4095_v38 = vmul.f32 %v3961_v40, %v3961_v40  ;;  %3759 = vmatmul.bf16.gmra.mxu2 %v6459_v10  ;;  %v3473_v10 = vsel %vm1452_vm12, %v3471_v41, %v3472_v32  ;;  %v5189_v20 = vld [vmem:[#allocation2 + $0xcc] sm:$0xe]  ;;  %v5162_v41 = vor.u32 %v5161_v35, %v6233_v42 }
 0x274   : > { %v2911_v55 = vpop.f32.mrf.mxu1  ;;  %v3806_v52 = vpop.f32.mrf.mxu3  ;;  %v5190_v25 = vor.u32 %v5189_v20, %v5188_v63  ;;  %v3352_v24 = vsel %vm1195_vm11, %v3347_v3, %v3351_v21 }
 0x275   : > { %v4126_v44 = vadd.f32 %v4125_v58, %v4095_v38  ;;  %v3807_v56 = vadd.f32 %v3806_v52, %v3717_v29  ;;  %v2912_v59 = vadd.f32 %v2911_v55, %v6258_v19 }
 0x276   : > { %v3720_v1 = vpop.f32.mrf.mxu2  ;;  %v3474_v43 = vrot.slane %v5190_v25, 1 }
 0x277   : > { %v3896_v54 = vadd.f32 %v6465_v57, %v3807_v56  ;;  %v6495_v57 = vld [vmem:[#allocation2 + $0xcc] sm:$0xff]  }
 0x279   : > { %v6491_v7 = vpop.f32.mrf.mxu0  ;;  %v3962_v48 = vadd.f32 %v3896_v54, %v2907_v6  ;;  %3848 = vmatmul.bf16.gmra.mxu3 %v3340_v51  ;;  %v1498_v6 = vrot.slane %v5162_v41, 1  ;;  %v1499_v54 = vrot.slane %v6247_v37, 1  ;;  %v3354_v37 = vshrl.u32 %v6495_v57, 16 }
 0x27b   : > { %v4896_v2 = vpack.c.bf16 %v3962_v48, %v3961_v40  ;;  %v4057_v33 = vadd.f32 %v4056_v39, %v3962_v48  ;;  %v4096_v5 = vmul.f32 %v3962_v48, %v3962_v48  ;;  %v3172_v39 = vpack.c.b16 %v3156_v61, %v3156_v61 }
 0x27c   : > { %v2914_v58 = vpop.f32.mrf.mxu1  ;;  %3942 = vmatmul.bf16.gmra.mxu0 %v3473_v10  ;;  %v3809_v0 = vpop.f32.mrf.mxu3 }
 0x27d   : > { %5065 = vst [vmem:[%s6415_s10 + $0x20] sm:$0xff] %v4896_v2   ;;  %v4127_v28 = vadd.f32 %v4126_v44, %v4096_v5  ;;  %v3810_v29 = vadd.f32 %v3809_v0, %v3720_v1  ;;  %v3475_v44 = vrot.slane %v3172_v39, 1  ;;  %v1500_v2 = vsel %vm1452_vm12, %v1498_v6, %v1499_v54 }
 0x27e   : > { %v3722_v13 = vpop.f32.mrf.mxu2  ;;  %v2915_v63 = vadd.f32 %v2914_v58, %v6265_v11 }
 0x27f   : > { %2953 = vmatmul.bf16.gmra.mxu1 %v1497_v18  ;;  %v3899_v45 = vadd.f32 %v6472_v16, %v3810_v29  ;;  %v3476_v49 = vsel %vm1452_vm12, %v3474_v43, %v3475_v44  ;;  %v3361_v18 = vshll.u32 %v3172_v39, 16 }
 0x281   : > { %v3905_v17 = vpop.f32.mrf.mxu0  ;;  %v3963_v40 = vadd.f32 %v3899_v45, %v2910_v62  ;;  %v3363_v29 = vrot.slane %v3361_v18, 1 }
 0x283   : > { %v4058_v38 = vadd.f32 %v4057_v33, %v3963_v40  ;;  %v4097_v34 = vmul.f32 %v3963_v40, %v3963_v40  ;;  %3764 = vmatmul.bf16.gmra.mxu2 %v5037_v36  ;;  %v3356_v36 = vshll.u32 %v6495_v57, 16 }
 0x284   : > { %v2916_v52 = vpop.f32.mrf.mxu1  ;;  %v3811_v32 = vpop.f32.mrf.mxu3 }
 0x285   : > { %v4128_v56 = vadd.f32 %v4127_v28, %v4097_v34  ;;  %v3812_v51 = vadd.f32 %v3811_v32, %v3722_v13  ;;  %v3358_v5 = vrot.slane %v3356_v36, 1  ;;  %v2917_v11 = vadd.f32 %v2916_v52, %v6270_v60 }
 0x286   : > { %v3725_v16 = vpop.f32.mrf.mxu2 }
 0x287   : > { %v3901_v1 = vadd.f32 %v6484_v26, %v3812_v51  ;;  %v3359_v28 = vor.u32 %v3358_v5, %v3354_v37 }
 0x289   : > { %v3908_v14 = vpop.f32.mrf.mxu0  ;;  %v3964_v42 = vadd.f32 %v3901_v1, %v2912_v59  ;;  %3853 = vmatmul.bf16.gmra.mxu3 %v3352_v24  ;;  %v3364_v45 = vsel %vm1195_vm11, %v3359_v28, %v3363_v29 }
 0x28b   : > { %v4901_v10 = vpack.c.bf16 %v3964_v42, %v3963_v40  ;;  %v4059_v48 = vadd.f32 %v4058_v38, %v3964_v42  ;;  %v4098_v20 = vmul.f32 %v3964_v42, %v3964_v42 }
 0x28c   : > { %v2919_v15 = vpop.f32.mrf.mxu1  ;;  %3947 = vmatmul.bf16.gmra.mxu0 %v3476_v49  ;;  %v3814_v19 = vpop.f32.mrf.mxu3 }
 0x28d   : > { %5066 = vst [vmem:[%s6415_s10 + $0x28] sm:$0xff] %v4901_v10   ;;  %v4129_v26 = vadd.f32 %v4128_v56, %v4098_v20  ;;  %v3815_v55 = vadd.f32 %v3814_v19, %v3725_v16  ;;  %v2920_v43 = vadd.f32 %v2919_v15, %v6276_v23 }
 0x28e   : > { %v3727_v33 = vpop.f32.mrf.mxu2 }
 0x28f   : > { %2958 = vmatmul.bf16.gmra.mxu1 %v1500_v2  ;;  %v3904_v46 = vadd.f32 %v6491_v7, %v3815_v55 }
 0x291   : > { %v3910_v0 = vpop.f32.mrf.mxu0  ;;  %v3965_v35 = vadd.f32 %v3904_v46, %v2915_v63 }
 0x293   : > { %v4060_v12 = vadd.f32 %v4059_v48, %v3965_v35  ;;  %v4099_v13 = vmul.f32 %v3965_v35, %v3965_v35  ;;  %3769 = vmatmul.bf16.gmra.mxu2 %v6495_v57 }
 0x294   : > { %v2921_v8 = vpop.f32.mrf.mxu1  ;;  %v3816_v53 = vpop.f32.mrf.mxu3 }
 0x295   : > { %v4130_v61 = vadd.f32 %v4129_v26, %v4099_v13  ;;  %v3817_v62 = vadd.f32 %v3816_v53, %v3727_v33  ;;  %v2922_v6 = vadd.f32 %v2921_v8, %v6282_v50 }
 0x296   : > { %v3730_v25 = vpop.f32.mrf.mxu2 }
 0x297   : > { %v3906_v58 = vadd.f32 %v3905_v17, %v3817_v62 }
 0x299   : > { %v3913_v7 = vpop.f32.mrf.mxu0  ;;  %v3966_v40 = vadd.f32 %v3906_v58, %v2917_v11  ;;  %3858 = vmatmul.bf16.gmra.mxu3 %v3364_v45 }
 0x29b   : > { %v4906_v3 = vpack.c.bf16 %v3966_v40, %v3965_v35  ;;  %v4061_v21 = vadd.f32 %v4060_v12, %v3966_v40  ;;  %v4100_v39 = vmul.f32 %v3966_v40, %v3966_v40 }
 0x29c   : > { %v2924_v38 = vpop.f32.mrf.mxu1  ;;  %v3819_v34 = vpop.f32.mrf.mxu3 }
 0x29d   : > { %5067 = vst [vmem:[%s6415_s10 + $0x30] sm:$0xff] %v4906_v3   ;;  %v4131_v57 = vadd.f32 %v4130_v61, %v4100_v39  ;;  %v3820_v41 = vadd.f32 %v3819_v34, %v3730_v25  ;;  %v2925_v19 = vadd.f32 %v2924_v38, %v6289_v22 }
 0x29e   : > { %v3732_v32 = vpop.f32.mrf.mxu2 }
 0x29f   : > { %v3909_v44 = vadd.f32 %v3908_v14, %v3820_v41 }
 0x2a1   : > { %v3915_v56 = vpop.f32.mrf.mxu0  ;;  %v3967_v51 = vadd.f32 %v3909_v44, %v2920_v43 }
 0x2a3   : > { %v4062_v24 = vadd.f32 %v4061_v21, %v3967_v51  ;;  %v4101_v60 = vmul.f32 %v3967_v51, %v3967_v51 }
 0x2a4   : > { %v2926_v17 = vpop.f32.mrf.mxu1  ;;  %v3821_v52 = vpop.f32.mrf.mxu3 }
 0x2a5   : > { %v4132_v16 = vadd.f32 %v4131_v57, %v4101_v60  ;;  %v3822_v59 = vadd.f32 %v3821_v52, %v3732_v32  ;;  %v2927_v35 = vadd.f32 %v2926_v17, %v6296_v27 }
 0x2a6   : > { %v3735_v1 = vpop.f32.mrf.mxu2 }
 0x2a7   : > { %v3911_v54 = vadd.f32 %v3910_v0, %v3822_v59 }
 0x2a9   : > { %v3918_v49 = vpop.f32.mrf.mxu0  ;;  %v3968_v42 = vadd.f32 %v3911_v54, %v2922_v6 }
 0x2ab   : > { %v4911_v36 = vpack.c.bf16 %v3968_v42, %v3967_v51  ;;  %v4063_v10 = vadd.f32 %v4062_v24, %v3968_v42  ;;  %v4102_v48 = vmul.f32 %v3968_v42, %v3968_v42 }
 0x2ac   : > { %v2929_v23 = vpop.f32.mrf.mxu1  ;;  %v3824_v14 = vpop.f32.mrf.mxu3 }
 0x2ad   : > { %5068 = vst [vmem:[%s6415_s10 + $0x38] sm:$0xff] %v4911_v36   ;;  %v4133_v20 = vadd.f32 %v4132_v16, %v4102_v48  ;;  %v3825_v15 = vadd.f32 %v3824_v14, %v3735_v1  ;;  %v2930_v11 = vadd.f32 %v2929_v23, %v6302_v9 }
 0x2ae   : > { %v3737_v2 = vpop.f32.mrf.mxu2 }
 0x2af   : > { %v3914_v26 = vadd.f32 %v3913_v7, %v3825_v15 }
 0x2b1   : > { %v3920_v55 = vpop.f32.mrf.mxu0  ;;  %v3969_v33 = vadd.f32 %v3914_v26, %v2925_v19 }
 0x2b3   : > { %v4064_v37 = vadd.f32 %v4063_v10, %v3969_v33  ;;  %v4103_v50 = vmul.f32 %v3969_v33, %v3969_v33 }
 0x2b4   : > { %v2931_v5 = vpop.f32.mrf.mxu1  ;;  %v3826_v18 = vpop.f32.mrf.mxu3 }
 0x2b5   : > { %v4134_v63 = vadd.f32 %v4133_v20, %v4103_v50  ;;  %v3827_v46 = vadd.f32 %v3826_v18, %v3737_v2  ;;  %v2932_v41 = vadd.f32 %v2931_v5, %v6309_v31 }
 0x2b6   : > { %v3740_v0 = vpop.f32.mrf.mxu2 }
 0x2b7   : > { %v3916_v28 = vadd.f32 %v3915_v56, %v3827_v46 }
 0x2b9   : > { %v3923_v29 = vpop.f32.mrf.mxu0  ;;  %v3970_v12 = vadd.f32 %v3916_v28, %v2927_v35 }
 0x2bb   : > { %v4916_v13 = vpack.c.bf16 %v3970_v12, %v3969_v33  ;;  %v4065_v8 = vadd.f32 %v4064_v37, %v3970_v12  ;;  %v4104_v53 = vmul.f32 %v3970_v12, %v3970_v12 }
 0x2bc   : > { %v2934_v22 = vpop.f32.mrf.mxu1  ;;  %v3829_v61 = vpop.f32.mrf.mxu3 }
 0x2bd   : > { %5069 = vst [vmem:[%s6415_s10 + $0x40] sm:$0xff] %v4916_v13   ;;  %v4135_v62 = vadd.f32 %v4134_v63, %v4104_v53  ;;  %v3830_v45 = vadd.f32 %v3829_v61, %v3740_v0  ;;  %v2935_v59 = vadd.f32 %v2934_v22, %v6316_v4  ;;  %v6635_v13 = vld [vmem:[#allocation13_spill] sm:$0xff] }
 0x2be   : > { %v3742_v25 = vpop.f32.mrf.mxu2 }
 0x2bf   : > { %v3919_v58 = vadd.f32 %v3918_v49, %v3830_v45 }
 0x2c1   : > { %v3971_v7 = vadd.f32 %v3919_v58, %v2930_v11  ;;  %v3925_v40 = vpop.f32.mrf.mxu0 }
 0x2c3   : > { %v4066_v3 = vadd.f32 %v4065_v8, %v3971_v7  ;;  %v4105_v27 = vmul.f32 %v3971_v7, %v3971_v7 }
 0x2c4   : > { %v2936_v21 = vpop.f32.mrf.mxu1  ;;  %v3831_v39 = vpop.f32.mrf.mxu3 }
 0x2c5   : > { %v4136_v38 = vadd.f32 %v4135_v62, %v4105_v27  ;;  %v3832_v34 = vadd.f32 %v3831_v39, %v3742_v25  ;;  %v2937_v14 = vadd.f32 %v2936_v21, %v6323_v47 }
 0x2c6   : > { %v3745_v57 = vpop.f32.mrf.mxu2 }
 0x2c7   : > { %v3921_v32 = vadd.f32 %v3920_v55, %v3832_v34 }
 0x2c9   : > { %v3972_v43 = vadd.f32 %v3921_v32, %v2932_v41  ;;  %v3928_v60 = vpop.f32.mrf.mxu0 }
 0x2cb   : > { %v4921_v44 = vpack.c.bf16 %v3972_v43, %v3971_v7  ;;  %v4067_v56 = vadd.f32 %v4066_v3, %v3972_v43  ;;  %v4106_v51 = vmul.f32 %v3972_v43, %v3972_v43  ;;  %v6636_v3 = vld [vmem:[#allocation3_spill] sm:$0xff] }
 0x2cc   : > { %v2939_v24 = vpop.f32.mrf.mxu1  ;;  %v3834_v9 = vpop.f32.mrf.mxu3 }
 0x2cd   : > { %5070 = vst [vmem:[%s6415_s10 + $0x48] sm:$0xff] %v4921_v44   ;;  %v4137_v17 = vadd.f32 %v4136_v38, %v4106_v51  ;;  %v3835_v52 = vadd.f32 %v3834_v9, %v3745_v57  ;;  %v2940_v5 = vadd.f32 %v2939_v24, %v6329_v30  ;;  %v6637_v51 = vld [vmem:[#allocation16_spill] sm:$0xff] }
 0x2ce   : > { %v3747_v16 = vpop.f32.mrf.mxu2 }
 0x2cf   : > { %v3924_v1 = vadd.f32 %v3923_v29, %v3835_v52 }
 0x2d1   : > { %v3973_v6 = vadd.f32 %v3924_v1, %v2935_v59  ;;  %v3930_v23 = vpop.f32.mrf.mxu0 }
 0x2d3   : > { %v4068_v54 = vadd.f32 %v4067_v56, %v3973_v6  ;;  %v4107_v49 = vmul.f32 %v3973_v6, %v3973_v6 }
 0x2d4   : > { %v3836_v31 = vpop.f32.mrf.mxu3  ;;  %v2941_v42 = vpop.f32.mrf.mxu1 }
 0x2d5   : > { %v4138_v36 = vadd.f32 %v4137_v17, %v4107_v49  ;;  %v3837_v10 = vadd.f32 %v3836_v31, %v3747_v16  ;;  %v2942_v8 = vadd.f32 %v2941_v42, %v6635_v13  ;;  %v6638_v42 = vld [vmem:[#allocation4_spill] sm:$0xff] }
 0x2d6   : > { %v3750_v48 = vpop.f32.mrf.mxu2 }
 0x2d7   : > { %v3926_v20 = vadd.f32 %v3925_v40, %v3837_v10 }
 0x2d9   : > { %v3974_v15 = vadd.f32 %v3926_v20, %v2937_v14  ;;  %v3933_v63 = vpop.f32.mrf.mxu0 }
 0x2db   : > { %v4926_v2 = vpack.c.bf16 %v3974_v15, %v3973_v6  ;;  %v4069_v19 = vadd.f32 %v4068_v54, %v3974_v15  ;;  %v4108_v26 = vmul.f32 %v3974_v15, %v3974_v15 }
 0x2dc   : > { %v3839_v55 = vpop.f32.mrf.mxu3  ;;  %v2944_v50 = vpop.f32.mrf.mxu1 }
 0x2dd   : > { %5071 = vst [vmem:[%s6415_s10 + $0x50] sm:$0xff] %v4926_v2   ;;  %v4139_v4 = vadd.f32 %v4138_v36, %v4108_v26  ;;  %v3840_v33 = vadd.f32 %v3839_v55, %v3750_v48  ;;  %v2945_v27 = vadd.f32 %v2944_v50, %v6636_v3  ;;  %v6639_v55 = vld [vmem:[#allocation18_spill] sm:$0xff] }
 0x2de   : > { %v3752_v37 = vpop.f32.mrf.mxu2 }
 0x2df   : > { %v3929_v18 = vadd.f32 %v3928_v60, %v3840_v33 }
 0x2e1   : > { %v3975_v46 = vadd.f32 %v3929_v18, %v2940_v5  ;;  %v3935_v62 = vpop.f32.mrf.mxu0 }
 0x2e3   : > { %v4070_v0 = vadd.f32 %v4069_v19, %v3975_v46  ;;  %v4109_v35 = vmul.f32 %v3975_v46, %v3975_v46 }
 0x2e4   : > { %v3841_v47 = vpop.f32.mrf.mxu3  ;;  %v2946_v22 = vpop.f32.mrf.mxu1 }
 0x2e5   : > { %v4140_v28 = vadd.f32 %v4139_v4, %v4109_v35  ;;  %v3842_v29 = vadd.f32 %v3841_v47, %v3752_v37  ;;  %v2947_v24 = vadd.f32 %v2946_v22, %v6637_v51 }
 0x2e6   : > { %v3755_v12 = vpop.f32.mrf.mxu2 }
 0x2e7   : > { %v3931_v53 = vadd.f32 %v3930_v23, %v3842_v29 }
 0x2e9   : > { %v3976_v61 = vadd.f32 %v3931_v53, %v2942_v8  ;;  %v3938_v32 = vpop.f32.mrf.mxu0 }
 0x2eb   : > { %v4931_v45 = vpack.c.bf16 %v3976_v61, %v3975_v46  ;;  %v4071_v25 = vadd.f32 %v4070_v0, %v3976_v61  ;;  %v4110_v11 = vmul.f32 %v3976_v61, %v3976_v61 }
 0x2ec   : > { %v3844_v30 = vpop.f32.mrf.mxu3  ;;  %v2949_v38 = vpop.f32.mrf.mxu1 }
 0x2ed   : > { %5072 = vst [vmem:[%s6415_s10 + $0x58] sm:$0xff] %v4931_v45   ;;  %v4141_v58 = vadd.f32 %v4140_v28, %v4110_v11  ;;  %v3845_v7 = vadd.f32 %v3844_v30, %v3755_v12  ;;  %v2950_v36 = vadd.f32 %v2949_v38, %v6638_v42  ;;  %v6640_v28 = vld [vmem:[#allocation22_spill] sm:$0xff]  ;;  %v6641_v11 = vld [vmem:[#allocation5_spill] sm:$0xff] }
 0x2ee   : > { %v3757_v40 = vpop.f32.mrf.mxu2 }
 0x2ef   : > { %v3934_v21 = vadd.f32 %v3933_v63, %v3845_v7 }
 0x2f1   : > { %v3977_v39 = vadd.f32 %v3934_v21, %v2945_v27  ;;  %v3940_v49 = vpop.f32.mrf.mxu0 }
 0x2f3   : > { %v4072_v34 = vadd.f32 %v4071_v25, %v3977_v39  ;;  %v4111_v57 = vmul.f32 %v3977_v39, %v3977_v39 }
 0x2f4   : > { %v3846_v41 = vpop.f32.mrf.mxu3  ;;  %v2951_v1 = vpop.f32.mrf.mxu1 }
 0x2f5   : > { %v4142_v43 = vadd.f32 %v4141_v58, %v4111_v57  ;;  %v3847_v44 = vadd.f32 %v3846_v41, %v3757_v40  ;;  %v2952_v4 = vadd.f32 %v2951_v1, %v6639_v55  ;;  %v6643_v1 = vld [vmem:[#allocation6_spill] sm:$0xff] }
 0x2f6   : > { %v3760_v56 = vpop.f32.mrf.mxu2 }
 0x2f7   : > { %v3936_v9 = vadd.f32 %v3935_v62, %v3847_v44 }
 0x2f9   : > { %v3978_v60 = vadd.f32 %v3936_v9, %v2947_v24  ;;  %v3943_v37 = vpop.f32.mrf.mxu0 }
 0x2fb   : > { %v4936_v17 = vpack.c.bf16 %v3978_v60, %v3977_v39  ;;  %v4073_v52 = vadd.f32 %v4072_v34, %v3978_v60  ;;  %v4112_v16 = vmul.f32 %v3978_v60, %v3978_v60 }
 0x2fc   : > { %v3849_v59 = vpop.f32.mrf.mxu3  ;;  %v2954_v19 = vpop.f32.mrf.mxu1 }
 0x2fd   : > { %5073 = vst [vmem:[%s6415_s10 + $0x60] sm:$0xff] %v4936_v17   ;;  %v4143_v6 = vadd.f32 %v4142_v43, %v4112_v16  ;;  %v3850_v54 = vadd.f32 %v3849_v59, %v3760_v56  ;;  %v2955_v29 = vadd.f32 %v2954_v19, %v6640_v28 }
 0x2fe   : > { %v3762_v31 = vpop.f32.mrf.mxu2 }
 0x2ff   : > { %v3939_v10 = vadd.f32 %v3938_v32, %v3850_v54  ;;  %v6642_v32 = vld [vmem:[#allocation25_spill] sm:$0xff] }
 0x301   : > { %v3979_v48 = vadd.f32 %v3939_v10, %v2950_v36  ;;  %v3945_v53 = vpop.f32.mrf.mxu0 }
 0x303   : > { %v4074_v23 = vadd.f32 %v4073_v52, %v3979_v48  ;;  %v4113_v14 = vmul.f32 %v3979_v48, %v3979_v48 }
 0x304   : > { %v3851_v20 = vpop.f32.mrf.mxu3  ;;  %v2956_v13 = vpop.f32.mrf.mxu1 }
 0x305   : > { %v4144_v15 = vadd.f32 %v4143_v6, %v4113_v14  ;;  %v3852_v2 = vadd.f32 %v3851_v20, %v3762_v31  ;;  %v2957_v30 = vadd.f32 %v2956_v13, %v6641_v11 }
 0x306   : > { %v3765_v26 = vpop.f32.mrf.mxu2 }
 0x307   : > { %v3941_v33 = vadd.f32 %v3940_v49, %v3852_v2 }
 0x309   : > { %v3980_v50 = vadd.f32 %v3941_v33, %v2952_v4  ;;  %v3948_v38 = vpop.f32.mrf.mxu0 }
 0x30b   : > { %v4941_v5 = vpack.c.bf16 %v3980_v50, %v3979_v48  ;;  %v4075_v18 = vadd.f32 %v4074_v23, %v3980_v50  ;;  %v4114_v63 = vmul.f32 %v3980_v50, %v3980_v50 }
 0x30c   : > { %v3854_v46 = vpop.f32.mrf.mxu3  ;;  %v2959_v3 = vpop.f32.mrf.mxu1 }
 0x30d   : > { %5074 = vst [vmem:[%s6415_s10 + $0x68] sm:$0xff] %v4941_v5   ;;  %v4145_v0 = vadd.f32 %v4144_v15, %v4114_v63  ;;  %v3855_v35 = vadd.f32 %v3854_v46, %v3765_v26  ;;  %v2960_v43 = vadd.f32 %v2959_v3, %v6642_v32 }
 0x30e   : > { %v3767_v47 = vpop.f32.mrf.mxu2 }
 0x30f   : > { %v3944_v12 = vadd.f32 %v3943_v37, %v3855_v35 }
 0x311   : > { %v3981_v8 = vadd.f32 %v3944_v12, %v2955_v29  ;;  %v3950_v59 = vpop.f32.mrf.mxu0 }
 0x313   : > { %v4076_v22 = vadd.f32 %v4075_v18, %v3981_v8  ;;  %v4115_v61 = vmul.f32 %v3981_v8, %v3981_v8 }
 0x314   : > { %v3856_v62 = vpop.f32.mrf.mxu3  ;;  %v2961_v60 = vpop.f32.mrf.mxu1 }
 0x315   : > { %v4146_v45 = vadd.f32 %v4145_v0, %v4115_v61  ;;  %v3857_v25 = vadd.f32 %v3856_v62, %v3767_v47  ;;  %v2962_v6 = vadd.f32 %v2961_v60, %v6643_v1 }
 0x316   : > { %v3770_v7 = vpop.f32.mrf.mxu2 }
 0x317   : > { %v3946_v58 = vadd.f32 %v3945_v53, %v3857_v25 }
 0x319   : > { %v3982_v40 = vadd.f32 %v3946_v58, %v2957_v30 }
 0x31b   : > { %v4946_v27 = vpack.c.bf16 %v3982_v40, %v3981_v8  ;;  %v4077_v21 = vadd.f32 %v4076_v22, %v3982_v40  ;;  %v4116_v39 = vmul.f32 %v3982_v40, %v3982_v40 }
 0x31c   : > { %v3859_v34 = vpop.f32.mrf.mxu3 }
 0x31d   : > { %5075 = vst [vmem:[%s6415_s10 + $0x70] sm:$0xff] %v4946_v27   ;;  %v4147_v57 = vadd.f32 %v4146_v45, %v4116_v39  ;;  %v3860_v41 = vadd.f32 %v3859_v34, %v3770_v7 }
 0x31e   : > { %v3772_v51 = vpop.f32.mrf.mxu2 }
 0x31f   : > { %v3949_v44 = vadd.f32 %v3948_v38, %v3860_v41 }
 0x321   : > { %v3983_v56 = vadd.f32 %v3949_v44, %v2960_v43 }
 0x323   : > { %v4078_v24 = vadd.f32 %v4077_v21, %v3983_v56  ;;  %v4117_v9 = vmul.f32 %v3983_v56, %v3983_v56 }
 0x324   : > { %v3861_v17 = vpop.f32.mrf.mxu3 }
 0x325   : > { %v4148_v52 = vadd.f32 %v4147_v57, %v4117_v9  ;;  %v3862_v16 = vadd.f32 %v3861_v17, %v3772_v51 }
 0x327   : > { %v3951_v54 = vadd.f32 %v3950_v59, %v3862_v16 }
 0x329   : > { %v3984_v49 = vadd.f32 %v3951_v54, %v2962_v6 }
 0x32b   : > { %v4951_v31 = vpack.c.bf16 %v3984_v49, %v3983_v56  ;;  %v4079_v42 = vadd.f32 %v4078_v24, %v3984_v49  ;;  %v4118_v36 = vmul.f32 %v3984_v49, %v3984_v49 }
 0x32d   : > { %5076 = vst [vmem:[%s6415_s10 + $0x78] sm:$0xff] %v4951_v31   ;;  %v4080_v10 = vrot.slane %v4079_v42, 4  ;;  %v4149_v48 = vadd.f32 %v4148_v52, %v4118_v36 }
 0x32f   : > { %v4081_v23 = vadd.f32 %v4080_v10, %v4079_v42  ;;  %v4150_v14 = vrot.slane %v4149_v48, 4 }
 0x331   : > { %v4082_v20 = vrot.slane %v4081_v23, 2  ;;  %v4151_v15 = vadd.f32 %v4150_v14, %v4149_v48 }
 0x333   : > { %v4083_v2 = vadd.f32 %v4082_v20, %v4081_v23  ;;  %v4152_v19 = vrot.slane %v4151_v15, 2 }
 0x335   : > { %v4084_v26 = vrot.slane %v4083_v2, 1  ;;  %v4153_v55 = vadd.f32 %v4152_v19, %v4151_v15 }
 0x337   : > { %v4085_v4 = vadd.f32 %v4084_v26, %v4083_v2  ;;  %v4154_v33 = vrot.slane %v4153_v55, 1 }
 0x339   : > { %4086 = vst [vmem:[%s263_s14] sm:$0x1] %v4085_v4  ;;  %v4155_v37 = vadd.f32 %v4154_v33, %v4153_v55 }
 0x33b   : > { %4156 = vst [vmem:[%s263_s14 + $0x1] sm:$0x1] %v4155_v37 }
 0x33c PF: > { %s17_s21 = sadd.s32 1, %s5193_s21  }
 0x33d   : > { %p14_p5 = scmp.ge.s32.totalorder %s17_s21, 4  }
 0x33f   :  { %16 = sbr.rel (!%p14_p5) target bundleno = 1 (0x1), region = 87 }

</bundles_post_ra>
